<compile_context>
chip_gen: v5e
topology: v5e:2x2
jax: 0.10.0
libtpu: 0.0.40
codegen_flags: <defaults>
</compile_context>

<pallas_src>
import functools
import math

import jax
import jax.numpy as jnp
from jax.experimental import pallas as pl
from jax.experimental.pallas import tpu as pltpu


def _round_up(x, m):
    return (x + m - 1) // m * m


def _vmem_capacity_bytes():
    try:
        return int(pltpu.get_tpu_info().vmem_capacity_bytes)
    except Exception:
        return 128 * 1024 * 1024


def bigru_layer_kernel(x_ref, wih_ref, whh_ref, bgi_ref, bhn_ref, h0_ref,
                       out_ref, hT_ref, gi_ref):
    """One bidirectional GRU layer, both directions fused.

    x_ref:   (T, B, I)   bf16  time-major layer input
    wih_ref: (I, 6H)     bf16  [W_ih_fwd | W_ih_bwd], gate order r|z|n
    whh_ref: (2, H, 3H)  bf16  per-direction hidden weights
    bgi_ref: (1, 6H)     f32   b_ih + [b_hr, b_hz, 0] per direction (prefolded)
    bhn_ref: (1, 2H)     f32   [b_hn_fwd | b_hn_bwd] (stays separate: * r)
    h0_ref:  (2, B, H)   f32   initial hidden per direction
    out_ref: (T, B, 2H)        out[t,:, :H]=fwd hidden, out[t,:, H:]=bwd hidden
    hT_ref:  (2, B, H)   f32   final hidden per direction
    gi_ref:  (T, B, 6H)  bf16  VMEM scratch: staged input projections (no bias)
    """
    T, B, I = x_ref.shape
    H = h0_ref.shape[-1]
    H3 = 3 * H

    # ---- precompute: input projections for BOTH directions, chunked over T --
    # (tc*B, I) @ (I, 6H) on the MXU, bf16 operands, f32 accumulate, stored
    # bf16 directly into gi_ref (no full-size f32 transient).
    wih = wih_ref[...]                                   # (I, 6H) bf16
    tc = max(1, min(T, 512 // B))                        # ~<=512 rows per chunk
    for t0 in range(0, T, tc):
        tcur = min(tc, T - t0)
        xc = x_ref[pl.ds(t0, tcur)]                      # (tcur, B, I) bf16
        gi = jax.lax.dot_general(
            xc.reshape(tcur * B, I), wih,
            dimension_numbers=(((1,), (0,)), ((), ())),
            preferred_element_type=jnp.float32,
        )
        gi_ref[pl.ds(t0, tcur)] = gi.reshape(tcur, B, 2 * H3).astype(jnp.bfloat16)

    # ---- hoisted loop invariants -------------------------------------------
    whh_f = whh_ref[0]                                   # (H, 3H) bf16
    whh_b = whh_ref[1]                                   # (H, 3H) bf16
    bgi_f = jnp.broadcast_to(bgi_ref[:, pl.ds(0, H3)], (B, H3))    # f32
    bgi_b = jnp.broadcast_to(bgi_ref[:, pl.ds(H3, H3)], (B, H3))   # f32
    bhn_f = jnp.broadcast_to(bhn_ref[:, pl.ds(0, H)], (B, H))      # f32
    bhn_b = jnp.broadcast_to(bhn_ref[:, pl.ds(H, H)], (B, H))      # f32

    def sigmoid(u):
        # 0.5*(tanh(0.5*u)+1): one EUP op instead of exp + reciprocal.
        return 0.5 * jnp.tanh(0.5 * u) + 0.5

    def step(t, carry):
        h_f, h_b = carry
        rt = T - 1 - t                              # backward direction's step

        # Load only the needed (B, 3H) half per direction; add bias in f32.
        gif = gi_ref[pl.ds(t, 1), :, pl.ds(0, H3)].reshape(B, H3)
        gib = gi_ref[pl.ds(rt, 1), :, pl.ds(H3, H3)].reshape(B, H3)
        gif = gif.astype(jnp.float32) + bgi_f
        gib = gib.astype(jnp.float32) + bgi_b

        # Recurrent matmuls: bf16 operands, f32 accumulate.
        gh_f = jnp.dot(h_f.astype(jnp.bfloat16), whh_f,
                       preferred_element_type=jnp.float32)
        gh_b = jnp.dot(h_b.astype(jnp.bfloat16), whh_b,
                       preferred_element_type=jnp.float32)

        # forward direction (gate order r|z|n, matches PyTorch GRU)
        r_f = sigmoid(gif[:, :H] + gh_f[:, :H])
        z_f = sigmoid(gif[:, H:2 * H] + gh_f[:, H:2 * H])
        n_f = jnp.tanh(gif[:, 2 * H:] + r_f * (gh_f[:, 2 * H:] + bhn_f))
        h_f = (1.0 - z_f) * n_f + z_f * h_f

        # backward direction
        r_b = sigmoid(gib[:, :H] + gh_b[:, :H])
        z_b = sigmoid(gib[:, H:2 * H] + gh_b[:, H:2 * H])
        n_b = jnp.tanh(gib[:, 2 * H:] + r_b * (gh_b[:, 2 * H:] + bhn_b))
        h_b = (1.0 - z_b) * n_b + z_b * h_b

        # Contiguous (B, H) stores at static lane offsets 0 / H (H % 128 == 0
        # by construction -> unmasked vst).
        out_ref[pl.ds(t, 1), :, pl.ds(0, H)] = h_f[None].astype(out_ref.dtype)
        out_ref[pl.ds(rt, 1), :, pl.ds(H, H)] = h_b[None].astype(out_ref.dtype)
        return h_f, h_b

    h_f = h0_ref[0]
    h_b = h0_ref[1]
    if T <= 16:
        # Modest static unroll: straight-line code without blowing the vreg file.
        for t in range(T):
            h_f, h_b = step(t, (h_f, h_b))
    else:
        h_f, h_b = jax.lax.fori_loop(0, T, step, (h_f, h_b), unroll=2)

    hT_ref[0, :, :] = h_f
    hT_ref[1, :, :] = h_b


def run_bigru_layer(x_tm, wih, whh, bgi, bhn, h0, *, out_dtype):
    """x_tm: (T, B, I) time-major bf16. Returns ((T, B, 2H), (2, B, H) f32)."""
    T, B, _ = x_tm.shape
    H = h0.shape[-1]
    vmem = pl.BlockSpec(memory_space=pltpu.MemorySpace.VMEM)

    out_itemsize = 4 if out_dtype == jnp.float32 else 2

    def nbytes(a):
        return int(a.size) * int(a.dtype.itemsize)

    in_bytes = sum(nbytes(a) for a in (x_tm, wih, whh, bgi, bhn, h0))
    gi_bytes = T * B * 6 * H * 2                     # bf16 scratch
    out_bytes = T * B * 2 * H * out_itemsize + 2 * B * H * 4
    vmem_bytes = int(1.5 * (in_bytes + gi_bytes + out_bytes)) + (4 << 20)
    vmem_bytes = max(vmem_bytes, 16 * 1024 * 1024)
    # Cap at physical capacity minus headroom for Mosaic internal scratch.
    cap = max(_vmem_capacity_bytes() - (16 << 20), 16 * 1024 * 1024)
    vmem_bytes = min(vmem_bytes, cap)

    return pl.pallas_call(
        bigru_layer_kernel,
        out_shape=(
            jax.ShapeDtypeStruct((T, B, 2 * H), out_dtype),
            jax.ShapeDtypeStruct((2, B, H), jnp.float32),
        ),
        in_specs=[vmem] * 6,
        out_specs=(vmem, vmem),
        scratch_shapes=[pltpu.VMEM((T, B, 6 * H), jnp.bfloat16)],
        compiler_params=pltpu.CompilerParams(vmem_limit_bytes=vmem_bytes),
    )(x_tm, wih, whh, bgi, bhn, h0)


def init_params(key, input_size, hidden_size, n_layers):
    """nn.GRU-equivalent init (U(-1/sqrt(H), 1/sqrt(H))), stored fused and
    zero-padded to H_pad = round_up(H, 128). Weights stored bf16 (MXU operands);
    biases stay f32."""
    H = hidden_size
    Hp = _round_up(H, 128)
    k = 1.0 / math.sqrt(H)
    params = []
    for layer in range(n_layers):
        in_dim = input_size if layer == 0 else 2 * H
        in_dim_p = input_size if layer == 0 else 2 * Hp
        wih_p = jnp.zeros((in_dim_p, 6 * Hp), jnp.float32)
        whh_p = jnp.zeros((2, Hp, 3 * Hp), jnp.float32)
        bgi_p = jnp.zeros((1, 6 * Hp), jnp.float32)
        bhn_p = jnp.zeros((1, 2 * Hp), jnp.float32)

        # Where the logical input rows live inside the padded input feature dim.
        if layer == 0:
            row_blocks = [(0, 0, in_dim)]              # (dst_row, src_row, count)
        else:
            row_blocks = [(0, 0, H), (Hp, H, H)]       # prev fwd / prev bwd halves

        for d in range(2):                             # 0: forward, 1: backward
            key, k1, k2, k3, k4 = jax.random.split(key, 5)
            wih = jax.random.uniform(k1, (in_dim, 3 * H), jnp.float32, -k, k)
            whh = jax.random.uniform(k2, (H, 3 * H), jnp.float32, -k, k)
            bih = jax.random.uniform(k3, (3 * H,), jnp.float32, -k, k)
            bhh = jax.random.uniform(k4, (3 * H,), jnp.float32, -k, k)
            # Fold b_hh's r/z parts into the input-projection bias.
            bgi = bih + jnp.concatenate(
                [bhh[:2 * H], jnp.zeros((H,), jnp.float32)])
            bhn = bhh[2 * H:]

            for g in range(3):                         # gate order r | z | n
                cp = d * 3 * Hp + g * Hp               # padded gate column start
                cs = g * H                             # logical gate column start
                for (dr, sr, cnt) in row_blocks:
                    wih_p = wih_p.at[dr:dr + cnt, cp:cp + H].set(
                        wih[sr:sr + cnt, cs:cs + H])
                whh_p = whh_p.at[d, :H, g * Hp:g * Hp + H].set(whh[:, cs:cs + H])
                bgi_p = bgi_p.at[0, cp:cp + H].set(bgi[cs:cs + H])
            bhn_p = bhn_p.at[0, d * Hp:d * Hp + H].set(bhn)

        params.append(dict(
            wih=wih_p.astype(jnp.bfloat16),            # (in_dim_p, 6*Hp)
            whh=whh_p.astype(jnp.bfloat16),            # (2, Hp, 3*Hp)
            bgi=bgi_p,                                 # (1, 6*Hp) f32
            bhn=bhn_p,                                 # (1, 2*Hp) f32
        ))
    return params


def encoder_forward(x, params, hidden=None, *, hidden_size, n_layers):
    """Matches Encoder.forward: returns (out_fwd + out_bwd, hidden)."""
    B, T, _ = x.shape
    H = hidden_size
    Hp = params[0]["whh"].shape[1]          # padded hidden size (multiple of 128)
    Bp = _round_up(max(B, 1), 8)            # padded batch (multiple of 8)

    hidden_p = jnp.zeros((n_layers * 2, Bp, Hp), jnp.float32)
    if hidden is not None:
        hidden_p = hidden_p.at[:, :B, :H].set(hidden)

    # Time-major, batch-padded, bf16 layer input.
    x_tm = jnp.transpose(x, (1, 0, 2))                         # (T, B, I)
    if Bp != B:
        x_tm = jnp.pad(x_tm, ((0, 0), (0, Bp - B), (0, 0)))
    layer_in = x_tm.astype(jnp.bfloat16)

    finals = []
    for layer in range(n_layers):
        p = params[layer]
        h0 = jnp.stack([hidden_p[2 * layer], hidden_p[2 * layer + 1]], axis=0)
        last = layer == n_layers - 1
        out_tm, hT = run_bigru_layer(
            layer_in, p["wih"], p["whh"], p["bgi"], p["bhn"], h0,
            out_dtype=jnp.float32 if last else jnp.bfloat16)
        finals.append(hT[:, :B, :H])        # (2, B, H) = [fwd, bwd], unpadded
        layer_in = out_tm                   # (T, Bp, 2Hp) feeds next layer
        # (eval mode: inter-layer dropout is a no-op)

    out_sum_tm = (layer_in[:, :B, :H].astype(jnp.float32)
                  + layer_in[:, :B, Hp:Hp + H].astype(jnp.float32))  # (T, B, H)
    outputs = jnp.transpose(out_sum_tm, (1, 0, 2))                   # (B, T, H)
    hidden_out = jnp.concatenate(finals, axis=0)                     # (2*n_layers, B, H)
    return outputs, hidden_out


if __name__ == "__main__":
    B, T = 2, 8
    input_size, hidden_size, n_layers = 16, 32, 2

    key = jax.random.PRNGKey(0)
    kp, kx = jax.random.split(key)
    params = init_params(kp, input_size, hidden_size, n_layers)
    x = jax.random.normal(kx, (B, T, input_size), jnp.float32)

    forward = jax.jit(functools.partial(
        encoder_forward, hidden_size=hidden_size, n_layers=n_layers))
    outputs, hidden = forward(x, params)
    jax.block_until_ready((outputs, hidden))

    assert outputs.shape == (B, T, hidden_size)
    assert hidden.shape == (n_layers * 2, B, hidden_size)
    assert bool(jnp.all(jnp.isfinite(outputs))) and bool(jnp.all(jnp.isfinite(hidden)))
    print("KERNEL_OK")
</pallas_src>

<mosaic_0001>
module attributes {stable_mosaic.version = 11 : i64} {
  func.func @bigru_layer_kernel(%arg0: memref<8x8x16xbf16, #tpu.memory_space<vmem>>, %arg1: memref<16x768xbf16, #tpu.memory_space<vmem>>, %arg2: memref<2x128x384xbf16, #tpu.memory_space<vmem>>, %arg3: memref<1x768xf32, #tpu.memory_space<vmem>>, %arg4: memref<1x256xf32, #tpu.memory_space<vmem>>, %arg5: memref<2x8x128xf32, #tpu.memory_space<vmem>>, %arg6: memref<8x8x256xbf16, #tpu.memory_space<vmem>>, %arg7: memref<2x8x128xf32, #tpu.memory_space<vmem>>, %arg8: memref<8x8x768xbf16, #tpu.memory_space<vmem>>) attributes {dimension_semantics = [], scalar_prefetch = 0 : i64, scratch_operands = 1 : i64, tpu.core_type = #tpu.core_type<tc>} {
    %c0 = arith.constant 0 : index
    %c0_0 = arith.constant 0 : index
    %0 = vector.load %arg1[%c0, %c0_0] : memref<16x768xbf16, #tpu.memory_space<vmem>>, vector<16x768xbf16>
    %c0_1 = arith.constant 0 : index
    %c0_2 = arith.constant 0 : index
    %c0_3 = arith.constant 0 : index
    %1 = vector.load %arg0[%c0_1, %c0_2, %c0_3] : memref<8x8x16xbf16, #tpu.memory_space<vmem>>, vector<8x8x16xbf16>
    %2 = vector.shape_cast %1 : vector<8x8x16xbf16> to vector<64x16xbf16>
    %cst = arith.constant dense<0.000000e+00> : vector<64x768xf32>
    %3 = tpu.matmul %2, %0, %cst {dimension_numbers = #tpu.dot_dimension_numbers<[1], [0], [0], [1], [0, 0, 1, 1], [], []>} : vector<64x16xbf16>, vector<16x768xbf16>, vector<64x768xf32> -> vector<64x768xf32>
    %4 = vector.shape_cast %3 : vector<64x768xf32> to vector<8x8x768xf32>
    %5 = arith.truncf %4 : vector<8x8x768xf32> to vector<8x8x768xbf16>
    %c0_4 = arith.constant 0 : index
    %c0_5 = arith.constant 0 : index
    %c0_6 = arith.constant 0 : index
    %6 = vector.load %arg8[%c0_4, %c0_5, %c0_6] : memref<8x8x768xbf16, #tpu.memory_space<vmem>>, vector<8x8x768xbf16>
    tpu.vector_store %arg8[%c0_4, %c0_5, %c0_6], %5 {strides = array<i32>} : memref<8x8x768xbf16, #tpu.memory_space<vmem>>, vector<8x8x768xbf16>,
    %c0_7 = arith.constant 0 : index
    %c0_8 = arith.constant 0 : index
    %c0_9 = arith.constant 0 : index
    %7 = vector.load %arg2[%c0_7, %c0_8, %c0_9] : memref<2x128x384xbf16, #tpu.memory_space<vmem>>, vector<1x128x384xbf16>
    %8 = vector.shape_cast %7 : vector<1x128x384xbf16> to vector<128x384xbf16>
    %c1 = arith.constant 1 : index
    %c0_10 = arith.constant 0 : index
    %c0_11 = arith.constant 0 : index
    %9 = vector.load %arg2[%c1, %c0_10, %c0_11] : memref<2x128x384xbf16, #tpu.memory_space<vmem>>, vector<1x128x384xbf16>
    %10 = vector.shape_cast %9 : vector<1x128x384xbf16> to vector<128x384xbf16>
    %c0_12 = arith.constant 0 : index
    %c0_13 = arith.constant 0 : index
    %11 = vector.load %arg3[%c0_12, %c0_13] : memref<1x768xf32, #tpu.memory_space<vmem>>, vector<1x384xf32>
    %12 = vector.shape_cast %11 : vector<1x384xf32> to vector<1x384xf32>
    %13 = vector.broadcast %12 : vector<1x384xf32> to vector<8x384xf32>
    %c0_14 = arith.constant 0 : index
    %c384 = arith.constant 384 : index
    %14 = vector.load %arg3[%c0_14, %c384] : memref<1x768xf32, #tpu.memory_space<vmem>>, vector<1x384xf32>
    %15 = vector.shape_cast %14 : vector<1x384xf32> to vector<1x384xf32>
    %16 = vector.broadcast %15 : vector<1x384xf32> to vector<8x384xf32>
    %c0_15 = arith.constant 0 : index
    %c0_16 = arith.constant 0 : index
    %17 = vector.load %arg4[%c0_15, %c0_16] : memref<1x256xf32, #tpu.memory_space<vmem>>, vector<1x128xf32>
    %18 = vector.shape_cast %17 : vector<1x128xf32> to vector<1x128xf32>
    %19 = vector.broadcast %18 : vector<1x128xf32> to vector<8x128xf32>
    %c0_17 = arith.constant 0 : index
    %c128 = arith.constant 128 : index
    %20 = vector.load %arg4[%c0_17, %c128] : memref<1x256xf32, #tpu.memory_space<vmem>>, vector<1x128xf32>
    %21 = vector.shape_cast %20 : vector<1x128xf32> to vector<1x128xf32>
    %22 = vector.broadcast %21 : vector<1x128xf32> to vector<8x128xf32>
    %c0_18 = arith.constant 0 : index
    %c0_19 = arith.constant 0 : index
    %c0_20 = arith.constant 0 : index
    %23 = vector.load %arg5[%c0_18, %c0_19, %c0_20] : memref<2x8x128xf32, #tpu.memory_space<vmem>>, vector<1x8x128xf32>
    %24 = vector.shape_cast %23 : vector<1x8x128xf32> to vector<8x128xf32>
    %c1_21 = arith.constant 1 : index
    %c0_22 = arith.constant 0 : index
    %c0_23 = arith.constant 0 : index
    %25 = vector.load %arg5[%c1_21, %c0_22, %c0_23] : memref<2x8x128xf32, #tpu.memory_space<vmem>>, vector<1x8x128xf32>
    %26 = vector.shape_cast %25 : vector<1x8x128xf32> to vector<8x128xf32>
    %c0_24 = arith.constant 0 : index
    %c0_25 = arith.constant 0 : index
    %c0_26 = arith.constant 0 : index
    %27 = vector.load %arg8[%c0_24, %c0_25, %c0_26] : memref<8x8x768xbf16, #tpu.memory_space<vmem>>, vector<1x8x384xbf16>
    %28 = vector.shape_cast %27 : vector<1x8x384xbf16> to vector<8x384xbf16>
    %c7 = arith.constant 7 : index
    %c0_27 = arith.constant 0 : index
    %c384_28 = arith.constant 384 : index
    %29 = vector.load %arg8[%c7, %c0_27, %c384_28] : memref<8x8x768xbf16, #tpu.memory_space<vmem>>, vector<1x8x384xbf16>
    %30 = vector.shape_cast %29 : vector<1x8x384xbf16> to vector<8x384xbf16>
    %31 = arith.extf %28 : vector<8x384xbf16> to vector<8x384xf32>
    %32 = arith.addf %31, %13 : vector<8x384xf32>
    %33 = arith.extf %30 : vector<8x384xbf16> to vector<8x384xf32>
    %34 = arith.addf %33, %16 : vector<8x384xf32>
    %35 = arith.truncf %24 : vector<8x128xf32> to vector<8x128xbf16>
    %cst_29 = arith.constant dense<0.000000e+00> : vector<8x384xf32>
    %36 = tpu.matmul %35, %8, %cst_29 {dimension_numbers = #tpu.dot_dimension_numbers<[1], [0], [0], [1], [0, 0, 1, 1], [], []>} : vector<8x128xbf16>, vector<128x384xbf16>, vector<8x384xf32> -> vector<8x384xf32>
    %37 = arith.truncf %26 : vector<8x128xf32> to vector<8x128xbf16>
    %cst_30 = arith.constant dense<0.000000e+00> : vector<8x384xf32>
    %38 = tpu.matmul %37, %10, %cst_30 {dimension_numbers = #tpu.dot_dimension_numbers<[1], [0], [0], [1], [0, 0, 1, 1], [], []>} : vector<8x128xbf16>, vector<128x384xbf16>, vector<8x384xf32> -> vector<8x384xf32>
    %39 = vector.extract_strided_slice %32 {offsets = [0, 0], sizes = [8, 128], strides = [1, 1]} : vector<8x384xf32> to vector<8x128xf32>
    %40 = vector.extract_strided_slice %36 {offsets = [0, 0], sizes = [8, 128], strides = [1, 1]} : vector<8x384xf32> to vector<8x128xf32>
    %41 = arith.addf %39, %40 : vector<8x128xf32>
    %cst_31 = arith.constant 5.000000e-01 : f32
    %42 = vector.broadcast %cst_31 : f32 to vector<8x128xf32>
    %43 = arith.mulf %42, %41 : vector<8x128xf32>
    %44 = math.tanh %43 : vector<8x128xf32>
    %cst_32 = arith.constant 5.000000e-01 : f32
    %45 = vector.broadcast %cst_32 : f32 to vector<8x128xf32>
    %46 = arith.mulf %45, %44 : vector<8x128xf32>
    %cst_33 = arith.constant 5.000000e-01 : f32
    %47 = vector.broadcast %cst_33 : f32 to vector<8x128xf32>
    %48 = arith.addf %46, %47 : vector<8x128xf32>
    %49 = vector.extract_strided_slice %32 {offsets = [0, 128], sizes = [8, 128], strides = [1, 1]} : vector<8x384xf32> to vector<8x128xf32>
    %50 = vector.extract_strided_slice %36 {offsets = [0, 128], sizes = [8, 128], strides = [1, 1]} : vector<8x384xf32> to vector<8x128xf32>
    %51 = arith.addf %49, %50 : vector<8x128xf32>
    %cst_34 = arith.constant 5.000000e-01 : f32
    %52 = vector.broadcast %cst_34 : f32 to vector<8x128xf32>
    %53 = arith.mulf %52, %51 : vector<8x128xf32>
    %54 = math.tanh %53 : vector<8x128xf32>
    %cst_35 = arith.constant 5.000000e-01 : f32
    %55 = vector.broadcast %cst_35 : f32 to vector<8x128xf32>
    %56 = arith.mulf %55, %54 : vector<8x128xf32>
    %cst_36 = arith.constant 5.000000e-01 : f32
    %57 = vector.broadcast %cst_36 : f32 to vector<8x128xf32>
    %58 = arith.addf %56, %57 : vector<8x128xf32>
    %59 = vector.extract_strided_slice %32 {offsets = [0, 256], sizes = [8, 128], strides = [1, 1]} : vector<8x384xf32> to vector<8x128xf32>
    %60 = vector.extract_strided_slice %36 {offsets = [0, 256], sizes = [8, 128], strides = [1, 1]} : vector<8x384xf32> to vector<8x128xf32>
    %61 = arith.addf %60, %19 : vector<8x128xf32>
    %62 = arith.mulf %48, %61 : vector<8x128xf32>
    %63 = arith.addf %59, %62 : vector<8x128xf32>
    %64 = math.tanh %63 : vector<8x128xf32>
    %cst_37 = arith.constant 1.000000e+00 : f32
    %65 = vector.broadcast %cst_37 : f32 to vector<8x128xf32>
    %66 = arith.subf %65, %58 : vector<8x128xf32>
    %67 = arith.mulf %66, %64 : vector<8x128xf32>
    %68 = arith.mulf %58, %24 : vector<8x128xf32>
    %69 = arith.addf %67, %68 : vector<8x128xf32>
    %70 = vector.extract_strided_slice %34 {offsets = [0, 0], sizes = [8, 128], strides = [1, 1]} : vector<8x384xf32> to vector<8x128xf32>
    %71 = vector.extract_strided_slice %38 {offsets = [0, 0], sizes = [8, 128], strides = [1, 1]} : vector<8x384xf32> to vector<8x128xf32>
    %72 = arith.addf %70, %71 : vector<8x128xf32>
    %cst_38 = arith.constant 5.000000e-01 : f32
    %73 = vector.broadcast %cst_38 : f32 to vector<8x128xf32>
    %74 = arith.mulf %73, %72 : vector<8x128xf32>
    %75 = math.tanh %74 : vector<8x128xf32>
    %cst_39 = arith.constant 5.000000e-01 : f32
    %76 = vector.broadcast %cst_39 : f32 to vector<8x128xf32>
    %77 = arith.mulf %76, %75 : vector<8x128xf32>
    %cst_40 = arith.constant 5.000000e-01 : f32
    %78 = vector.broadcast %cst_40 : f32 to vector<8x128xf32>
    %79 = arith.addf %77, %78 : vector<8x128xf32>
    %80 = vector.extract_strided_slice %34 {offsets = [0, 128], sizes = [8, 128], strides = [1, 1]} : vector<8x384xf32> to vector<8x128xf32>
    %81 = vector.extract_strided_slice %38 {offsets = [0, 128], sizes = [8, 128], strides = [1, 1]} : vector<8x384xf32> to vector<8x128xf32>
    %82 = arith.addf %80, %81 : vector<8x128xf32>
    %cst_41 = arith.constant 5.000000e-01 : f32
    %83 = vector.broadcast %cst_41 : f32 to vector<8x128xf32>
    %84 = arith.mulf %83, %82 : vector<8x128xf32>
    %85 = math.tanh %84 : vector<8x128xf32>
    %cst_42 = arith.constant 5.000000e-01 : f32
    %86 = vector.broadcast %cst_42 : f32 to vector<8x128xf32>
    %87 = arith.mulf %86, %85 : vector<8x128xf32>
    %cst_43 = arith.constant 5.000000e-01 : f32
    %88 = vector.broadcast %cst_43 : f32 to vector<8x128xf32>
    %89 = arith.addf %87, %88 : vector<8x128xf32>
    %90 = vector.extract_strided_slice %34 {offsets = [0, 256], sizes = [8, 128], strides = [1, 1]} : vector<8x384xf32> to vector<8x128xf32>
    %91 = vector.extract_strided_slice %38 {offsets = [0, 256], sizes = [8, 128], strides = [1, 1]} : vector<8x384xf32> to vector<8x128xf32>
    %92 = arith.addf %91, %22 : vector<8x128xf32>
    %93 = arith.mulf %79, %92 : vector<8x128xf32>
    %94 = arith.addf %90, %93 : vector<8x128xf32>
    %95 = math.tanh %94 : vector<8x128xf32>
    %cst_44 = arith.constant 1.000000e+00 : f32
    %96 = vector.broadcast %cst_44 : f32 to vector<8x128xf32>
    %97 = arith.subf %96, %89 : vector<8x128xf32>
    %98 = arith.mulf %97, %95 : vector<8x128xf32>
    %99 = arith.mulf %89, %26 : vector<8x128xf32>
    %100 = arith.addf %98, %99 : vector<8x128xf32>
    %101 = vector.shape_cast %69 : vector<8x128xf32> to vector<1x8x128xf32>
    %102 = arith.truncf %101 : vector<1x8x128xf32> to vector<1x8x128xbf16>
    %c0_45 = arith.constant 0 : index
    %c0_46 = arith.constant 0 : index
    %c0_47 = arith.constant 0 : index
    %103 = vector.load %arg6[%c0_45, %c0_46, %c0_47] : memref<8x8x256xbf16, #tpu.memory_space<vmem>>, vector<1x8x128xbf16>
    tpu.vector_store %arg6[%c0_45, %c0_46, %c0_47], %102 {strides = array<i32>} : memref<8x8x256xbf16, #tpu.memory_space<vmem>>, vector<1x8x128xbf16>,
    %104 = vector.shape_cast %100 : vector<8x128xf32> to vector<1x8x128xf32>
    %105 = arith.truncf %104 : vector<1x8x128xf32> to vector<1x8x128xbf16>
    %c7_48 = arith.constant 7 : index
    %c0_49 = arith.constant 0 : index
    %c128_50 = arith.constant 128 : index
    %106 = vector.load %arg6[%c7_48, %c0_49, %c128_50] : memref<8x8x256xbf16, #tpu.memory_space<vmem>>, vector<1x8x128xbf16>
    tpu.vector_store %arg6[%c7_48, %c0_49, %c128_50], %105 {strides = array<i32>} : memref<8x8x256xbf16, #tpu.memory_space<vmem>>, vector<1x8x128xbf16>,
    %c1_51 = arith.constant 1 : index
    %c0_52 = arith.constant 0 : index
    %c0_53 = arith.constant 0 : index
    %107 = vector.load %arg8[%c1_51, %c0_52, %c0_53] : memref<8x8x768xbf16, #tpu.memory_space<vmem>>, vector<1x8x384xbf16>
    %108 = vector.shape_cast %107 : vector<1x8x384xbf16> to vector<8x384xbf16>
    %c6 = arith.constant 6 : index
    %c0_54 = arith.constant 0 : index
    %c384_55 = arith.constant 384 : index
    %109 = vector.load %arg8[%c6, %c0_54, %c384_55] : memref<8x8x768xbf16, #tpu.memory_space<vmem>>, vector<1x8x384xbf16>
    %110 = vector.shape_cast %109 : vector<1x8x384xbf16> to vector<8x384xbf16>
    %111 = arith.extf %108 : vector<8x384xbf16> to vector<8x384xf32>
    %112 = arith.addf %111, %13 : vector<8x384xf32>
    %113 = arith.extf %110 : vector<8x384xbf16> to vector<8x384xf32>
    %114 = arith.addf %113, %16 : vector<8x384xf32>
    %115 = arith.truncf %69 : vector<8x128xf32> to vector<8x128xbf16>
    %cst_56 = arith.constant dense<0.000000e+00> : vector<8x384xf32>
    %116 = tpu.matmul %115, %8, %cst_56 {dimension_numbers = #tpu.dot_dimension_numbers<[1], [0], [0], [1], [0, 0, 1, 1], [], []>} : vector<8x128xbf16>, vector<128x384xbf16>, vector<8x384xf32> -> vector<8x384xf32>
    %117 = arith.truncf %100 : vector<8x128xf32> to vector<8x128xbf16>
    %cst_57 = arith.constant dense<0.000000e+00> : vector<8x384xf32>
    %118 = tpu.matmul %117, %10, %cst_57 {dimension_numbers = #tpu.dot_dimension_numbers<[1], [0], [0], [1], [0, 0, 1, 1], [], []>} : vector<8x128xbf16>, vector<128x384xbf16>, vector<8x384xf32> -> vector<8x384xf32>
    %119 = vector.extract_strided_slice %112 {offsets = [0, 0], sizes = [8, 128], strides = [1, 1]} : vector<8x384xf32> to vector<8x128xf32>
    %120 = vector.extract_strided_slice %116 {offsets = [0, 0], sizes = [8, 128], strides = [1, 1]} : vector<8x384xf32> to vector<8x128xf32>
    %121 = arith.addf %119, %120 : vector<8x128xf32>
    %cst_58 = arith.constant 5.000000e-01 : f32
    %122 = vector.broadcast %cst_58 : f32 to vector<8x128xf32>
    %123 = arith.mulf %122, %121 : vector<8x128xf32>
    %124 = math.tanh %123 : vector<8x128xf32>
    %cst_59 = arith.constant 5.000000e-01 : f32
    %125 = vector.broadcast %cst_59 : f32 to vector<8x128xf32>
    %126 = arith.mulf %125, %124 : vector<8x128xf32>
    %cst_60 = arith.constant 5.000000e-01 : f32
    %127 = vector.broadcast %cst_60 : f32 to vector<8x128xf32>
    %128 = arith.addf %126, %127 : vector<8x128xf32>
    %129 = vector.extract_strided_slice %112 {offsets = [0, 128], sizes = [8, 128], strides = [1, 1]} : vector<8x384xf32> to vector<8x128xf32>
    %130 = vector.extract_strided_slice %116 {offsets = [0, 128], sizes = [8, 128], strides = [1, 1]} : vector<8x384xf32> to vector<8x128xf32>
    %131 = arith.addf %129, %130 : vector<8x128xf32>
    %cst_61 = arith.constant 5.000000e-01 : f32
    %132 = vector.broadcast %cst_61 : f32 to vector<8x128xf32>
    %133 = arith.mulf %132, %131 : vector<8x128xf32>
    %134 = math.tanh %133 : vector<8x128xf32>
    %cst_62 = arith.constant 5.000000e-01 : f32
    %135 = vector.broadcast %cst_62 : f32 to vector<8x128xf32>
    %136 = arith.mulf %135, %134 : vector<8x128xf32>
    %cst_63 = arith.constant 5.000000e-01 : f32
    %137 = vector.broadcast %cst_63 : f32 to vector<8x128xf32>
    %138 = arith.addf %136, %137 : vector<8x128xf32>
    %139 = vector.extract_strided_slice %112 {offsets = [0, 256], sizes = [8, 128], strides = [1, 1]} : vector<8x384xf32> to vector<8x128xf32>
    %140 = vector.extract_strided_slice %116 {offsets = [0, 256], sizes = [8, 128], strides = [1, 1]} : vector<8x384xf32> to vector<8x128xf32>
    %141 = arith.addf %140, %19 : vector<8x128xf32>
    %142 = arith.mulf %128, %141 : vector<8x128xf32>
    %143 = arith.addf %139, %142 : vector<8x128xf32>
    %144 = math.tanh %143 : vector<8x128xf32>
    %cst_64 = arith.constant 1.000000e+00 : f32
    %145 = vector.broadcast %cst_64 : f32 to vector<8x128xf32>
    %146 = arith.subf %145, %138 : vector<8x128xf32>
    %147 = arith.mulf %146, %144 : vector<8x128xf32>
    %148 = arith.mulf %138, %69 : vector<8x128xf32>
    %149 = arith.addf %147, %148 : vector<8x128xf32>
    %150 = vector.extract_strided_slice %114 {offsets = [0, 0], sizes = [8, 128], strides = [1, 1]} : vector<8x384xf32> to vector<8x128xf32>
    %151 = vector.extract_strided_slice %118 {offsets = [0, 0], sizes = [8, 128], strides = [1, 1]} : vector<8x384xf32> to vector<8x128xf32>
    %152 = arith.addf %150, %151 : vector<8x128xf32>
    %cst_65 = arith.constant 5.000000e-01 : f32
    %153 = vector.broadcast %cst_65 : f32 to vector<8x128xf32>
    %154 = arith.mulf %153, %152 : vector<8x128xf32>
    %155 = math.tanh %154 : vector<8x128xf32>
    %cst_66 = arith.constant 5.000000e-01 : f32
    %156 = vector.broadcast %cst_66 : f32 to vector<8x128xf32>
    %157 = arith.mulf %156, %155 : vector<8x128xf32>
    %cst_67 = arith.constant 5.000000e-01 : f32
    %158 = vector.broadcast %cst_67 : f32 to vector<8x128xf32>
    %159 = arith.addf %157, %158 : vector<8x128xf32>
    %160 = vector.extract_strided_slice %114 {offsets = [0, 128], sizes = [8, 128], strides = [1, 1]} : vector<8x384xf32> to vector<8x128xf32>
    %161 = vector.extract_strided_slice %118 {offsets = [0, 128], sizes = [8, 128], strides = [1, 1]} : vector<8x384xf32> to vector<8x128xf32>
    %162 = arith.addf %160, %161 : vector<8x128xf32>
    %cst_68 = arith.constant 5.000000e-01 : f32
    %163 = vector.broadcast %cst_68 : f32 to vector<8x128xf32>
    %164 = arith.mulf %163, %162 : vector<8x128xf32>
    %165 = math.tanh %164 : vector<8x128xf32>
    %cst_69 = arith.constant 5.000000e-01 : f32
    %166 = vector.broadcast %cst_69 : f32 to vector<8x128xf32>
    %167 = arith.mulf %166, %165 : vector<8x128xf32>
    %cst_70 = arith.constant 5.000000e-01 : f32
    %168 = vector.broadcast %cst_70 : f32 to vector<8x128xf32>
    %169 = arith.addf %167, %168 : vector<8x128xf32>
    %170 = vector.extract_strided_slice %114 {offsets = [0, 256], sizes = [8, 128], strides = [1, 1]} : vector<8x384xf32> to vector<8x128xf32>
    %171 = vector.extract_strided_slice %118 {offsets = [0, 256], sizes = [8, 128], strides = [1, 1]} : vector<8x384xf32> to vector<8x128xf32>
    %172 = arith.addf %171, %22 : vector<8x128xf32>
    %173 = arith.mulf %159, %172 : vector<8x128xf32>
    %174 = arith.addf %170, %173 : vector<8x128xf32>
    %175 = math.tanh %174 : vector<8x128xf32>
    %cst_71 = arith.constant 1.000000e+00 : f32
    %176 = vector.broadcast %cst_71 : f32 to vector<8x128xf32>
    %177 = arith.subf %176, %169 : vector<8x128xf32>
    %178 = arith.mulf %177, %175 : vector<8x128xf32>
    %179 = arith.mulf %169, %100 : vector<8x128xf32>
    %180 = arith.addf %178, %179 : vector<8x128xf32>
    %181 = vector.shape_cast %149 : vector<8x128xf32> to vector<1x8x128xf32>
    %182 = arith.truncf %181 : vector<1x8x128xf32> to vector<1x8x128xbf16>
    %c1_72 = arith.constant 1 : index
    %c0_73 = arith.constant 0 : index
    %c0_74 = arith.constant 0 : index
    %183 = vector.load %arg6[%c1_72, %c0_73, %c0_74] : memref<8x8x256xbf16, #tpu.memory_space<vmem>>, vector<1x8x128xbf16>
    tpu.vector_store %arg6[%c1_72, %c0_73, %c0_74], %182 {strides = array<i32>} : memref<8x8x256xbf16, #tpu.memory_space<vmem>>, vector<1x8x128xbf16>,
    %184 = vector.shape_cast %180 : vector<8x128xf32> to vector<1x8x128xf32>
    %185 = arith.truncf %184 : vector<1x8x128xf32> to vector<1x8x128xbf16>
    %c6_75 = arith.constant 6 : index
    %c0_76 = arith.constant 0 : index
    %c128_77 = arith.constant 128 : index
    %186 = vector.load %arg6[%c6_75, %c0_76, %c128_77] : memref<8x8x256xbf16, #tpu.memory_space<vmem>>, vector<1x8x128xbf16>
    tpu.vector_store %arg6[%c6_75, %c0_76, %c128_77], %185 {strides = array<i32>} : memref<8x8x256xbf16, #tpu.memory_space<vmem>>, vector<1x8x128xbf16>,
    %c2 = arith.constant 2 : index
    %c0_78 = arith.constant 0 : index
    %c0_79 = arith.constant 0 : index
    %187 = vector.load %arg8[%c2, %c0_78, %c0_79] : memref<8x8x768xbf16, #tpu.memory_space<vmem>>, vector<1x8x384xbf16>
    %188 = vector.shape_cast %187 : vector<1x8x384xbf16> to vector<8x384xbf16>
    %c5 = arith.constant 5 : index
    %c0_80 = arith.constant 0 : index
    %c384_81 = arith.constant 384 : index
    %189 = vector.load %arg8[%c5, %c0_80, %c384_81] : memref<8x8x768xbf16, #tpu.memory_space<vmem>>, vector<1x8x384xbf16>
    %190 = vector.shape_cast %189 : vector<1x8x384xbf16> to vector<8x384xbf16>
    %191 = arith.extf %188 : vector<8x384xbf16> to vector<8x384xf32>
    %192 = arith.addf %191, %13 : vector<8x384xf32>
    %193 = arith.extf %190 : vector<8x384xbf16> to vector<8x384xf32>
    %194 = arith.addf %193, %16 : vector<8x384xf32>
    %195 = arith.truncf %149 : vector<8x128xf32> to vector<8x128xbf16>
    %cst_82 = arith.constant dense<0.000000e+00> : vector<8x384xf32>
    %196 = tpu.matmul %195, %8, %cst_82 {dimension_numbers = #tpu.dot_dimension_numbers<[1], [0], [0], [1], [0, 0, 1, 1], [], []>} : vector<8x128xbf16>, vector<128x384xbf16>, vector<8x384xf32> -> vector<8x384xf32>
    %197 = arith.truncf %180 : vector<8x128xf32> to vector<8x128xbf16>
    %cst_83 = arith.constant dense<0.000000e+00> : vector<8x384xf32>
    %198 = tpu.matmul %197, %10, %cst_83 {dimension_numbers = #tpu.dot_dimension_numbers<[1], [0], [0], [1], [0, 0, 1, 1], [], []>} : vector<8x128xbf16>, vector<128x384xbf16>, vector<8x384xf32> -> vector<8x384xf32>
    %199 = vector.extract_strided_slice %192 {offsets = [0, 0], sizes = [8, 128], strides = [1, 1]} : vector<8x384xf32> to vector<8x128xf32>
    %200 = vector.extract_strided_slice %196 {offsets = [0, 0], sizes = [8, 128], strides = [1, 1]} : vector<8x384xf32> to vector<8x128xf32>
    %201 = arith.addf %199, %200 : vector<8x128xf32>
    %cst_84 = arith.constant 5.000000e-01 : f32
    %202 = vector.broadcast %cst_84 : f32 to vector<8x128xf32>
    %203 = arith.mulf %202, %201 : vector<8x128xf32>
    %204 = math.tanh %203 : vector<8x128xf32>
    %cst_85 = arith.constant 5.000000e-01 : f32
    %205 = vector.broadcast %cst_85 : f32 to vector<8x128xf32>
    %206 = arith.mulf %205, %204 : vector<8x128xf32>
    %cst_86 = arith.constant 5.000000e-01 : f32
    %207 = vector.broadcast %cst_86 : f32 to vector<8x128xf32>
    %208 = arith.addf %206, %207 : vector<8x128xf32>
    %209 = vector.extract_strided_slice %192 {offsets = [0, 128], sizes = [8, 128], strides = [1, 1]} : vector<8x384xf32> to vector<8x128xf32>
    %210 = vector.extract_strided_slice %196 {offsets = [0, 128], sizes = [8, 128], strides = [1, 1]} : vector<8x384xf32> to vector<8x128xf32>
    %211 = arith.addf %209, %210 : vector<8x128xf32>
    %cst_87 = arith.constant 5.000000e-01 : f32
    %212 = vector.broadcast %cst_87 : f32 to vector<8x128xf32>
    %213 = arith.mulf %212, %211 : vector<8x128xf32>
    %214 = math.tanh %213 : vector<8x128xf32>
    %cst_88 = arith.constant 5.000000e-01 : f32
    %215 = vector.broadcast %cst_88 : f32 to vector<8x128xf32>
    %216 = arith.mulf %215, %214 : vector<8x128xf32>
    %cst_89 = arith.constant 5.000000e-01 : f32
    %217 = vector.broadcast %cst_89 : f32 to vector<8x128xf32>
    %218 = arith.addf %216, %217 : vector<8x128xf32>
    %219 = vector.extract_strided_slice %192 {offsets = [0, 256], sizes = [8, 128], strides = [1, 1]} : vector<8x384xf32> to vector<8x128xf32>
    %220 = vector.extract_strided_slice %196 {offsets = [0, 256], sizes = [8, 128], strides = [1, 1]} : vector<8x384xf32> to vector<8x128xf32>
    %221 = arith.addf %220, %19 : vector<8x128xf32>
    %222 = arith.mulf %208, %221 : vector<8x128xf32>
    %223 = arith.addf %219, %222 : vector<8x128xf32>
    %224 = math.tanh %223 : vector<8x128xf32>
    %cst_90 = arith.constant 1.000000e+00 : f32
    %225 = vector.broadcast %cst_90 : f32 to vector<8x128xf32>
    %226 = arith.subf %225, %218 : vector<8x128xf32>
    %227 = arith.mulf %226, %224 : vector<8x128xf32>
    %228 = arith.mulf %218, %149 : vector<8x128xf32>
    %229 = arith.addf %227, %228 : vector<8x128xf32>
    %230 = vector.extract_strided_slice %194 {offsets = [0, 0], sizes = [8, 128], strides = [1, 1]} : vector<8x384xf32> to vector<8x128xf32>
    %231 = vector.extract_strided_slice %198 {offsets = [0, 0], sizes = [8, 128], strides = [1, 1]} : vector<8x384xf32> to vector<8x128xf32>
    %232 = arith.addf %230, %231 : vector<8x128xf32>
    %cst_91 = arith.constant 5.000000e-01 : f32
    %233 = vector.broadcast %cst_91 : f32 to vector<8x128xf32>
    %234 = arith.mulf %233, %232 : vector<8x128xf32>
    %235 = math.tanh %234 : vector<8x128xf32>
    %cst_92 = arith.constant 5.000000e-01 : f32
    %236 = vector.broadcast %cst_92 : f32 to vector<8x128xf32>
    %237 = arith.mulf %236, %235 : vector<8x128xf32>
    %cst_93 = arith.constant 5.000000e-01 : f32
    %238 = vector.broadcast %cst_93 : f32 to vector<8x128xf32>
    %239 = arith.addf %237, %238 : vector<8x128xf32>
    %240 = vector.extract_strided_slice %194 {offsets = [0, 128], sizes = [8, 128], strides = [1, 1]} : vector<8x384xf32> to vector<8x128xf32>
    %241 = vector.extract_strided_slice %198 {offsets = [0, 128], sizes = [8, 128], strides = [1, 1]} : vector<8x384xf32> to vector<8x128xf32>
    %242 = arith.addf %240, %241 : vector<8x128xf32>
    %cst_94 = arith.constant 5.000000e-01 : f32
    %243 = vector.broadcast %cst_94 : f32 to vector<8x128xf32>
    %244 = arith.mulf %243, %242 : vector<8x128xf32>
    %245 = math.tanh %244 : vector<8x128xf32>
    %cst_95 = arith.constant 5.000000e-01 : f32
    %246 = vector.broadcast %cst_95 : f32 to vector<8x128xf32>
    %247 = arith.mulf %246, %245 : vector<8x128xf32>
    %cst_96 = arith.constant 5.000000e-01 : f32
    %248 = vector.broadcast %cst_96 : f32 to vector<8x128xf32>
    %249 = arith.addf %247, %248 : vector<8x128xf32>
    %250 = vector.extract_strided_slice %194 {offsets = [0, 256], sizes = [8, 128], strides = [1, 1]} : vector<8x384xf32> to vector<8x128xf32>
    %251 = vector.extract_strided_slice %198 {offsets = [0, 256], sizes = [8, 128], strides = [1, 1]} : vector<8x384xf32> to vector<8x128xf32>
    %252 = arith.addf %251, %22 : vector<8x128xf32>
    %253 = arith.mulf %239, %252 : vector<8x128xf32>
    %254 = arith.addf %250, %253 : vector<8x128xf32>
    %255 = math.tanh %254 : vector<8x128xf32>
    %cst_97 = arith.constant 1.000000e+00 : f32
    %256 = vector.broadcast %cst_97 : f32 to vector<8x128xf32>
    %257 = arith.subf %256, %249 : vector<8x128xf32>
    %258 = arith.mulf %257, %255 : vector<8x128xf32>
    %259 = arith.mulf %249, %180 : vector<8x128xf32>
    %260 = arith.addf %258, %259 : vector<8x128xf32>
    %261 = vector.shape_cast %229 : vector<8x128xf32> to vector<1x8x128xf32>
    %262 = arith.truncf %261 : vector<1x8x128xf32> to vector<1x8x128xbf16>
    %c2_98 = arith.constant 2 : index
    %c0_99 = arith.constant 0 : index
    %c0_100 = arith.constant 0 : index
    %263 = vector.load %arg6[%c2_98, %c0_99, %c0_100] : memref<8x8x256xbf16, #tpu.memory_space<vmem>>, vector<1x8x128xbf16>
    tpu.vector_store %arg6[%c2_98, %c0_99, %c0_100], %262 {strides = array<i32>} : memref<8x8x256xbf16, #tpu.memory_space<vmem>>, vector<1x8x128xbf16>,
    %264 = vector.shape_cast %260 : vector<8x128xf32> to vector<1x8x128xf32>
    %265 = arith.truncf %264 : vector<1x8x128xf32> to vector<1x8x128xbf16>
    %c5_101 = arith.constant 5 : index
    %c0_102 = arith.constant 0 : index
    %c128_103 = arith.constant 128 : index
    %266 = vector.load %arg6[%c5_101, %c0_102, %c128_103] : memref<8x8x256xbf16, #tpu.memory_space<vmem>>, vector<1x8x128xbf16>
    tpu.vector_store %arg6[%c5_101, %c0_102, %c128_103], %265 {strides = array<i32>} : memref<8x8x256xbf16, #tpu.memory_space<vmem>>, vector<1x8x128xbf16>,
    %c3 = arith.constant 3 : index
    %c0_104 = arith.constant 0 : index
    %c0_105 = arith.constant 0 : index
    %267 = vector.load %arg8[%c3, %c0_104, %c0_105] : memref<8x8x768xbf16, #tpu.memory_space<vmem>>, vector<1x8x384xbf16>
    %268 = vector.shape_cast %267 : vector<1x8x384xbf16> to vector<8x384xbf16>
    %c4 = arith.constant 4 : index
    %c0_106 = arith.constant 0 : index
    %c384_107 = arith.constant 384 : index
    %269 = vector.load %arg8[%c4, %c0_106, %c384_107] : memref<8x8x768xbf16, #tpu.memory_space<vmem>>, vector<1x8x384xbf16>
    %270 = vector.shape_cast %269 : vector<1x8x384xbf16> to vector<8x384xbf16>
    %271 = arith.extf %268 : vector<8x384xbf16> to vector<8x384xf32>
    %272 = arith.addf %271, %13 : vector<8x384xf32>
    %273 = arith.extf %270 : vector<8x384xbf16> to vector<8x384xf32>
    %274 = arith.addf %273, %16 : vector<8x384xf32>
    %275 = arith.truncf %229 : vector<8x128xf32> to vector<8x128xbf16>
    %cst_108 = arith.constant dense<0.000000e+00> : vector<8x384xf32>
    %276 = tpu.matmul %275, %8, %cst_108 {dimension_numbers = #tpu.dot_dimension_numbers<[1], [0], [0], [1], [0, 0, 1, 1], [], []>} : vector<8x128xbf16>, vector<128x384xbf16>, vector<8x384xf32> -> vector<8x384xf32>
    %277 = arith.truncf %260 : vector<8x128xf32> to vector<8x128xbf16>
    %cst_109 = arith.constant dense<0.000000e+00> : vector<8x384xf32>
    %278 = tpu.matmul %277, %10, %cst_109 {dimension_numbers = #tpu.dot_dimension_numbers<[1], [0], [0], [1], [0, 0, 1, 1], [], []>} : vector<8x128xbf16>, vector<128x384xbf16>, vector<8x384xf32> -> vector<8x384xf32>
    %279 = vector.extract_strided_slice %272 {offsets = [0, 0], sizes = [8, 128], strides = [1, 1]} : vector<8x384xf32> to vector<8x128xf32>
    %280 = vector.extract_strided_slice %276 {offsets = [0, 0], sizes = [8, 128], strides = [1, 1]} : vector<8x384xf32> to vector<8x128xf32>
    %281 = arith.addf %279, %280 : vector<8x128xf32>
    %cst_110 = arith.constant 5.000000e-01 : f32
    %282 = vector.broadcast %cst_110 : f32 to vector<8x128xf32>
    %283 = arith.mulf %282, %281 : vector<8x128xf32>
    %284 = math.tanh %283 : vector<8x128xf32>
    %cst_111 = arith.constant 5.000000e-01 : f32
    %285 = vector.broadcast %cst_111 : f32 to vector<8x128xf32>
    %286 = arith.mulf %285, %284 : vector<8x128xf32>
    %cst_112 = arith.constant 5.000000e-01 : f32
    %287 = vector.broadcast %cst_112 : f32 to vector<8x128xf32>
    %288 = arith.addf %286, %287 : vector<8x128xf32>
    %289 = vector.extract_strided_slice %272 {offsets = [0, 128], sizes = [8, 128], strides = [1, 1]} : vector<8x384xf32> to vector<8x128xf32>
    %290 = vector.extract_strided_slice %276 {offsets = [0, 128], sizes = [8, 128], strides = [1, 1]} : vector<8x384xf32> to vector<8x128xf32>
    %291 = arith.addf %289, %290 : vector<8x128xf32>
    %cst_113 = arith.constant 5.000000e-01 : f32
    %292 = vector.broadcast %cst_113 : f32 to vector<8x128xf32>
    %293 = arith.mulf %292, %291 : vector<8x128xf32>
    %294 = math.tanh %293 : vector<8x128xf32>
    %cst_114 = arith.constant 5.000000e-01 : f32
    %295 = vector.broadcast %cst_114 : f32 to vector<8x128xf32>
    %296 = arith.mulf %295, %294 : vector<8x128xf32>
    %cst_115 = arith.constant 5.000000e-01 : f32
    %297 = vector.broadcast %cst_115 : f32 to vector<8x128xf32>
    %298 = arith.addf %296, %297 : vector<8x128xf32>
    %299 = vector.extract_strided_slice %272 {offsets = [0, 256], sizes = [8, 128], strides = [1, 1]} : vector<8x384xf32> to vector<8x128xf32>
    %300 = vector.extract_strided_slice %276 {offsets = [0, 256], sizes = [8, 128], strides = [1, 1]} : vector<8x384xf32> to vector<8x128xf32>
    %301 = arith.addf %300, %19 : vector<8x128xf32>
    %302 = arith.mulf %288, %301 : vector<8x128xf32>
    %303 = arith.addf %299, %302 : vector<8x128xf32>
    %304 = math.tanh %303 : vector<8x128xf32>
    %cst_116 = arith.constant 1.000000e+00 : f32
    %305 = vector.broadcast %cst_116 : f32 to vector<8x128xf32>
    %306 = arith.subf %305, %298 : vector<8x128xf32>
    %307 = arith.mulf %306, %304 : vector<8x128xf32>
    %308 = arith.mulf %298, %229 : vector<8x128xf32>
    %309 = arith.addf %307, %308 : vector<8x128xf32>
    %310 = vector.extract_strided_slice %274 {offsets = [0, 0], sizes = [8, 128], strides = [1, 1]} : vector<8x384xf32> to vector<8x128xf32>
    %311 = vector.extract_strided_slice %278 {offsets = [0, 0], sizes = [8, 128], strides = [1, 1]} : vector<8x384xf32> to vector<8x128xf32>
    %312 = arith.addf %310, %311 : vector<8x128xf32>
    %cst_117 = arith.constant 5.000000e-01 : f32
    %313 = vector.broadcast %cst_117 : f32 to vector<8x128xf32>
    %314 = arith.mulf %313, %312 : vector<8x128xf32>
    %315 = math.tanh %314 : vector<8x128xf32>
    %cst_118 = arith.constant 5.000000e-01 : f32
    %316 = vector.broadcast %cst_118 : f32 to vector<8x128xf32>
    %317 = arith.mulf %316, %315 : vector<8x128xf32>
    %cst_119 = arith.constant 5.000000e-01 : f32
    %318 = vector.broadcast %cst_119 : f32 to vector<8x128xf32>
    %319 = arith.addf %317, %318 : vector<8x128xf32>
    %320 = vector.extract_strided_slice %274 {offsets = [0, 128], sizes = [8, 128], strides = [1, 1]} : vector<8x384xf32> to vector<8x128xf32>
    %321 = vector.extract_strided_slice %278 {offsets = [0, 128], sizes = [8, 128], strides = [1, 1]} : vector<8x384xf32> to vector<8x128xf32>
    %322 = arith.addf %320, %321 : vector<8x128xf32>
    %cst_120 = arith.constant 5.000000e-01 : f32
    %323 = vector.broadcast %cst_120 : f32 to vector<8x128xf32>
    %324 = arith.mulf %323, %322 : vector<8x128xf32>
    %325 = math.tanh %324 : vector<8x128xf32>
    %cst_121 = arith.constant 5.000000e-01 : f32
    %326 = vector.broadcast %cst_121 : f32 to vector<8x128xf32>
    %327 = arith.mulf %326, %325 : vector<8x128xf32>
    %cst_122 = arith.constant 5.000000e-01 : f32
    %328 = vector.broadcast %cst_122 : f32 to vector<8x128xf32>
    %329 = arith.addf %327, %328 : vector<8x128xf32>
    %330 = vector.extract_strided_slice %274 {offsets = [0, 256], sizes = [8, 128], strides = [1, 1]} : vector<8x384xf32> to vector<8x128xf32>
    %331 = vector.extract_strided_slice %278 {offsets = [0, 256], sizes = [8, 128], strides = [1, 1]} : vector<8x384xf32> to vector<8x128xf32>
    %332 = arith.addf %331, %22 : vector<8x128xf32>
    %333 = arith.mulf %319, %332 : vector<8x128xf32>
    %334 = arith.addf %330, %333 : vector<8x128xf32>
    %335 = math.tanh %334 : vector<8x128xf32>
    %cst_123 = arith.constant 1.000000e+00 : f32
    %336 = vector.broadcast %cst_123 : f32 to vector<8x128xf32>
    %337 = arith.subf %336, %329 : vector<8x128xf32>
    %338 = arith.mulf %337, %335 : vector<8x128xf32>
    %339 = arith.mulf %329, %260 : vector<8x128xf32>
    %340 = arith.addf %338, %339 : vector<8x128xf32>
    %341 = vector.shape_cast %309 : vector<8x128xf32> to vector<1x8x128xf32>
    %342 = arith.truncf %341 : vector<1x8x128xf32> to vector<1x8x128xbf16>
    %c3_124 = arith.constant 3 : index
    %c0_125 = arith.constant 0 : index
    %c0_126 = arith.constant 0 : index
    %343 = vector.load %arg6[%c3_124, %c0_125, %c0_126] : memref<8x8x256xbf16, #tpu.memory_space<vmem>>, vector<1x8x128xbf16>
    tpu.vector_store %arg6[%c3_124, %c0_125, %c0_126], %342 {strides = array<i32>} : memref<8x8x256xbf16, #tpu.memory_space<vmem>>, vector<1x8x128xbf16>,
    %344 = vector.shape_cast %340 : vector<8x128xf32> to vector<1x8x128xf32>
    %345 = arith.truncf %344 : vector<1x8x128xf32> to vector<1x8x128xbf16>
    %c4_127 = arith.constant 4 : index
    %c0_128 = arith.constant 0 : index
    %c128_129 = arith.constant 128 : index
    %346 = vector.load %arg6[%c4_127, %c0_128, %c128_129] : memref<8x8x256xbf16, #tpu.memory_space<vmem>>, vector<1x8x128xbf16>
    tpu.vector_store %arg6[%c4_127, %c0_128, %c128_129], %345 {strides = array<i32>} : memref<8x8x256xbf16, #tpu.memory_space<vmem>>, vector<1x8x128xbf16>,
    %c4_130 = arith.constant 4 : index
    %c0_131 = arith.constant 0 : index
    %c0_132 = arith.constant 0 : index
    %347 = vector.load %arg8[%c4_130, %c0_131, %c0_132] : memref<8x8x768xbf16, #tpu.memory_space<vmem>>, vector<1x8x384xbf16>
    %348 = vector.shape_cast %347 : vector<1x8x384xbf16> to vector<8x384xbf16>
    %c3_133 = arith.constant 3 : index
    %c0_134 = arith.constant 0 : index
    %c384_135 = arith.constant 384 : index
    %349 = vector.load %arg8[%c3_133, %c0_134, %c384_135] : memref<8x8x768xbf16, #tpu.memory_space<vmem>>, vector<1x8x384xbf16>
    %350 = vector.shape_cast %349 : vector<1x8x384xbf16> to vector<8x384xbf16>
    %351 = arith.extf %348 : vector<8x384xbf16> to vector<8x384xf32>
    %352 = arith.addf %351, %13 : vector<8x384xf32>
    %353 = arith.extf %350 : vector<8x384xbf16> to vector<8x384xf32>
    %354 = arith.addf %353, %16 : vector<8x384xf32>
    %355 = arith.truncf %309 : vector<8x128xf32> to vector<8x128xbf16>
    %cst_136 = arith.constant dense<0.000000e+00> : vector<8x384xf32>
    %356 = tpu.matmul %355, %8, %cst_136 {dimension_numbers = #tpu.dot_dimension_numbers<[1], [0], [0], [1], [0, 0, 1, 1], [], []>} : vector<8x128xbf16>, vector<128x384xbf16>, vector<8x384xf32> -> vector<8x384xf32>
    %357 = arith.truncf %340 : vector<8x128xf32> to vector<8x128xbf16>
    %cst_137 = arith.constant dense<0.000000e+00> : vector<8x384xf32>
    %358 = tpu.matmul %357, %10, %cst_137 {dimension_numbers = #tpu.dot_dimension_numbers<[1], [0], [0], [1], [0, 0, 1, 1], [], []>} : vector<8x128xbf16>, vector<128x384xbf16>, vector<8x384xf32> -> vector<8x384xf32>
    %359 = vector.extract_strided_slice %352 {offsets = [0, 0], sizes = [8, 128], strides = [1, 1]} : vector<8x384xf32> to vector<8x128xf32>
    %360 = vector.extract_strided_slice %356 {offsets = [0, 0], sizes = [8, 128], strides = [1, 1]} : vector<8x384xf32> to vector<8x128xf32>
    %361 = arith.addf %359, %360 : vector<8x128xf32>
    %cst_138 = arith.constant 5.000000e-01 : f32
    %362 = vector.broadcast %cst_138 : f32 to vector<8x128xf32>
    %363 = arith.mulf %362, %361 : vector<8x128xf32>
    %364 = math.tanh %363 : vector<8x128xf32>
    %cst_139 = arith.constant 5.000000e-01 : f32
    %365 = vector.broadcast %cst_139 : f32 to vector<8x128xf32>
    %366 = arith.mulf %365, %364 : vector<8x128xf32>
    %cst_140 = arith.constant 5.000000e-01 : f32
    %367 = vector.broadcast %cst_140 : f32 to vector<8x128xf32>
    %368 = arith.addf %366, %367 : vector<8x128xf32>
    %369 = vector.extract_strided_slice %352 {offsets = [0, 128], sizes = [8, 128], strides = [1, 1]} : vector<8x384xf32> to vector<8x128xf32>
    %370 = vector.extract_strided_slice %356 {offsets = [0, 128], sizes = [8, 128], strides = [1, 1]} : vector<8x384xf32> to vector<8x128xf32>
    %371 = arith.addf %369, %370 : vector<8x128xf32>
    %cst_141 = arith.constant 5.000000e-01 : f32
    %372 = vector.broadcast %cst_141 : f32 to vector<8x128xf32>
    %373 = arith.mulf %372, %371 : vector<8x128xf32>
    %374 = math.tanh %373 : vector<8x128xf32>
    %cst_142 = arith.constant 5.000000e-01 : f32
    %375 = vector.broadcast %cst_142 : f32 to vector<8x128xf32>
    %376 = arith.mulf %375, %374 : vector<8x128xf32>
    %cst_143 = arith.constant 5.000000e-01 : f32
    %377 = vector.broadcast %cst_143 : f32 to vector<8x128xf32>
    %378 = arith.addf %376, %377 : vector<8x128xf32>
    %379 = vector.extract_strided_slice %352 {offsets = [0, 256], sizes = [8, 128], strides = [1, 1]} : vector<8x384xf32> to vector<8x128xf32>
    %380 = vector.extract_strided_slice %356 {offsets = [0, 256], sizes = [8, 128], strides = [1, 1]} : vector<8x384xf32> to vector<8x128xf32>
    %381 = arith.addf %380, %19 : vector<8x128xf32>
    %382 = arith.mulf %368, %381 : vector<8x128xf32>
    %383 = arith.addf %379, %382 : vector<8x128xf32>
    %384 = math.tanh %383 : vector<8x128xf32>
    %cst_144 = arith.constant 1.000000e+00 : f32
    %385 = vector.broadcast %cst_144 : f32 to vector<8x128xf32>
    %386 = arith.subf %385, %378 : vector<8x128xf32>
    %387 = arith.mulf %386, %384 : vector<8x128xf32>
    %388 = arith.mulf %378, %309 : vector<8x128xf32>
    %389 = arith.addf %387, %388 : vector<8x128xf32>
    %390 = vector.extract_strided_slice %354 {offsets = [0, 0], sizes = [8, 128], strides = [1, 1]} : vector<8x384xf32> to vector<8x128xf32>
    %391 = vector.extract_strided_slice %358 {offsets = [0, 0], sizes = [8, 128], strides = [1, 1]} : vector<8x384xf32> to vector<8x128xf32>
    %392 = arith.addf %390, %391 : vector<8x128xf32>
    %cst_145 = arith.constant 5.000000e-01 : f32
    %393 = vector.broadcast %cst_145 : f32 to vector<8x128xf32>
    %394 = arith.mulf %393, %392 : vector<8x128xf32>
    %395 = math.tanh %394 : vector<8x128xf32>
    %cst_146 = arith.constant 5.000000e-01 : f32
    %396 = vector.broadcast %cst_146 : f32 to vector<8x128xf32>
    %397 = arith.mulf %396, %395 : vector<8x128xf32>
    %cst_147 = arith.constant 5.000000e-01 : f32
    %398 = vector.broadcast %cst_147 : f32 to vector<8x128xf32>
    %399 = arith.addf %397, %398 : vector<8x128xf32>
    %400 = vector.extract_strided_slice %354 {offsets = [0, 128], sizes = [8, 128], strides = [1, 1]} : vector<8x384xf32> to vector<8x128xf32>
    %401 = vector.extract_strided_slice %358 {offsets = [0, 128], sizes = [8, 128], strides = [1, 1]} : vector<8x384xf32> to vector<8x128xf32>
    %402 = arith.addf %400, %401 : vector<8x128xf32>
    %cst_148 = arith.constant 5.000000e-01 : f32
    %403 = vector.broadcast %cst_148 : f32 to vector<8x128xf32>
    %404 = arith.mulf %403, %402 : vector<8x128xf32>
    %405 = math.tanh %404 : vector<8x128xf32>
    %cst_149 = arith.constant 5.000000e-01 : f32
    %406 = vector.broadcast %cst_149 : f32 to vector<8x128xf32>
    %407 = arith.mulf %406, %405 : vector<8x128xf32>
    %cst_150 = arith.constant 5.000000e-01 : f32
    %408 = vector.broadcast %cst_150 : f32 to vector<8x128xf32>
    %409 = arith.addf %407, %408 : vector<8x128xf32>
    %410 = vector.extract_strided_slice %354 {offsets = [0, 256], sizes = [8, 128], strides = [1, 1]} : vector<8x384xf32> to vector<8x128xf32>
    %411 = vector.extract_strided_slice %358 {offsets = [0, 256], sizes = [8, 128], strides = [1, 1]} : vector<8x384xf32> to vector<8x128xf32>
    %412 = arith.addf %411, %22 : vector<8x128xf32>
    %413 = arith.mulf %399, %412 : vector<8x128xf32>
    %414 = arith.addf %410, %413 : vector<8x128xf32>
    %415 = math.tanh %414 : vector<8x128xf32>
    %cst_151 = arith.constant 1.000000e+00 : f32
    %416 = vector.broadcast %cst_151 : f32 to vector<8x128xf32>
    %417 = arith.subf %416, %409 : vector<8x128xf32>
    %418 = arith.mulf %417, %415 : vector<8x128xf32>
    %419 = arith.mulf %409, %340 : vector<8x128xf32>
    %420 = arith.addf %418, %419 : vector<8x128xf32>
    %421 = vector.shape_cast %389 : vector<8x128xf32> to vector<1x8x128xf32>
    %422 = arith.truncf %421 : vector<1x8x128xf32> to vector<1x8x128xbf16>
    %c4_152 = arith.constant 4 : index
    %c0_153 = arith.constant 0 : index
    %c0_154 = arith.constant 0 : index
    %423 = vector.load %arg6[%c4_152, %c0_153, %c0_154] : memref<8x8x256xbf16, #tpu.memory_space<vmem>>, vector<1x8x128xbf16>
    tpu.vector_store %arg6[%c4_152, %c0_153, %c0_154], %422 {strides = array<i32>} : memref<8x8x256xbf16, #tpu.memory_space<vmem>>, vector<1x8x128xbf16>,
    %424 = vector.shape_cast %420 : vector<8x128xf32> to vector<1x8x128xf32>
    %425 = arith.truncf %424 : vector<1x8x128xf32> to vector<1x8x128xbf16>
    %c3_155 = arith.constant 3 : index
    %c0_156 = arith.constant 0 : index
    %c128_157 = arith.constant 128 : index
    %426 = vector.load %arg6[%c3_155, %c0_156, %c128_157] : memref<8x8x256xbf16, #tpu.memory_space<vmem>>, vector<1x8x128xbf16>
    tpu.vector_store %arg6[%c3_155, %c0_156, %c128_157], %425 {strides = array<i32>} : memref<8x8x256xbf16, #tpu.memory_space<vmem>>, vector<1x8x128xbf16>,
    %c5_158 = arith.constant 5 : index
    %c0_159 = arith.constant 0 : index
    %c0_160 = arith.constant 0 : index
    %427 = vector.load %arg8[%c5_158, %c0_159, %c0_160] : memref<8x8x768xbf16, #tpu.memory_space<vmem>>, vector<1x8x384xbf16>
    %428 = vector.shape_cast %427 : vector<1x8x384xbf16> to vector<8x384xbf16>
    %c2_161 = arith.constant 2 : index
    %c0_162 = arith.constant 0 : index
    %c384_163 = arith.constant 384 : index
    %429 = vector.load %arg8[%c2_161, %c0_162, %c384_163] : memref<8x8x768xbf16, #tpu.memory_space<vmem>>, vector<1x8x384xbf16>
    %430 = vector.shape_cast %429 : vector<1x8x384xbf16> to vector<8x384xbf16>
    %431 = arith.extf %428 : vector<8x384xbf16> to vector<8x384xf32>
    %432 = arith.addf %431, %13 : vector<8x384xf32>
    %433 = arith.extf %430 : vector<8x384xbf16> to vector<8x384xf32>
    %434 = arith.addf %433, %16 : vector<8x384xf32>
    %435 = arith.truncf %389 : vector<8x128xf32> to vector<8x128xbf16>
    %cst_164 = arith.constant dense<0.000000e+00> : vector<8x384xf32>
    %436 = tpu.matmul %435, %8, %cst_164 {dimension_numbers = #tpu.dot_dimension_numbers<[1], [0], [0], [1], [0, 0, 1, 1], [], []>} : vector<8x128xbf16>, vector<128x384xbf16>, vector<8x384xf32> -> vector<8x384xf32>
    %437 = arith.truncf %420 : vector<8x128xf32> to vector<8x128xbf16>
    %cst_165 = arith.constant dense<0.000000e+00> : vector<8x384xf32>
    %438 = tpu.matmul %437, %10, %cst_165 {dimension_numbers = #tpu.dot_dimension_numbers<[1], [0], [0], [1], [0, 0, 1, 1], [], []>} : vector<8x128xbf16>, vector<128x384xbf16>, vector<8x384xf32> -> vector<8x384xf32>
    %439 = vector.extract_strided_slice %432 {offsets = [0, 0], sizes = [8, 128], strides = [1, 1]} : vector<8x384xf32> to vector<8x128xf32>
    %440 = vector.extract_strided_slice %436 {offsets = [0, 0], sizes = [8, 128], strides = [1, 1]} : vector<8x384xf32> to vector<8x128xf32>
    %441 = arith.addf %439, %440 : vector<8x128xf32>
    %cst_166 = arith.constant 5.000000e-01 : f32
    %442 = vector.broadcast %cst_166 : f32 to vector<8x128xf32>
    %443 = arith.mulf %442, %441 : vector<8x128xf32>
    %444 = math.tanh %443 : vector<8x128xf32>
    %cst_167 = arith.constant 5.000000e-01 : f32
    %445 = vector.broadcast %cst_167 : f32 to vector<8x128xf32>
    %446 = arith.mulf %445, %444 : vector<8x128xf32>
    %cst_168 = arith.constant 5.000000e-01 : f32
    %447 = vector.broadcast %cst_168 : f32 to vector<8x128xf32>
    %448 = arith.addf %446, %447 : vector<8x128xf32>
    %449 = vector.extract_strided_slice %432 {offsets = [0, 128], sizes = [8, 128], strides = [1, 1]} : vector<8x384xf32> to vector<8x128xf32>
    %450 = vector.extract_strided_slice %436 {offsets = [0, 128], sizes = [8, 128], strides = [1, 1]} : vector<8x384xf32> to vector<8x128xf32>
    %451 = arith.addf %449, %450 : vector<8x128xf32>
    %cst_169 = arith.constant 5.000000e-01 : f32
    %452 = vector.broadcast %cst_169 : f32 to vector<8x128xf32>
    %453 = arith.mulf %452, %451 : vector<8x128xf32>
    %454 = math.tanh %453 : vector<8x128xf32>
    %cst_170 = arith.constant 5.000000e-01 : f32
    %455 = vector.broadcast %cst_170 : f32 to vector<8x128xf32>
    %456 = arith.mulf %455, %454 : vector<8x128xf32>
    %cst_171 = arith.constant 5.000000e-01 : f32
    %457 = vector.broadcast %cst_171 : f32 to vector<8x128xf32>
    %458 = arith.addf %456, %457 : vector<8x128xf32>
    %459 = vector.extract_strided_slice %432 {offsets = [0, 256], sizes = [8, 128], strides = [1, 1]} : vector<8x384xf32> to vector<8x128xf32>
    %460 = vector.extract_strided_slice %436 {offsets = [0, 256], sizes = [8, 128], strides = [1, 1]} : vector<8x384xf32> to vector<8x128xf32>
    %461 = arith.addf %460, %19 : vector<8x128xf32>
    %462 = arith.mulf %448, %461 : vector<8x128xf32>
    %463 = arith.addf %459, %462 : vector<8x128xf32>
    %464 = math.tanh %463 : vector<8x128xf32>
    %cst_172 = arith.constant 1.000000e+00 : f32
    %465 = vector.broadcast %cst_172 : f32 to vector<8x128xf32>
    %466 = arith.subf %465, %458 : vector<8x128xf32>
    %467 = arith.mulf %466, %464 : vector<8x128xf32>
    %468 = arith.mulf %458, %389 : vector<8x128xf32>
    %469 = arith.addf %467, %468 : vector<8x128xf32>
    %470 = vector.extract_strided_slice %434 {offsets = [0, 0], sizes = [8, 128], strides = [1, 1]} : vector<8x384xf32> to vector<8x128xf32>
    %471 = vector.extract_strided_slice %438 {offsets = [0, 0], sizes = [8, 128], strides = [1, 1]} : vector<8x384xf32> to vector<8x128xf32>
    %472 = arith.addf %470, %471 : vector<8x128xf32>
    %cst_173 = arith.constant 5.000000e-01 : f32
    %473 = vector.broadcast %cst_173 : f32 to vector<8x128xf32>
    %474 = arith.mulf %473, %472 : vector<8x128xf32>
    %475 = math.tanh %474 : vector<8x128xf32>
    %cst_174 = arith.constant 5.000000e-01 : f32
    %476 = vector.broadcast %cst_174 : f32 to vector<8x128xf32>
    %477 = arith.mulf %476, %475 : vector<8x128xf32>
    %cst_175 = arith.constant 5.000000e-01 : f32
    %478 = vector.broadcast %cst_175 : f32 to vector<8x128xf32>
    %479 = arith.addf %477, %478 : vector<8x128xf32>
    %480 = vector.extract_strided_slice %434 {offsets = [0, 128], sizes = [8, 128], strides = [1, 1]} : vector<8x384xf32> to vector<8x128xf32>
    %481 = vector.extract_strided_slice %438 {offsets = [0, 128], sizes = [8, 128], strides = [1, 1]} : vector<8x384xf32> to vector<8x128xf32>
    %482 = arith.addf %480, %481 : vector<8x128xf32>
    %cst_176 = arith.constant 5.000000e-01 : f32
    %483 = vector.broadcast %cst_176 : f32 to vector<8x128xf32>
    %484 = arith.mulf %483, %482 : vector<8x128xf32>
    %485 = math.tanh %484 : vector<8x128xf32>
    %cst_177 = arith.constant 5.000000e-01 : f32
    %486 = vector.broadcast %cst_177 : f32 to vector<8x128xf32>
    %487 = arith.mulf %486, %485 : vector<8x128xf32>
    %cst_178 = arith.constant 5.000000e-01 : f32
    %488 = vector.broadcast %cst_178 : f32 to vector<8x128xf32>
    %489 = arith.addf %487, %488 : vector<8x128xf32>
    %490 = vector.extract_strided_slice %434 {offsets = [0, 256], sizes = [8, 128], strides = [1, 1]} : vector<8x384xf32> to vector<8x128xf32>
    %491 = vector.extract_strided_slice %438 {offsets = [0, 256], sizes = [8, 128], strides = [1, 1]} : vector<8x384xf32> to vector<8x128xf32>
    %492 = arith.addf %491, %22 : vector<8x128xf32>
    %493 = arith.mulf %479, %492 : vector<8x128xf32>
    %494 = arith.addf %490, %493 : vector<8x128xf32>
    %495 = math.tanh %494 : vector<8x128xf32>
    %cst_179 = arith.constant 1.000000e+00 : f32
    %496 = vector.broadcast %cst_179 : f32 to vector<8x128xf32>
    %497 = arith.subf %496, %489 : vector<8x128xf32>
    %498 = arith.mulf %497, %495 : vector<8x128xf32>
    %499 = arith.mulf %489, %420 : vector<8x128xf32>
    %500 = arith.addf %498, %499 : vector<8x128xf32>
    %501 = vector.shape_cast %469 : vector<8x128xf32> to vector<1x8x128xf32>
    %502 = arith.truncf %501 : vector<1x8x128xf32> to vector<1x8x128xbf16>
    %c5_180 = arith.constant 5 : index
    %c0_181 = arith.constant 0 : index
    %c0_182 = arith.constant 0 : index
    %503 = vector.load %arg6[%c5_180, %c0_181, %c0_182] : memref<8x8x256xbf16, #tpu.memory_space<vmem>>, vector<1x8x128xbf16>
    tpu.vector_store %arg6[%c5_180, %c0_181, %c0_182], %502 {strides = array<i32>} : memref<8x8x256xbf16, #tpu.memory_space<vmem>>, vector<1x8x128xbf16>,
    %504 = vector.shape_cast %500 : vector<8x128xf32> to vector<1x8x128xf32>
    %505 = arith.truncf %504 : vector<1x8x128xf32> to vector<1x8x128xbf16>
    %c2_183 = arith.constant 2 : index
    %c0_184 = arith.constant 0 : index
    %c128_185 = arith.constant 128 : index
    %506 = vector.load %arg6[%c2_183, %c0_184, %c128_185] : memref<8x8x256xbf16, #tpu.memory_space<vmem>>, vector<1x8x128xbf16>
    tpu.vector_store %arg6[%c2_183, %c0_184, %c128_185], %505 {strides = array<i32>} : memref<8x8x256xbf16, #tpu.memory_space<vmem>>, vector<1x8x128xbf16>,
    %c6_186 = arith.constant 6 : index
    %c0_187 = arith.constant 0 : index
    %c0_188 = arith.constant 0 : index
    %507 = vector.load %arg8[%c6_186, %c0_187, %c0_188] : memref<8x8x768xbf16, #tpu.memory_space<vmem>>, vector<1x8x384xbf16>
    %508 = vector.shape_cast %507 : vector<1x8x384xbf16> to vector<8x384xbf16>
    %c1_189 = arith.constant 1 : index
    %c0_190 = arith.constant 0 : index
    %c384_191 = arith.constant 384 : index
    %509 = vector.load %arg8[%c1_189, %c0_190, %c384_191] : memref<8x8x768xbf16, #tpu.memory_space<vmem>>, vector<1x8x384xbf16>
    %510 = vector.shape_cast %509 : vector<1x8x384xbf16> to vector<8x384xbf16>
    %511 = arith.extf %508 : vector<8x384xbf16> to vector<8x384xf32>
    %512 = arith.addf %511, %13 : vector<8x384xf32>
    %513 = arith.extf %510 : vector<8x384xbf16> to vector<8x384xf32>
    %514 = arith.addf %513, %16 : vector<8x384xf32>
    %515 = arith.truncf %469 : vector<8x128xf32> to vector<8x128xbf16>
    %cst_192 = arith.constant dense<0.000000e+00> : vector<8x384xf32>
    %516 = tpu.matmul %515, %8, %cst_192 {dimension_numbers = #tpu.dot_dimension_numbers<[1], [0], [0], [1], [0, 0, 1, 1], [], []>} : vector<8x128xbf16>, vector<128x384xbf16>, vector<8x384xf32> -> vector<8x384xf32>
    %517 = arith.truncf %500 : vector<8x128xf32> to vector<8x128xbf16>
    %cst_193 = arith.constant dense<0.000000e+00> : vector<8x384xf32>
    %518 = tpu.matmul %517, %10, %cst_193 {dimension_numbers = #tpu.dot_dimension_numbers<[1], [0], [0], [1], [0, 0, 1, 1], [], []>} : vector<8x128xbf16>, vector<128x384xbf16>, vector<8x384xf32> -> vector<8x384xf32>
    %519 = vector.extract_strided_slice %512 {offsets = [0, 0], sizes = [8, 128], strides = [1, 1]} : vector<8x384xf32> to vector<8x128xf32>
    %520 = vector.extract_strided_slice %516 {offsets = [0, 0], sizes = [8, 128], strides = [1, 1]} : vector<8x384xf32> to vector<8x128xf32>
    %521 = arith.addf %519, %520 : vector<8x128xf32>
    %cst_194 = arith.constant 5.000000e-01 : f32
    %522 = vector.broadcast %cst_194 : f32 to vector<8x128xf32>
    %523 = arith.mulf %522, %521 : vector<8x128xf32>
    %524 = math.tanh %523 : vector<8x128xf32>
    %cst_195 = arith.constant 5.000000e-01 : f32
    %525 = vector.broadcast %cst_195 : f32 to vector<8x128xf32>
    %526 = arith.mulf %525, %524 : vector<8x128xf32>
    %cst_196 = arith.constant 5.000000e-01 : f32
    %527 = vector.broadcast %cst_196 : f32 to vector<8x128xf32>
    %528 = arith.addf %526, %527 : vector<8x128xf32>
    %529 = vector.extract_strided_slice %512 {offsets = [0, 128], sizes = [8, 128], strides = [1, 1]} : vector<8x384xf32> to vector<8x128xf32>
    %530 = vector.extract_strided_slice %516 {offsets = [0, 128], sizes = [8, 128], strides = [1, 1]} : vector<8x384xf32> to vector<8x128xf32>
    %531 = arith.addf %529, %530 : vector<8x128xf32>
    %cst_197 = arith.constant 5.000000e-01 : f32
    %532 = vector.broadcast %cst_197 : f32 to vector<8x128xf32>
    %533 = arith.mulf %532, %531 : vector<8x128xf32>
    %534 = math.tanh %533 : vector<8x128xf32>
    %cst_198 = arith.constant 5.000000e-01 : f32
    %535 = vector.broadcast %cst_198 : f32 to vector<8x128xf32>
    %536 = arith.mulf %535, %534 : vector<8x128xf32>
    %cst_199 = arith.constant 5.000000e-01 : f32
    %537 = vector.broadcast %cst_199 : f32 to vector<8x128xf32>
    %538 = arith.addf %536, %537 : vector<8x128xf32>
    %539 = vector.extract_strided_slice %512 {offsets = [0, 256], sizes = [8, 128], strides = [1, 1]} : vector<8x384xf32> to vector<8x128xf32>
    %540 = vector.extract_strided_slice %516 {offsets = [0, 256], sizes = [8, 128], strides = [1, 1]} : vector<8x384xf32> to vector<8x128xf32>
    %541 = arith.addf %540, %19 : vector<8x128xf32>
    %542 = arith.mulf %528, %541 : vector<8x128xf32>
    %543 = arith.addf %539, %542 : vector<8x128xf32>
    %544 = math.tanh %543 : vector<8x128xf32>
    %cst_200 = arith.constant 1.000000e+00 : f32
    %545 = vector.broadcast %cst_200 : f32 to vector<8x128xf32>
    %546 = arith.subf %545, %538 : vector<8x128xf32>
    %547 = arith.mulf %546, %544 : vector<8x128xf32>
    %548 = arith.mulf %538, %469 : vector<8x128xf32>
    %549 = arith.addf %547, %548 : vector<8x128xf32>
    %550 = vector.extract_strided_slice %514 {offsets = [0, 0], sizes = [8, 128], strides = [1, 1]} : vector<8x384xf32> to vector<8x128xf32>
    %551 = vector.extract_strided_slice %518 {offsets = [0, 0], sizes = [8, 128], strides = [1, 1]} : vector<8x384xf32> to vector<8x128xf32>
    %552 = arith.addf %550, %551 : vector<8x128xf32>
    %cst_201 = arith.constant 5.000000e-01 : f32
    %553 = vector.broadcast %cst_201 : f32 to vector<8x128xf32>
    %554 = arith.mulf %553, %552 : vector<8x128xf32>
    %555 = math.tanh %554 : vector<8x128xf32>
    %cst_202 = arith.constant 5.000000e-01 : f32
    %556 = vector.broadcast %cst_202 : f32 to vector<8x128xf32>
    %557 = arith.mulf %556, %555 : vector<8x128xf32>
    %cst_203 = arith.constant 5.000000e-01 : f32
    %558 = vector.broadcast %cst_203 : f32 to vector<8x128xf32>
    %559 = arith.addf %557, %558 : vector<8x128xf32>
    %560 = vector.extract_strided_slice %514 {offsets = [0, 128], sizes = [8, 128], strides = [1, 1]} : vector<8x384xf32> to vector<8x128xf32>
    %561 = vector.extract_strided_slice %518 {offsets = [0, 128], sizes = [8, 128], strides = [1, 1]} : vector<8x384xf32> to vector<8x128xf32>
    %562 = arith.addf %560, %561 : vector<8x128xf32>
    %cst_204 = arith.constant 5.000000e-01 : f32
    %563 = vector.broadcast %cst_204 : f32 to vector<8x128xf32>
    %564 = arith.mulf %563, %562 : vector<8x128xf32>
    %565 = math.tanh %564 : vector<8x128xf32>
    %cst_205 = arith.constant 5.000000e-01 : f32
    %566 = vector.broadcast %cst_205 : f32 to vector<8x128xf32>
    %567 = arith.mulf %566, %565 : vector<8x128xf32>
    %cst_206 = arith.constant 5.000000e-01 : f32
    %568 = vector.broadcast %cst_206 : f32 to vector<8x128xf32>
    %569 = arith.addf %567, %568 : vector<8x128xf32>
    %570 = vector.extract_strided_slice %514 {offsets = [0, 256], sizes = [8, 128], strides = [1, 1]} : vector<8x384xf32> to vector<8x128xf32>
    %571 = vector.extract_strided_slice %518 {offsets = [0, 256], sizes = [8, 128], strides = [1, 1]} : vector<8x384xf32> to vector<8x128xf32>
    %572 = arith.addf %571, %22 : vector<8x128xf32>
    %573 = arith.mulf %559, %572 : vector<8x128xf32>
    %574 = arith.addf %570, %573 : vector<8x128xf32>
    %575 = math.tanh %574 : vector<8x128xf32>
    %cst_207 = arith.constant 1.000000e+00 : f32
    %576 = vector.broadcast %cst_207 : f32 to vector<8x128xf32>
    %577 = arith.subf %576, %569 : vector<8x128xf32>
    %578 = arith.mulf %577, %575 : vector<8x128xf32>
    %579 = arith.mulf %569, %500 : vector<8x128xf32>
    %580 = arith.addf %578, %579 : vector<8x128xf32>
    %581 = vector.shape_cast %549 : vector<8x128xf32> to vector<1x8x128xf32>
    %582 = arith.truncf %581 : vector<1x8x128xf32> to vector<1x8x128xbf16>
    %c6_208 = arith.constant 6 : index
    %c0_209 = arith.constant 0 : index
    %c0_210 = arith.constant 0 : index
    %583 = vector.load %arg6[%c6_208, %c0_209, %c0_210] : memref<8x8x256xbf16, #tpu.memory_space<vmem>>, vector<1x8x128xbf16>
    tpu.vector_store %arg6[%c6_208, %c0_209, %c0_210], %582 {strides = array<i32>} : memref<8x8x256xbf16, #tpu.memory_space<vmem>>, vector<1x8x128xbf16>,
    %584 = vector.shape_cast %580 : vector<8x128xf32> to vector<1x8x128xf32>
    %585 = arith.truncf %584 : vector<1x8x128xf32> to vector<1x8x128xbf16>
    %c1_211 = arith.constant 1 : index
    %c0_212 = arith.constant 0 : index
    %c128_213 = arith.constant 128 : index
    %586 = vector.load %arg6[%c1_211, %c0_212, %c128_213] : memref<8x8x256xbf16, #tpu.memory_space<vmem>>, vector<1x8x128xbf16>
    tpu.vector_store %arg6[%c1_211, %c0_212, %c128_213], %585 {strides = array<i32>} : memref<8x8x256xbf16, #tpu.memory_space<vmem>>, vector<1x8x128xbf16>,
    %c7_214 = arith.constant 7 : index
    %c0_215 = arith.constant 0 : index
    %c0_216 = arith.constant 0 : index
    %587 = vector.load %arg8[%c7_214, %c0_215, %c0_216] : memref<8x8x768xbf16, #tpu.memory_space<vmem>>, vector<1x8x384xbf16>
    %588 = vector.shape_cast %587 : vector<1x8x384xbf16> to vector<8x384xbf16>
    %c0_217 = arith.constant 0 : index
    %c0_218 = arith.constant 0 : index
    %c384_219 = arith.constant 384 : index
    %589 = vector.load %arg8[%c0_217, %c0_218, %c384_219] : memref<8x8x768xbf16, #tpu.memory_space<vmem>>, vector<1x8x384xbf16>
    %590 = vector.shape_cast %589 : vector<1x8x384xbf16> to vector<8x384xbf16>
    %591 = arith.extf %588 : vector<8x384xbf16> to vector<8x384xf32>
    %592 = arith.addf %591, %13 : vector<8x384xf32>
    %593 = arith.extf %590 : vector<8x384xbf16> to vector<8x384xf32>
    %594 = arith.addf %593, %16 : vector<8x384xf32>
    %595 = arith.truncf %549 : vector<8x128xf32> to vector<8x128xbf16>
    %cst_220 = arith.constant dense<0.000000e+00> : vector<8x384xf32>
    %596 = tpu.matmul %595, %8, %cst_220 {dimension_numbers = #tpu.dot_dimension_numbers<[1], [0], [0], [1], [0, 0, 1, 1], [], []>} : vector<8x128xbf16>, vector<128x384xbf16>, vector<8x384xf32> -> vector<8x384xf32>
    %597 = arith.truncf %580 : vector<8x128xf32> to vector<8x128xbf16>
    %cst_221 = arith.constant dense<0.000000e+00> : vector<8x384xf32>
    %598 = tpu.matmul %597, %10, %cst_221 {dimension_numbers = #tpu.dot_dimension_numbers<[1], [0], [0], [1], [0, 0, 1, 1], [], []>} : vector<8x128xbf16>, vector<128x384xbf16>, vector<8x384xf32> -> vector<8x384xf32>
    %599 = vector.extract_strided_slice %592 {offsets = [0, 0], sizes = [8, 128], strides = [1, 1]} : vector<8x384xf32> to vector<8x128xf32>
    %600 = vector.extract_strided_slice %596 {offsets = [0, 0], sizes = [8, 128], strides = [1, 1]} : vector<8x384xf32> to vector<8x128xf32>
    %601 = arith.addf %599, %600 : vector<8x128xf32>
    %cst_222 = arith.constant 5.000000e-01 : f32
    %602 = vector.broadcast %cst_222 : f32 to vector<8x128xf32>
    %603 = arith.mulf %602, %601 : vector<8x128xf32>
    %604 = math.tanh %603 : vector<8x128xf32>
    %cst_223 = arith.constant 5.000000e-01 : f32
    %605 = vector.broadcast %cst_223 : f32 to vector<8x128xf32>
    %606 = arith.mulf %605, %604 : vector<8x128xf32>
    %cst_224 = arith.constant 5.000000e-01 : f32
    %607 = vector.broadcast %cst_224 : f32 to vector<8x128xf32>
    %608 = arith.addf %606, %607 : vector<8x128xf32>
    %609 = vector.extract_strided_slice %592 {offsets = [0, 128], sizes = [8, 128], strides = [1, 1]} : vector<8x384xf32> to vector<8x128xf32>
    %610 = vector.extract_strided_slice %596 {offsets = [0, 128], sizes = [8, 128], strides = [1, 1]} : vector<8x384xf32> to vector<8x128xf32>
    %611 = arith.addf %609, %610 : vector<8x128xf32>
    %cst_225 = arith.constant 5.000000e-01 : f32
    %612 = vector.broadcast %cst_225 : f32 to vector<8x128xf32>
    %613 = arith.mulf %612, %611 : vector<8x128xf32>
    %614 = math.tanh %613 : vector<8x128xf32>
    %cst_226 = arith.constant 5.000000e-01 : f32
    %615 = vector.broadcast %cst_226 : f32 to vector<8x128xf32>
    %616 = arith.mulf %615, %614 : vector<8x128xf32>
    %cst_227 = arith.constant 5.000000e-01 : f32
    %617 = vector.broadcast %cst_227 : f32 to vector<8x128xf32>
    %618 = arith.addf %616, %617 : vector<8x128xf32>
    %619 = vector.extract_strided_slice %592 {offsets = [0, 256], sizes = [8, 128], strides = [1, 1]} : vector<8x384xf32> to vector<8x128xf32>
    %620 = vector.extract_strided_slice %596 {offsets = [0, 256], sizes = [8, 128], strides = [1, 1]} : vector<8x384xf32> to vector<8x128xf32>
    %621 = arith.addf %620, %19 : vector<8x128xf32>
    %622 = arith.mulf %608, %621 : vector<8x128xf32>
    %623 = arith.addf %619, %622 : vector<8x128xf32>
    %624 = math.tanh %623 : vector<8x128xf32>
    %cst_228 = arith.constant 1.000000e+00 : f32
    %625 = vector.broadcast %cst_228 : f32 to vector<8x128xf32>
    %626 = arith.subf %625, %618 : vector<8x128xf32>
    %627 = arith.mulf %626, %624 : vector<8x128xf32>
    %628 = arith.mulf %618, %549 : vector<8x128xf32>
    %629 = arith.addf %627, %628 : vector<8x128xf32>
    %630 = vector.extract_strided_slice %594 {offsets = [0, 0], sizes = [8, 128], strides = [1, 1]} : vector<8x384xf32> to vector<8x128xf32>
    %631 = vector.extract_strided_slice %598 {offsets = [0, 0], sizes = [8, 128], strides = [1, 1]} : vector<8x384xf32> to vector<8x128xf32>
    %632 = arith.addf %630, %631 : vector<8x128xf32>
    %cst_229 = arith.constant 5.000000e-01 : f32
    %633 = vector.broadcast %cst_229 : f32 to vector<8x128xf32>
    %634 = arith.mulf %633, %632 : vector<8x128xf32>
    %635 = math.tanh %634 : vector<8x128xf32>
    %cst_230 = arith.constant 5.000000e-01 : f32
    %636 = vector.broadcast %cst_230 : f32 to vector<8x128xf32>
    %637 = arith.mulf %636, %635 : vector<8x128xf32>
    %cst_231 = arith.constant 5.000000e-01 : f32
    %638 = vector.broadcast %cst_231 : f32 to vector<8x128xf32>
    %639 = arith.addf %637, %638 : vector<8x128xf32>
    %640 = vector.extract_strided_slice %594 {offsets = [0, 128], sizes = [8, 128], strides = [1, 1]} : vector<8x384xf32> to vector<8x128xf32>
    %641 = vector.extract_strided_slice %598 {offsets = [0, 128], sizes = [8, 128], strides = [1, 1]} : vector<8x384xf32> to vector<8x128xf32>
    %642 = arith.addf %640, %641 : vector<8x128xf32>
    %cst_232 = arith.constant 5.000000e-01 : f32
    %643 = vector.broadcast %cst_232 : f32 to vector<8x128xf32>
    %644 = arith.mulf %643, %642 : vector<8x128xf32>
    %645 = math.tanh %644 : vector<8x128xf32>
    %cst_233 = arith.constant 5.000000e-01 : f32
    %646 = vector.broadcast %cst_233 : f32 to vector<8x128xf32>
    %647 = arith.mulf %646, %645 : vector<8x128xf32>
    %cst_234 = arith.constant 5.000000e-01 : f32
    %648 = vector.broadcast %cst_234 : f32 to vector<8x128xf32>
    %649 = arith.addf %647, %648 : vector<8x128xf32>
    %650 = vector.extract_strided_slice %594 {offsets = [0, 256], sizes = [8, 128], strides = [1, 1]} : vector<8x384xf32> to vector<8x128xf32>
    %651 = vector.extract_strided_slice %598 {offsets = [0, 256], sizes = [8, 128], strides = [1, 1]} : vector<8x384xf32> to vector<8x128xf32>
    %652 = arith.addf %651, %22 : vector<8x128xf32>
    %653 = arith.mulf %639, %652 : vector<8x128xf32>
    %654 = arith.addf %650, %653 : vector<8x128xf32>
    %655 = math.tanh %654 : vector<8x128xf32>
    %cst_235 = arith.constant 1.000000e+00 : f32
    %656 = vector.broadcast %cst_235 : f32 to vector<8x128xf32>
    %657 = arith.subf %656, %649 : vector<8x128xf32>
    %658 = arith.mulf %657, %655 : vector<8x128xf32>
    %659 = arith.mulf %649, %580 : vector<8x128xf32>
    %660 = arith.addf %658, %659 : vector<8x128xf32>
    %661 = vector.shape_cast %629 : vector<8x128xf32> to vector<1x8x128xf32>
    %662 = arith.truncf %661 : vector<1x8x128xf32> to vector<1x8x128xbf16>
    %c7_236 = arith.constant 7 : index
    %c0_237 = arith.constant 0 : index
    %c0_238 = arith.constant 0 : index
    %663 = vector.load %arg6[%c7_236, %c0_237, %c0_238] : memref<8x8x256xbf16, #tpu.memory_space<vmem>>, vector<1x8x128xbf16>
    tpu.vector_store %arg6[%c7_236, %c0_237, %c0_238], %662 {strides = array<i32>} : memref<8x8x256xbf16, #tpu.memory_space<vmem>>, vector<1x8x128xbf16>,
    %664 = vector.shape_cast %660 : vector<8x128xf32> to vector<1x8x128xf32>
    %665 = arith.truncf %664 : vector<1x8x128xf32> to vector<1x8x128xbf16>
    %c0_239 = arith.constant 0 : index
    %c0_240 = arith.constant 0 : index
    %c128_241 = arith.constant 128 : index
    %666 = vector.load %arg6[%c0_239, %c0_240, %c128_241] : memref<8x8x256xbf16, #tpu.memory_space<vmem>>, vector<1x8x128xbf16>
    tpu.vector_store %arg6[%c0_239, %c0_240, %c128_241], %665 {strides = array<i32>} : memref<8x8x256xbf16, #tpu.memory_space<vmem>>, vector<1x8x128xbf16>,
    %c0_242 = arith.constant 0 : index
    %c0_243 = arith.constant 0 : index
    %c0_244 = arith.constant 0 : index
    %667 = vector.load %arg7[%c0_242, %c0_243, %c0_244] : memref<2x8x128xf32, #tpu.memory_space<vmem>>, vector<1x8x128xf32>
    %668 = vector.shape_cast %667 : vector<1x8x128xf32> to vector<8x128xf32>
    %669 = vector.shape_cast %629 : vector<8x128xf32> to vector<1x8x128xf32>
    tpu.vector_store %arg7[%c0_242, %c0_243, %c0_244], %669 {strides = array<i32>} : memref<2x8x128xf32, #tpu.memory_space<vmem>>, vector<1x8x128xf32>,
    %c1_245 = arith.constant 1 : index
    %c0_246 = arith.constant 0 : index
    %c0_247 = arith.constant 0 : index
    %670 = vector.load %arg7[%c1_245, %c0_246, %c0_247] : memref<2x8x128xf32, #tpu.memory_space<vmem>>, vector<1x8x128xf32>
    %671 = vector.shape_cast %670 : vector<1x8x128xf32> to vector<8x128xf32>
    %672 = vector.shape_cast %660 : vector<8x128xf32> to vector<1x8x128xf32>
    tpu.vector_store %arg7[%c1_245, %c0_246, %c0_247], %672 {strides = array<i32>} : memref<2x8x128xf32, #tpu.memory_space<vmem>>, vector<1x8x128xf32>,
    return
  }
}

module attributes {stable_mosaic.version = 11 : i64} {
  func.func @bigru_layer_kernel(%arg0: memref<8x8x256xbf16, #tpu.memory_space<vmem>>, %arg1: memref<256x768xbf16, #tpu.memory_space<vmem>>, %arg2: memref<2x128x384xbf16, #tpu.memory_space<vmem>>, %arg3: memref<1x768xf32, #tpu.memory_space<vmem>>, %arg4: memref<1x256xf32, #tpu.memory_space<vmem>>, %arg5: memref<2x8x128xf32, #tpu.memory_space<vmem>>, %arg6: memref<8x8x256xf32, #tpu.memory_space<vmem>>, %arg7: memref<2x8x128xf32, #tpu.memory_space<vmem>>, %arg8: memref<8x8x768xbf16, #tpu.memory_space<vmem>>) attributes {dimension_semantics = [], scalar_prefetch = 0 : i64, scratch_operands = 1 : i64, tpu.core_type = #tpu.core_type<tc>} {
    %c0 = arith.constant 0 : index
    %c0_0 = arith.constant 0 : index
    %0 = vector.load %arg1[%c0, %c0_0] : memref<256x768xbf16, #tpu.memory_space<vmem>>, vector<256x768xbf16>
    %c0_1 = arith.constant 0 : index
    %c0_2 = arith.constant 0 : index
    %c0_3 = arith.constant 0 : index
    %1 = vector.load %arg0[%c0_1, %c0_2, %c0_3] : memref<8x8x256xbf16, #tpu.memory_space<vmem>>, vector<8x8x256xbf16>
    %2 = vector.shape_cast %1 : vector<8x8x256xbf16> to vector<64x256xbf16>
    %cst = arith.constant dense<0.000000e+00> : vector<64x768xf32>
    %3 = tpu.matmul %2, %0, %cst {dimension_numbers = #tpu.dot_dimension_numbers<[1], [0], [0], [1], [0, 0, 1, 1], [], []>} : vector<64x256xbf16>, vector<256x768xbf16>, vector<64x768xf32> -> vector<64x768xf32>
    %4 = vector.shape_cast %3 : vector<64x768xf32> to vector<8x8x768xf32>
    %5 = arith.truncf %4 : vector<8x8x768xf32> to vector<8x8x768xbf16>
    %c0_4 = arith.constant 0 : index
    %c0_5 = arith.constant 0 : index
    %c0_6 = arith.constant 0 : index
    %6 = vector.load %arg8[%c0_4, %c0_5, %c0_6] : memref<8x8x768xbf16, #tpu.memory_space<vmem>>, vector<8x8x768xbf16>
    tpu.vector_store %arg8[%c0_4, %c0_5, %c0_6], %5 {strides = array<i32>} : memref<8x8x768xbf16, #tpu.memory_space<vmem>>, vector<8x8x768xbf16>,
    %c0_7 = arith.constant 0 : index
    %c0_8 = arith.constant 0 : index
    %c0_9 = arith.constant 0 : index
    %7 = vector.load %arg2[%c0_7, %c0_8, %c0_9] : memref<2x128x384xbf16, #tpu.memory_space<vmem>>, vector<1x128x384xbf16>
    %8 = vector.shape_cast %7 : vector<1x128x384xbf16> to vector<128x384xbf16>
    %c1 = arith.constant 1 : index
    %c0_10 = arith.constant 0 : index
    %c0_11 = arith.constant 0 : index
    %9 = vector.load %arg2[%c1, %c0_10, %c0_11] : memref<2x128x384xbf16, #tpu.memory_space<vmem>>, vector<1x128x384xbf16>
    %10 = vector.shape_cast %9 : vector<1x128x384xbf16> to vector<128x384xbf16>
    %c0_12 = arith.constant 0 : index
    %c0_13 = arith.constant 0 : index
    %11 = vector.load %arg3[%c0_12, %c0_13] : memref<1x768xf32, #tpu.memory_space<vmem>>, vector<1x384xf32>
    %12 = vector.shape_cast %11 : vector<1x384xf32> to vector<1x384xf32>
    %13 = vector.broadcast %12 : vector<1x384xf32> to vector<8x384xf32>
    %c0_14 = arith.constant 0 : index
    %c384 = arith.constant 384 : index
    %14 = vector.load %arg3[%c0_14, %c384] : memref<1x768xf32, #tpu.memory_space<vmem>>, vector<1x384xf32>
    %15 = vector.shape_cast %14 : vector<1x384xf32> to vector<1x384xf32>
    %16 = vector.broadcast %15 : vector<1x384xf32> to vector<8x384xf32>
    %c0_15 = arith.constant 0 : index
    %c0_16 = arith.constant 0 : index
    %17 = vector.load %arg4[%c0_15, %c0_16] : memref<1x256xf32, #tpu.memory_space<vmem>>, vector<1x128xf32>
    %18 = vector.shape_cast %17 : vector<1x128xf32> to vector<1x128xf32>
    %19 = vector.broadcast %18 : vector<1x128xf32> to vector<8x128xf32>
    %c0_17 = arith.constant 0 : index
    %c128 = arith.constant 128 : index
    %20 = vector.load %arg4[%c0_17, %c128] : memref<1x256xf32, #tpu.memory_space<vmem>>, vector<1x128xf32>
    %21 = vector.shape_cast %20 : vector<1x128xf32> to vector<1x128xf32>
    %22 = vector.broadcast %21 : vector<1x128xf32> to vector<8x128xf32>
    %c0_18 = arith.constant 0 : index
    %c0_19 = arith.constant 0 : index
    %c0_20 = arith.constant 0 : index
    %23 = vector.load %arg5[%c0_18, %c0_19, %c0_20] : memref<2x8x128xf32, #tpu.memory_space<vmem>>, vector<1x8x128xf32>
    %24 = vector.shape_cast %23 : vector<1x8x128xf32> to vector<8x128xf32>
    %c1_21 = arith.constant 1 : index
    %c0_22 = arith.constant 0 : index
    %c0_23 = arith.constant 0 : index
    %25 = vector.load %arg5[%c1_21, %c0_22, %c0_23] : memref<2x8x128xf32, #tpu.memory_space<vmem>>, vector<1x8x128xf32>
    %26 = vector.shape_cast %25 : vector<1x8x128xf32> to vector<8x128xf32>
    %c0_24 = arith.constant 0 : index
    %c0_25 = arith.constant 0 : index
    %c0_26 = arith.constant 0 : index
    %27 = vector.load %arg8[%c0_24, %c0_25, %c0_26] : memref<8x8x768xbf16, #tpu.memory_space<vmem>>, vector<1x8x384xbf16>
    %28 = vector.shape_cast %27 : vector<1x8x384xbf16> to vector<8x384xbf16>
    %c7 = arith.constant 7 : index
    %c0_27 = arith.constant 0 : index
    %c384_28 = arith.constant 384 : index
    %29 = vector.load %arg8[%c7, %c0_27, %c384_28] : memref<8x8x768xbf16, #tpu.memory_space<vmem>>, vector<1x8x384xbf16>
    %30 = vector.shape_cast %29 : vector<1x8x384xbf16> to vector<8x384xbf16>
    %31 = arith.extf %28 : vector<8x384xbf16> to vector<8x384xf32>
    %32 = arith.addf %31, %13 : vector<8x384xf32>
    %33 = arith.extf %30 : vector<8x384xbf16> to vector<8x384xf32>
    %34 = arith.addf %33, %16 : vector<8x384xf32>
    %35 = arith.truncf %24 : vector<8x128xf32> to vector<8x128xbf16>
    %cst_29 = arith.constant dense<0.000000e+00> : vector<8x384xf32>
    %36 = tpu.matmul %35, %8, %cst_29 {dimension_numbers = #tpu.dot_dimension_numbers<[1], [0], [0], [1], [0, 0, 1, 1], [], []>} : vector<8x128xbf16>, vector<128x384xbf16>, vector<8x384xf32> -> vector<8x384xf32>
    %37 = arith.truncf %26 : vector<8x128xf32> to vector<8x128xbf16>
    %cst_30 = arith.constant dense<0.000000e+00> : vector<8x384xf32>
    %38 = tpu.matmul %37, %10, %cst_30 {dimension_numbers = #tpu.dot_dimension_numbers<[1], [0], [0], [1], [0, 0, 1, 1], [], []>} : vector<8x128xbf16>, vector<128x384xbf16>, vector<8x384xf32> -> vector<8x384xf32>
    %39 = vector.extract_strided_slice %32 {offsets = [0, 0], sizes = [8, 128], strides = [1, 1]} : vector<8x384xf32> to vector<8x128xf32>
    %40 = vector.extract_strided_slice %36 {offsets = [0, 0], sizes = [8, 128], strides = [1, 1]} : vector<8x384xf32> to vector<8x128xf32>
    %41 = arith.addf %39, %40 : vector<8x128xf32>
    %cst_31 = arith.constant 5.000000e-01 : f32
    %42 = vector.broadcast %cst_31 : f32 to vector<8x128xf32>
    %43 = arith.mulf %42, %41 : vector<8x128xf32>
    %44 = math.tanh %43 : vector<8x128xf32>
    %cst_32 = arith.constant 5.000000e-01 : f32
    %45 = vector.broadcast %cst_32 : f32 to vector<8x128xf32>
    %46 = arith.mulf %45, %44 : vector<8x128xf32>
    %cst_33 = arith.constant 5.000000e-01 : f32
    %47 = vector.broadcast %cst_33 : f32 to vector<8x128xf32>
    %48 = arith.addf %46, %47 : vector<8x128xf32>
    %49 = vector.extract_strided_slice %32 {offsets = [0, 128], sizes = [8, 128], strides = [1, 1]} : vector<8x384xf32> to vector<8x128xf32>
    %50 = vector.extract_strided_slice %36 {offsets = [0, 128], sizes = [8, 128], strides = [1, 1]} : vector<8x384xf32> to vector<8x128xf32>
    %51 = arith.addf %49, %50 : vector<8x128xf32>
    %cst_34 = arith.constant 5.000000e-01 : f32
    %52 = vector.broadcast %cst_34 : f32 to vector<8x128xf32>
    %53 = arith.mulf %52, %51 : vector<8x128xf32>
    %54 = math.tanh %53 : vector<8x128xf32>
    %cst_35 = arith.constant 5.000000e-01 : f32
    %55 = vector.broadcast %cst_35 : f32 to vector<8x128xf32>
    %56 = arith.mulf %55, %54 : vector<8x128xf32>
    %cst_36 = arith.constant 5.000000e-01 : f32
    %57 = vector.broadcast %cst_36 : f32 to vector<8x128xf32>
    %58 = arith.addf %56, %57 : vector<8x128xf32>
    %59 = vector.extract_strided_slice %32 {offsets = [0, 256], sizes = [8, 128], strides = [1, 1]} : vector<8x384xf32> to vector<8x128xf32>
    %60 = vector.extract_strided_slice %36 {offsets = [0, 256], sizes = [8, 128], strides = [1, 1]} : vector<8x384xf32> to vector<8x128xf32>
    %61 = arith.addf %60, %19 : vector<8x128xf32>
    %62 = arith.mulf %48, %61 : vector<8x128xf32>
    %63 = arith.addf %59, %62 : vector<8x128xf32>
    %64 = math.tanh %63 : vector<8x128xf32>
    %cst_37 = arith.constant 1.000000e+00 : f32
    %65 = vector.broadcast %cst_37 : f32 to vector<8x128xf32>
    %66 = arith.subf %65, %58 : vector<8x128xf32>
    %67 = arith.mulf %66, %64 : vector<8x128xf32>
    %68 = arith.mulf %58, %24 : vector<8x128xf32>
    %69 = arith.addf %67, %68 : vector<8x128xf32>
    %70 = vector.extract_strided_slice %34 {offsets = [0, 0], sizes = [8, 128], strides = [1, 1]} : vector<8x384xf32> to vector<8x128xf32>
    %71 = vector.extract_strided_slice %38 {offsets = [0, 0], sizes = [8, 128], strides = [1, 1]} : vector<8x384xf32> to vector<8x128xf32>
    %72 = arith.addf %70, %71 : vector<8x128xf32>
    %cst_38 = arith.constant 5.000000e-01 : f32
    %73 = vector.broadcast %cst_38 : f32 to vector<8x128xf32>
    %74 = arith.mulf %73, %72 : vector<8x128xf32>
    %75 = math.tanh %74 : vector<8x128xf32>
    %cst_39 = arith.constant 5.000000e-01 : f32
    %76 = vector.broadcast %cst_39 : f32 to vector<8x128xf32>
    %77 = arith.mulf %76, %75 : vector<8x128xf32>
    %cst_40 = arith.constant 5.000000e-01 : f32
    %78 = vector.broadcast %cst_40 : f32 to vector<8x128xf32>
    %79 = arith.addf %77, %78 : vector<8x128xf32>
    %80 = vector.extract_strided_slice %34 {offsets = [0, 128], sizes = [8, 128], strides = [1, 1]} : vector<8x384xf32> to vector<8x128xf32>
    %81 = vector.extract_strided_slice %38 {offsets = [0, 128], sizes = [8, 128], strides = [1, 1]} : vector<8x384xf32> to vector<8x128xf32>
    %82 = arith.addf %80, %81 : vector<8x128xf32>
    %cst_41 = arith.constant 5.000000e-01 : f32
    %83 = vector.broadcast %cst_41 : f32 to vector<8x128xf32>
    %84 = arith.mulf %83, %82 : vector<8x128xf32>
    %85 = math.tanh %84 : vector<8x128xf32>
    %cst_42 = arith.constant 5.000000e-01 : f32
    %86 = vector.broadcast %cst_42 : f32 to vector<8x128xf32>
    %87 = arith.mulf %86, %85 : vector<8x128xf32>
    %cst_43 = arith.constant 5.000000e-01 : f32
    %88 = vector.broadcast %cst_43 : f32 to vector<8x128xf32>
    %89 = arith.addf %87, %88 : vector<8x128xf32>
    %90 = vector.extract_strided_slice %34 {offsets = [0, 256], sizes = [8, 128], strides = [1, 1]} : vector<8x384xf32> to vector<8x128xf32>
    %91 = vector.extract_strided_slice %38 {offsets = [0, 256], sizes = [8, 128], strides = [1, 1]} : vector<8x384xf32> to vector<8x128xf32>
    %92 = arith.addf %91, %22 : vector<8x128xf32>
    %93 = arith.mulf %79, %92 : vector<8x128xf32>
    %94 = arith.addf %90, %93 : vector<8x128xf32>
    %95 = math.tanh %94 : vector<8x128xf32>
    %cst_44 = arith.constant 1.000000e+00 : f32
    %96 = vector.broadcast %cst_44 : f32 to vector<8x128xf32>
    %97 = arith.subf %96, %89 : vector<8x128xf32>
    %98 = arith.mulf %97, %95 : vector<8x128xf32>
    %99 = arith.mulf %89, %26 : vector<8x128xf32>
    %100 = arith.addf %98, %99 : vector<8x128xf32>
    %101 = vector.shape_cast %69 : vector<8x128xf32> to vector<1x8x128xf32>
    %c0_45 = arith.constant 0 : index
    %c0_46 = arith.constant 0 : index
    %c0_47 = arith.constant 0 : index
    %102 = vector.load %arg6[%c0_45, %c0_46, %c0_47] : memref<8x8x256xf32, #tpu.memory_space<vmem>>, vector<1x8x128xf32>
    tpu.vector_store %arg6[%c0_45, %c0_46, %c0_47], %101 {strides = array<i32>} : memref<8x8x256xf32, #tpu.memory_space<vmem>>, vector<1x8x128xf32>,
    %103 = vector.shape_cast %100 : vector<8x128xf32> to vector<1x8x128xf32>
    %c7_48 = arith.constant 7 : index
    %c0_49 = arith.constant 0 : index
    %c128_50 = arith.constant 128 : index
    %104 = vector.load %arg6[%c7_48, %c0_49, %c128_50] : memref<8x8x256xf32, #tpu.memory_space<vmem>>, vector<1x8x128xf32>
    tpu.vector_store %arg6[%c7_48, %c0_49, %c128_50], %103 {strides = array<i32>} : memref<8x8x256xf32, #tpu.memory_space<vmem>>, vector<1x8x128xf32>,
    %c1_51 = arith.constant 1 : index
    %c0_52 = arith.constant 0 : index
    %c0_53 = arith.constant 0 : index
    %105 = vector.load %arg8[%c1_51, %c0_52, %c0_53] : memref<8x8x768xbf16, #tpu.memory_space<vmem>>, vector<1x8x384xbf16>
    %106 = vector.shape_cast %105 : vector<1x8x384xbf16> to vector<8x384xbf16>
    %c6 = arith.constant 6 : index
    %c0_54 = arith.constant 0 : index
    %c384_55 = arith.constant 384 : index
    %107 = vector.load %arg8[%c6, %c0_54, %c384_55] : memref<8x8x768xbf16, #tpu.memory_space<vmem>>, vector<1x8x384xbf16>
    %108 = vector.shape_cast %107 : vector<1x8x384xbf16> to vector<8x384xbf16>
    %109 = arith.extf %106 : vector<8x384xbf16> to vector<8x384xf32>
    %110 = arith.addf %109, %13 : vector<8x384xf32>
    %111 = arith.extf %108 : vector<8x384xbf16> to vector<8x384xf32>
    %112 = arith.addf %111, %16 : vector<8x384xf32>
    %113 = arith.truncf %69 : vector<8x128xf32> to vector<8x128xbf16>
    %cst_56 = arith.constant dense<0.000000e+00> : vector<8x384xf32>
    %114 = tpu.matmul %113, %8, %cst_56 {dimension_numbers = #tpu.dot_dimension_numbers<[1], [0], [0], [1], [0, 0, 1, 1], [], []>} : vector<8x128xbf16>, vector<128x384xbf16>, vector<8x384xf32> -> vector<8x384xf32>
    %115 = arith.truncf %100 : vector<8x128xf32> to vector<8x128xbf16>
    %cst_57 = arith.constant dense<0.000000e+00> : vector<8x384xf32>
    %116 = tpu.matmul %115, %10, %cst_57 {dimension_numbers = #tpu.dot_dimension_numbers<[1], [0], [0], [1], [0, 0, 1, 1], [], []>} : vector<8x128xbf16>, vector<128x384xbf16>, vector<8x384xf32> -> vector<8x384xf32>
    %117 = vector.extract_strided_slice %110 {offsets = [0, 0], sizes = [8, 128], strides = [1, 1]} : vector<8x384xf32> to vector<8x128xf32>
    %118 = vector.extract_strided_slice %114 {offsets = [0, 0], sizes = [8, 128], strides = [1, 1]} : vector<8x384xf32> to vector<8x128xf32>
    %119 = arith.addf %117, %118 : vector<8x128xf32>
    %cst_58 = arith.constant 5.000000e-01 : f32
    %120 = vector.broadcast %cst_58 : f32 to vector<8x128xf32>
    %121 = arith.mulf %120, %119 : vector<8x128xf32>
    %122 = math.tanh %121 : vector<8x128xf32>
    %cst_59 = arith.constant 5.000000e-01 : f32
    %123 = vector.broadcast %cst_59 : f32 to vector<8x128xf32>
    %124 = arith.mulf %123, %122 : vector<8x128xf32>
    %cst_60 = arith.constant 5.000000e-01 : f32
    %125 = vector.broadcast %cst_60 : f32 to vector<8x128xf32>
    %126 = arith.addf %124, %125 : vector<8x128xf32>
    %127 = vector.extract_strided_slice %110 {offsets = [0, 128], sizes = [8, 128], strides = [1, 1]} : vector<8x384xf32> to vector<8x128xf32>
    %128 = vector.extract_strided_slice %114 {offsets = [0, 128], sizes = [8, 128], strides = [1, 1]} : vector<8x384xf32> to vector<8x128xf32>
    %129 = arith.addf %127, %128 : vector<8x128xf32>
    %cst_61 = arith.constant 5.000000e-01 : f32
    %130 = vector.broadcast %cst_61 : f32 to vector<8x128xf32>
    %131 = arith.mulf %130, %129 : vector<8x128xf32>
    %132 = math.tanh %131 : vector<8x128xf32>
    %cst_62 = arith.constant 5.000000e-01 : f32
    %133 = vector.broadcast %cst_62 : f32 to vector<8x128xf32>
    %134 = arith.mulf %133, %132 : vector<8x128xf32>
    %cst_63 = arith.constant 5.000000e-01 : f32
    %135 = vector.broadcast %cst_63 : f32 to vector<8x128xf32>
    %136 = arith.addf %134, %135 : vector<8x128xf32>
    %137 = vector.extract_strided_slice %110 {offsets = [0, 256], sizes = [8, 128], strides = [1, 1]} : vector<8x384xf32> to vector<8x128xf32>
    %138 = vector.extract_strided_slice %114 {offsets = [0, 256], sizes = [8, 128], strides = [1, 1]} : vector<8x384xf32> to vector<8x128xf32>
    %139 = arith.addf %138, %19 : vector<8x128xf32>
    %140 = arith.mulf %126, %139 : vector<8x128xf32>
    %141 = arith.addf %137, %140 : vector<8x128xf32>
    %142 = math.tanh %141 : vector<8x128xf32>
    %cst_64 = arith.constant 1.000000e+00 : f32
    %143 = vector.broadcast %cst_64 : f32 to vector<8x128xf32>
    %144 = arith.subf %143, %136 : vector<8x128xf32>
    %145 = arith.mulf %144, %142 : vector<8x128xf32>
    %146 = arith.mulf %136, %69 : vector<8x128xf32>
    %147 = arith.addf %145, %146 : vector<8x128xf32>
    %148 = vector.extract_strided_slice %112 {offsets = [0, 0], sizes = [8, 128], strides = [1, 1]} : vector<8x384xf32> to vector<8x128xf32>
    %149 = vector.extract_strided_slice %116 {offsets = [0, 0], sizes = [8, 128], strides = [1, 1]} : vector<8x384xf32> to vector<8x128xf32>
    %150 = arith.addf %148, %149 : vector<8x128xf32>
    %cst_65 = arith.constant 5.000000e-01 : f32
    %151 = vector.broadcast %cst_65 : f32 to vector<8x128xf32>
    %152 = arith.mulf %151, %150 : vector<8x128xf32>
    %153 = math.tanh %152 : vector<8x128xf32>
    %cst_66 = arith.constant 5.000000e-01 : f32
    %154 = vector.broadcast %cst_66 : f32 to vector<8x128xf32>
    %155 = arith.mulf %154, %153 : vector<8x128xf32>
    %cst_67 = arith.constant 5.000000e-01 : f32
    %156 = vector.broadcast %cst_67 : f32 to vector<8x128xf32>
    %157 = arith.addf %155, %156 : vector<8x128xf32>
    %158 = vector.extract_strided_slice %112 {offsets = [0, 128], sizes = [8, 128], strides = [1, 1]} : vector<8x384xf32> to vector<8x128xf32>
    %159 = vector.extract_strided_slice %116 {offsets = [0, 128], sizes = [8, 128], strides = [1, 1]} : vector<8x384xf32> to vector<8x128xf32>
    %160 = arith.addf %158, %159 : vector<8x128xf32>
    %cst_68 = arith.constant 5.000000e-01 : f32
    %161 = vector.broadcast %cst_68 : f32 to vector<8x128xf32>
    %162 = arith.mulf %161, %160 : vector<8x128xf32>
    %163 = math.tanh %162 : vector<8x128xf32>
    %cst_69 = arith.constant 5.000000e-01 : f32
    %164 = vector.broadcast %cst_69 : f32 to vector<8x128xf32>
    %165 = arith.mulf %164, %163 : vector<8x128xf32>
    %cst_70 = arith.constant 5.000000e-01 : f32
    %166 = vector.broadcast %cst_70 : f32 to vector<8x128xf32>
    %167 = arith.addf %165, %166 : vector<8x128xf32>
    %168 = vector.extract_strided_slice %112 {offsets = [0, 256], sizes = [8, 128], strides = [1, 1]} : vector<8x384xf32> to vector<8x128xf32>
    %169 = vector.extract_strided_slice %116 {offsets = [0, 256], sizes = [8, 128], strides = [1, 1]} : vector<8x384xf32> to vector<8x128xf32>
    %170 = arith.addf %169, %22 : vector<8x128xf32>
    %171 = arith.mulf %157, %170 : vector<8x128xf32>
    %172 = arith.addf %168, %171 : vector<8x128xf32>
    %173 = math.tanh %172 : vector<8x128xf32>
    %cst_71 = arith.constant 1.000000e+00 : f32
    %174 = vector.broadcast %cst_71 : f32 to vector<8x128xf32>
    %175 = arith.subf %174, %167 : vector<8x128xf32>
    %176 = arith.mulf %175, %173 : vector<8x128xf32>
    %177 = arith.mulf %167, %100 : vector<8x128xf32>
    %178 = arith.addf %176, %177 : vector<8x128xf32>
    %179 = vector.shape_cast %147 : vector<8x128xf32> to vector<1x8x128xf32>
    %c1_72 = arith.constant 1 : index
    %c0_73 = arith.constant 0 : index
    %c0_74 = arith.constant 0 : index
    %180 = vector.load %arg6[%c1_72, %c0_73, %c0_74] : memref<8x8x256xf32, #tpu.memory_space<vmem>>, vector<1x8x128xf32>
    tpu.vector_store %arg6[%c1_72, %c0_73, %c0_74], %179 {strides = array<i32>} : memref<8x8x256xf32, #tpu.memory_space<vmem>>, vector<1x8x128xf32>,
    %181 = vector.shape_cast %178 : vector<8x128xf32> to vector<1x8x128xf32>
    %c6_75 = arith.constant 6 : index
    %c0_76 = arith.constant 0 : index
    %c128_77 = arith.constant 128 : index
    %182 = vector.load %arg6[%c6_75, %c0_76, %c128_77] : memref<8x8x256xf32, #tpu.memory_space<vmem>>, vector<1x8x128xf32>
    tpu.vector_store %arg6[%c6_75, %c0_76, %c128_77], %181 {strides = array<i32>} : memref<8x8x256xf32, #tpu.memory_space<vmem>>, vector<1x8x128xf32>,
    %c2 = arith.constant 2 : index
    %c0_78 = arith.constant 0 : index
    %c0_79 = arith.constant 0 : index
    %183 = vector.load %arg8[%c2, %c0_78, %c0_79] : memref<8x8x768xbf16, #tpu.memory_space<vmem>>, vector<1x8x384xbf16>
    %184 = vector.shape_cast %183 : vector<1x8x384xbf16> to vector<8x384xbf16>
    %c5 = arith.constant 5 : index
    %c0_80 = arith.constant 0 : index
    %c384_81 = arith.constant 384 : index
    %185 = vector.load %arg8[%c5, %c0_80, %c384_81] : memref<8x8x768xbf16, #tpu.memory_space<vmem>>, vector<1x8x384xbf16>
    %186 = vector.shape_cast %185 : vector<1x8x384xbf16> to vector<8x384xbf16>
    %187 = arith.extf %184 : vector<8x384xbf16> to vector<8x384xf32>
    %188 = arith.addf %187, %13 : vector<8x384xf32>
    %189 = arith.extf %186 : vector<8x384xbf16> to vector<8x384xf32>
    %190 = arith.addf %189, %16 : vector<8x384xf32>
    %191 = arith.truncf %147 : vector<8x128xf32> to vector<8x128xbf16>
    %cst_82 = arith.constant dense<0.000000e+00> : vector<8x384xf32>
    %192 = tpu.matmul %191, %8, %cst_82 {dimension_numbers = #tpu.dot_dimension_numbers<[1], [0], [0], [1], [0, 0, 1, 1], [], []>} : vector<8x128xbf16>, vector<128x384xbf16>, vector<8x384xf32> -> vector<8x384xf32>
    %193 = arith.truncf %178 : vector<8x128xf32> to vector<8x128xbf16>
    %cst_83 = arith.constant dense<0.000000e+00> : vector<8x384xf32>
    %194 = tpu.matmul %193, %10, %cst_83 {dimension_numbers = #tpu.dot_dimension_numbers<[1], [0], [0], [1], [0, 0, 1, 1], [], []>} : vector<8x128xbf16>, vector<128x384xbf16>, vector<8x384xf32> -> vector<8x384xf32>
    %195 = vector.extract_strided_slice %188 {offsets = [0, 0], sizes = [8, 128], strides = [1, 1]} : vector<8x384xf32> to vector<8x128xf32>
    %196 = vector.extract_strided_slice %192 {offsets = [0, 0], sizes = [8, 128], strides = [1, 1]} : vector<8x384xf32> to vector<8x128xf32>
    %197 = arith.addf %195, %196 : vector<8x128xf32>
    %cst_84 = arith.constant 5.000000e-01 : f32
    %198 = vector.broadcast %cst_84 : f32 to vector<8x128xf32>
    %199 = arith.mulf %198, %197 : vector<8x128xf32>
    %200 = math.tanh %199 : vector<8x128xf32>
    %cst_85 = arith.constant 5.000000e-01 : f32
    %201 = vector.broadcast %cst_85 : f32 to vector<8x128xf32>
    %202 = arith.mulf %201, %200 : vector<8x128xf32>
    %cst_86 = arith.constant 5.000000e-01 : f32
    %203 = vector.broadcast %cst_86 : f32 to vector<8x128xf32>
    %204 = arith.addf %202, %203 : vector<8x128xf32>
    %205 = vector.extract_strided_slice %188 {offsets = [0, 128], sizes = [8, 128], strides = [1, 1]} : vector<8x384xf32> to vector<8x128xf32>
    %206 = vector.extract_strided_slice %192 {offsets = [0, 128], sizes = [8, 128], strides = [1, 1]} : vector<8x384xf32> to vector<8x128xf32>
    %207 = arith.addf %205, %206 : vector<8x128xf32>
    %cst_87 = arith.constant 5.000000e-01 : f32
    %208 = vector.broadcast %cst_87 : f32 to vector<8x128xf32>
    %209 = arith.mulf %208, %207 : vector<8x128xf32>
    %210 = math.tanh %209 : vector<8x128xf32>
    %cst_88 = arith.constant 5.000000e-01 : f32
    %211 = vector.broadcast %cst_88 : f32 to vector<8x128xf32>
    %212 = arith.mulf %211, %210 : vector<8x128xf32>
    %cst_89 = arith.constant 5.000000e-01 : f32
    %213 = vector.broadcast %cst_89 : f32 to vector<8x128xf32>
    %214 = arith.addf %212, %213 : vector<8x128xf32>
    %215 = vector.extract_strided_slice %188 {offsets = [0, 256], sizes = [8, 128], strides = [1, 1]} : vector<8x384xf32> to vector<8x128xf32>
    %216 = vector.extract_strided_slice %192 {offsets = [0, 256], sizes = [8, 128], strides = [1, 1]} : vector<8x384xf32> to vector<8x128xf32>
    %217 = arith.addf %216, %19 : vector<8x128xf32>
    %218 = arith.mulf %204, %217 : vector<8x128xf32>
    %219 = arith.addf %215, %218 : vector<8x128xf32>
    %220 = math.tanh %219 : vector<8x128xf32>
    %cst_90 = arith.constant 1.000000e+00 : f32
    %221 = vector.broadcast %cst_90 : f32 to vector<8x128xf32>
    %222 = arith.subf %221, %214 : vector<8x128xf32>
    %223 = arith.mulf %222, %220 : vector<8x128xf32>
    %224 = arith.mulf %214, %147 : vector<8x128xf32>
    %225 = arith.addf %223, %224 : vector<8x128xf32>
    %226 = vector.extract_strided_slice %190 {offsets = [0, 0], sizes = [8, 128], strides = [1, 1]} : vector<8x384xf32> to vector<8x128xf32>
    %227 = vector.extract_strided_slice %194 {offsets = [0, 0], sizes = [8, 128], strides = [1, 1]} : vector<8x384xf32> to vector<8x128xf32>
    %228 = arith.addf %226, %227 : vector<8x128xf32>
    %cst_91 = arith.constant 5.000000e-01 : f32
    %229 = vector.broadcast %cst_91 : f32 to vector<8x128xf32>
    %230 = arith.mulf %229, %228 : vector<8x128xf32>
    %231 = math.tanh %230 : vector<8x128xf32>
    %cst_92 = arith.constant 5.000000e-01 : f32
    %232 = vector.broadcast %cst_92 : f32 to vector<8x128xf32>
    %233 = arith.mulf %232, %231 : vector<8x128xf32>
    %cst_93 = arith.constant 5.000000e-01 : f32
    %234 = vector.broadcast %cst_93 : f32 to vector<8x128xf32>
    %235 = arith.addf %233, %234 : vector<8x128xf32>
    %236 = vector.extract_strided_slice %190 {offsets = [0, 128], sizes = [8, 128], strides = [1, 1]} : vector<8x384xf32> to vector<8x128xf32>
    %237 = vector.extract_strided_slice %194 {offsets = [0, 128], sizes = [8, 128], strides = [1, 1]} : vector<8x384xf32> to vector<8x128xf32>
    %238 = arith.addf %236, %237 : vector<8x128xf32>
    %cst_94 = arith.constant 5.000000e-01 : f32
    %239 = vector.broadcast %cst_94 : f32 to vector<8x128xf32>
    %240 = arith.mulf %239, %238 : vector<8x128xf32>
    %241 = math.tanh %240 : vector<8x128xf32>
    %cst_95 = arith.constant 5.000000e-01 : f32
    %242 = vector.broadcast %cst_95 : f32 to vector<8x128xf32>
    %243 = arith.mulf %242, %241 : vector<8x128xf32>
    %cst_96 = arith.constant 5.000000e-01 : f32
    %244 = vector.broadcast %cst_96 : f32 to vector<8x128xf32>
    %245 = arith.addf %243, %244 : vector<8x128xf32>
    %246 = vector.extract_strided_slice %190 {offsets = [0, 256], sizes = [8, 128], strides = [1, 1]} : vector<8x384xf32> to vector<8x128xf32>
    %247 = vector.extract_strided_slice %194 {offsets = [0, 256], sizes = [8, 128], strides = [1, 1]} : vector<8x384xf32> to vector<8x128xf32>
    %248 = arith.addf %247, %22 : vector<8x128xf32>
    %249 = arith.mulf %235, %248 : vector<8x128xf32>
    %250 = arith.addf %246, %249 : vector<8x128xf32>
    %251 = math.tanh %250 : vector<8x128xf32>
    %cst_97 = arith.constant 1.000000e+00 : f32
    %252 = vector.broadcast %cst_97 : f32 to vector<8x128xf32>
    %253 = arith.subf %252, %245 : vector<8x128xf32>
    %254 = arith.mulf %253, %251 : vector<8x128xf32>
    %255 = arith.mulf %245, %178 : vector<8x128xf32>
    %256 = arith.addf %254, %255 : vector<8x128xf32>
    %257 = vector.shape_cast %225 : vector<8x128xf32> to vector<1x8x128xf32>
    %c2_98 = arith.constant 2 : index
    %c0_99 = arith.constant 0 : index
    %c0_100 = arith.constant 0 : index
    %258 = vector.load %arg6[%c2_98, %c0_99, %c0_100] : memref<8x8x256xf32, #tpu.memory_space<vmem>>, vector<1x8x128xf32>
    tpu.vector_store %arg6[%c2_98, %c0_99, %c0_100], %257 {strides = array<i32>} : memref<8x8x256xf32, #tpu.memory_space<vmem>>, vector<1x8x128xf32>,
    %259 = vector.shape_cast %256 : vector<8x128xf32> to vector<1x8x128xf32>
    %c5_101 = arith.constant 5 : index
    %c0_102 = arith.constant 0 : index
    %c128_103 = arith.constant 128 : index
    %260 = vector.load %arg6[%c5_101, %c0_102, %c128_103] : memref<8x8x256xf32, #tpu.memory_space<vmem>>, vector<1x8x128xf32>
    tpu.vector_store %arg6[%c5_101, %c0_102, %c128_103], %259 {strides = array<i32>} : memref<8x8x256xf32, #tpu.memory_space<vmem>>, vector<1x8x128xf32>,
    %c3 = arith.constant 3 : index
    %c0_104 = arith.constant 0 : index
    %c0_105 = arith.constant 0 : index
    %261 = vector.load %arg8[%c3, %c0_104, %c0_105] : memref<8x8x768xbf16, #tpu.memory_space<vmem>>, vector<1x8x384xbf16>
    %262 = vector.shape_cast %261 : vector<1x8x384xbf16> to vector<8x384xbf16>
    %c4 = arith.constant 4 : index
    %c0_106 = arith.constant 0 : index
    %c384_107 = arith.constant 384 : index
    %263 = vector.load %arg8[%c4, %c0_106, %c384_107] : memref<8x8x768xbf16, #tpu.memory_space<vmem>>, vector<1x8x384xbf16>
    %264 = vector.shape_cast %263 : vector<1x8x384xbf16> to vector<8x384xbf16>
    %265 = arith.extf %262 : vector<8x384xbf16> to vector<8x384xf32>
    %266 = arith.addf %265, %13 : vector<8x384xf32>
    %267 = arith.extf %264 : vector<8x384xbf16> to vector<8x384xf32>
    %268 = arith.addf %267, %16 : vector<8x384xf32>
    %269 = arith.truncf %225 : vector<8x128xf32> to vector<8x128xbf16>
    %cst_108 = arith.constant dense<0.000000e+00> : vector<8x384xf32>
    %270 = tpu.matmul %269, %8, %cst_108 {dimension_numbers = #tpu.dot_dimension_numbers<[1], [0], [0], [1], [0, 0, 1, 1], [], []>} : vector<8x128xbf16>, vector<128x384xbf16>, vector<8x384xf32> -> vector<8x384xf32>
    %271 = arith.truncf %256 : vector<8x128xf32> to vector<8x128xbf16>
    %cst_109 = arith.constant dense<0.000000e+00> : vector<8x384xf32>
    %272 = tpu.matmul %271, %10, %cst_109 {dimension_numbers = #tpu.dot_dimension_numbers<[1], [0], [0], [1], [0, 0, 1, 1], [], []>} : vector<8x128xbf16>, vector<128x384xbf16>, vector<8x384xf32> -> vector<8x384xf32>
    %273 = vector.extract_strided_slice %266 {offsets = [0, 0], sizes = [8, 128], strides = [1, 1]} : vector<8x384xf32> to vector<8x128xf32>
    %274 = vector.extract_strided_slice %270 {offsets = [0, 0], sizes = [8, 128], strides = [1, 1]} : vector<8x384xf32> to vector<8x128xf32>
    %275 = arith.addf %273, %274 : vector<8x128xf32>
    %cst_110 = arith.constant 5.000000e-01 : f32
    %276 = vector.broadcast %cst_110 : f32 to vector<8x128xf32>
    %277 = arith.mulf %276, %275 : vector<8x128xf32>
    %278 = math.tanh %277 : vector<8x128xf32>
    %cst_111 = arith.constant 5.000000e-01 : f32
    %279 = vector.broadcast %cst_111 : f32 to vector<8x128xf32>
    %280 = arith.mulf %279, %278 : vector<8x128xf32>
    %cst_112 = arith.constant 5.000000e-01 : f32
    %281 = vector.broadcast %cst_112 : f32 to vector<8x128xf32>
    %282 = arith.addf %280, %281 : vector<8x128xf32>
    %283 = vector.extract_strided_slice %266 {offsets = [0, 128], sizes = [8, 128], strides = [1, 1]} : vector<8x384xf32> to vector<8x128xf32>
    %284 = vector.extract_strided_slice %270 {offsets = [0, 128], sizes = [8, 128], strides = [1, 1]} : vector<8x384xf32> to vector<8x128xf32>
    %285 = arith.addf %283, %284 : vector<8x128xf32>
    %cst_113 = arith.constant 5.000000e-01 : f32
    %286 = vector.broadcast %cst_113 : f32 to vector<8x128xf32>
    %287 = arith.mulf %286, %285 : vector<8x128xf32>
    %288 = math.tanh %287 : vector<8x128xf32>
    %cst_114 = arith.constant 5.000000e-01 : f32
    %289 = vector.broadcast %cst_114 : f32 to vector<8x128xf32>
    %290 = arith.mulf %289, %288 : vector<8x128xf32>
    %cst_115 = arith.constant 5.000000e-01 : f32
    %291 = vector.broadcast %cst_115 : f32 to vector<8x128xf32>
    %292 = arith.addf %290, %291 : vector<8x128xf32>
    %293 = vector.extract_strided_slice %266 {offsets = [0, 256], sizes = [8, 128], strides = [1, 1]} : vector<8x384xf32> to vector<8x128xf32>
    %294 = vector.extract_strided_slice %270 {offsets = [0, 256], sizes = [8, 128], strides = [1, 1]} : vector<8x384xf32> to vector<8x128xf32>
    %295 = arith.addf %294, %19 : vector<8x128xf32>
    %296 = arith.mulf %282, %295 : vector<8x128xf32>
    %297 = arith.addf %293, %296 : vector<8x128xf32>
    %298 = math.tanh %297 : vector<8x128xf32>
    %cst_116 = arith.constant 1.000000e+00 : f32
    %299 = vector.broadcast %cst_116 : f32 to vector<8x128xf32>
    %300 = arith.subf %299, %292 : vector<8x128xf32>
    %301 = arith.mulf %300, %298 : vector<8x128xf32>
    %302 = arith.mulf %292, %225 : vector<8x128xf32>
    %303 = arith.addf %301, %302 : vector<8x128xf32>
    %304 = vector.extract_strided_slice %268 {offsets = [0, 0], sizes = [8, 128], strides = [1, 1]} : vector<8x384xf32> to vector<8x128xf32>
    %305 = vector.extract_strided_slice %272 {offsets = [0, 0], sizes = [8, 128], strides = [1, 1]} : vector<8x384xf32> to vector<8x128xf32>
    %306 = arith.addf %304, %305 : vector<8x128xf32>
    %cst_117 = arith.constant 5.000000e-01 : f32
    %307 = vector.broadcast %cst_117 : f32 to vector<8x128xf32>
    %308 = arith.mulf %307, %306 : vector<8x128xf32>
    %309 = math.tanh %308 : vector<8x128xf32>
    %cst_118 = arith.constant 5.000000e-01 : f32
    %310 = vector.broadcast %cst_118 : f32 to vector<8x128xf32>
    %311 = arith.mulf %310, %309 : vector<8x128xf32>
    %cst_119 = arith.constant 5.000000e-01 : f32
    %312 = vector.broadcast %cst_119 : f32 to vector<8x128xf32>
    %313 = arith.addf %311, %312 : vector<8x128xf32>
    %314 = vector.extract_strided_slice %268 {offsets = [0, 128], sizes = [8, 128], strides = [1, 1]} : vector<8x384xf32> to vector<8x128xf32>
    %315 = vector.extract_strided_slice %272 {offsets = [0, 128], sizes = [8, 128], strides = [1, 1]} : vector<8x384xf32> to vector<8x128xf32>
    %316 = arith.addf %314, %315 : vector<8x128xf32>
    %cst_120 = arith.constant 5.000000e-01 : f32
    %317 = vector.broadcast %cst_120 : f32 to vector<8x128xf32>
    %318 = arith.mulf %317, %316 : vector<8x128xf32>
    %319 = math.tanh %318 : vector<8x128xf32>
    %cst_121 = arith.constant 5.000000e-01 : f32
    %320 = vector.broadcast %cst_121 : f32 to vector<8x128xf32>
    %321 = arith.mulf %320, %319 : vector<8x128xf32>
    %cst_122 = arith.constant 5.000000e-01 : f32
    %322 = vector.broadcast %cst_122 : f32 to vector<8x128xf32>
    %323 = arith.addf %321, %322 : vector<8x128xf32>
    %324 = vector.extract_strided_slice %268 {offsets = [0, 256], sizes = [8, 128], strides = [1, 1]} : vector<8x384xf32> to vector<8x128xf32>
    %325 = vector.extract_strided_slice %272 {offsets = [0, 256], sizes = [8, 128], strides = [1, 1]} : vector<8x384xf32> to vector<8x128xf32>
    %326 = arith.addf %325, %22 : vector<8x128xf32>
    %327 = arith.mulf %313, %326 : vector<8x128xf32>
    %328 = arith.addf %324, %327 : vector<8x128xf32>
    %329 = math.tanh %328 : vector<8x128xf32>
    %cst_123 = arith.constant 1.000000e+00 : f32
    %330 = vector.broadcast %cst_123 : f32 to vector<8x128xf32>
    %331 = arith.subf %330, %323 : vector<8x128xf32>
    %332 = arith.mulf %331, %329 : vector<8x128xf32>
    %333 = arith.mulf %323, %256 : vector<8x128xf32>
    %334 = arith.addf %332, %333 : vector<8x128xf32>
    %335 = vector.shape_cast %303 : vector<8x128xf32> to vector<1x8x128xf32>
    %c3_124 = arith.constant 3 : index
    %c0_125 = arith.constant 0 : index
    %c0_126 = arith.constant 0 : index
    %336 = vector.load %arg6[%c3_124, %c0_125, %c0_126] : memref<8x8x256xf32, #tpu.memory_space<vmem>>, vector<1x8x128xf32>
    tpu.vector_store %arg6[%c3_124, %c0_125, %c0_126], %335 {strides = array<i32>} : memref<8x8x256xf32, #tpu.memory_space<vmem>>, vector<1x8x128xf32>,
    %337 = vector.shape_cast %334 : vector<8x128xf32> to vector<1x8x128xf32>
    %c4_127 = arith.constant 4 : index
    %c0_128 = arith.constant 0 : index
    %c128_129 = arith.constant 128 : index
    %338 = vector.load %arg6[%c4_127, %c0_128, %c128_129] : memref<8x8x256xf32, #tpu.memory_space<vmem>>, vector<1x8x128xf32>
    tpu.vector_store %arg6[%c4_127, %c0_128, %c128_129], %337 {strides = array<i32>} : memref<8x8x256xf32, #tpu.memory_space<vmem>>, vector<1x8x128xf32>,
    %c4_130 = arith.constant 4 : index
    %c0_131 = arith.constant 0 : index
    %c0_132 = arith.constant 0 : index
    %339 = vector.load %arg8[%c4_130, %c0_131, %c0_132] : memref<8x8x768xbf16, #tpu.memory_space<vmem>>, vector<1x8x384xbf16>
    %340 = vector.shape_cast %339 : vector<1x8x384xbf16> to vector<8x384xbf16>
    %c3_133 = arith.constant 3 : index
    %c0_134 = arith.constant 0 : index
    %c384_135 = arith.constant 384 : index
    %341 = vector.load %arg8[%c3_133, %c0_134, %c384_135] : memref<8x8x768xbf16, #tpu.memory_space<vmem>>, vector<1x8x384xbf16>
    %342 = vector.shape_cast %341 : vector<1x8x384xbf16> to vector<8x384xbf16>
    %343 = arith.extf %340 : vector<8x384xbf16> to vector<8x384xf32>
    %344 = arith.addf %343, %13 : vector<8x384xf32>
    %345 = arith.extf %342 : vector<8x384xbf16> to vector<8x384xf32>
    %346 = arith.addf %345, %16 : vector<8x384xf32>
    %347 = arith.truncf %303 : vector<8x128xf32> to vector<8x128xbf16>
    %cst_136 = arith.constant dense<0.000000e+00> : vector<8x384xf32>
    %348 = tpu.matmul %347, %8, %cst_136 {dimension_numbers = #tpu.dot_dimension_numbers<[1], [0], [0], [1], [0, 0, 1, 1], [], []>} : vector<8x128xbf16>, vector<128x384xbf16>, vector<8x384xf32> -> vector<8x384xf32>
    %349 = arith.truncf %334 : vector<8x128xf32> to vector<8x128xbf16>
    %cst_137 = arith.constant dense<0.000000e+00> : vector<8x384xf32>
    %350 = tpu.matmul %349, %10, %cst_137 {dimension_numbers = #tpu.dot_dimension_numbers<[1], [0], [0], [1], [0, 0, 1, 1], [], []>} : vector<8x128xbf16>, vector<128x384xbf16>, vector<8x384xf32> -> vector<8x384xf32>
    %351 = vector.extract_strided_slice %344 {offsets = [0, 0], sizes = [8, 128], strides = [1, 1]} : vector<8x384xf32> to vector<8x128xf32>
    %352 = vector.extract_strided_slice %348 {offsets = [0, 0], sizes = [8, 128], strides = [1, 1]} : vector<8x384xf32> to vector<8x128xf32>
    %353 = arith.addf %351, %352 : vector<8x128xf32>
    %cst_138 = arith.constant 5.000000e-01 : f32
    %354 = vector.broadcast %cst_138 : f32 to vector<8x128xf32>
    %355 = arith.mulf %354, %353 : vector<8x128xf32>
    %356 = math.tanh %355 : vector<8x128xf32>
    %cst_139 = arith.constant 5.000000e-01 : f32
    %357 = vector.broadcast %cst_139 : f32 to vector<8x128xf32>
    %358 = arith.mulf %357, %356 : vector<8x128xf32>
    %cst_140 = arith.constant 5.000000e-01 : f32
    %359 = vector.broadcast %cst_140 : f32 to vector<8x128xf32>
    %360 = arith.addf %358, %359 : vector<8x128xf32>
    %361 = vector.extract_strided_slice %344 {offsets = [0, 128], sizes = [8, 128], strides = [1, 1]} : vector<8x384xf32> to vector<8x128xf32>
    %362 = vector.extract_strided_slice %348 {offsets = [0, 128], sizes = [8, 128], strides = [1, 1]} : vector<8x384xf32> to vector<8x128xf32>
    %363 = arith.addf %361, %362 : vector<8x128xf32>
    %cst_141 = arith.constant 5.000000e-01 : f32
    %364 = vector.broadcast %cst_141 : f32 to vector<8x128xf32>
    %365 = arith.mulf %364, %363 : vector<8x128xf32>
    %366 = math.tanh %365 : vector<8x128xf32>
    %cst_142 = arith.constant 5.000000e-01 : f32
    %367 = vector.broadcast %cst_142 : f32 to vector<8x128xf32>
    %368 = arith.mulf %367, %366 : vector<8x128xf32>
    %cst_143 = arith.constant 5.000000e-01 : f32
    %369 = vector.broadcast %cst_143 : f32 to vector<8x128xf32>
    %370 = arith.addf %368, %369 : vector<8x128xf32>
    %371 = vector.extract_strided_slice %344 {offsets = [0, 256], sizes = [8, 128], strides = [1, 1]} : vector<8x384xf32> to vector<8x128xf32>
    %372 = vector.extract_strided_slice %348 {offsets = [0, 256], sizes = [8, 128], strides = [1, 1]} : vector<8x384xf32> to vector<8x128xf32>
    %373 = arith.addf %372, %19 : vector<8x128xf32>
    %374 = arith.mulf %360, %373 : vector<8x128xf32>
    %375 = arith.addf %371, %374 : vector<8x128xf32>
    %376 = math.tanh %375 : vector<8x128xf32>
    %cst_144 = arith.constant 1.000000e+00 : f32
    %377 = vector.broadcast %cst_144 : f32 to vector<8x128xf32>
    %378 = arith.subf %377, %370 : vector<8x128xf32>
    %379 = arith.mulf %378, %376 : vector<8x128xf32>
    %380 = arith.mulf %370, %303 : vector<8x128xf32>
    %381 = arith.addf %379, %380 : vector<8x128xf32>
    %382 = vector.extract_strided_slice %346 {offsets = [0, 0], sizes = [8, 128], strides = [1, 1]} : vector<8x384xf32> to vector<8x128xf32>
    %383 = vector.extract_strided_slice %350 {offsets = [0, 0], sizes = [8, 128], strides = [1, 1]} : vector<8x384xf32> to vector<8x128xf32>
    %384 = arith.addf %382, %383 : vector<8x128xf32>
    %cst_145 = arith.constant 5.000000e-01 : f32
    %385 = vector.broadcast %cst_145 : f32 to vector<8x128xf32>
    %386 = arith.mulf %385, %384 : vector<8x128xf32>
    %387 = math.tanh %386 : vector<8x128xf32>
    %cst_146 = arith.constant 5.000000e-01 : f32
    %388 = vector.broadcast %cst_146 : f32 to vector<8x128xf32>
    %389 = arith.mulf %388, %387 : vector<8x128xf32>
    %cst_147 = arith.constant 5.000000e-01 : f32
    %390 = vector.broadcast %cst_147 : f32 to vector<8x128xf32>
    %391 = arith.addf %389, %390 : vector<8x128xf32>
    %392 = vector.extract_strided_slice %346 {offsets = [0, 128], sizes = [8, 128], strides = [1, 1]} : vector<8x384xf32> to vector<8x128xf32>
    %393 = vector.extract_strided_slice %350 {offsets = [0, 128], sizes = [8, 128], strides = [1, 1]} : vector<8x384xf32> to vector<8x128xf32>
    %394 = arith.addf %392, %393 : vector<8x128xf32>
    %cst_148 = arith.constant 5.000000e-01 : f32
    %395 = vector.broadcast %cst_148 : f32 to vector<8x128xf32>
    %396 = arith.mulf %395, %394 : vector<8x128xf32>
    %397 = math.tanh %396 : vector<8x128xf32>
    %cst_149 = arith.constant 5.000000e-01 : f32
    %398 = vector.broadcast %cst_149 : f32 to vector<8x128xf32>
    %399 = arith.mulf %398, %397 : vector<8x128xf32>
    %cst_150 = arith.constant 5.000000e-01 : f32
    %400 = vector.broadcast %cst_150 : f32 to vector<8x128xf32>
    %401 = arith.addf %399, %400 : vector<8x128xf32>
    %402 = vector.extract_strided_slice %346 {offsets = [0, 256], sizes = [8, 128], strides = [1, 1]} : vector<8x384xf32> to vector<8x128xf32>
    %403 = vector.extract_strided_slice %350 {offsets = [0, 256], sizes = [8, 128], strides = [1, 1]} : vector<8x384xf32> to vector<8x128xf32>
    %404 = arith.addf %403, %22 : vector<8x128xf32>
    %405 = arith.mulf %391, %404 : vector<8x128xf32>
    %406 = arith.addf %402, %405 : vector<8x128xf32>
    %407 = math.tanh %406 : vector<8x128xf32>
    %cst_151 = arith.constant 1.000000e+00 : f32
    %408 = vector.broadcast %cst_151 : f32 to vector<8x128xf32>
    %409 = arith.subf %408, %401 : vector<8x128xf32>
    %410 = arith.mulf %409, %407 : vector<8x128xf32>
    %411 = arith.mulf %401, %334 : vector<8x128xf32>
    %412 = arith.addf %410, %411 : vector<8x128xf32>
    %413 = vector.shape_cast %381 : vector<8x128xf32> to vector<1x8x128xf32>
    %c4_152 = arith.constant 4 : index
    %c0_153 = arith.constant 0 : index
    %c0_154 = arith.constant 0 : index
    %414 = vector.load %arg6[%c4_152, %c0_153, %c0_154] : memref<8x8x256xf32, #tpu.memory_space<vmem>>, vector<1x8x128xf32>
    tpu.vector_store %arg6[%c4_152, %c0_153, %c0_154], %413 {strides = array<i32>} : memref<8x8x256xf32, #tpu.memory_space<vmem>>, vector<1x8x128xf32>,
    %415 = vector.shape_cast %412 : vector<8x128xf32> to vector<1x8x128xf32>
    %c3_155 = arith.constant 3 : index
    %c0_156 = arith.constant 0 : index
    %c128_157 = arith.constant 128 : index
    %416 = vector.load %arg6[%c3_155, %c0_156, %c128_157] : memref<8x8x256xf32, #tpu.memory_space<vmem>>, vector<1x8x128xf32>
    tpu.vector_store %arg6[%c3_155, %c0_156, %c128_157], %415 {strides = array<i32>} : memref<8x8x256xf32, #tpu.memory_space<vmem>>, vector<1x8x128xf32>,
    %c5_158 = arith.constant 5 : index
    %c0_159 = arith.constant 0 : index
    %c0_160 = arith.constant 0 : index
    %417 = vector.load %arg8[%c5_158, %c0_159, %c0_160] : memref<8x8x768xbf16, #tpu.memory_space<vmem>>, vector<1x8x384xbf16>
    %418 = vector.shape_cast %417 : vector<1x8x384xbf16> to vector<8x384xbf16>
    %c2_161 = arith.constant 2 : index
    %c0_162 = arith.constant 0 : index
    %c384_163 = arith.constant 384 : index
    %419 = vector.load %arg8[%c2_161, %c0_162, %c384_163] : memref<8x8x768xbf16, #tpu.memory_space<vmem>>, vector<1x8x384xbf16>
    %420 = vector.shape_cast %419 : vector<1x8x384xbf16> to vector<8x384xbf16>
    %421 = arith.extf %418 : vector<8x384xbf16> to vector<8x384xf32>
    %422 = arith.addf %421, %13 : vector<8x384xf32>
    %423 = arith.extf %420 : vector<8x384xbf16> to vector<8x384xf32>
    %424 = arith.addf %423, %16 : vector<8x384xf32>
    %425 = arith.truncf %381 : vector<8x128xf32> to vector<8x128xbf16>
    %cst_164 = arith.constant dense<0.000000e+00> : vector<8x384xf32>
    %426 = tpu.matmul %425, %8, %cst_164 {dimension_numbers = #tpu.dot_dimension_numbers<[1], [0], [0], [1], [0, 0, 1, 1], [], []>} : vector<8x128xbf16>, vector<128x384xbf16>, vector<8x384xf32> -> vector<8x384xf32>
    %427 = arith.truncf %412 : vector<8x128xf32> to vector<8x128xbf16>
    %cst_165 = arith.constant dense<0.000000e+00> : vector<8x384xf32>
    %428 = tpu.matmul %427, %10, %cst_165 {dimension_numbers = #tpu.dot_dimension_numbers<[1], [0], [0], [1], [0, 0, 1, 1], [], []>} : vector<8x128xbf16>, vector<128x384xbf16>, vector<8x384xf32> -> vector<8x384xf32>
    %429 = vector.extract_strided_slice %422 {offsets = [0, 0], sizes = [8, 128], strides = [1, 1]} : vector<8x384xf32> to vector<8x128xf32>
    %430 = vector.extract_strided_slice %426 {offsets = [0, 0], sizes = [8, 128], strides = [1, 1]} : vector<8x384xf32> to vector<8x128xf32>
    %431 = arith.addf %429, %430 : vector<8x128xf32>
    %cst_166 = arith.constant 5.000000e-01 : f32
    %432 = vector.broadcast %cst_166 : f32 to vector<8x128xf32>
    %433 = arith.mulf %432, %431 : vector<8x128xf32>
    %434 = math.tanh %433 : vector<8x128xf32>
    %cst_167 = arith.constant 5.000000e-01 : f32
    %435 = vector.broadcast %cst_167 : f32 to vector<8x128xf32>
    %436 = arith.mulf %435, %434 : vector<8x128xf32>
    %cst_168 = arith.constant 5.000000e-01 : f32
    %437 = vector.broadcast %cst_168 : f32 to vector<8x128xf32>
    %438 = arith.addf %436, %437 : vector<8x128xf32>
    %439 = vector.extract_strided_slice %422 {offsets = [0, 128], sizes = [8, 128], strides = [1, 1]} : vector<8x384xf32> to vector<8x128xf32>
    %440 = vector.extract_strided_slice %426 {offsets = [0, 128], sizes = [8, 128], strides = [1, 1]} : vector<8x384xf32> to vector<8x128xf32>
    %441 = arith.addf %439, %440 : vector<8x128xf32>
    %cst_169 = arith.constant 5.000000e-01 : f32
    %442 = vector.broadcast %cst_169 : f32 to vector<8x128xf32>
    %443 = arith.mulf %442, %441 : vector<8x128xf32>
    %444 = math.tanh %443 : vector<8x128xf32>
    %cst_170 = arith.constant 5.000000e-01 : f32
    %445 = vector.broadcast %cst_170 : f32 to vector<8x128xf32>
    %446 = arith.mulf %445, %444 : vector<8x128xf32>
    %cst_171 = arith.constant 5.000000e-01 : f32
    %447 = vector.broadcast %cst_171 : f32 to vector<8x128xf32>
    %448 = arith.addf %446, %447 : vector<8x128xf32>
    %449 = vector.extract_strided_slice %422 {offsets = [0, 256], sizes = [8, 128], strides = [1, 1]} : vector<8x384xf32> to vector<8x128xf32>
    %450 = vector.extract_strided_slice %426 {offsets = [0, 256], sizes = [8, 128], strides = [1, 1]} : vector<8x384xf32> to vector<8x128xf32>
    %451 = arith.addf %450, %19 : vector<8x128xf32>
    %452 = arith.mulf %438, %451 : vector<8x128xf32>
    %453 = arith.addf %449, %452 : vector<8x128xf32>
    %454 = math.tanh %453 : vector<8x128xf32>
    %cst_172 = arith.constant 1.000000e+00 : f32
    %455 = vector.broadcast %cst_172 : f32 to vector<8x128xf32>
    %456 = arith.subf %455, %448 : vector<8x128xf32>
    %457 = arith.mulf %456, %454 : vector<8x128xf32>
    %458 = arith.mulf %448, %381 : vector<8x128xf32>
    %459 = arith.addf %457, %458 : vector<8x128xf32>
    %460 = vector.extract_strided_slice %424 {offsets = [0, 0], sizes = [8, 128], strides = [1, 1]} : vector<8x384xf32> to vector<8x128xf32>
    %461 = vector.extract_strided_slice %428 {offsets = [0, 0], sizes = [8, 128], strides = [1, 1]} : vector<8x384xf32> to vector<8x128xf32>
    %462 = arith.addf %460, %461 : vector<8x128xf32>
    %cst_173 = arith.constant 5.000000e-01 : f32
    %463 = vector.broadcast %cst_173 : f32 to vector<8x128xf32>
    %464 = arith.mulf %463, %462 : vector<8x128xf32>
    %465 = math.tanh %464 : vector<8x128xf32>
    %cst_174 = arith.constant 5.000000e-01 : f32
    %466 = vector.broadcast %cst_174 : f32 to vector<8x128xf32>
    %467 = arith.mulf %466, %465 : vector<8x128xf32>
    %cst_175 = arith.constant 5.000000e-01 : f32
    %468 = vector.broadcast %cst_175 : f32 to vector<8x128xf32>
    %469 = arith.addf %467, %468 : vector<8x128xf32>
    %470 = vector.extract_strided_slice %424 {offsets = [0, 128], sizes = [8, 128], strides = [1, 1]} : vector<8x384xf32> to vector<8x128xf32>
    %471 = vector.extract_strided_slice %428 {offsets = [0, 128], sizes = [8, 128], strides = [1, 1]} : vector<8x384xf32> to vector<8x128xf32>
    %472 = arith.addf %470, %471 : vector<8x128xf32>
    %cst_176 = arith.constant 5.000000e-01 : f32
    %473 = vector.broadcast %cst_176 : f32 to vector<8x128xf32>
    %474 = arith.mulf %473, %472 : vector<8x128xf32>
    %475 = math.tanh %474 : vector<8x128xf32>
    %cst_177 = arith.constant 5.000000e-01 : f32
    %476 = vector.broadcast %cst_177 : f32 to vector<8x128xf32>
    %477 = arith.mulf %476, %475 : vector<8x128xf32>
    %cst_178 = arith.constant 5.000000e-01 : f32
    %478 = vector.broadcast %cst_178 : f32 to vector<8x128xf32>
    %479 = arith.addf %477, %478 : vector<8x128xf32>
    %480 = vector.extract_strided_slice %424 {offsets = [0, 256], sizes = [8, 128], strides = [1, 1]} : vector<8x384xf32> to vector<8x128xf32>
    %481 = vector.extract_strided_slice %428 {offsets = [0, 256], sizes = [8, 128], strides = [1, 1]} : vector<8x384xf32> to vector<8x128xf32>
    %482 = arith.addf %481, %22 : vector<8x128xf32>
    %483 = arith.mulf %469, %482 : vector<8x128xf32>
    %484 = arith.addf %480, %483 : vector<8x128xf32>
    %485 = math.tanh %484 : vector<8x128xf32>
    %cst_179 = arith.constant 1.000000e+00 : f32
    %486 = vector.broadcast %cst_179 : f32 to vector<8x128xf32>
    %487 = arith.subf %486, %479 : vector<8x128xf32>
    %488 = arith.mulf %487, %485 : vector<8x128xf32>
    %489 = arith.mulf %479, %412 : vector<8x128xf32>
    %490 = arith.addf %488, %489 : vector<8x128xf32>
    %491 = vector.shape_cast %459 : vector<8x128xf32> to vector<1x8x128xf32>
    %c5_180 = arith.constant 5 : index
    %c0_181 = arith.constant 0 : index
    %c0_182 = arith.constant 0 : index
    %492 = vector.load %arg6[%c5_180, %c0_181, %c0_182] : memref<8x8x256xf32, #tpu.memory_space<vmem>>, vector<1x8x128xf32>
    tpu.vector_store %arg6[%c5_180, %c0_181, %c0_182], %491 {strides = array<i32>} : memref<8x8x256xf32, #tpu.memory_space<vmem>>, vector<1x8x128xf32>,
    %493 = vector.shape_cast %490 : vector<8x128xf32> to vector<1x8x128xf32>
    %c2_183 = arith.constant 2 : index
    %c0_184 = arith.constant 0 : index
    %c128_185 = arith.constant 128 : index
    %494 = vector.load %arg6[%c2_183, %c0_184, %c128_185] : memref<8x8x256xf32, #tpu.memory_space<vmem>>, vector<1x8x128xf32>
    tpu.vector_store %arg6[%c2_183, %c0_184, %c128_185], %493 {strides = array<i32>} : memref<8x8x256xf32, #tpu.memory_space<vmem>>, vector<1x8x128xf32>,
    %c6_186 = arith.constant 6 : index
    %c0_187 = arith.constant 0 : index
    %c0_188 = arith.constant 0 : index
    %495 = vector.load %arg8[%c6_186, %c0_187, %c0_188] : memref<8x8x768xbf16, #tpu.memory_space<vmem>>, vector<1x8x384xbf16>
    %496 = vector.shape_cast %495 : vector<1x8x384xbf16> to vector<8x384xbf16>
    %c1_189 = arith.constant 1 : index
    %c0_190 = arith.constant 0 : index
    %c384_191 = arith.constant 384 : index
    %497 = vector.load %arg8[%c1_189, %c0_190, %c384_191] : memref<8x8x768xbf16, #tpu.memory_space<vmem>>, vector<1x8x384xbf16>
    %498 = vector.shape_cast %497 : vector<1x8x384xbf16> to vector<8x384xbf16>
    %499 = arith.extf %496 : vector<8x384xbf16> to vector<8x384xf32>
    %500 = arith.addf %499, %13 : vector<8x384xf32>
    %501 = arith.extf %498 : vector<8x384xbf16> to vector<8x384xf32>
    %502 = arith.addf %501, %16 : vector<8x384xf32>
    %503 = arith.truncf %459 : vector<8x128xf32> to vector<8x128xbf16>
    %cst_192 = arith.constant dense<0.000000e+00> : vector<8x384xf32>
    %504 = tpu.matmul %503, %8, %cst_192 {dimension_numbers = #tpu.dot_dimension_numbers<[1], [0], [0], [1], [0, 0, 1, 1], [], []>} : vector<8x128xbf16>, vector<128x384xbf16>, vector<8x384xf32> -> vector<8x384xf32>
    %505 = arith.truncf %490 : vector<8x128xf32> to vector<8x128xbf16>
    %cst_193 = arith.constant dense<0.000000e+00> : vector<8x384xf32>
    %506 = tpu.matmul %505, %10, %cst_193 {dimension_numbers = #tpu.dot_dimension_numbers<[1], [0], [0], [1], [0, 0, 1, 1], [], []>} : vector<8x128xbf16>, vector<128x384xbf16>, vector<8x384xf32> -> vector<8x384xf32>
    %507 = vector.extract_strided_slice %500 {offsets = [0, 0], sizes = [8, 128], strides = [1, 1]} : vector<8x384xf32> to vector<8x128xf32>
    %508 = vector.extract_strided_slice %504 {offsets = [0, 0], sizes = [8, 128], strides = [1, 1]} : vector<8x384xf32> to vector<8x128xf32>
    %509 = arith.addf %507, %508 : vector<8x128xf32>
    %cst_194 = arith.constant 5.000000e-01 : f32
    %510 = vector.broadcast %cst_194 : f32 to vector<8x128xf32>
    %511 = arith.mulf %510, %509 : vector<8x128xf32>
    %512 = math.tanh %511 : vector<8x128xf32>
    %cst_195 = arith.constant 5.000000e-01 : f32
    %513 = vector.broadcast %cst_195 : f32 to vector<8x128xf32>
    %514 = arith.mulf %513, %512 : vector<8x128xf32>
    %cst_196 = arith.constant 5.000000e-01 : f32
    %515 = vector.broadcast %cst_196 : f32 to vector<8x128xf32>
    %516 = arith.addf %514, %515 : vector<8x128xf32>
    %517 = vector.extract_strided_slice %500 {offsets = [0, 128], sizes = [8, 128], strides = [1, 1]} : vector<8x384xf32> to vector<8x128xf32>
    %518 = vector.extract_strided_slice %504 {offsets = [0, 128], sizes = [8, 128], strides = [1, 1]} : vector<8x384xf32> to vector<8x128xf32>
    %519 = arith.addf %517, %518 : vector<8x128xf32>
    %cst_197 = arith.constant 5.000000e-01 : f32
    %520 = vector.broadcast %cst_197 : f32 to vector<8x128xf32>
    %521 = arith.mulf %520, %519 : vector<8x128xf32>
    %522 = math.tanh %521 : vector<8x128xf32>
    %cst_198 = arith.constant 5.000000e-01 : f32
    %523 = vector.broadcast %cst_198 : f32 to vector<8x128xf32>
    %524 = arith.mulf %523, %522 : vector<8x128xf32>
    %cst_199 = arith.constant 5.000000e-01 : f32
    %525 = vector.broadcast %cst_199 : f32 to vector<8x128xf32>
    %526 = arith.addf %524, %525 : vector<8x128xf32>
    %527 = vector.extract_strided_slice %500 {offsets = [0, 256], sizes = [8, 128], strides = [1, 1]} : vector<8x384xf32> to vector<8x128xf32>
    %528 = vector.extract_strided_slice %504 {offsets = [0, 256], sizes = [8, 128], strides = [1, 1]} : vector<8x384xf32> to vector<8x128xf32>
    %529 = arith.addf %528, %19 : vector<8x128xf32>
    %530 = arith.mulf %516, %529 : vector<8x128xf32>
    %531 = arith.addf %527, %530 : vector<8x128xf32>
    %532 = math.tanh %531 : vector<8x128xf32>
    %cst_200 = arith.constant 1.000000e+00 : f32
    %533 = vector.broadcast %cst_200 : f32 to vector<8x128xf32>
    %534 = arith.subf %533, %526 : vector<8x128xf32>
    %535 = arith.mulf %534, %532 : vector<8x128xf32>
    %536 = arith.mulf %526, %459 : vector<8x128xf32>
    %537 = arith.addf %535, %536 : vector<8x128xf32>
    %538 = vector.extract_strided_slice %502 {offsets = [0, 0], sizes = [8, 128], strides = [1, 1]} : vector<8x384xf32> to vector<8x128xf32>
    %539 = vector.extract_strided_slice %506 {offsets = [0, 0], sizes = [8, 128], strides = [1, 1]} : vector<8x384xf32> to vector<8x128xf32>
    %540 = arith.addf %538, %539 : vector<8x128xf32>
    %cst_201 = arith.constant 5.000000e-01 : f32
    %541 = vector.broadcast %cst_201 : f32 to vector<8x128xf32>
    %542 = arith.mulf %541, %540 : vector<8x128xf32>
    %543 = math.tanh %542 : vector<8x128xf32>
    %cst_202 = arith.constant 5.000000e-01 : f32
    %544 = vector.broadcast %cst_202 : f32 to vector<8x128xf32>
    %545 = arith.mulf %544, %543 : vector<8x128xf32>
    %cst_203 = arith.constant 5.000000e-01 : f32
    %546 = vector.broadcast %cst_203 : f32 to vector<8x128xf32>
    %547 = arith.addf %545, %546 : vector<8x128xf32>
    %548 = vector.extract_strided_slice %502 {offsets = [0, 128], sizes = [8, 128], strides = [1, 1]} : vector<8x384xf32> to vector<8x128xf32>
    %549 = vector.extract_strided_slice %506 {offsets = [0, 128], sizes = [8, 128], strides = [1, 1]} : vector<8x384xf32> to vector<8x128xf32>
    %550 = arith.addf %548, %549 : vector<8x128xf32>
    %cst_204 = arith.constant 5.000000e-01 : f32
    %551 = vector.broadcast %cst_204 : f32 to vector<8x128xf32>
    %552 = arith.mulf %551, %550 : vector<8x128xf32>
    %553 = math.tanh %552 : vector<8x128xf32>
    %cst_205 = arith.constant 5.000000e-01 : f32
    %554 = vector.broadcast %cst_205 : f32 to vector<8x128xf32>
    %555 = arith.mulf %554, %553 : vector<8x128xf32>
    %cst_206 = arith.constant 5.000000e-01 : f32
    %556 = vector.broadcast %cst_206 : f32 to vector<8x128xf32>
    %557 = arith.addf %555, %556 : vector<8x128xf32>
    %558 = vector.extract_strided_slice %502 {offsets = [0, 256], sizes = [8, 128], strides = [1, 1]} : vector<8x384xf32> to vector<8x128xf32>
    %559 = vector.extract_strided_slice %506 {offsets = [0, 256], sizes = [8, 128], strides = [1, 1]} : vector<8x384xf32> to vector<8x128xf32>
    %560 = arith.addf %559, %22 : vector<8x128xf32>
    %561 = arith.mulf %547, %560 : vector<8x128xf32>
    %562 = arith.addf %558, %561 : vector<8x128xf32>
    %563 = math.tanh %562 : vector<8x128xf32>
    %cst_207 = arith.constant 1.000000e+00 : f32
    %564 = vector.broadcast %cst_207 : f32 to vector<8x128xf32>
    %565 = arith.subf %564, %557 : vector<8x128xf32>
    %566 = arith.mulf %565, %563 : vector<8x128xf32>
    %567 = arith.mulf %557, %490 : vector<8x128xf32>
    %568 = arith.addf %566, %567 : vector<8x128xf32>
    %569 = vector.shape_cast %537 : vector<8x128xf32> to vector<1x8x128xf32>
    %c6_208 = arith.constant 6 : index
    %c0_209 = arith.constant 0 : index
    %c0_210 = arith.constant 0 : index
    %570 = vector.load %arg6[%c6_208, %c0_209, %c0_210] : memref<8x8x256xf32, #tpu.memory_space<vmem>>, vector<1x8x128xf32>
    tpu.vector_store %arg6[%c6_208, %c0_209, %c0_210], %569 {strides = array<i32>} : memref<8x8x256xf32, #tpu.memory_space<vmem>>, vector<1x8x128xf32>,
    %571 = vector.shape_cast %568 : vector<8x128xf32> to vector<1x8x128xf32>
    %c1_211 = arith.constant 1 : index
    %c0_212 = arith.constant 0 : index
    %c128_213 = arith.constant 128 : index
    %572 = vector.load %arg6[%c1_211, %c0_212, %c128_213] : memref<8x8x256xf32, #tpu.memory_space<vmem>>, vector<1x8x128xf32>
    tpu.vector_store %arg6[%c1_211, %c0_212, %c128_213], %571 {strides = array<i32>} : memref<8x8x256xf32, #tpu.memory_space<vmem>>, vector<1x8x128xf32>,
    %c7_214 = arith.constant 7 : index
    %c0_215 = arith.constant 0 : index
    %c0_216 = arith.constant 0 : index
    %573 = vector.load %arg8[%c7_214, %c0_215, %c0_216] : memref<8x8x768xbf16, #tpu.memory_space<vmem>>, vector<1x8x384xbf16>
    %574 = vector.shape_cast %573 : vector<1x8x384xbf16> to vector<8x384xbf16>
    %c0_217 = arith.constant 0 : index
    %c0_218 = arith.constant 0 : index
    %c384_219 = arith.constant 384 : index
    %575 = vector.load %arg8[%c0_217, %c0_218, %c384_219] : memref<8x8x768xbf16, #tpu.memory_space<vmem>>, vector<1x8x384xbf16>
    %576 = vector.shape_cast %575 : vector<1x8x384xbf16> to vector<8x384xbf16>
    %577 = arith.extf %574 : vector<8x384xbf16> to vector<8x384xf32>
    %578 = arith.addf %577, %13 : vector<8x384xf32>
    %579 = arith.extf %576 : vector<8x384xbf16> to vector<8x384xf32>
    %580 = arith.addf %579, %16 : vector<8x384xf32>
    %581 = arith.truncf %537 : vector<8x128xf32> to vector<8x128xbf16>
    %cst_220 = arith.constant dense<0.000000e+00> : vector<8x384xf32>
    %582 = tpu.matmul %581, %8, %cst_220 {dimension_numbers = #tpu.dot_dimension_numbers<[1], [0], [0], [1], [0, 0, 1, 1], [], []>} : vector<8x128xbf16>, vector<128x384xbf16>, vector<8x384xf32> -> vector<8x384xf32>
    %583 = arith.truncf %568 : vector<8x128xf32> to vector<8x128xbf16>
    %cst_221 = arith.constant dense<0.000000e+00> : vector<8x384xf32>
    %584 = tpu.matmul %583, %10, %cst_221 {dimension_numbers = #tpu.dot_dimension_numbers<[1], [0], [0], [1], [0, 0, 1, 1], [], []>} : vector<8x128xbf16>, vector<128x384xbf16>, vector<8x384xf32> -> vector<8x384xf32>
    %585 = vector.extract_strided_slice %578 {offsets = [0, 0], sizes = [8, 128], strides = [1, 1]} : vector<8x384xf32> to vector<8x128xf32>
    %586 = vector.extract_strided_slice %582 {offsets = [0, 0], sizes = [8, 128], strides = [1, 1]} : vector<8x384xf32> to vector<8x128xf32>
    %587 = arith.addf %585, %586 : vector<8x128xf32>
    %cst_222 = arith.constant 5.000000e-01 : f32
    %588 = vector.broadcast %cst_222 : f32 to vector<8x128xf32>
    %589 = arith.mulf %588, %587 : vector<8x128xf32>
    %590 = math.tanh %589 : vector<8x128xf32>
    %cst_223 = arith.constant 5.000000e-01 : f32
    %591 = vector.broadcast %cst_223 : f32 to vector<8x128xf32>
    %592 = arith.mulf %591, %590 : vector<8x128xf32>
    %cst_224 = arith.constant 5.000000e-01 : f32
    %593 = vector.broadcast %cst_224 : f32 to vector<8x128xf32>
    %594 = arith.addf %592, %593 : vector<8x128xf32>
    %595 = vector.extract_strided_slice %578 {offsets = [0, 128], sizes = [8, 128], strides = [1, 1]} : vector<8x384xf32> to vector<8x128xf32>
    %596 = vector.extract_strided_slice %582 {offsets = [0, 128], sizes = [8, 128], strides = [1, 1]} : vector<8x384xf32> to vector<8x128xf32>
    %597 = arith.addf %595, %596 : vector<8x128xf32>
    %cst_225 = arith.constant 5.000000e-01 : f32
    %598 = vector.broadcast %cst_225 : f32 to vector<8x128xf32>
    %599 = arith.mulf %598, %597 : vector<8x128xf32>
    %600 = math.tanh %599 : vector<8x128xf32>
    %cst_226 = arith.constant 5.000000e-01 : f32
    %601 = vector.broadcast %cst_226 : f32 to vector<8x128xf32>
    %602 = arith.mulf %601, %600 : vector<8x128xf32>
    %cst_227 = arith.constant 5.000000e-01 : f32
    %603 = vector.broadcast %cst_227 : f32 to vector<8x128xf32>
    %604 = arith.addf %602, %603 : vector<8x128xf32>
    %605 = vector.extract_strided_slice %578 {offsets = [0, 256], sizes = [8, 128], strides = [1, 1]} : vector<8x384xf32> to vector<8x128xf32>
    %606 = vector.extract_strided_slice %582 {offsets = [0, 256], sizes = [8, 128], strides = [1, 1]} : vector<8x384xf32> to vector<8x128xf32>
    %607 = arith.addf %606, %19 : vector<8x128xf32>
    %608 = arith.mulf %594, %607 : vector<8x128xf32>
    %609 = arith.addf %605, %608 : vector<8x128xf32>
    %610 = math.tanh %609 : vector<8x128xf32>
    %cst_228 = arith.constant 1.000000e+00 : f32
    %611 = vector.broadcast %cst_228 : f32 to vector<8x128xf32>
    %612 = arith.subf %611, %604 : vector<8x128xf32>
    %613 = arith.mulf %612, %610 : vector<8x128xf32>
    %614 = arith.mulf %604, %537 : vector<8x128xf32>
    %615 = arith.addf %613, %614 : vector<8x128xf32>
    %616 = vector.extract_strided_slice %580 {offsets = [0, 0], sizes = [8, 128], strides = [1, 1]} : vector<8x384xf32> to vector<8x128xf32>
    %617 = vector.extract_strided_slice %584 {offsets = [0, 0], sizes = [8, 128], strides = [1, 1]} : vector<8x384xf32> to vector<8x128xf32>
    %618 = arith.addf %616, %617 : vector<8x128xf32>
    %cst_229 = arith.constant 5.000000e-01 : f32
    %619 = vector.broadcast %cst_229 : f32 to vector<8x128xf32>
    %620 = arith.mulf %619, %618 : vector<8x128xf32>
    %621 = math.tanh %620 : vector<8x128xf32>
    %cst_230 = arith.constant 5.000000e-01 : f32
    %622 = vector.broadcast %cst_230 : f32 to vector<8x128xf32>
    %623 = arith.mulf %622, %621 : vector<8x128xf32>
    %cst_231 = arith.constant 5.000000e-01 : f32
    %624 = vector.broadcast %cst_231 : f32 to vector<8x128xf32>
    %625 = arith.addf %623, %624 : vector<8x128xf32>
    %626 = vector.extract_strided_slice %580 {offsets = [0, 128], sizes = [8, 128], strides = [1, 1]} : vector<8x384xf32> to vector<8x128xf32>
    %627 = vector.extract_strided_slice %584 {offsets = [0, 128], sizes = [8, 128], strides = [1, 1]} : vector<8x384xf32> to vector<8x128xf32>
    %628 = arith.addf %626, %627 : vector<8x128xf32>
    %cst_232 = arith.constant 5.000000e-01 : f32
    %629 = vector.broadcast %cst_232 : f32 to vector<8x128xf32>
    %630 = arith.mulf %629, %628 : vector<8x128xf32>
    %631 = math.tanh %630 : vector<8x128xf32>
    %cst_233 = arith.constant 5.000000e-01 : f32
    %632 = vector.broadcast %cst_233 : f32 to vector<8x128xf32>
    %633 = arith.mulf %632, %631 : vector<8x128xf32>
    %cst_234 = arith.constant 5.000000e-01 : f32
    %634 = vector.broadcast %cst_234 : f32 to vector<8x128xf32>
    %635 = arith.addf %633, %634 : vector<8x128xf32>
    %636 = vector.extract_strided_slice %580 {offsets = [0, 256], sizes = [8, 128], strides = [1, 1]} : vector<8x384xf32> to vector<8x128xf32>
    %637 = vector.extract_strided_slice %584 {offsets = [0, 256], sizes = [8, 128], strides = [1, 1]} : vector<8x384xf32> to vector<8x128xf32>
    %638 = arith.addf %637, %22 : vector<8x128xf32>
    %639 = arith.mulf %625, %638 : vector<8x128xf32>
    %640 = arith.addf %636, %639 : vector<8x128xf32>
    %641 = math.tanh %640 : vector<8x128xf32>
    %cst_235 = arith.constant 1.000000e+00 : f32
    %642 = vector.broadcast %cst_235 : f32 to vector<8x128xf32>
    %643 = arith.subf %642, %635 : vector<8x128xf32>
    %644 = arith.mulf %643, %641 : vector<8x128xf32>
    %645 = arith.mulf %635, %568 : vector<8x128xf32>
    %646 = arith.addf %644, %645 : vector<8x128xf32>
    %647 = vector.shape_cast %615 : vector<8x128xf32> to vector<1x8x128xf32>
    %c7_236 = arith.constant 7 : index
    %c0_237 = arith.constant 0 : index
    %c0_238 = arith.constant 0 : index
    %648 = vector.load %arg6[%c7_236, %c0_237, %c0_238] : memref<8x8x256xf32, #tpu.memory_space<vmem>>, vector<1x8x128xf32>
    tpu.vector_store %arg6[%c7_236, %c0_237, %c0_238], %647 {strides = array<i32>} : memref<8x8x256xf32, #tpu.memory_space<vmem>>, vector<1x8x128xf32>,
    %649 = vector.shape_cast %646 : vector<8x128xf32> to vector<1x8x128xf32>
    %c0_239 = arith.constant 0 : index
    %c0_240 = arith.constant 0 : index
    %c128_241 = arith.constant 128 : index
    %650 = vector.load %arg6[%c0_239, %c0_240, %c128_241] : memref<8x8x256xf32, #tpu.memory_space<vmem>>, vector<1x8x128xf32>
    tpu.vector_store %arg6[%c0_239, %c0_240, %c128_241], %649 {strides = array<i32>} : memref<8x8x256xf32, #tpu.memory_space<vmem>>, vector<1x8x128xf32>,
    %c0_242 = arith.constant 0 : index
    %c0_243 = arith.constant 0 : index
    %c0_244 = arith.constant 0 : index
    %651 = vector.load %arg7[%c0_242, %c0_243, %c0_244] : memref<2x8x128xf32, #tpu.memory_space<vmem>>, vector<1x8x128xf32>
    %652 = vector.shape_cast %651 : vector<1x8x128xf32> to vector<8x128xf32>
    %653 = vector.shape_cast %615 : vector<8x128xf32> to vector<1x8x128xf32>
    tpu.vector_store %arg7[%c0_242, %c0_243, %c0_244], %653 {strides = array<i32>} : memref<2x8x128xf32, #tpu.memory_space<vmem>>, vector<1x8x128xf32>,
    %c1_245 = arith.constant 1 : index
    %c0_246 = arith.constant 0 : index
    %c0_247 = arith.constant 0 : index
    %654 = vector.load %arg7[%c1_245, %c0_246, %c0_247] : memref<2x8x128xf32, #tpu.memory_space<vmem>>, vector<1x8x128xf32>
    %655 = vector.shape_cast %654 : vector<1x8x128xf32> to vector<8x128xf32>
    %656 = vector.shape_cast %646 : vector<8x128xf32> to vector<1x8x128xf32>
    tpu.vector_store %arg7[%c1_245, %c0_246, %c0_247], %656 {strides = array<i32>} : memref<2x8x128xf32, #tpu.memory_space<vmem>>, vector<1x8x128xf32>,
    return
  }
}

</mosaic_0001>

<bundles_post_ra>
// kernel: encoder_forward.2
= control target key start
LH: loop header
LB: loop body
LE: loop exit
PB: predicated region body
PF: predicated region fallthrough
CT: control target
= control target key end

     0   :  { %13 = vsyncpa [#allocation4], 0  ;;  %s2248_s27 = smov [#allocation3]   ;;  %s2249_s29 = smov 192   ;;  %s3147_s0 = inlined_call_operand.vmem [shape: bf16[8,8,16], index: 0, kind: input, shape index: {}]   ;;  %s3148_s1 = inlined_call_operand.vmem [shape: bf16[16,768], index: 1, kind: input, shape index: {}]   ;;  %s3149_s2 = inlined_call_operand.hbm [shape: bf16[2,128,384], index: 2, kind: input, shape index: {}]   ;;  %s3150_s3 = inlined_call_operand.vmem [shape: f32[1,768], index: 3, kind: input, shape index: {}]   ;;  %s3151_s4 = inlined_call_operand.vmem [shape: f32[1,256], index: 4, kind: input, shape index: {}]   ;;  %s3152_s5 = inlined_call_operand.vmem [shape: f32[2,8,128], index: 5, kind: input, shape index: {}]   ;;  %s3153_s6 = inlined_call_operand.vmem [shape: bf16[8,8,256], index: 6, kind: output, shape index: {0}]   ;;  %s3154_s7 = inlined_call_operand.vmem [shape: f32[2,8,128], index: 7, kind: output, shape index: {1}]  }
   0x1   :  { %s22_s26 = sshll.u32 %s3149_s2, 4  ;;  %s24_s28 = sshll.u32 %s2248_s27, 4  ;;  %s23_s26 = int_to_ptr.hbm [resolvable:$true] %s22_s26  ;;  %s25_s28 = int_to_ptr.vmem [resolvable:$true] %s24_s28 }
   0x2   :  { %s2250_s30 = smov 12  }
   0x3   :  { %30 = dma.hbm_to_vmem [thread:$0]  %s23_s26, 6144, %s25_s28, [#allocation4], %s2249_s29, %s2249_s29, %s2250_s30  }
   0x4   :  { %2246 = dma.done.wait [#allocation4], 6144  }
   0x5   :  { %2247 = vsyncadd [#allocation4], 4294961152  ;;  %v1807_v0 = vld [vmem:[%s3148_s1] sm:$0xf]  ;;  %v2064_v1 = vld [vmem:[%s3148_s1 + $0x14] sm:$0xf0] }
   0x6   :  { %v2061_v2 = vld [vmem:[%s3148_s1 + $0x4] sm:$0xf]  ;;  %v1808_v3 = vor.u32 %v2064_v1, %v1807_v0  ;;  %v1809_v4 = vld [vmem:[%s3148_s1 + $0x18] sm:$0xf0]  ;;  %v1815_v5 = vld [vmem:[%s3148_s1 + $0x8] sm:$0xf] }
   0x7   :  { %v2065_v6 = vld [vmem:[%s3148_s1 + $0x1c] sm:$0xf0]  ;;  %v1812_v7 = vor.u32 %v2061_v2, %v1809_v4  ;;  %v2062_v9 = vld [vmem:[%s3148_s1 + $0xc] sm:$0xf]  ;;  %v1817_v10 = vld [vmem:[%s3148_s1 + $0x20] sm:$0xf0] }
   0x8   :  { %v1816_v8 = vor.u32 %v2065_v6, %v1815_v5  ;;  %v2321_v11 = vld [vmem:[%s3147_s0] sm:$0xff]  ;;  %vm106_vm0 = vcmask 130048   ;;  %126 = vmatpush.bf16.msra.mxu0 %v1808_v3  ;;  %v1820_v12 = vor.u32 %v2062_v9, %v1817_v10  ;;  %v1823_v13 = vld [vmem:[%s3148_s1 + $0x10] sm:$0xf]  ;;  %v2066_v14 = vld [vmem:[%s3148_s1 + $0x24] sm:$0xf0] }
   0x9   :  { %v2063_v15 = vld [vmem:[%s3148_s1 + $0x14] sm:$0xf]  ;;  %155 = vmatpush.bf16.msra.mxu1 %v1812_v7  ;;  %v1824_v16 = vor.u32 %v2066_v14, %v1823_v13  ;;  %v1825_v17 = vld [vmem:[%s3148_s1 + $0x28] sm:$0xf0]  ;;  %v1940_v18 = vld [vmem:[#allocation3 + $0xa8] sm:$0xf] }
   0xa   :  { %184 = vmatpush.bf16.msra.mxu2 %v1816_v8  ;;  %213 = vmatpush.bf16.msra.mxu3 %v1820_v12  ;;  %v1828_v19 = vor.u32 %v2063_v15, %v1825_v17  ;;  %v2093_v20 = vld [vmem:[#allocation3 + $0xb0] sm:$0xf0]  ;;  %v1928_v22 = vld [vmem:[#allocation3 + $0x90] sm:$0xf]  ;;  %v2090_v23 = vld [vmem:[#allocation3 + $0x98] sm:$0xf0] }
   0xb   :  { %1829 = vmatmul.msk.bf16.vlgmr.msra.gmra.mxu0 %vm106_vm0, %v2321_v11  ;;  %v2337_v21 = vor.u32 %v2093_v20, %v1940_v18  ;;  %v2092_v24 = vld [vmem:[#allocation3 + $0xac] sm:$0xf]  ;;  %v1942_v25 = vld [vmem:[#allocation3 + $0xb4] sm:$0xf0]  ;;  %v2346_v26 = vor.u32 %v2090_v23, %v1928_v22  ;;  %v2089_v28 = vld [vmem:[#allocation3 + $0x94] sm:$0xf] }
   0xc   :  { %1833 = vmatmul.msk.bf16.vlgmr.msra.gmra.mxu1 %vm106_vm0, %v2321_v11  ;;  %242 = vmatpush.bf16.msrb.mxu0 %v1824_v16  ;;  %v2348_v27 = vor.u32 %v2092_v24, %v1942_v25  ;;  %v1930_v29 = vld [vmem:[#allocation3 + $0x9c] sm:$0xf0]  ;;  %v1916_v30 = vld [vmem:[#allocation3 + $0x78] sm:$0xf]  ;;  %v2087_v31 = vld [vmem:[#allocation3 + $0x80] sm:$0xf0] }
   0xd   :  { %1837 = vmatmul.msk.bf16.vlgmr.msra.gmra.mxu2 %vm106_vm0, %v2321_v11  ;;  %1841 = vmatmul.msk.bf16.vlgmr.msra.gmra.mxu3 %vm106_vm0, %v2321_v11  ;;  %v2351_v32 = vor.u32 %v2089_v28, %v1930_v29  ;;  %v2086_v33 = vld [vmem:[#allocation3 + $0x7c] sm:$0xf]  ;;  %v1918_v34 = vld [vmem:[#allocation3 + $0x84] sm:$0xf0]  ;;  %v2354_v35 = vor.u32 %v2087_v31, %v1916_v30  ;;  %v1904_v36 = vld [vmem:[#allocation3 + $0x60] sm:$0xf] }
   0xe   :  { %271 = vmatpush.bf16.msrb.mxu1 %v1828_v19  ;;  %579 = vmatpush.bf16.msrb.mxu2 %v2337_v21  ;;  %v2084_v37 = vld [vmem:[#allocation3 + $0x68] sm:$0xf0]  ;;  %v2357_v38 = vor.u32 %v2086_v33, %v1918_v34  ;;  %v1892_v41 = vld [vmem:[#allocation3 + $0x48] sm:$0xf]  ;;  %v2081_v42 = vld [vmem:[#allocation3 + $0x50] sm:$0xf0] }
   0xf   :  { %592 = vmatpush.bf16.msrb.mxu3 %v2348_v27  ;;  %v2362_v39 = vld [vmem:[%s3147_s0 + $0x8] sm:$0xff]  ;;  %v2365_v40 = vor.u32 %v2084_v37, %v1904_v36  ;;  %v2083_v43 = vld [vmem:[#allocation3 + $0x64] sm:$0xf]  ;;  %v1906_v44 = vld [vmem:[#allocation3 + $0x6c] sm:$0xf0]  ;;  %v2369_v45 = vor.u32 %v2081_v42, %v1892_v41 }
  0x10   :  { %v1880_v46 = vld [vmem:[#allocation3 + $0x30] sm:$0xf]  ;;  %v2371_v47 = vor.u32 %v2083_v43, %v1906_v44  ;;  %v2078_v48 = vld [vmem:[#allocation3 + $0x38] sm:$0xf0]  ;;  %v2080_v49 = vld [vmem:[#allocation3 + $0x4c] sm:$0xf] }
  0x11   :  { %3186 = vst [vmem:[#allocation6_spill] sm:$0xff] %v2369_v45  ;;  %v1894_v50 = vld [vmem:[#allocation3 + $0x54] sm:$0xf0]  ;;  %v2382_v51 = vor.u32 %v2078_v48, %v1880_v46  ;;  %v2075_v54 = vld [vmem:[#allocation3 + $0x20] sm:$0xf0]  ;;  %v2402_v3 = vld [vmem:[%s3147_s0 + $0x10] sm:$0xff] }
  0x12   :  { %580 = vmatpush.bf16.msrb.mxu2 %v2346_v26  ;;  %v1868_v52 = vld [vmem:[#allocation3 + $0x18] sm:$0xf]  ;;  %v2385_v53 = vor.u32 %v2080_v49, %v1894_v50  ;;  %v2077_v55 = vld [vmem:[#allocation3 + $0x34] sm:$0xf]  ;;  %v1882_v56 = vld [vmem:[#allocation3 + $0x3c] sm:$0xf0] }
  0x13   :  { %593 = vmatpush.bf16.msrb.mxu3 %v2351_v32  ;;  %3187 = vst [vmem:[#allocation7_spill] sm:$0xff] %v2382_v51  ;;  %v2388_v57 = vor.u32 %v2075_v54, %v1868_v52  ;;  %v1856_v58 = vld [vmem:[#allocation3] sm:$0xf]  ;;  %v2391_v59 = vor.u32 %v2077_v55, %v1882_v56  ;;  %v2072_v60 = vld [vmem:[#allocation3 + $0x8] sm:$0xf0]  ;;  %v2434_v24 = vld [vmem:[%s3147_s0 + $0x18] sm:$0xff] }
  0x14   :  { %3188 = vst [vmem:[#allocation8_spill] sm:$0xff] %v2385_v53  ;;  %v2074_v61 = vld [vmem:[#allocation3 + $0x1c] sm:$0xf]  ;;  %v1870_v62 = vld [vmem:[#allocation3 + $0x24] sm:$0xf0]  ;;  %v2394_v1 = vor.u32 %v2072_v60, %v1856_v58 }
  0x15   :  { %3189 = vst [vmem:[#allocation9_spill] sm:$0xff] %v2388_v57  ;;  %v1948_v63 = vld [vmem:[#allocation3 + $0xb0] sm:$0xf]  ;;  %v2094_v0 = vld [vmem:[#allocation3 + $0xb8] sm:$0xf0]  ;;  %v2397_v2 = vor.u32 %v2074_v61, %v1870_v62 }
  0x16   :  { %581 = vmatpush.bf16.msrb.mxu2 %v2354_v35  ;;  %3190 = vst [vmem:[#allocation10_spill] sm:$0xff] %v2391_v59  ;;  %v2404_v4 = vor.u32 %v2094_v0, %v1948_v63  ;;  %v2071_v5 = vld [vmem:[#allocation3 + $0x4] sm:$0xf]  ;;  %v1858_v6 = vld [vmem:[#allocation3 + $0xc] sm:$0xf0] }
  0x17   :  { %594 = vmatpush.bf16.msrb.mxu3 %v2357_v38  ;;  %3191 = vst [vmem:[#allocation11_spill] sm:$0xff] %v2394_v1  ;;  %v1936_v7 = vld [vmem:[#allocation3 + $0x98] sm:$0xf]  ;;  %v2091_v8 = vld [vmem:[#allocation3 + $0xa0] sm:$0xf0]  ;;  %v2408_v9 = vor.u32 %v2071_v5, %v1858_v6 }
  0x18   :  { %3192 = vst [vmem:[#allocation12_spill] sm:$0xff] %v2397_v2  ;;  %v2413_v10 = vor.u32 %v2091_v8, %v1936_v7  ;;  %v1924_v12 = vld [vmem:[#allocation3 + $0x80] sm:$0xf]  ;;  %v2088_v13 = vld [vmem:[#allocation3 + $0x88] sm:$0xf0] }
  0x19   :  { %3193 = vst [vmem:[#allocation13_spill] sm:$0xff] %v2408_v9  ;;  %v2423_v14 = vor.u32 %v2088_v13, %v1924_v12  ;;  %v2116_v15 = vld [vmem:[#allocation3 + $0x16c] sm:$0xf]  ;;  %v2038_v16 = vld [vmem:[#allocation3 + $0x174] sm:$0xf0]  ;;  %v2477_v6 = vld [vmem:[%s3152_s5] sm:$0xff] }
  0x1a   :  { %582 = vmatpush.bf16.msrb.mxu2 %v2365_v40  ;;  %v1912_v17 = vld [vmem:[#allocation3 + $0x68] sm:$0xf]  ;;  %v2085_v18 = vld [vmem:[#allocation3 + $0x70] sm:$0xf0]  ;;  %v2425_v19 = vor.u32 %v2116_v15, %v2038_v16  ;;  %v1900_v22 = vld [vmem:[#allocation3 + $0x50] sm:$0xf]  ;;  %v450_v7 = vpack.c.bf16 %v2477_v6, %v2477_v6 }
  0x1b   :  { %1830 = vmatmul.msk.bf16.gmra.mxu0 %vm106_vm0, %v2362_v39  ;;  %595 = vmatpush.bf16.msrb.mxu3 %v2371_v47  ;;  %v2429_v20 = vor.u32 %v2085_v18, %v1912_v17  ;;  %v2082_v23 = vld [vmem:[#allocation3 + $0x58] sm:$0xf0]  ;;  %v1888_v28 = vld [vmem:[#allocation3 + $0x38] sm:$0xf]  ;;  %v2079_v29 = vld [vmem:[#allocation3 + $0x40] sm:$0xf0] }
  0x1c   :  { %1834 = vmatmul.msk.bf16.gmra.mxu1 %vm106_vm0, %v2362_v39  ;;  %760 = vmatpush.bf16.msra.mxu0 %v2425_v19  ;;  %v2437_v25 = vor.u32 %v2082_v23, %v1900_v22  ;;  %v2442_v30 = vor.u32 %v2079_v29, %v1888_v28  ;;  %v1876_v31 = vld [vmem:[#allocation3 + $0x20] sm:$0xf]  ;;  %v2076_v33 = vld [vmem:[#allocation3 + $0x28] sm:$0xf0]  ;;  %v2044_v34 = vld [vmem:[#allocation3 + $0x170] sm:$0xf] }
  0x1d   :  { %1838 = vmatmul.msk.bf16.gmra.mxu2 %vm106_vm0, %v2362_v39  ;;  %1842 = vmatmul.msk.bf16.gmra.mxu3 %vm106_vm0, %v2362_v39  ;;  %v2118_v36 = vld [vmem:[#allocation3 + $0x178] sm:$0xf0]  ;;  %v2113_v37 = vld [vmem:[#allocation3 + $0x154] sm:$0xf]  ;;  %v2026_v42 = vld [vmem:[#allocation3 + $0x15c] sm:$0xf0]  ;;  %v2457_v54 = vor.u32 %v2076_v33, %v1876_v31 }
  0x1e   :  { %583 = vmatpush.bf16.msrb.mxu2 %v2369_v45  ;;  %v2450_v41 = vor.u32 %v2118_v36, %v2044_v34  ;;  %v2036_v43 = vld [vmem:[#allocation3 + $0x168] sm:$0xf]  ;;  %v2117_v44 = vld [vmem:[#allocation3 + $0x170] sm:$0xf0]  ;;  %v2452_v46 = vor.u32 %v2113_v37, %v2026_v42  ;;  %v2032_v49 = vld [vmem:[#allocation3 + $0x158] sm:$0xf] }
  0x1f   :  { %596 = vmatpush.bf16.msrb.mxu3 %v2385_v53  ;;  %v2454_v48 = vor.u32 %v2117_v44, %v2036_v43  ;;  %v2115_v50 = vld [vmem:[#allocation3 + $0x160] sm:$0xf0]  ;;  %v2024_v52 = vld [vmem:[#allocation3 + $0x150] sm:$0xf]  ;;  %v2114_v56 = vld [vmem:[#allocation3 + $0x158] sm:$0xf0] }
  0x20   :  { %773 = vmatpush.bf16.msra.mxu1 %v2450_v41  ;;  %v2460_v55 = vor.u32 %v2115_v50, %v2032_v49  ;;  %v2110_v58 = vld [vmem:[#allocation3 + $0x13c] sm:$0xf]  ;;  %v2014_v60 = vld [vmem:[#allocation3 + $0x144] sm:$0xf0]  ;;  %v2073_v62 = vld [vmem:[#allocation3 + $0x10] sm:$0xf0]  ;;  %761 = vmatpush.bf16.msra.mxu0 %v2452_v46  ;;  %v2464_v63 = vor.u32 %v2114_v56, %v2024_v52 }
  0x21   :  { %v1864_v61 = vld [vmem:[#allocation3 + $0x8] sm:$0xf]  ;;  %v2466_v0 = vor.u32 %v2110_v58, %v2014_v60  ;;  %v2012_v8 = vld [vmem:[#allocation3 + $0x138] sm:$0xf]  ;;  %v2111_v12 = vld [vmem:[#allocation3 + $0x140] sm:$0xf0] }
  0x22   :  { %584 = vmatpush.bf16.msrb.mxu2 %v2382_v51  ;;  %v2469_v5 = vor.u32 %v2073_v62, %v1864_v61  ;;  %v2486_v13 = vor.u32 %v2111_v12, %v2012_v8  ;;  %v2020_v15 = vld [vmem:[#allocation3 + $0x140] sm:$0xf]  ;;  %v2112_v16 = vld [vmem:[#allocation3 + $0x148] sm:$0xf0]  ;;  %v2107_v23 = vld [vmem:[#allocation3 + $0x124] sm:$0xf] }
  0x23   :  { %597 = vmatpush.bf16.msrb.mxu3 %v2391_v59  ;;  %v2000_v17 = vld [vmem:[#allocation3 + $0x120] sm:$0xf]  ;;  %v2488_v18 = vor.u32 %v2112_v16, %v2020_v15  ;;  %v2108_v22 = vld [vmem:[#allocation3 + $0x128] sm:$0xf0]  ;;  %v2002_v28 = vld [vmem:[#allocation3 + $0x12c] sm:$0xf0] }
  0x24   :  { %774 = vmatpush.bf16.msra.mxu1 %v2460_v55  ;;  %762 = vmatpush.bf16.msra.mxu0 %v2466_v0  ;;  %v2492_v29 = vor.u32 %v2108_v22, %v2000_v17  ;;  %v2494_v31 = vor.u32 %v2107_v23, %v2002_v28  ;;  %v1988_v33 = vld [vmem:[#allocation3 + $0x108] sm:$0xf]  ;;  %v2105_v34 = vld [vmem:[#allocation3 + $0x110] sm:$0xf0]  ;;  %v2104_v42 = vld [vmem:[#allocation3 + $0x10c] sm:$0xf] }
  0x25   :  { %v2109_v36 = vld [vmem:[#allocation3 + $0x130] sm:$0xf0]  ;;  %v1990_v43 = vld [vmem:[#allocation3 + $0x114] sm:$0xf0]  ;;  %v2504_v49 = vor.u32 %v2105_v34, %v1988_v33  ;;  %v1976_v50 = vld [vmem:[#allocation3 + $0xf0] sm:$0xf] }
  0x26   :  { %585 = vmatpush.bf16.msrb.mxu2 %v2388_v57  ;;  %v2500_v44 = vor.u32 %v2104_v42, %v1990_v43  ;;  %v2102_v52 = vld [vmem:[#allocation3 + $0xf8] sm:$0xf0]  ;;  %v1964_v58 = vld [vmem:[#allocation3 + $0xd8] sm:$0xf]  ;;  %v2099_v60 = vld [vmem:[#allocation3 + $0xe0] sm:$0xf0] }
  0x27   :  { %598 = vmatpush.bf16.msrb.mxu3 %v2397_v2  ;;  %v2510_v56 = vor.u32 %v2102_v52, %v1976_v50  ;;  %v2518_v61 = vor.u32 %v2099_v60, %v1964_v58  ;;  %v1996_v62 = vld [vmem:[#allocation3 + $0x110] sm:$0xf]  ;;  %v2106_v8 = vld [vmem:[#allocation3 + $0x118] sm:$0xf0]  ;;  %v1952_v12 = vld [vmem:[#allocation3 + $0xc0] sm:$0xf] }
  0x28   :  { %775 = vmatpush.bf16.msra.mxu1 %v2488_v18  ;;  %763 = vmatpush.bf16.msra.mxu0 %v2494_v31  ;;  %v2520_v15 = vor.u32 %v2106_v8, %v1996_v62  ;;  %v2096_v16 = vld [vmem:[#allocation3 + $0xc8] sm:$0xf0]  ;;  %v2101_v17 = vld [vmem:[#allocation3 + $0xf4] sm:$0xf]  ;;  %v1978_v22 = vld [vmem:[#allocation3 + $0xfc] sm:$0xf0] }
  0x29   :  { %v2524_v23 = vor.u32 %v2096_v16, %v1952_v12  ;;  %v2526_v28 = vor.u32 %v2101_v17, %v1978_v22  ;;  %v1966_v42 = vld [vmem:[#allocation3 + $0xe4] sm:$0xf0]  ;;  %v2095_v50 = vld [vmem:[#allocation3 + $0xc4] sm:$0xf]  ;;  %v1954_v52 = vld [vmem:[#allocation3 + $0xcc] sm:$0xf0] }
  0x2a   :  { %586 = vmatpush.bf16.msrb.mxu2 %v2394_v1  ;;  %3194 = vst [vmem:[#allocation14_spill] sm:$0xff] %v2520_v15  ;;  %v2555_v58 = vor.u32 %v2095_v50, %v1954_v52  ;;  %v1972_v60 = vld [vmem:[#allocation3 + $0xe0] sm:$0xf]  ;;  %v2100_v62 = vld [vmem:[#allocation3 + $0xe8] sm:$0xf0] }
  0x2b   :  { %1831 = vmatmul.msk.bf16.gmra.mxu0 %vm106_vm0, %v2402_v3  ;;  %599 = vmatpush.bf16.msrb.mxu3 %v2408_v9  ;;  %v2558_v8 = vor.u32 %v2100_v62, %v1972_v60  ;;  %v2097_v12 = vld [vmem:[#allocation3 + $0xd0] sm:$0xf0]  ;;  %v2606_v52 = vld [vmem:[%s3150_s3] sm:$0x7] }
  0x2c   :  { %1835 = vmatmul.msk.bf16.gmra.mxu1 %vm106_vm0, %v2402_v3  ;;  %764 = vmatpush.bf16.msra.mxu0 %v2500_v44  ;;  %v2612_v60 = vperm.slane %v2606_v52, 0  ;;  %v2615_v62 = vperm.slane %v2606_v52, 1 }
  0x2d   :  { %1839 = vmatmul.msk.bf16.gmra.mxu2 %vm106_vm0, %v2402_v3  ;;  %1843 = vmatmul.msk.bf16.gmra.mxu3 %vm106_vm0, %v2402_v3  ;;  %3196 = vst [vmem:[#allocation16_spill] sm:$0xff] %v2558_v8 }
  0x2e   :  { %605 = vmatpush.bf16.msra.mxu2 %v2404_v4  ;;  %3198 = vst [vmem:[#allocation18_spill] sm:$0xff] %v2612_v60 }
  0x2f   :  { %747 = vmatpush.bf16.msra.mxu3 %v2454_v48  ;;  %3199 = vst [vmem:[#allocation19_spill] sm:$0xff] %v2615_v62 }
  0x30   :  { %765 = vmatpush.bf16.msra.mxu0 %v2526_v28 }
  0x32   :  { %606 = vmatpush.bf16.msra.mxu2 %v2413_v10 }
  0x33   :  { %748 = vmatpush.bf16.msra.mxu3 %v2464_v63 }
  0x36   :  { %607 = vmatpush.bf16.msra.mxu2 %v2423_v14 }
  0x37   :  { %749 = vmatpush.bf16.msra.mxu3 %v2486_v13 }
  0x3a   :  { %608 = vmatpush.bf16.msra.mxu2 %v2429_v20 }
  0x3b   :  { %1832 = vmatmul.msk.bf16.gmra.mxu0 %vm106_vm0, %v2434_v24  ;;  %750 = vmatpush.bf16.msra.mxu3 %v2492_v29 }
  0x3c   :  { %1836 = vmatmul.msk.bf16.gmra.mxu1 %vm106_vm0, %v2434_v24 }
  0x3d   :  { %1840 = vmatmul.msk.bf16.gmra.mxu2 %vm106_vm0, %v2434_v24  ;;  %1844 = vmatmul.msk.bf16.gmra.mxu3 %vm106_vm0, %v2434_v24 }
  0x3e   :  { %609 = vmatpush.bf16.msra.mxu2 %v2437_v25 }
  0x3f   :  { %751 = vmatpush.bf16.msra.mxu3 %v2504_v49 }
  0x42   :  { %610 = vmatpush.bf16.msra.mxu2 %v2442_v30 }
  0x43   :  { %752 = vmatpush.bf16.msra.mxu3 %v2510_v56 }
  0x46   :  { %611 = vmatpush.bf16.msra.mxu2 %v2457_v54 }
  0x47   :  { %753 = vmatpush.bf16.msra.mxu3 %v2518_v61 }
  0x4a   :  { %612 = vmatpush.bf16.msra.mxu2 %v2469_v5 }
  0x4b   :  { %1845 = vmatmul.msk.bf16.vlgmr.msrb.gmra.mxu0 %vm106_vm0, %v2321_v11  ;;  %754 = vmatpush.bf16.msra.mxu3 %v2524_v23 }
  0x4c   :  { %1849 = vmatmul.msk.bf16.vlgmr.msrb.gmra.mxu1 %vm106_vm0, %v2321_v11  ;;  %v2008_v11 = vld [vmem:[#allocation3 + $0x128] sm:$0xf] }
  0x4d   :  { %587 = vmatmul.bf16.vlgmr.msrb.gmra.mxu2 %v450_v7  ;;  %600 = vmatmul.bf16.vlgmr.msrb.gmra.mxu3 %v450_v7  ;;  %v2498_v37 = vor.u32 %v2109_v36, %v2008_v11  ;;  %v2103_v11 = vld [vmem:[#allocation3 + $0x100] sm:$0xf0]  ;;  %v2098_v36 = vld [vmem:[#allocation3 + $0xdc] sm:$0xf] }
  0x4e   :  { %845 = vmatpush.bf16.msrb.mxu2 %v2337_v21  ;;  %v2546_v43 = vor.u32 %v2098_v36, %v1966_v42 }
  0x4f   :  { %776 = vmatpush.bf16.msra.mxu1 %v2498_v37  ;;  %858 = vmatpush.bf16.msrb.mxu3 %v2348_v27 }
  0x50   :  { %766 = vmatpush.bf16.msra.mxu0 %v2546_v43 }
  0x52   :  { %846 = vmatpush.bf16.msrb.mxu2 %v2346_v26 }
  0x53   :  { %777 = vmatpush.bf16.msra.mxu1 %v2520_v15  ;;  %859 = vmatpush.bf16.msrb.mxu3 %v2351_v32 }
  0x54   :  { %767 = vmatpush.bf16.msra.mxu0 %v2555_v58 }
  0x56   :  { %847 = vmatpush.bf16.msrb.mxu2 %v2354_v35 }
  0x57   :  { %860 = vmatpush.bf16.msrb.mxu3 %v2357_v38 }
  0x58   :  { %871 = vmatpush.bf16.msrb.mxu0 %v2404_v4 }
  0x5a   :  { %848 = vmatpush.bf16.msrb.mxu2 %v2365_v40 }
  0x5b   :  { %1846 = vmatmul.msk.bf16.gmra.mxu0 %vm106_vm0, %v2362_v39  ;;  %861 = vmatpush.bf16.msrb.mxu3 %v2371_v47 }
  0x5c   :  { %1850 = vmatmul.msk.bf16.gmra.mxu1 %vm106_vm0, %v2362_v39  ;;  %v2531_v39 = vld [vmem:[%s3152_s5 + $0x8] sm:$0xff]  ;;  %872 = vmatpush.bf16.msrb.mxu0 %v2413_v10 }
  0x5d   :  { %613 = vmatmul.bf16.vlgmr.msra.gmra.mxu2 %v450_v7  ;;  %v1984_v7 = vld [vmem:[#allocation3 + $0xf8] sm:$0xf]  ;;  %v618_v34 = vpack.c.bf16 %v2531_v39, %v2531_v39 }
  0x5e   :  { %849 = vmatpush.bf16.msrb.mxu2 %v2369_v45  ;;  %v2534_v33 = vor.u32 %v2103_v11, %v1984_v7 }
  0x5f   :  { %755 = vmatmul.bf16.vlgmr.msra.gmra.mxu3 %v618_v34 }
  0x60   :  { %3195 = vst [vmem:[#allocation15_spill] sm:$0xff] %v2534_v33  ;;  %778 = vmatpush.bf16.msra.mxu1 %v2534_v33  ;;  %862 = vmatpush.bf16.msrb.mxu3 %v2385_v53 }
  0x61   :  { %873 = vmatpush.bf16.msrb.mxu0 %v2423_v14 }
  0x62   :  { %850 = vmatpush.bf16.msrb.mxu2 %v2382_v51 }
  0x64   :  { %779 = vmatpush.bf16.msra.mxu1 %v2558_v8  ;;  %863 = vmatpush.bf16.msrb.mxu3 %v2391_v59 }
  0x65   :  { %874 = vmatpush.bf16.msrb.mxu0 %v2429_v20 }
  0x66   :  { %851 = vmatpush.bf16.msrb.mxu2 %v2388_v57 }
  0x68   :  { %864 = vmatpush.bf16.msrb.mxu3 %v2397_v2 }
  0x69   :  { %875 = vmatpush.bf16.msrb.mxu0 %v2437_v25 }
  0x6a   :  { %852 = vmatpush.bf16.msrb.mxu2 %v2394_v1 }
  0x6b   :  { %1847 = vmatmul.msk.bf16.gmra.mxu0 %vm106_vm0, %v2402_v3 }
  0x6c   :  { %1851 = vmatmul.msk.bf16.gmra.mxu1 %vm106_vm0, %v2402_v3  ;;  %v1960_v3 = vld [vmem:[#allocation3 + $0xc8] sm:$0xf]  ;;  %865 = vmatpush.bf16.msrb.mxu3 %v2408_v9 }
  0x6d   :  { %v2565_v16 = vor.u32 %v2097_v12, %v1960_v3  ;;  %876 = vmatpush.bf16.msrb.mxu0 %v2442_v30 }
  0x6e   :  { %897 = vmatpush.bf16.msra.mxu2 %v2425_v19 }
  0x6f   :  { %3197 = vst [vmem:[#allocation17_spill] sm:$0xff] %v2565_v16  ;;  %780 = vmatpush.bf16.msra.mxu1 %v2565_v16 }
  0x70   :  { %910 = vmatpush.bf16.msra.mxu3 %v2450_v41 }
  0x71   :  { %877 = vmatpush.bf16.msrb.mxu0 %v2457_v54 }
  0x72   :  { %898 = vmatpush.bf16.msra.mxu2 %v2452_v46 }
  0x73   :  { %884 = vmatpush.bf16.msrb.mxu1 %v2454_v48 }
  0x74   :  { %911 = vmatpush.bf16.msra.mxu3 %v2460_v55 }
  0x75   :  { %878 = vmatpush.bf16.msrb.mxu0 %v2469_v5 }
  0x76   :  { %899 = vmatpush.bf16.msra.mxu2 %v2466_v0 }
  0x77   :  { %885 = vmatpush.bf16.msrb.mxu1 %v2464_v63 }
  0x78   :  { %912 = vmatpush.bf16.msra.mxu3 %v2488_v18 }
  0x7a   :  { %900 = vmatpush.bf16.msra.mxu2 %v2494_v31 }
  0x7b   :  { %1848 = vmatmul.msk.bf16.gmra.mxu0 %vm106_vm0, %v2434_v24  ;;  %886 = vmatpush.bf16.msrb.mxu1 %v2486_v13 }
  0x7c   :  { %1852 = vmatmul.msk.bf16.gmra.mxu1 %vm106_vm0, %v2434_v24  ;;  %913 = vmatpush.bf16.msra.mxu3 %v2498_v37 }
  0x7e   :  { %901 = vmatpush.bf16.msra.mxu2 %v2500_v44 }
  0x7f   :  { %887 = vmatpush.bf16.msrb.mxu1 %v2492_v29 }
  0x80   :  { %914 = vmatpush.bf16.msra.mxu3 %v2520_v15 }
  0x82   :  { %902 = vmatpush.bf16.msra.mxu2 %v2526_v28 }
  0x83   :  { %888 = vmatpush.bf16.msrb.mxu1 %v2504_v49 }
  0x84   :  { %915 = vmatpush.bf16.msra.mxu3 %v2534_v33 }
  0x86   :  { %903 = vmatpush.bf16.msra.mxu2 %v2546_v43 }
  0x87   :  { %889 = vmatpush.bf16.msrb.mxu1 %v2510_v56 }
  0x88   :  { %v128_v24 = vpop.f32.mrf.mxu0  ;;  %916 = vmatpush.bf16.msra.mxu3 %v2558_v8 }
  0x89   :  { %v157_v17 = vpop.f32.mrf.mxu1 }
  0x8a   :  { %904 = vmatpush.bf16.msra.mxu2 %v2555_v58  ;;  %v2595_v22 = vpack.c.bf16 %v157_v17, %v128_v24 }
  0x8b   :  { %768 = vmatmul.bf16.vlgmr.msra.gmra.mxu0 %v618_v34  ;;  %890 = vmatpush.bf16.msrb.mxu1 %v2518_v61 }
  0x8c   :  { %781 = vmatmul.bf16.vlgmr.msra.gmra.mxu1 %v618_v34  ;;  %983 = vmatpush.bf16.msra.mxu0 %v2337_v21 }
  0x8d   :  { %917 = vmatpush.bf16.msra.mxu3 %v2565_v16 }
  0x8f   :  { %891 = vmatpush.bf16.msrb.mxu1 %v2524_v23 }
  0x90   :  { %v186_v7 = vpop.f32.mrf.mxu2  ;;  %v215_v11 = vpop.f32.mrf.mxu3  ;;  %984 = vmatpush.bf16.msra.mxu0 %v2346_v26 }
  0x91   :  { %v130_v36 = vpop.f32.mrf.mxu0  ;;  %v294_v42 = vpack.c.bf16 %v215_v11, %v186_v7  ;;  %v159_v50 = vpop.f32.mrf.mxu1 }
  0x92   :  { %v296_v34 = vpack.c.bf16 %v159_v50, %v130_v36 }
  0x93   :  { %318 = vst [vmem:[#allocation2 + $0x8] sm:$0xff] %v294_v42  ;;  %996 = vmatpush.bf16.msra.mxu1 %v2348_v27 }
  0x94   :  { %v833_v3 = vunpack.c.l.bf16 %v296_v34  ;;  %v834_v12 = vunpack.c.h.bf16 %v296_v34  ;;  %985 = vmatpush.bf16.msra.mxu0 %v2354_v35 }
  0x96   :  { %v2619_v24 = vadd.f32 %v833_v3, %v2612_v60  ;;  %v2622_v17 = vadd.f32 %v834_v12, %v2615_v62 }
  0x97   :  { %997 = vmatpush.bf16.msra.mxu1 %v2351_v32 }
  0x98   :  { %3200 = vst [vmem:[#allocation20_spill] sm:$0xff] %v2619_v24  ;;  %v188_v7 = vpop.f32.mrf.mxu2  ;;  %v217_v11 = vpop.f32.mrf.mxu3  ;;  %986 = vmatpush.bf16.msra.mxu0 %v2365_v40 }
  0x99   :  { %3201 = vst [vmem:[#allocation21_spill] sm:$0xff] %v2622_v17  ;;  %v133_v36 = vpop.f32.mrf.mxu0  ;;  %v297_v42 = vpack.c.bf16 %v217_v11, %v188_v7  ;;  %v162_v50 = vpop.f32.mrf.mxu1 }
  0x9a   :  { %v299_v33 = vpack.c.bf16 %v162_v50, %v133_v36 }
  0x9b   :  { %321 = vst [vmem:[#allocation2 + $0x20] sm:$0xff] %v297_v42  ;;  %998 = vmatpush.bf16.msra.mxu1 %v2357_v38 }
  0x9c   :  { %v971_v34 = vunpack.c.l.bf16 %v299_v33  ;;  %v972_v3 = vunpack.c.h.bf16 %v299_v33  ;;  %987 = vmatpush.bf16.msra.mxu0 %v2369_v45 }
  0x9e   :  { %v2632_v12 = vadd.f32 %v971_v34, %v2612_v60  ;;  %v2635_v17 = vadd.f32 %v972_v3, %v2615_v62 }
  0x9f   :  { %999 = vmatpush.bf16.msra.mxu1 %v2371_v47 }
  0xa0   :  { %3202 = vst [vmem:[#allocation22_spill] sm:$0xff] %v2632_v12  ;;  %v191_v7 = vpop.f32.mrf.mxu2  ;;  %v220_v11 = vpop.f32.mrf.mxu3  ;;  %988 = vmatpush.bf16.msra.mxu0 %v2382_v51 }
  0xa1   :  { %3203 = vst [vmem:[#allocation23_spill] sm:$0xff] %v2635_v17  ;;  %v135_v36 = vpop.f32.mrf.mxu0  ;;  %v300_v42 = vpack.c.bf16 %v220_v11, %v191_v7  ;;  %v164_v50 = vpop.f32.mrf.mxu1 }
  0xa2   :  { %v302_v24 = vpack.c.bf16 %v164_v50, %v135_v36 }
  0xa3   :  { %324 = vst [vmem:[#allocation2 + $0x38] sm:$0xff] %v300_v42  ;;  %1000 = vmatpush.bf16.msra.mxu1 %v2385_v53 }
  0xa4   :  { %v1109_v33 = vunpack.c.l.bf16 %v302_v24  ;;  %v1110_v16 = vunpack.c.h.bf16 %v302_v24  ;;  %989 = vmatpush.bf16.msra.mxu0 %v2388_v57 }
  0xa6   :  { %v2642_v34 = vadd.f32 %v1109_v33, %v2612_v60  ;;  %v2645_v3 = vadd.f32 %v1110_v16, %v2615_v62 }
  0xa7   :  { %1001 = vmatpush.bf16.msra.mxu1 %v2391_v59 }
  0xa8   :  { %3204 = vst [vmem:[#allocation24_spill] sm:$0xff] %v2642_v34  ;;  %v193_v17 = vpop.f32.mrf.mxu2  ;;  %v222_v7 = vpop.f32.mrf.mxu3  ;;  %990 = vmatpush.bf16.msra.mxu0 %v2394_v1 }
  0xa9   :  { %3205 = vst [vmem:[#allocation25_spill] sm:$0xff] %v2645_v3  ;;  %v138_v11 = vpop.f32.mrf.mxu0  ;;  %v303_v36 = vpack.c.bf16 %v222_v7, %v193_v17  ;;  %v167_v50 = vpop.f32.mrf.mxu1 }
  0xaa   :  { %v305_v42 = vpack.c.bf16 %v167_v50, %v138_v11 }
  0xab   :  { %327 = vst [vmem:[#allocation2 + $0x50] sm:$0xff] %v303_v36  ;;  %1002 = vmatpush.bf16.msra.mxu1 %v2397_v2 }
  0xac   :  { %329 = vst [vmem:[#allocation2 + $0x60] sm:$0xff] %v305_v42 }
  0xaf   :  { %1003 = vmatpush.bf16.msra.mxu1 %v2408_v9 }
  0xb0   :  { %v196_v24 = vpop.f32.mrf.mxu2  ;;  %v225_v33 = vpop.f32.mrf.mxu3 }
  0xb1   :  { %v140_v16 = vpop.f32.mrf.mxu0  ;;  %v306_v3 = vpack.c.bf16 %v225_v33, %v196_v24  ;;  %v169_v34 = vpop.f32.mrf.mxu1 }
  0xb2   :  { %v308_v12 = vpack.c.bf16 %v169_v34, %v140_v16 }
  0xb3   :  { %330 = vst [vmem:[#allocation2 + $0x68] sm:$0xff] %v306_v3 }
  0xb4   :  { %332 = vst [vmem:[#allocation2 + $0x78] sm:$0xff] %v308_v12 }
  0xb8   :  { %v198_v57 = vpop.f32.mrf.mxu2  ;;  %v227_v17 = vpop.f32.mrf.mxu3 }
  0xb9   :  { %v143_v7 = vpop.f32.mrf.mxu0  ;;  %v309_v11 = vpack.c.bf16 %v227_v17, %v198_v57  ;;  %v172_v50 = vpop.f32.mrf.mxu1  ;;  %v438_v57 = vunpack.c.l.bf16 %v2595_v22 }
  0xba   :  { %v311_v1 = vpack.c.bf16 %v172_v50, %v143_v7 }
  0xbb   :  { %333 = vst [vmem:[#allocation2 + $0x80] sm:$0xff] %v309_v11  ;;  %v441_v17 = vadd.f32 %v438_v57, %v2612_v60  ;;  %v434_v57 = vld [vmem:[#allocation2 + $0x8] sm:$0xf] }
  0xbc   :  { %335 = vst [vmem:[#allocation2 + $0x90] sm:$0xff] %v311_v1  ;;  %v439_v1 = vunpack.c.h.bf16 %v2595_v22 }
  0xc0   :  { %v201_v36 = vpop.f32.mrf.mxu2  ;;  %v230_v42 = vpop.f32.mrf.mxu3 }
  0xc1   :  { %v145_v2 = vpop.f32.mrf.mxu0  ;;  %v312_v8 = vpack.c.bf16 %v230_v42, %v201_v36  ;;  %v174_v9 = vpop.f32.mrf.mxu1 }
  0xc2   :  { %v314_v59 = vpack.c.bf16 %v174_v9, %v145_v2  ;;  %v442_v2 = vadd.f32 %v439_v1, %v2615_v62  ;;  %v2658_v1 = vld [vmem:[%s3151_s4] ss:$0 sm:$0xff] }
  0xc3   :  { %336 = vst [vmem:[#allocation2 + $0x98] sm:$0xff] %v312_v8 }
  0xc4   :  { %338 = vst [vmem:[#allocation2 + $0xa8] sm:$0xff] %v314_v59 }
  0xc5   :  { %3206 = vst [vmem:[#allocation26_spill] sm:$0xff] %v2658_v1 }
  0xc8   :  { %v203_v24 = vpop.f32.mrf.mxu2  ;;  %v232_v34 = vpop.f32.mrf.mxu3 }
  0xc9   :  { %v244_v3 = vpop.f32.mrf.mxu0  ;;  %v315_v12 = vpack.c.bf16 %v232_v34, %v203_v24  ;;  %v273_v33 = vpop.f32.mrf.mxu1 }
  0xca   :  { %v295_v16 = vpack.c.bf16 %v273_v33, %v244_v3 }
  0xcb   :  { %339 = vst [vmem:[#allocation2 + $0xb0] sm:$0xff] %v315_v12 }
  0xcc   :  { %319 = vst [vmem:[#allocation2 + $0x10] sm:$0xff] %v295_v16 }
  0xd0   :  { %v588_v7 = vpop.f32.mrf.mxu2  ;;  %v601_v9 = vpop.f32.mrf.mxu3 }
  0xd1   :  { %v786_v11 = vadd.f32 %v588_v7, %v441_v17  ;;  %v246_v59 = vpop.f32.mrf.mxu0  ;;  %v275_v8 = vpop.f32.mrf.mxu1  ;;  %v791_v36 = vadd.f32 %v601_v9, %v442_v2  ;;  %v2661_v7 = vperm.slane %v2606_v52, 2 }
  0xd2   :  { %v298_v42 = vpack.c.bf16 %v275_v8, %v246_v59 }
  0xd3   :  { %v787_v50 = vmul.f32 0.5, %v786_v11  ;;  %v792_v24 = vmul.f32 0.5, %v791_v36  ;;  %v440_v11 = vunpack.c.l.bf16 %v434_v57 }
  0xd4   :  { %322 = vst [vmem:[#allocation2 + $0x28] sm:$0xff] %v298_v42 }
  0xd5   :  { %2124 = vtanh.f32 %v787_v50  ;;  %v443_v42 = vadd.f32 %v440_v11, %v2661_v7 }
  0xd6   :  { %2126 = vtanh.f32 %v792_v24 }
  0xd8   :  { %v590_v34 = vpop.f32.mrf.mxu2  ;;  %v603_v12 = vpop.f32.mrf.mxu3 }
  0xd9   :  { %v249_v3 = vpop.f32.mrf.mxu0  ;;  %v278_v33 = vpop.f32.mrf.mxu1 }
  0xda   :  { %v301_v16 = vpack.c.bf16 %v278_v33, %v249_v3 }
  0xdb   :  { %v2125_v22 = vpop.eup %2124 }
  0xdc   :  { %v789_v17 = vmul.f32 0.5, %v2125_v22  ;;  %325 = vst [vmem:[#allocation2 + $0x40] sm:$0xff] %v301_v16  ;;  %v2127_v9 = vpop.eup %2126 }
  0xdd   :  { %v794_v3 = vmul.f32 0.5, %v2127_v9 }
  0xde   :  { %v790_v59 = vadd.f32 0.5, %v789_v17 }
  0xdf   :  { %v795_v33 = vadd.f32 0.5, %v794_v3 }
  0xe0   :  { %v614_v2 = vpop.f32.mrf.mxu2 }
  0xe1   :  { %v796_v8 = vadd.f32 %v2658_v1, %v614_v2  ;;  %v251_v50 = vpop.f32.mrf.mxu0  ;;  %v280_v36 = vpop.f32.mrf.mxu1  ;;  %v800_v60 = vsub.f32 1.0, %v795_v33  ;;  %v802_v2 = vmul.f32 %v795_v33, %v2477_v6 }
  0xe2   :  { %v304_v34 = vpack.c.bf16 %v280_v36, %v251_v50  ;;  %v756_v16 = vpop.f32.mrf.mxu3 }
  0xe3   :  { %v797_v24 = vmul.f32 %v796_v8, %v790_v59 }
  0xe4   :  { %328 = vst [vmem:[#allocation2 + $0x58] sm:$0xff] %v304_v34  ;;  %v414_v34 = vld [vmem:[%s3150_s3 + $0x3] sm:$0x7] }
  0xe5   :  { %v798_v12 = vadd.f32 %v797_v24, %v443_v42  ;;  %v2694_v33 = vperm.slane %v414_v34, 0 }
  0xe7   :  { %2128 = vtanh.f32 %v798_v12 }
  0xe8   :  { %v616_v22 = vpop.f32.mrf.mxu2 }
  0xe9   :  { %v254_v52 = vpop.f32.mrf.mxu0  ;;  %v283_v57 = vpop.f32.mrf.mxu1 }
  0xea   :  { %v307_v62 = vpack.c.bf16 %v283_v57, %v254_v52  ;;  %v758_v59 = vpop.f32.mrf.mxu3  ;;  %v2696_v52 = vperm.slane %v414_v34, 1 }
  0xec   :  { %331 = vst [vmem:[#allocation2 + $0x70] sm:$0xff] %v307_v62 }
  0xed   :  { %v2129_v17 = vpop.eup %2128 }
  0xee   :  { %v801_v1 = vmul.f32 %v2129_v17, %v800_v60 }
  0xf0   :  { %v2666_v51 = vadd.f32 %v802_v2, %v801_v1 }
  0xf1   :  { %v256_v11 = vpop.f32.mrf.mxu0  ;;  %v285_v9 = vpop.f32.mrf.mxu1 }
  0xf2   :  { %v822_v8 = vpack.c.bf16 %v2666_v51, %v2666_v51  ;;  %v310_v50 = vpack.c.bf16 %v285_v9, %v256_v11 }
  0xf4   :  { %823 = vst [vmem:[%s3153_s6] sm:$0xf] %v822_v8  ;;  %853 = vmatmul.bf16.vlgmr.msrb.gmra.mxu2 %v822_v8  ;;  %866 = vmatmul.bf16.vlgmr.msrb.gmra.mxu3 %v822_v8 }
  0xf5   :  { %334 = vst [vmem:[#allocation2 + $0x88] sm:$0xff] %v310_v50  ;;  %879 = vmatmul.bf16.vlgmr.msrb.gmra.mxu0 %v822_v8  ;;  %1009 = vmatpush.bf16.msrb.mxu2 %v2404_v4 }
  0xf6   :  { %1022 = vmatpush.bf16.msrb.mxu3 %v2454_v48  ;;  %1035 = vmatpush.bf16.msrb.mxu0 %v2425_v19 }
  0xf9   :  { %v259_v6 = vpop.f32.mrf.mxu0  ;;  %1010 = vmatpush.bf16.msrb.mxu2 %v2413_v10  ;;  %v288_v60 = vpop.f32.mrf.mxu1 }
  0xfa   :  { %1023 = vmatpush.bf16.msrb.mxu3 %v2464_v63  ;;  %1036 = vmatpush.bf16.msrb.mxu0 %v2452_v46  ;;  %v313_v62 = vpack.c.bf16 %v288_v60, %v259_v6  ;;  %v2709_v60 = vld [vmem:[%s3151_s4 + $0x1] ss:$0 sm:$0xff] }
  0xfc   :  { %337 = vst [vmem:[#allocation2 + $0xa0] sm:$0xff] %v313_v62 }
  0xfd   :  { %1011 = vmatpush.bf16.msrb.mxu2 %v2423_v14 }
  0xfe   :  { %1024 = vmatpush.bf16.msrb.mxu3 %v2486_v13  ;;  %1037 = vmatpush.bf16.msrb.mxu0 %v2466_v0 }
 0x101   :  { %v261_v1 = vpop.f32.mrf.mxu0  ;;  %1012 = vmatpush.bf16.msrb.mxu2 %v2429_v20  ;;  %v290_v36 = vpop.f32.mrf.mxu1 }
 0x102   :  { %1025 = vmatpush.bf16.msrb.mxu3 %v2492_v29  ;;  %1038 = vmatpush.bf16.msrb.mxu0 %v2494_v31  ;;  %v316_v42 = vpack.c.bf16 %v290_v36, %v261_v1 }
 0x104   :  { %340 = vst [vmem:[#allocation2 + $0xb8] sm:$0xff] %v316_v42 }
 0x105   :  { %1013 = vmatpush.bf16.msrb.mxu2 %v2437_v25 }
 0x106   :  { %1026 = vmatpush.bf16.msrb.mxu3 %v2504_v49  ;;  %1039 = vmatpush.bf16.msrb.mxu0 %v2500_v44 }
 0x109   :  { %v769_v24 = vpop.f32.mrf.mxu0  ;;  %1014 = vmatpush.bf16.msrb.mxu2 %v2442_v30  ;;  %v782_v3 = vpop.f32.mrf.mxu1 }
 0x10a   :  { %1027 = vmatpush.bf16.msrb.mxu3 %v2510_v56  ;;  %1040 = vmatpush.bf16.msrb.mxu0 %v2526_v28  ;;  %v814_v42 = vadd.f32 %v2709_v60, %v782_v3 }
 0x10b   :  { %v436_v12 = vld [vmem:[#allocation2 + $0xb4] sm:$0xff]  ;;  %v437_v62 = vld [vmem:[#allocation2 + $0xbc] sm:$0xf] }
 0x10c   :  { %v444_v22 = vunpack.c.l.bf16 %v436_v12  ;;  %v445_v57 = vunpack.c.h.bf16 %v436_v12  ;;  %v446_v36 = vunpack.c.l.bf16 %v437_v62  ;;  %v3209_v62 = vld [vmem:[#allocation10_spill] sm:$0xff] }
 0x10d   :  { %1015 = vmatpush.bf16.msrb.mxu2 %v2457_v54 }
 0x10e   :  { %1028 = vmatpush.bf16.msrb.mxu3 %v2518_v61  ;;  %1041 = vmatpush.bf16.msrb.mxu0 %v2546_v43  ;;  %v447_v17 = vadd.f32 %v444_v22, %v2694_v33  ;;  %v448_v2 = vadd.f32 %v445_v57, %v2696_v52  ;;  %v2712_v22 = vperm.slane %v414_v34, 2  ;;  %v3208_v34 = vld [vmem:[#allocation7_spill] sm:$0xff] }
 0x110   :  { %v804_v11 = vadd.f32 %v756_v16, %v447_v17  ;;  %v809_v59 = vadd.f32 %v769_v24, %v448_v2  ;;  %v449_v57 = vadd.f32 %v446_v36, %v2712_v22  ;;  %v3211_v36 = vld [vmem:[#allocation9_spill] sm:$0xff] }
 0x111   :  { %v771_v9 = vpop.f32.mrf.mxu0  ;;  %1016 = vmatpush.bf16.msrb.mxu2 %v2469_v5  ;;  %v784_v8 = vpop.f32.mrf.mxu1 }
 0x112   :  { %1029 = vmatpush.bf16.msrb.mxu3 %v2524_v23  ;;  %1042 = vmatpush.bf16.msrb.mxu0 %v2555_v58  ;;  %v805_v50 = vmul.f32 0.5, %v804_v11  ;;  %v810_v6 = vmul.f32 0.5, %v809_v59 }
 0x114   :  { %2130 = vtanh.f32 %v805_v50 }
 0x115   :  { %2132 = vtanh.f32 %v810_v6 }
 0x11a   :  { %v2131_v16 = vpop.eup %2130 }
 0x11b   :  { %v807_v1 = vmul.f32 0.5, %v2131_v16  ;;  %v2133_v24 = vpop.eup %2132 }
 0x11c   :  { %v812_v2 = vmul.f32 0.5, %v2133_v24  ;;  %v3213_v24 = vld [vmem:[#allocation17_spill] sm:$0xff] }
 0x11d   :  { %v808_v12 = vadd.f32 0.5, %v807_v1  ;;  %v3210_v1 = vld [vmem:[#allocation16_spill] sm:$0xff] }
 0x11e   :  { %v813_v59 = vadd.f32 0.5, %v812_v2 }
 0x11f   :  { %v815_v17 = vmul.f32 %v814_v42, %v808_v12  ;;  %v3212_v42 = vld [vmem:[#allocation12_spill] sm:$0xff]  ;;  %v3214_v12 = vld [vmem:[#allocation11_spill] sm:$0xff] }
 0x120   :  { %v818_v9 = vsub.f32 1.0, %v813_v59  ;;  %v820_v50 = vmul.f32 %v2531_v39, %v813_v59  ;;  %v3207_v39 = vld [vmem:[#allocation15_spill] sm:$0xff]  ;;  %v3216_v59 = vld [vmem:[#allocation20_spill] sm:$0xff] }
 0x121   :  { %v816_v11 = vadd.f32 %v815_v17, %v449_v57  ;;  %v3215_v57 = vld [vmem:[#allocation13_spill] sm:$0xff] }
 0x123   :  { %2134 = vtanh.f32 %v816_v11 }
 0x129   :  { %v2135_v8 = vpop.eup %2134 }
 0x12a   :  { %v819_v6 = vmul.f32 %v2135_v8, %v818_v9  ;;  %v3217_v8 = vld [vmem:[#allocation21_spill] sm:$0xff] }
 0x12c   :  { %v2716_v16 = vadd.f32 %v820_v50, %v819_v6 }
 0x12e   :  { %v824_v3 = vpack.c.bf16 %v2716_v16, %v2716_v16 }
 0x130   :  { %2046 = vst [vmem:[%s3153_s6 + $0x3c] sm:$0xf] %v824_v3  ;;  %892 = vmatmul.bf16.vlgmr.msrb.gmra.mxu1 %v824_v3  ;;  %905 = vmatmul.bf16.vlgmr.msra.gmra.mxu2 %v824_v3 }
 0x131   :  { %918 = vmatmul.bf16.vlgmr.msra.gmra.mxu3 %v824_v3  ;;  %1048 = vmatpush.bf16.msrb.mxu1 %v2450_v41 }
 0x132   :  { %1121 = vmatpush.bf16.msra.mxu2 %v2337_v21  ;;  %1134 = vmatpush.bf16.msra.mxu3 %v2348_v27 }
 0x135   :  { %1049 = vmatpush.bf16.msrb.mxu1 %v2460_v55 }
 0x136   :  { %1122 = vmatpush.bf16.msra.mxu2 %v2346_v26  ;;  %1135 = vmatpush.bf16.msra.mxu3 %v2351_v32 }
 0x139   :  { %1050 = vmatpush.bf16.msrb.mxu1 %v2488_v18 }
 0x13a   :  { %1123 = vmatpush.bf16.msra.mxu2 %v2354_v35  ;;  %1136 = vmatpush.bf16.msra.mxu3 %v2357_v38 }
 0x13d   :  { %1051 = vmatpush.bf16.msrb.mxu1 %v2498_v37 }
 0x13e   :  { %1124 = vmatpush.bf16.msra.mxu2 %v2365_v40  ;;  %1137 = vmatpush.bf16.msra.mxu3 %v2371_v47 }
 0x141   :  { %1052 = vmatpush.bf16.msrb.mxu1 %v2520_v15 }
 0x142   :  { %1125 = vmatpush.bf16.msra.mxu2 %v2369_v45  ;;  %1138 = vmatpush.bf16.msra.mxu3 %v2385_v53 }
 0x145   :  { %1053 = vmatpush.bf16.msrb.mxu1 %v3207_v39 }
 0x146   :  { %1126 = vmatpush.bf16.msra.mxu2 %v3208_v34  ;;  %1139 = vmatpush.bf16.msra.mxu3 %v3209_v62  ;;  %v829_v62 = vld [vmem:[#allocation2 + $0x20] sm:$0xf] }
 0x147   :  { %v835_v34 = vunpack.c.l.bf16 %v829_v62 }
 0x149   :  { %1054 = vmatpush.bf16.msrb.mxu1 %v3210_v1  ;;  %v838_v15 = vadd.f32 %v835_v34, %v2661_v7 }
 0x14a   :  { %1127 = vmatpush.bf16.msra.mxu2 %v3211_v36  ;;  %1140 = vmatpush.bf16.msra.mxu3 %v3212_v42 }
 0x14d   :  { %1055 = vmatpush.bf16.msrb.mxu1 %v3213_v24 }
 0x14e   :  { %1128 = vmatpush.bf16.msra.mxu2 %v3214_v12  ;;  %1141 = vmatpush.bf16.msra.mxu3 %v3215_v57  ;;  %v3218_v57 = vld [vmem:[#allocation26_spill] sm:$0xff] }
 0x172   :  { %v880_v17 = vpop.f32.mrf.mxu0 }
 0x173   :  { %v933_v53 = vadd.f32 %v3218_v57, %v880_v17 }
 0x177   :  { %v854_v2 = vpop.f32.mrf.mxu2  ;;  %v867_v11 = vpop.f32.mrf.mxu3 }
 0x178   :  { %v923_v9 = vadd.f32 %v854_v2, %v3216_v59  ;;  %v928_v50 = vadd.f32 %v867_v11, %v3217_v8 }
 0x17a   :  { %v924_v6 = vmul.f32 0.5, %v923_v9  ;;  %v882_v3 = vpop.f32.mrf.mxu0  ;;  %v929_v1 = vmul.f32 0.5, %v928_v50 }
 0x17c   :  { %2136 = vtanh.f32 %v924_v6 }
 0x17d   :  { %2138 = vtanh.f32 %v929_v1 }
 0x17f   :  { %v856_v36 = vpop.f32.mrf.mxu2  ;;  %v869_v42 = vpop.f32.mrf.mxu3 }
 0x182   :  { %v2137_v24 = vpop.eup %2136 }
 0x183   :  { %v926_v12 = vmul.f32 0.5, %v2137_v24  ;;  %v2139_v39 = vpop.eup %2138 }
 0x184   :  { %v931_v59 = vmul.f32 0.5, %v2139_v39 }
 0x185   :  { %v927_v45 = vadd.f32 0.5, %v926_v12 }
 0x186   :  { %v932_v9 = vadd.f32 0.5, %v931_v59 }
 0x187   :  { %v934_v2 = vmul.f32 %v933_v53, %v927_v45  ;;  %v831_v45 = vld [vmem:[#allocation2 + $0x9c] sm:$0xff] }
 0x188   :  { %v937_v8 = vsub.f32 1.0, %v932_v9  ;;  %v939_v36 = vmul.f32 %v932_v9, %v2666_v51  ;;  %v839_v51 = vunpack.c.l.bf16 %v831_v45  ;;  %v840_v34 = vunpack.c.h.bf16 %v831_v45 }
 0x189   :  { %v935_v11 = vadd.f32 %v934_v2, %v838_v15 }
 0x18a   :  { %v842_v53 = vadd.f32 %v839_v51, %v2694_v33  ;;  %v843_v12 = vadd.f32 %v840_v34, %v2696_v52 }
 0x18b   :  { %2140 = vtanh.f32 %v935_v11  ;;  %v832_v11 = vld [vmem:[#allocation2 + $0xa4] sm:$0xf] }
 0x191   :  { %v2141_v50 = vpop.eup %2140 }
 0x192   :  { %v938_v1 = vmul.f32 %v2141_v50, %v937_v8  ;;  %v841_v50 = vunpack.c.l.bf16 %v832_v11  ;;  %v3220_v11 = vld [vmem:[#allocation6_spill] sm:$0xff] }
 0x194   :  { %v2752_v42 = vadd.f32 %v939_v36, %v938_v1  ;;  %v844_v51 = vadd.f32 %v841_v50, %v2712_v22  ;;  %v3223_v50 = vld [vmem:[#allocation7_spill] sm:$0xff] }
 0x196   :  { %v959_v62 = vpack.c.bf16 %v2752_v42, %v2752_v42 }
 0x198   :  { %2047 = vst [vmem:[%s3153_s6 + $0x8] sm:$0xf] %v959_v62  ;;  %991 = vmatmul.bf16.vlgmr.msra.gmra.mxu0 %v959_v62  ;;  %1004 = vmatmul.bf16.vlgmr.msra.gmra.mxu1 %v959_v62 }
 0x199   :  { %1017 = vmatmul.bf16.vlgmr.msrb.gmra.mxu2 %v959_v62  ;;  %1147 = vmatpush.bf16.msra.mxu0 %v2404_v4 }
 0x19a   :  { %1160 = vmatpush.bf16.msra.mxu1 %v2454_v48  ;;  %1173 = vmatpush.bf16.msrb.mxu2 %v2425_v19 }
 0x19d   :  { %1148 = vmatpush.bf16.msra.mxu0 %v2413_v10 }
 0x19e   :  { %1161 = vmatpush.bf16.msra.mxu1 %v2464_v63  ;;  %1174 = vmatpush.bf16.msrb.mxu2 %v2452_v46 }
 0x1a1   :  { %1149 = vmatpush.bf16.msra.mxu0 %v2423_v14 }
 0x1a2   :  { %1162 = vmatpush.bf16.msra.mxu1 %v2486_v13  ;;  %1175 = vmatpush.bf16.msrb.mxu2 %v2466_v0 }
 0x1a5   :  { %1150 = vmatpush.bf16.msra.mxu0 %v2429_v20 }
 0x1a6   :  { %1163 = vmatpush.bf16.msra.mxu1 %v2492_v29  ;;  %1176 = vmatpush.bf16.msrb.mxu2 %v2494_v31 }
 0x1a9   :  { %1151 = vmatpush.bf16.msra.mxu0 %v2437_v25 }
 0x1aa   :  { %1164 = vmatpush.bf16.msra.mxu1 %v2504_v49  ;;  %1177 = vmatpush.bf16.msrb.mxu2 %v2500_v44 }
 0x1ad   :  { %1152 = vmatpush.bf16.msra.mxu0 %v2442_v30  ;;  %v893_v15 = vpop.f32.mrf.mxu1 }
 0x1ae   :  { %1165 = vmatpush.bf16.msra.mxu1 %v2510_v56  ;;  %1178 = vmatpush.bf16.msrb.mxu2 %v2526_v28  ;;  %v941_v39 = vadd.f32 %v893_v15, %v842_v53 }
 0x1b0   :  { %v942_v24 = vmul.f32 0.5, %v941_v39 }
 0x1b1   :  { %1153 = vmatpush.bf16.msra.mxu0 %v2457_v54 }
 0x1b2   :  { %1166 = vmatpush.bf16.msra.mxu1 %v2518_v61  ;;  %1179 = vmatpush.bf16.msrb.mxu2 %v2546_v43  ;;  %2142 = vtanh.f32 %v942_v24 }
 0x1b3   :  { %v906_v17 = vpop.f32.mrf.mxu2 }
 0x1b4   :  { %v946_v6 = vadd.f32 %v906_v17, %v843_v12  ;;  %v919_v3 = vpop.f32.mrf.mxu3 }
 0x1b5   :  { %1154 = vmatpush.bf16.msra.mxu0 %v2469_v5  ;;  %v895_v2 = vpop.f32.mrf.mxu1  ;;  %v951_v36 = vadd.f32 %v2709_v60, %v919_v3 }
 0x1b6   :  { %1167 = vmatpush.bf16.msra.mxu1 %v2524_v23  ;;  %1180 = vmatpush.bf16.msrb.mxu2 %v2555_v58  ;;  %v947_v59 = vmul.f32 0.5, %v946_v6 }
 0x1b8   :  { %v2143_v9 = vpop.eup %2142  ;;  %2144 = vtanh.f32 %v947_v59 }
 0x1b9   :  { %v944_v8 = vmul.f32 0.5, %v2143_v9  ;;  %v3221_v9 = vld [vmem:[#allocation8_spill] sm:$0xff] }
 0x1bb   :  { %v945_v1 = vadd.f32 0.5, %v944_v8  ;;  %v908_v62 = vpop.f32.mrf.mxu2  ;;  %v3222_v8 = vld [vmem:[#allocation15_spill] sm:$0xff] }
 0x1bc   :  { %v921_v45 = vpop.f32.mrf.mxu3  ;;  %v3226_v62 = vld [vmem:[#allocation9_spill] sm:$0xff] }
 0x1bd   :  { %v952_v53 = vmul.f32 %v951_v36, %v945_v1  ;;  %v3224_v1 = vld [vmem:[#allocation10_spill] sm:$0xff]  ;;  %v3225_v36 = vld [vmem:[#allocation16_spill] sm:$0xff] }
 0x1be   :  { %v2145_v15 = vpop.eup %2144  ;;  %v3227_v45 = vld [vmem:[#allocation12_spill] sm:$0xff] }
 0x1bf   :  { %v949_v39 = vmul.f32 0.5, %v2145_v15  ;;  %v953_v34 = vadd.f32 %v952_v53, %v844_v51  ;;  %v3228_v51 = vld [vmem:[#allocation17_spill] sm:$0xff]  ;;  %v3229_v53 = vld [vmem:[#allocation11_spill] sm:$0xff] }
 0x1c0   :  { %v3230_v15 = vld [vmem:[#allocation13_spill] sm:$0xff] }
 0x1c1   :  { %2146 = vtanh.f32 %v953_v34  ;;  %v950_v24 = vadd.f32 0.5, %v949_v39 }
 0x1c3   :  { %v955_v12 = vsub.f32 1.0, %v950_v24  ;;  %v957_v6 = vmul.f32 %v950_v24, %v2716_v16  ;;  %v3219_v16 = vld [vmem:[#allocation14_spill] sm:$0xff] }
 0x1c4   :  { %v3231_v24 = vld [vmem:[#allocation22_spill] sm:$0xff] }
 0x1c7   :  { %v2147_v17 = vpop.eup %2146 }
 0x1c8   :  { %v956_v2 = vmul.f32 %v2147_v17, %v955_v12  ;;  %v3232_v17 = vld [vmem:[#allocation23_spill] sm:$0xff] }
 0x1ca   :  { %v2788_v59 = vadd.f32 %v957_v6, %v956_v2 }
 0x1cc   :  { %v962_v3 = vpack.c.bf16 %v2788_v59, %v2788_v59 }
 0x1ce   :  { %2048 = vst [vmem:[%s3153_s6 + $0x34] sm:$0xf] %v962_v3  ;;  %1030 = vmatmul.bf16.vlgmr.msrb.gmra.mxu3 %v962_v3  ;;  %1043 = vmatmul.bf16.vlgmr.msrb.gmra.mxu0 %v962_v3 }
 0x1cf   :  { %1056 = vmatmul.bf16.vlgmr.msrb.gmra.mxu1 %v962_v3  ;;  %1186 = vmatpush.bf16.msrb.mxu3 %v2450_v41 }
 0x1d0   :  { %1257 = vmatpush.bf16.msrb.mxu0 %v2337_v21  ;;  %1270 = vmatpush.bf16.msrb.mxu1 %v2348_v27 }
 0x1d3   :  { %1187 = vmatpush.bf16.msrb.mxu3 %v2460_v55 }
 0x1d4   :  { %1258 = vmatpush.bf16.msrb.mxu0 %v2346_v26  ;;  %1271 = vmatpush.bf16.msrb.mxu1 %v2351_v32 }
 0x1d7   :  { %1188 = vmatpush.bf16.msrb.mxu3 %v2488_v18 }
 0x1d8   :  { %1259 = vmatpush.bf16.msrb.mxu0 %v2354_v35  ;;  %1272 = vmatpush.bf16.msrb.mxu1 %v2357_v38 }
 0x1db   :  { %1189 = vmatpush.bf16.msrb.mxu3 %v2498_v37 }
 0x1dc   :  { %1260 = vmatpush.bf16.msrb.mxu0 %v2365_v40  ;;  %1273 = vmatpush.bf16.msrb.mxu1 %v2371_v47 }
 0x1df   :  { %1190 = vmatpush.bf16.msrb.mxu3 %v3219_v16 }
 0x1e0   :  { %1261 = vmatpush.bf16.msrb.mxu0 %v3220_v11  ;;  %1274 = vmatpush.bf16.msrb.mxu1 %v3221_v9 }
 0x1e3   :  { %1191 = vmatpush.bf16.msrb.mxu3 %v3222_v8 }
 0x1e4   :  { %1262 = vmatpush.bf16.msrb.mxu0 %v3223_v50  ;;  %1275 = vmatpush.bf16.msrb.mxu1 %v3224_v1 }
 0x1e7   :  { %1192 = vmatpush.bf16.msrb.mxu3 %v3225_v36 }
 0x1e8   :  { %1263 = vmatpush.bf16.msrb.mxu0 %v3226_v62  ;;  %1276 = vmatpush.bf16.msrb.mxu1 %v3227_v45  ;;  %v967_v45 = vld [vmem:[#allocation2 + $0x38] sm:$0xf] }
 0x1e9   :  { %v973_v8 = vunpack.c.l.bf16 %v967_v45 }
 0x1eb   :  { %1193 = vmatpush.bf16.msrb.mxu3 %v3228_v51 }
 0x1ec   :  { %1264 = vmatpush.bf16.msrb.mxu0 %v3229_v53  ;;  %1277 = vmatpush.bf16.msrb.mxu1 %v3230_v15 }
 0x215   :  { %v992_v39 = vpop.f32.mrf.mxu0  ;;  %v1005_v34 = vpop.f32.mrf.mxu1 }
 0x216   :  { %v1061_v12 = vadd.f32 %v992_v39, %v3231_v24  ;;  %v1066_v6 = vadd.f32 %v1005_v34, %v3232_v17  ;;  %v976_v39 = vadd.f32 %v973_v8, %v2661_v7 }
 0x218   :  { %v1062_v2 = vmul.f32 0.5, %v1061_v12  ;;  %v1067_v3 = vmul.f32 0.5, %v1066_v6 }
 0x21a   :  { %2148 = vtanh.f32 %v1062_v2 }
 0x21b   :  { %2150 = vtanh.f32 %v1067_v3 }
 0x21c   :  { %v1018_v36 = vpop.f32.mrf.mxu2 }
 0x21d   :  { %v994_v62 = vpop.f32.mrf.mxu0  ;;  %v1007_v1 = vpop.f32.mrf.mxu1  ;;  %v1071_v15 = vadd.f32 %v3218_v57, %v1018_v36 }
 0x220   :  { %v2149_v50 = vpop.eup %2148 }
 0x221   :  { %v1064_v51 = vmul.f32 0.5, %v2149_v50  ;;  %v2151_v53 = vpop.eup %2150 }
 0x222   :  { %v1069_v34 = vmul.f32 0.5, %v2151_v53 }
 0x223   :  { %v1065_v9 = vadd.f32 0.5, %v1064_v51 }
 0x224   :  { %v1020_v11 = vpop.f32.mrf.mxu2  ;;  %v1070_v17 = vadd.f32 0.5, %v1069_v34 }
 0x225   :  { %v1072_v24 = vmul.f32 %v1071_v15, %v1065_v9 }
 0x226   :  { %v1075_v6 = vsub.f32 1.0, %v1070_v17  ;;  %v1077_v1 = vmul.f32 %v1070_v17, %v2752_v42  ;;  %v969_v42 = vld [vmem:[#allocation2 + $0x84] sm:$0xff] }
 0x227   :  { %v1073_v12 = vadd.f32 %v1072_v24, %v976_v39  ;;  %v978_v11 = vunpack.c.h.bf16 %v969_v42  ;;  %v977_v36 = vunpack.c.l.bf16 %v969_v42 }
 0x229   :  { %2152 = vtanh.f32 %v1073_v12  ;;  %v981_v45 = vadd.f32 %v978_v11, %v2696_v52  ;;  %v980_v51 = vadd.f32 %v977_v36, %v2694_v33 }
 0x22f   :  { %v2153_v2 = vpop.eup %2152 }
 0x230   :  { %v1076_v62 = vmul.f32 %v2153_v2, %v1075_v6  ;;  %v970_v2 = vld [vmem:[#allocation2 + $0x8c] sm:$0xf] }
 0x232   :  { %v2824_v3 = vadd.f32 %v1077_v1, %v1076_v62  ;;  %v979_v62 = vunpack.c.l.bf16 %v970_v2  ;;  %v3235_v2 = vld [vmem:[#allocation15_spill] sm:$0xff] }
 0x234   :  { %v1097_v50 = vpack.c.bf16 %v2824_v3, %v2824_v3  ;;  %v982_v36 = vadd.f32 %v979_v62, %v2712_v22  ;;  %v3237_v62 = vld [vmem:[#allocation10_spill] sm:$0xff] }
 0x236   :  { %2049 = vst [vmem:[%s3153_s6 + $0x10] sm:$0xf] %v1097_v50  ;;  %1129 = vmatmul.bf16.vlgmr.msra.gmra.mxu2 %v1097_v50  ;;  %1142 = vmatmul.bf16.vlgmr.msra.gmra.mxu3 %v1097_v50 }
 0x237   :  { %1155 = vmatmul.bf16.vlgmr.msra.gmra.mxu0 %v1097_v50  ;;  %1283 = vmatpush.bf16.msra.mxu2 %v2404_v4 }
 0x238   :  { %1296 = vmatpush.bf16.msra.mxu3 %v2454_v48  ;;  %1309 = vmatpush.bf16.msra.mxu0 %v2425_v19 }
 0x23b   :  { %1284 = vmatpush.bf16.msra.mxu2 %v2413_v10 }
 0x23c   :  { %1297 = vmatpush.bf16.msra.mxu3 %v2464_v63  ;;  %1310 = vmatpush.bf16.msra.mxu0 %v2452_v46 }
 0x23f   :  { %1285 = vmatpush.bf16.msra.mxu2 %v2423_v14 }
 0x240   :  { %1298 = vmatpush.bf16.msra.mxu3 %v2486_v13  ;;  %1311 = vmatpush.bf16.msra.mxu0 %v2466_v0 }
 0x243   :  { %1286 = vmatpush.bf16.msra.mxu2 %v2429_v20 }
 0x244   :  { %1299 = vmatpush.bf16.msra.mxu3 %v2492_v29  ;;  %1312 = vmatpush.bf16.msra.mxu0 %v2494_v31 }
 0x247   :  { %1287 = vmatpush.bf16.msra.mxu2 %v2437_v25 }
 0x248   :  { %1300 = vmatpush.bf16.msra.mxu3 %v2504_v49  ;;  %1313 = vmatpush.bf16.msra.mxu0 %v2500_v44 }
 0x24b   :  { %1288 = vmatpush.bf16.msra.mxu2 %v2442_v30  ;;  %v1044_v9 = vpop.f32.mrf.mxu0 }
 0x24c   :  { %1301 = vmatpush.bf16.msra.mxu3 %v2510_v56  ;;  %1314 = vmatpush.bf16.msra.mxu0 %v2526_v28  ;;  %v1057_v8 = vpop.f32.mrf.mxu1  ;;  %v1084_v53 = vadd.f32 %v1044_v9, %v981_v45 }
 0x24d   :  { %v1089_v11 = vadd.f32 %v2709_v60, %v1057_v8  ;;  %v3234_v8 = vld [vmem:[#allocation8_spill] sm:$0xff] }
 0x24e   :  { %v1085_v17 = vmul.f32 0.5, %v1084_v53 }
 0x24f   :  { %1289 = vmatpush.bf16.msra.mxu2 %v2457_v54 }
 0x250   :  { %1302 = vmatpush.bf16.msra.mxu3 %v2518_v61  ;;  %1315 = vmatpush.bf16.msra.mxu0 %v2546_v43 }
 0x251   :  { %v1031_v15 = vpop.f32.mrf.mxu3 }
 0x252   :  { %v1079_v39 = vadd.f32 %v1031_v15, %v980_v51 }
 0x253   :  { %1290 = vmatpush.bf16.msra.mxu2 %v2469_v5  ;;  %v1046_v24 = vpop.f32.mrf.mxu0 }
 0x254   :  { %1303 = vmatpush.bf16.msra.mxu3 %v2524_v23  ;;  %1316 = vmatpush.bf16.msra.mxu0 %v2555_v58  ;;  %v1080_v34 = vmul.f32 0.5, %v1079_v39  ;;  %v1059_v12 = vpop.f32.mrf.mxu1 }
 0x256   :  { %2154 = vtanh.f32 %v1080_v34 }
 0x257   :  { %2156 = vtanh.f32 %v1085_v17 }
 0x259   :  { %v1033_v6 = vpop.f32.mrf.mxu3 }
 0x25c   :  { %v2155_v1 = vpop.eup %2154 }
 0x25d   :  { %v1082_v50 = vmul.f32 0.5, %v2155_v1  ;;  %v2157_v42 = vpop.eup %2156  ;;  %v3236_v1 = vld [vmem:[#allocation7_spill] sm:$0xff] }
 0x25e   :  { %v1087_v51 = vmul.f32 0.5, %v2157_v42  ;;  %v3239_v42 = vld [vmem:[#allocation9_spill] sm:$0xff] }
 0x25f   :  { %v1083_v9 = vadd.f32 0.5, %v1082_v50  ;;  %v3238_v50 = vld [vmem:[#allocation16_spill] sm:$0xff] }
 0x260   :  { %v1088_v39 = vadd.f32 0.5, %v1087_v51 }
 0x261   :  { %v1090_v45 = vmul.f32 %v1089_v11, %v1083_v9  ;;  %v3240_v11 = vld [vmem:[#allocation12_spill] sm:$0xff]  ;;  %v3241_v9 = vld [vmem:[#allocation17_spill] sm:$0xff] }
 0x262   :  { %v1093_v24 = vsub.f32 1.0, %v1088_v39  ;;  %v1095_v34 = vmul.f32 %v1088_v39, %v2788_v59  ;;  %v3233_v59 = vld [vmem:[#allocation6_spill] sm:$0xff] }
 0x263   :  { %v1091_v15 = vadd.f32 %v1090_v45, %v982_v36  ;;  %v3242_v36 = vld [vmem:[#allocation11_spill] sm:$0xff]  ;;  %v3243_v45 = vld [vmem:[#allocation13_spill] sm:$0xff] }
 0x265   :  { %2158 = vtanh.f32 %v1091_v15 }
 0x26b   :  { %v2159_v53 = vpop.eup %2158 }
 0x26c   :  { %v1094_v12 = vmul.f32 %v2159_v53, %v1093_v24  ;;  %v3244_v24 = vld [vmem:[#allocation24_spill] sm:$0xff] }
 0x26e   :  { %v2860_v17 = vadd.f32 %v1095_v34, %v1094_v12  ;;  %v3245_v34 = vld [vmem:[#allocation25_spill] sm:$0xff] }
 0x270   :  { %v1100_v6 = vpack.c.bf16 %v2860_v17, %v2860_v17 }
 0x272   :  { %2050 = vst [vmem:[%s3153_s6 + $0x2c] sm:$0xf] %v1100_v6  ;;  %1168 = vmatmul.bf16.vlgmr.msra.gmra.mxu1 %v1100_v6  ;;  %1181 = vmatmul.bf16.vlgmr.msrb.gmra.mxu2 %v1100_v6 }
 0x273   :  { %1194 = vmatmul.bf16.vlgmr.msrb.gmra.mxu3 %v1100_v6  ;;  %1322 = vmatpush.bf16.msra.mxu1 %v2450_v41 }
 0x274   :  { %1391 = vmatpush.bf16.msrb.mxu2 %v2337_v21  ;;  %1404 = vmatpush.bf16.msrb.mxu3 %v2348_v27 }
 0x277   :  { %1323 = vmatpush.bf16.msra.mxu1 %v2460_v55 }
 0x278   :  { %1392 = vmatpush.bf16.msrb.mxu2 %v2346_v26  ;;  %1405 = vmatpush.bf16.msrb.mxu3 %v2351_v32 }
 0x27b   :  { %1324 = vmatpush.bf16.msra.mxu1 %v2488_v18 }
 0x27c   :  { %1393 = vmatpush.bf16.msrb.mxu2 %v2354_v35  ;;  %1406 = vmatpush.bf16.msrb.mxu3 %v2357_v38 }
 0x27f   :  { %1325 = vmatpush.bf16.msra.mxu1 %v2498_v37 }
 0x280   :  { %1394 = vmatpush.bf16.msrb.mxu2 %v2365_v40  ;;  %1407 = vmatpush.bf16.msrb.mxu3 %v2371_v47 }
 0x283   :  { %1326 = vmatpush.bf16.msra.mxu1 %v3219_v16 }
 0x284   :  { %1395 = vmatpush.bf16.msrb.mxu2 %v3233_v59  ;;  %1408 = vmatpush.bf16.msrb.mxu3 %v3234_v8 }
 0x287   :  { %1327 = vmatpush.bf16.msra.mxu1 %v3235_v2 }
 0x288   :  { %1396 = vmatpush.bf16.msrb.mxu2 %v3236_v1  ;;  %1409 = vmatpush.bf16.msrb.mxu3 %v3237_v62  ;;  %v1105_v1 = vld [vmem:[#allocation2 + $0x50] sm:$0xf] }
 0x289   :  { %v1111_v2 = vunpack.c.l.bf16 %v1105_v1 }
 0x28b   :  { %1328 = vmatpush.bf16.msra.mxu1 %v3238_v50  ;;  %v1114_v16 = vadd.f32 %v1111_v2, %v2661_v7 }
 0x28c   :  { %1397 = vmatpush.bf16.msrb.mxu2 %v3239_v42  ;;  %1410 = vmatpush.bf16.msrb.mxu3 %v3240_v11 }
 0x28f   :  { %1329 = vmatpush.bf16.msra.mxu1 %v3241_v9 }
 0x290   :  { %1398 = vmatpush.bf16.msrb.mxu2 %v3242_v36  ;;  %1411 = vmatpush.bf16.msrb.mxu3 %v3243_v45 }
 0x2b4   :  { %v1156_v51 = vpop.f32.mrf.mxu0 }
 0x2b5   :  { %v1209_v45 = vadd.f32 %v3218_v57, %v1156_v51  ;;  %v1107_v57 = vld [vmem:[#allocation2 + $0x6c] sm:$0xff] }
 0x2b6   :  { %v1116_v2 = vunpack.c.h.bf16 %v1107_v57 }
 0x2b9   :  { %v1130_v15 = vpop.f32.mrf.mxu2  ;;  %v1143_v39 = vpop.f32.mrf.mxu3 }
 0x2ba   :  { %v1199_v53 = vadd.f32 %v1130_v15, %v3244_v24  ;;  %v1204_v12 = vadd.f32 %v1143_v39, %v3245_v34 }
 0x2bc   :  { %v1200_v6 = vmul.f32 0.5, %v1199_v53  ;;  %v1158_v62 = vpop.f32.mrf.mxu0  ;;  %v1205_v50 = vmul.f32 0.5, %v1204_v12 }
 0x2be   :  { %2160 = vtanh.f32 %v1200_v6 }
 0x2bf   :  { %2162 = vtanh.f32 %v1205_v50 }
 0x2c1   :  { %v1132_v42 = vpop.f32.mrf.mxu2  ;;  %v1145_v11 = vpop.f32.mrf.mxu3 }
 0x2c4   :  { %v2161_v9 = vpop.eup %2160 }
 0x2c5   :  { %v1202_v36 = vmul.f32 0.5, %v2161_v9  ;;  %v2163_v8 = vpop.eup %2162 }
 0x2c6   :  { %v1207_v24 = vmul.f32 0.5, %v2163_v8 }
 0x2c7   :  { %v1203_v59 = vadd.f32 0.5, %v1202_v36  ;;  %v1119_v36 = vadd.f32 %v1116_v2, %v2696_v52 }
 0x2c8   :  { %v1208_v62 = vadd.f32 0.5, %v1207_v24  ;;  %v1108_v24 = vld [vmem:[#allocation2 + $0x74] sm:$0xf] }
 0x2c9   :  { %v1210_v15 = vmul.f32 %v1209_v45, %v1203_v59 }
 0x2ca   :  { %v1213_v53 = vsub.f32 1.0, %v1208_v62  ;;  %v1215_v42 = vmul.f32 %v1208_v62, %v2824_v3 }
 0x2cb   :  { %v1211_v39 = vadd.f32 %v1210_v15, %v1114_v16  ;;  %v1115_v16 = vunpack.c.l.bf16 %v1107_v57 }
 0x2cd   :  { %2164 = vtanh.f32 %v1211_v39  ;;  %v1118_v3 = vadd.f32 %v1115_v16, %v2694_v33 }
 0x2d3   :  { %v2165_v34 = vpop.eup %2164 }
 0x2d4   :  { %v1214_v50 = vmul.f32 %v2165_v34, %v1213_v53  ;;  %v1117_v53 = vunpack.c.l.bf16 %v1108_v24  ;;  %v3248_v24 = vld [vmem:[#allocation8_spill] sm:$0xff] }
 0x2d6   :  { %v2896_v11 = vadd.f32 %v1215_v42, %v1214_v50  ;;  %v1120_v57 = vadd.f32 %v1117_v53, %v2712_v22  ;;  %v3251_v53 = vld [vmem:[#allocation10_spill] sm:$0xff] }
 0x2d8   :  { %v1235_v1 = vpack.c.bf16 %v2896_v11, %v2896_v11 }
 0x2da   :  { %2051 = vst [vmem:[%s3153_s6 + $0x18] sm:$0xf] %v1235_v1  ;;  %1265 = vmatmul.bf16.vlgmr.msrb.gmra.mxu0 %v1235_v1  ;;  %1278 = vmatmul.bf16.vlgmr.msrb.gmra.mxu1 %v1235_v1 }
 0x2db   :  { %1291 = vmatmul.bf16.vlgmr.msra.gmra.mxu2 %v1235_v1  ;;  %1417 = vmatpush.bf16.msrb.mxu0 %v2404_v4 }
 0x2dc   :  { %1430 = vmatpush.bf16.msrb.mxu1 %v2454_v48  ;;  %1443 = vmatpush.bf16.msra.mxu2 %v2425_v19 }
 0x2df   :  { %1418 = vmatpush.bf16.msrb.mxu0 %v2413_v10 }
 0x2e0   :  { %1431 = vmatpush.bf16.msrb.mxu1 %v2464_v63  ;;  %1444 = vmatpush.bf16.msra.mxu2 %v2452_v46 }
 0x2e3   :  { %1419 = vmatpush.bf16.msrb.mxu0 %v2423_v14 }
 0x2e4   :  { %1432 = vmatpush.bf16.msrb.mxu1 %v2486_v13  ;;  %1445 = vmatpush.bf16.msra.mxu2 %v2466_v0 }
 0x2e7   :  { %1420 = vmatpush.bf16.msrb.mxu0 %v2429_v20 }
 0x2e8   :  { %1433 = vmatpush.bf16.msrb.mxu1 %v2492_v29  ;;  %1446 = vmatpush.bf16.msra.mxu2 %v2494_v31 }
 0x2eb   :  { %1421 = vmatpush.bf16.msrb.mxu0 %v2437_v25 }
 0x2ec   :  { %1434 = vmatpush.bf16.msrb.mxu1 %v2504_v49  ;;  %1447 = vmatpush.bf16.msra.mxu2 %v2500_v44 }
 0x2ef   :  { %1422 = vmatpush.bf16.msrb.mxu0 %v2442_v30  ;;  %v1169_v59 = vpop.f32.mrf.mxu1 }
 0x2f0   :  { %1435 = vmatpush.bf16.msrb.mxu1 %v2510_v56  ;;  %1448 = vmatpush.bf16.msra.mxu2 %v2526_v28  ;;  %v1217_v8 = vadd.f32 %v1169_v59, %v1118_v3 }
 0x2f2   :  { %v1218_v9 = vmul.f32 0.5, %v1217_v8 }
 0x2f3   :  { %1423 = vmatpush.bf16.msrb.mxu0 %v2457_v54 }
 0x2f4   :  { %1436 = vmatpush.bf16.msrb.mxu1 %v2518_v61  ;;  %1449 = vmatpush.bf16.msra.mxu2 %v2546_v43  ;;  %2166 = vtanh.f32 %v1218_v9 }
 0x2f5   :  { %v1182_v45 = vpop.f32.mrf.mxu2 }
 0x2f6   :  { %v1222_v51 = vadd.f32 %v1182_v45, %v1119_v36  ;;  %v1195_v12 = vpop.f32.mrf.mxu3 }
 0x2f7   :  { %1424 = vmatpush.bf16.msrb.mxu0 %v2469_v5  ;;  %v1171_v6 = vpop.f32.mrf.mxu1  ;;  %v1227_v50 = vadd.f32 %v2709_v60, %v1195_v12 }
 0x2f8   :  { %1437 = vmatpush.bf16.msrb.mxu1 %v2524_v23  ;;  %1450 = vmatpush.bf16.msra.mxu2 %v2555_v58  ;;  %v1223_v15 = vmul.f32 0.5, %v1222_v51 }
 0x2fa   :  { %v2167_v39 = vpop.eup %2166  ;;  %2168 = vtanh.f32 %v1223_v15  ;;  %v3247_v15 = vld [vmem:[#allocation6_spill] sm:$0xff] }
 0x2fb   :  { %v1220_v62 = vmul.f32 0.5, %v2167_v39  ;;  %v3249_v39 = vld [vmem:[#allocation15_spill] sm:$0xff] }
 0x2fd   :  { %v1221_v34 = vadd.f32 0.5, %v1220_v62  ;;  %v1184_v42 = vpop.f32.mrf.mxu2  ;;  %v3250_v62 = vld [vmem:[#allocation7_spill] sm:$0xff] }
 0x2fe   :  { %v1197_v1 = vpop.f32.mrf.mxu3  ;;  %v3254_v42 = vld [vmem:[#allocation12_spill] sm:$0xff] }
 0x2ff   :  { %v1228_v16 = vmul.f32 %v1227_v50, %v1221_v34  ;;  %v3252_v34 = vld [vmem:[#allocation16_spill] sm:$0xff]  ;;  %v3253_v50 = vld [vmem:[#allocation9_spill] sm:$0xff] }
 0x300   :  { %v2169_v3 = vpop.eup %2168  ;;  %v3255_v1 = vld [vmem:[#allocation17_spill] sm:$0xff] }
 0x301   :  { %v1225_v59 = vmul.f32 0.5, %v2169_v3  ;;  %v1229_v8 = vadd.f32 %v1228_v16, %v1120_v57  ;;  %v3256_v57 = vld [vmem:[#allocation11_spill] sm:$0xff]  ;;  %v3257_v16 = vld [vmem:[#allocation13_spill] sm:$0xff]  ;;  %v1241_v3 = vld [vmem:[#allocation2 + $0x60] sm:$0xff] }
 0x303   :  { %2170 = vtanh.f32 %v1229_v8  ;;  %v1226_v2 = vadd.f32 0.5, %v1225_v59  ;;  %v1245_v59 = vunpack.c.l.bf16 %v1241_v3  ;;  %v1246_v8 = vunpack.c.h.bf16 %v1241_v3 }
 0x305   :  { %v1231_v9 = vsub.f32 1.0, %v1226_v2  ;;  %v1233_v45 = vmul.f32 %v1226_v2, %v2860_v17  ;;  %v3246_v17 = vld [vmem:[#allocation14_spill] sm:$0xff] }
 0x306   :  { %v3258_v2 = vld [vmem:[#allocation18_spill] sm:$0xff] }
 0x309   :  { %v2171_v36 = vpop.eup %2170 }
 0x30a   :  { %v1232_v51 = vmul.f32 %v2171_v36, %v1231_v9  ;;  %v1248_v9 = vadd.f32 %v1245_v59, %v3258_v2  ;;  %v3259_v36 = vld [vmem:[#allocation19_spill] sm:$0xff]  ;;  %v2968_v59 = vld [vmem:[%s3151_s4] ss:$0 sm:$0xff] }
 0x30c   :  { %v2932_v6 = vadd.f32 %v1233_v45, %v1232_v51  ;;  %v1249_v45 = vadd.f32 %v1246_v8, %v3259_v36 }
 0x30e   :  { %v1238_v12 = vpack.c.bf16 %v2932_v6, %v2932_v6 }
 0x310   :  { %2052 = vst [vmem:[%s3153_s6 + $0x24] sm:$0xf] %v1238_v12  ;;  %1304 = vmatmul.bf16.vlgmr.msra.gmra.mxu3 %v1238_v12  ;;  %1317 = vmatmul.bf16.vlgmr.msra.gmra.mxu0 %v1238_v12 }
 0x311   :  { %1330 = vmatmul.bf16.vlgmr.msra.gmra.mxu1 %v1238_v12  ;;  %1456 = vmatpush.bf16.msra.mxu3 %v2450_v41 }
 0x312   :  { %1525 = vmatpush.bf16.msra.mxu0 %v2337_v21  ;;  %1538 = vmatpush.bf16.msra.mxu1 %v2348_v27 }
 0x315   :  { %1457 = vmatpush.bf16.msra.mxu3 %v2460_v55 }
 0x316   :  { %1526 = vmatpush.bf16.msra.mxu0 %v2346_v26  ;;  %1539 = vmatpush.bf16.msra.mxu1 %v2351_v32 }
 0x319   :  { %1458 = vmatpush.bf16.msra.mxu3 %v2488_v18 }
 0x31a   :  { %1527 = vmatpush.bf16.msra.mxu0 %v2354_v35  ;;  %1540 = vmatpush.bf16.msra.mxu1 %v2357_v38 }
 0x31d   :  { %1459 = vmatpush.bf16.msra.mxu3 %v2498_v37 }
 0x31e   :  { %1528 = vmatpush.bf16.msra.mxu0 %v2365_v40  ;;  %1541 = vmatpush.bf16.msra.mxu1 %v2371_v47 }
 0x321   :  { %1460 = vmatpush.bf16.msra.mxu3 %v3246_v17 }
 0x322   :  { %1529 = vmatpush.bf16.msra.mxu0 %v3247_v15  ;;  %1542 = vmatpush.bf16.msra.mxu1 %v3248_v24 }
 0x325   :  { %1461 = vmatpush.bf16.msra.mxu3 %v3249_v39  ;;  %v1242_v39 = vld [vmem:[#allocation2 + $0x68] sm:$0xf] }
 0x326   :  { %1530 = vmatpush.bf16.msra.mxu0 %v3250_v62  ;;  %1543 = vmatpush.bf16.msra.mxu1 %v3251_v53  ;;  %v1247_v15 = vunpack.c.l.bf16 %v1242_v39 }
 0x329   :  { %1462 = vmatpush.bf16.msra.mxu3 %v3252_v34 }
 0x32a   :  { %1531 = vmatpush.bf16.msra.mxu0 %v3253_v50  ;;  %1544 = vmatpush.bf16.msra.mxu1 %v3254_v42 }
 0x32d   :  { %1463 = vmatpush.bf16.msra.mxu3 %v3255_v1 }
 0x32e   :  { %1532 = vmatpush.bf16.msra.mxu0 %v3256_v57  ;;  %1545 = vmatpush.bf16.msra.mxu1 %v3257_v16 }
 0x357   :  { %v1266_v51 = vpop.f32.mrf.mxu0  ;;  %v1279_v12 = vpop.f32.mrf.mxu1 }
 0x358   :  { %v1335_v34 = vadd.f32 %v1266_v51, %v1248_v9  ;;  %v1340_v53 = vadd.f32 %v1279_v12, %v1249_v45 }
 0x35a   :  { %v1336_v50 = vmul.f32 0.5, %v1335_v34  ;;  %v1341_v62 = vmul.f32 0.5, %v1340_v53  ;;  %v1250_v53 = vadd.f32 %v1247_v15, %v2661_v7 }
 0x35c   :  { %2172 = vtanh.f32 %v1336_v50 }
 0x35d   :  { %2174 = vtanh.f32 %v1341_v62 }
 0x35e   :  { %v1292_v42 = vpop.f32.mrf.mxu2 }
 0x35f   :  { %v1268_v1 = vpop.f32.mrf.mxu0  ;;  %v1281_v57 = vpop.f32.mrf.mxu1  ;;  %v1345_v8 = vadd.f32 %v2968_v59, %v1292_v42 }
 0x362   :  { %v2173_v16 = vpop.eup %2172 }
 0x363   :  { %v1338_v24 = vmul.f32 0.5, %v2173_v16  ;;  %v2175_v3 = vpop.eup %2174 }
 0x364   :  { %v1343_v62 = vmul.f32 0.5, %v2175_v3 }
 0x365   :  { %v1339_v17 = vadd.f32 0.5, %v1338_v24 }
 0x366   :  { %v1294_v34 = vpop.f32.mrf.mxu2  ;;  %v1344_v57 = vadd.f32 0.5, %v1343_v62 }
 0x367   :  { %v1346_v50 = vmul.f32 %v1345_v8, %v1339_v17 }
 0x368   :  { %v1349_v9 = vsub.f32 1.0, %v1344_v57  ;;  %v1351_v39 = vmul.f32 %v1344_v57, %v2896_v11  ;;  %v1243_v11 = vld [vmem:[#allocation2 + $0x54] sm:$0xff] }
 0x369   :  { %v1347_v1 = vadd.f32 %v1346_v50, %v1250_v53  ;;  %v1252_v17 = vunpack.c.h.bf16 %v1243_v11  ;;  %v1251_v12 = vunpack.c.l.bf16 %v1243_v11 }
 0x36b   :  { %2176 = vtanh.f32 %v1347_v1  ;;  %v1255_v3 = vadd.f32 %v1252_v17, %v2696_v52  ;;  %v1254_v8 = vadd.f32 %v1251_v12, %v2694_v33 }
 0x371   :  { %v2177_v16 = vpop.eup %2176 }
 0x372   :  { %v1350_v24 = vmul.f32 %v2177_v16, %v1349_v9 }
 0x374   :  { %v2973_v45 = vadd.f32 %v1351_v39, %v1350_v24  ;;  %v1244_v39 = vld [vmem:[#allocation2 + $0x5c] sm:$0xf] }
 0x376   :  { %v1371_v51 = vpack.c.bf16 %v2973_v45, %v2973_v45 }
 0x378   :  { %2053 = vst [vmem:[%s3153_s6 + $0x20] sm:$0xf] %v1371_v51  ;;  %1399 = vmatmul.bf16.vlgmr.msrb.gmra.mxu2 %v1371_v51  ;;  %1412 = vmatmul.bf16.vlgmr.msrb.gmra.mxu3 %v1371_v51 }
 0x379   :  { %1425 = vmatmul.bf16.vlgmr.msrb.gmra.mxu0 %v1371_v51  ;;  %1551 = vmatpush.bf16.msrb.mxu2 %v2404_v4  ;;  %v1253_v51 = vunpack.c.l.bf16 %v1244_v39 }
 0x37a   :  { %1564 = vmatpush.bf16.msrb.mxu3 %v2454_v48  ;;  %1577 = vmatpush.bf16.msrb.mxu0 %v2425_v19 }
 0x37d   :  { %1552 = vmatpush.bf16.msrb.mxu2 %v2413_v10 }
 0x37e   :  { %1565 = vmatpush.bf16.msrb.mxu3 %v2464_v63  ;;  %1578 = vmatpush.bf16.msrb.mxu0 %v2452_v46 }
 0x381   :  { %1553 = vmatpush.bf16.msrb.mxu2 %v2423_v14 }
 0x382   :  { %1566 = vmatpush.bf16.msrb.mxu3 %v2486_v13  ;;  %1579 = vmatpush.bf16.msrb.mxu0 %v2466_v0 }
 0x385   :  { %1554 = vmatpush.bf16.msrb.mxu2 %v2429_v20 }
 0x386   :  { %1567 = vmatpush.bf16.msrb.mxu3 %v2492_v29  ;;  %1580 = vmatpush.bf16.msrb.mxu0 %v2494_v31 }
 0x389   :  { %1555 = vmatpush.bf16.msrb.mxu2 %v2437_v25 }
 0x38a   :  { %1568 = vmatpush.bf16.msrb.mxu3 %v2504_v49  ;;  %1581 = vmatpush.bf16.msrb.mxu0 %v2500_v44 }
 0x38d   :  { %1556 = vmatpush.bf16.msrb.mxu2 %v2442_v30  ;;  %v1318_v15 = vpop.f32.mrf.mxu0 }
 0x38e   :  { %1569 = vmatpush.bf16.msrb.mxu3 %v2510_v56  ;;  %1582 = vmatpush.bf16.msrb.mxu0 %v2526_v28  ;;  %v1331_v42 = vpop.f32.mrf.mxu1  ;;  %v1358_v34 = vadd.f32 %v1318_v15, %v1255_v3  ;;  %v1256_v3 = vadd.f32 %v1253_v51, %v2712_v22  ;;  %v1375_v51 = vld [vmem:[#allocation2 + $0x78] sm:$0xff] }
 0x38f   :  { %v1363_v15 = vadd.f32 %v2709_v60, %v1331_v42  ;;  %v3262_v60 = vld [vmem:[#allocation8_spill] sm:$0xff] }
 0x390   :  { %v1359_v9 = vmul.f32 0.5, %v1358_v34  ;;  %v3268_v42 = vld [vmem:[#allocation12_spill] sm:$0xff] }
 0x391   :  { %1557 = vmatpush.bf16.msrb.mxu2 %v2457_v54 }
 0x392   :  { %1570 = vmatpush.bf16.msrb.mxu3 %v2518_v61  ;;  %1583 = vmatpush.bf16.msrb.mxu0 %v2546_v43 }
 0x393   :  { %v1305_v53 = vpop.f32.mrf.mxu3 }
 0x394   :  { %v1353_v50 = vadd.f32 %v1305_v53, %v1254_v8 }
 0x395   :  { %1558 = vmatpush.bf16.msrb.mxu2 %v2469_v5  ;;  %v1320_v62 = vpop.f32.mrf.mxu0 }
 0x396   :  { %1571 = vmatpush.bf16.msrb.mxu3 %v2524_v23  ;;  %1584 = vmatpush.bf16.msrb.mxu0 %v2555_v58  ;;  %v1354_v1 = vmul.f32 0.5, %v1353_v50  ;;  %v1333_v57 = vpop.f32.mrf.mxu1 }
 0x398   :  { %2178 = vtanh.f32 %v1354_v1 }
 0x399   :  { %2180 = vtanh.f32 %v1359_v9 }
 0x39b   :  { %v1307_v16 = vpop.f32.mrf.mxu3 }
 0x39e   :  { %v2179_v24 = vpop.eup %2178 }
 0x39f   :  { %v1356_v11 = vmul.f32 0.5, %v2179_v24  ;;  %v2181_v17 = vpop.eup %2180  ;;  %v3271_v24 = vld [vmem:[#allocation13_spill] sm:$0xff] }
 0x3a0   :  { %v1361_v53 = vmul.f32 0.5, %v2181_v17  ;;  %v1379_v17 = vunpack.c.l.bf16 %v1375_v51 }
 0x3a1   :  { %v1357_v12 = vadd.f32 0.5, %v1356_v11 }
 0x3a2   :  { %v1362_v50 = vadd.f32 0.5, %v1361_v53 }
 0x3a3   :  { %v1364_v8 = vmul.f32 %v1363_v15, %v1357_v12  ;;  %v1380_v15 = vunpack.c.h.bf16 %v1375_v51  ;;  %v1382_v12 = vadd.f32 %v1379_v17, %v3258_v2 }
 0x3a4   :  { %v1367_v57 = vsub.f32 1.0, %v1362_v50  ;;  %v1369_v1 = vmul.f32 %v1362_v50, %v2932_v6  ;;  %v3265_v6 = vld [vmem:[#allocation10_spill] sm:$0xff] }
 0x3a5   :  { %v1365_v62 = vadd.f32 %v1364_v8, %v1256_v3  ;;  %v1383_v3 = vadd.f32 %v1380_v15, %v3259_v36 }
 0x3a7   :  { %2182 = vtanh.f32 %v1365_v62 }
 0x3ad   :  { %v2183_v34 = vpop.eup %2182 }
 0x3ae   :  { %v1368_v9 = vmul.f32 %v2183_v34, %v1367_v57 }
 0x3b0   :  { %v3009_v16 = vadd.f32 %v1369_v1, %v1368_v9 }
 0x3b2   :  { %v1373_v39 = vpack.c.bf16 %v3009_v16, %v3009_v16 }
 0x3b4   :  { %2054 = vst [vmem:[%s3153_s6 + $0x1c] sm:$0xf] %v1373_v39  ;;  %1438 = vmatmul.bf16.vlgmr.msrb.gmra.mxu1 %v1373_v39  ;;  %1451 = vmatmul.bf16.vlgmr.msra.gmra.mxu2 %v1373_v39 }
 0x3b5   :  { %1464 = vmatmul.bf16.vlgmr.msra.gmra.mxu3 %v1373_v39  ;;  %1590 = vmatpush.bf16.msrb.mxu1 %v2450_v41 }
 0x3b6   :  { %1659 = vmatpush.bf16.msra.mxu2 %v2337_v21  ;;  %1672 = vmatpush.bf16.msra.mxu3 %v2348_v27  ;;  %v3260_v21 = vld [vmem:[#allocation14_spill] sm:$0xff] }
 0x3b7   :  { %v3261_v27 = vld [vmem:[#allocation6_spill] sm:$0xff] }
 0x3b9   :  { %1591 = vmatpush.bf16.msrb.mxu1 %v2460_v55 }
 0x3ba   :  { %1660 = vmatpush.bf16.msra.mxu2 %v2346_v26  ;;  %1673 = vmatpush.bf16.msra.mxu3 %v2351_v32  ;;  %v3263_v26 = vld [vmem:[#allocation15_spill] sm:$0xff] }
 0x3bb   :  { %v3264_v32 = vld [vmem:[#allocation7_spill] sm:$0xff] }
 0x3bd   :  { %1592 = vmatpush.bf16.msrb.mxu1 %v2488_v18 }
 0x3be   :  { %1661 = vmatpush.bf16.msra.mxu2 %v2354_v35  ;;  %1674 = vmatpush.bf16.msra.mxu3 %v2357_v38  ;;  %v3266_v35 = vld [vmem:[#allocation16_spill] sm:$0xff]  ;;  %v3267_v38 = vld [vmem:[#allocation9_spill] sm:$0xff] }
 0x3c1   :  { %1593 = vmatpush.bf16.msrb.mxu1 %v2498_v37 }
 0x3c2   :  { %1662 = vmatpush.bf16.msra.mxu2 %v2365_v40  ;;  %1675 = vmatpush.bf16.msra.mxu3 %v2371_v47  ;;  %v3269_v40 = vld [vmem:[#allocation17_spill] sm:$0xff]  ;;  %v3270_v47 = vld [vmem:[#allocation11_spill] sm:$0xff] }
 0x3c5   :  { %1594 = vmatpush.bf16.msrb.mxu1 %v3260_v21 }
 0x3c6   :  { %1663 = vmatpush.bf16.msra.mxu2 %v3261_v27  ;;  %1676 = vmatpush.bf16.msra.mxu3 %v3262_v60  ;;  %v1376_v27 = vld [vmem:[#allocation2 + $0x80] sm:$0xf] }
 0x3c9   :  { %1595 = vmatpush.bf16.msrb.mxu1 %v3263_v26 }
 0x3ca   :  { %1664 = vmatpush.bf16.msra.mxu2 %v3264_v32  ;;  %1677 = vmatpush.bf16.msra.mxu3 %v3265_v6  ;;  %v1381_v32 = vunpack.c.l.bf16 %v1376_v27 }
 0x3cd   :  { %1596 = vmatpush.bf16.msrb.mxu1 %v3266_v35 }
 0x3ce   :  { %1665 = vmatpush.bf16.msra.mxu2 %v3267_v38  ;;  %1678 = vmatpush.bf16.msra.mxu3 %v3268_v42 }
 0x3d1   :  { %1597 = vmatpush.bf16.msrb.mxu1 %v3269_v40 }
 0x3d2   :  { %1666 = vmatpush.bf16.msra.mxu2 %v3270_v47  ;;  %1679 = vmatpush.bf16.msra.mxu3 %v3271_v24  ;;  %v1384_v24 = vadd.f32 %v1381_v32, %v2661_v7 }
 0x3f6   :  { %v1426_v11 = vpop.f32.mrf.mxu0 }
 0x3f7   :  { %v1479_v42 = vadd.f32 %v2968_v59, %v1426_v11 }
 0x3fb   :  { %v1400_v8 = vpop.f32.mrf.mxu2  ;;  %v1413_v53 = vpop.f32.mrf.mxu3 }
 0x3fc   :  { %v1469_v62 = vadd.f32 %v1400_v8, %v1382_v12  ;;  %v1474_v50 = vadd.f32 %v1413_v53, %v1383_v3 }
 0x3fe   :  { %v1470_v57 = vmul.f32 0.5, %v1469_v62  ;;  %v1428_v34 = vpop.f32.mrf.mxu0  ;;  %v1475_v1 = vmul.f32 0.5, %v1474_v50 }
 0x400   :  { %2184 = vtanh.f32 %v1470_v57 }
 0x401   :  { %2186 = vtanh.f32 %v1475_v1 }
 0x403   :  { %v1402_v9 = vpop.f32.mrf.mxu2  ;;  %v1415_v39 = vpop.f32.mrf.mxu3 }
 0x406   :  { %v2185_v60 = vpop.eup %2184 }
 0x407   :  { %v1472_v6 = vmul.f32 0.5, %v2185_v60  ;;  %v2187_v38 = vpop.eup %2186 }
 0x408   :  { %v1477_v17 = vmul.f32 0.5, %v2187_v38 }
 0x409   :  { %v1473_v47 = vadd.f32 0.5, %v1472_v6 }
 0x40a   :  { %v1478_v12 = vadd.f32 0.5, %v1477_v17 }
 0x40b   :  { %v1480_v51 = vmul.f32 %v1479_v42, %v1473_v47 }
 0x40c   :  { %v1483_v3 = vsub.f32 1.0, %v1478_v12  ;;  %v1485_v62 = vmul.f32 %v1478_v12, %v2973_v45  ;;  %v1377_v45 = vld [vmem:[#allocation2 + $0x3c] sm:$0xff] }
 0x40d   :  { %v1481_v15 = vadd.f32 %v1480_v51, %v1384_v24 }
 0x40f   :  { %2188 = vtanh.f32 %v1481_v15  ;;  %v1510_v15 = vld [vmem:[#allocation2 + $0x98] sm:$0xf] }
 0x415   :  { %v2189_v8 = vpop.eup %2188 }
 0x416   :  { %v1484_v53 = vmul.f32 %v2189_v8, %v1483_v3  ;;  %v1515_v3 = vunpack.c.l.bf16 %v1510_v15 }
 0x418   :  { %v3045_v50 = vadd.f32 %v1485_v62, %v1484_v53 }
 0x41a   :  { %v1505_v57 = vpack.c.bf16 %v3045_v50, %v3045_v50 }
 0x41c   :  { %2055 = vst [vmem:[%s3153_s6 + $0x28] sm:$0xf] %v1505_v57  ;;  %1533 = vmatmul.bf16.vlgmr.msra.gmra.mxu0 %v1505_v57  ;;  %1546 = vmatmul.bf16.vlgmr.msra.gmra.mxu1 %v1505_v57 }
 0x41d   :  { %1559 = vmatmul.bf16.vlgmr.msrb.gmra.mxu2 %v1505_v57  ;;  %1685 = vmatpush.bf16.msra.mxu0 %v2404_v4  ;;  %v1385_v4 = vunpack.c.l.bf16 %v1377_v45 }
 0x41e   :  { %1698 = vmatpush.bf16.msra.mxu1 %v2454_v48  ;;  %1711 = vmatpush.bf16.msrb.mxu2 %v2425_v19 }
 0x421   :  { %1686 = vmatpush.bf16.msra.mxu0 %v2413_v10  ;;  %v1388_v10 = vadd.f32 %v1385_v4, %v2694_v33 }
 0x422   :  { %1699 = vmatpush.bf16.msra.mxu1 %v2464_v63  ;;  %1712 = vmatpush.bf16.msrb.mxu2 %v2452_v46 }
 0x425   :  { %1687 = vmatpush.bf16.msra.mxu0 %v2423_v14 }
 0x426   :  { %1700 = vmatpush.bf16.msra.mxu1 %v2486_v13  ;;  %1713 = vmatpush.bf16.msrb.mxu2 %v2466_v0 }
 0x429   :  { %1688 = vmatpush.bf16.msra.mxu0 %v2429_v20  ;;  %v1386_v20 = vunpack.c.h.bf16 %v1377_v45  ;;  %v1518_v45 = vadd.f32 %v1515_v3, %v2661_v7 }
 0x42a   :  { %1701 = vmatpush.bf16.msra.mxu1 %v2492_v29  ;;  %1714 = vmatpush.bf16.msrb.mxu2 %v2494_v31  ;;  %v1378_v29 = vld [vmem:[#allocation2 + $0x44] sm:$0xf] }
 0x42d   :  { %1689 = vmatpush.bf16.msra.mxu0 %v2437_v25  ;;  %v1389_v25 = vadd.f32 %v1386_v20, %v2696_v52 }
 0x42e   :  { %1702 = vmatpush.bf16.msra.mxu1 %v2504_v49  ;;  %1715 = vmatpush.bf16.msrb.mxu2 %v2500_v44  ;;  %v1387_v44 = vunpack.c.l.bf16 %v1378_v29 }
 0x431   :  { %1690 = vmatpush.bf16.msra.mxu0 %v2442_v30  ;;  %v1439_v14 = vpop.f32.mrf.mxu1 }
 0x432   :  { %1703 = vmatpush.bf16.msra.mxu1 %v2510_v56  ;;  %1716 = vmatpush.bf16.msrb.mxu2 %v2526_v28  ;;  %v1487_v19 = vadd.f32 %v1439_v14, %v1388_v10  ;;  %v3081_v56 = vld [vmem:[%s3151_s4 + $0x1] ss:$0 sm:$0xff] }
 0x434   :  { %v1488_v46 = vmul.f32 0.5, %v1487_v19 }
 0x435   :  { %1691 = vmatpush.bf16.msra.mxu0 %v2457_v54 }
 0x436   :  { %1704 = vmatpush.bf16.msra.mxu1 %v2518_v61  ;;  %1717 = vmatpush.bf16.msrb.mxu2 %v2546_v43  ;;  %2190 = vtanh.f32 %v1488_v46 }
 0x437   :  { %v1452_v48 = vpop.f32.mrf.mxu2 }
 0x438   :  { %v1492_v63 = vadd.f32 %v1452_v48, %v1389_v25  ;;  %v1465_v30 = vpop.f32.mrf.mxu3 }
 0x439   :  { %1692 = vmatpush.bf16.msra.mxu0 %v2469_v5  ;;  %v1441_v0 = vpop.f32.mrf.mxu1  ;;  %v1497_v61 = vadd.f32 %v3081_v56, %v1465_v30 }
 0x43a   :  { %1705 = vmatpush.bf16.msra.mxu1 %v2524_v23  ;;  %1718 = vmatpush.bf16.msrb.mxu2 %v2555_v58  ;;  %v1493_v13 = vmul.f32 0.5, %v1492_v63  ;;  %v1390_v23 = vadd.f32 %v1387_v44, %v2712_v22  ;;  %v1511_v0 = vld [vmem:[#allocation2 + $0x24] sm:$0xff] }
 0x43c   :  { %v2191_v54 = vpop.eup %2190  ;;  %2192 = vtanh.f32 %v1493_v13  ;;  %v1520_v13 = vunpack.c.h.bf16 %v1511_v0 }
 0x43d   :  { %v1490_v31 = vmul.f32 0.5, %v2191_v54 }
 0x43f   :  { %v1491_v49 = vadd.f32 0.5, %v1490_v31  ;;  %v1454_v5 = vpop.f32.mrf.mxu2  ;;  %v1519_v31 = vunpack.c.l.bf16 %v1511_v0 }
 0x440   :  { %v1467_v28 = vpop.f32.mrf.mxu3 }
 0x441   :  { %v1498_v43 = vmul.f32 %v1497_v61, %v1491_v49  ;;  %v1522_v44 = vadd.f32 %v1519_v31, %v2694_v33 }
 0x442   :  { %v2193_v58 = vpop.eup %2192 }
 0x443   :  { %v1495_v11 = vmul.f32 0.5, %v2193_v58  ;;  %v1499_v34 = vadd.f32 %v1498_v43, %v1390_v23 }
 0x445   :  { %2194 = vtanh.f32 %v1499_v34  ;;  %v1496_v1 = vadd.f32 0.5, %v1495_v11  ;;  %v1512_v34 = vld [vmem:[#allocation2 + $0x2c] sm:$0xf] }
 0x447   :  { %v1501_v9 = vsub.f32 1.0, %v1496_v1  ;;  %v1503_v27 = vmul.f32 %v1496_v1, %v3009_v16  ;;  %v1509_v16 = vld [vmem:[#allocation2 + $0x90] sm:$0xff] }
 0x448   :  { %v1513_v38 = vunpack.c.l.bf16 %v1509_v16  ;;  %v1514_v42 = vunpack.c.h.bf16 %v1509_v16 }
 0x44a   :  { %v1516_v47 = vadd.f32 %v1513_v38, %v3258_v2 }
 0x44b   :  { %v2195_v39 = vpop.eup %2194 }
 0x44c   :  { %v1502_v60 = vmul.f32 %v2195_v39, %v1501_v9  ;;  %v1521_v9 = vunpack.c.l.bf16 %v1512_v34 }
 0x44e   :  { %v3086_v32 = vadd.f32 %v1503_v27, %v1502_v60  ;;  %v1524_v16 = vadd.f32 %v1521_v9, %v2712_v22 }
 0x450   :  { %v1507_v6 = vpack.c.bf16 %v3086_v32, %v3086_v32 }
 0x452   :  { %2056 = vst [vmem:[%s3153_s6 + $0x14] sm:$0xf] %v1507_v6  ;;  %1572 = vmatmul.bf16.vlgmr.msrb.gmra.mxu3 %v1507_v6  ;;  %1585 = vmatmul.bf16.vlgmr.msrb.gmra.mxu0 %v1507_v6 }
 0x453   :  { %1598 = vmatmul.bf16.vlgmr.msrb.gmra.mxu1 %v1507_v6  ;;  %1724 = vmatpush.bf16.msrb.mxu3 %v2450_v41  ;;  %v1517_v41 = vadd.f32 %v1514_v42, %v3259_v36 }
 0x457   :  { %1725 = vmatpush.bf16.msrb.mxu3 %v2460_v55 }
 0x45b   :  { %1726 = vmatpush.bf16.msrb.mxu3 %v2488_v18 }
 0x45f   :  { %1727 = vmatpush.bf16.msrb.mxu3 %v2498_v37 }
 0x463   :  { %1728 = vmatpush.bf16.msrb.mxu3 %v3260_v21 }
 0x467   :  { %1729 = vmatpush.bf16.msrb.mxu3 %v3263_v26 }
 0x46b   :  { %1730 = vmatpush.bf16.msrb.mxu3 %v3266_v35 }
 0x46f   :  { %1731 = vmatpush.bf16.msrb.mxu3 %v3269_v40 }
 0x499   :  { %v1534_v55 = vpop.f32.mrf.mxu0  ;;  %v1547_v24 = vpop.f32.mrf.mxu1 }
 0x49a   :  { %v1603_v18 = vadd.f32 %v1534_v55, %v1516_v47  ;;  %v1608_v51 = vadd.f32 %v1547_v24, %v1517_v41 }
 0x49c   :  { %v1604_v37 = vmul.f32 0.5, %v1603_v18  ;;  %v1609_v17 = vmul.f32 0.5, %v1608_v51 }
 0x49e   :  { %2196 = vtanh.f32 %v1604_v37 }
 0x49f   :  { %2198 = vtanh.f32 %v1609_v17 }
 0x4a0   :  { %v1560_v21 = vpop.f32.mrf.mxu2 }
 0x4a1   :  { %v1536_v26 = vpop.f32.mrf.mxu0  ;;  %v1549_v35 = vpop.f32.mrf.mxu1  ;;  %v1613_v62 = vadd.f32 %v2968_v59, %v1560_v21  ;;  %v1643_v21 = vld [vmem:[#allocation2 + $0xa8] sm:$0xff] }
 0x4a2   :  { %v1647_v35 = vunpack.c.l.bf16 %v1643_v21  ;;  %v1648_v15 = vunpack.c.h.bf16 %v1643_v21 }
 0x4a4   :  { %v2197_v40 = vpop.eup %2196 }
 0x4a5   :  { %v1606_v12 = vmul.f32 0.5, %v2197_v40  ;;  %v2199_v8 = vpop.eup %2198  ;;  %v1650_v40 = vadd.f32 %v1647_v35, %v3258_v2 }
 0x4a6   :  { %v1611_v10 = vmul.f32 0.5, %v2199_v8 }
 0x4a7   :  { %v1607_v53 = vadd.f32 0.5, %v1606_v12 }
 0x4a8   :  { %v1562_v57 = vpop.f32.mrf.mxu2  ;;  %v1612_v19 = vadd.f32 0.5, %v1611_v10 }
 0x4a9   :  { %v1614_v4 = vmul.f32 %v1613_v62, %v1607_v53 }
 0x4aa   :  { %v1617_v20 = vsub.f32 1.0, %v1612_v19  ;;  %v1619_v25 = vmul.f32 %v1612_v19, %v3045_v50  ;;  %v1523_v50 = vadd.f32 %v1520_v13, %v2696_v52 }
 0x4ab   :  { %v1615_v14 = vadd.f32 %v1614_v4, %v1518_v45 }
 0x4ad   :  { %2200 = vtanh.f32 %v1615_v14  ;;  %v1644_v14 = vld [vmem:[#allocation2 + $0xb0] sm:$0xf] }
 0x4b3   :  { %v2201_v46 = vpop.eup %2200 }
 0x4b4   :  { %v1618_v48 = vmul.f32 %v2201_v46, %v1617_v20  ;;  %v1649_v20 = vunpack.c.l.bf16 %v1644_v14 }
 0x4b6   :  { %v3106_v63 = vadd.f32 %v1619_v25, %v1618_v48 }
 0x4b8   :  { %v1639_v30 = vpack.c.bf16 %v3106_v63, %v3106_v63 }
 0x4ba   :  { %2057 = vst [vmem:[%s3153_s6 + $0x30] sm:$0xf] %v1639_v30  ;;  %1667 = vmatmul.bf16.vlgmr.msra.gmra.mxu2 %v1639_v30  ;;  %1680 = vmatmul.bf16.vlgmr.msra.gmra.mxu3 %v1639_v30 }
 0x4bb   :  { %1693 = vmatmul.bf16.vlgmr.msra.gmra.mxu0 %v1639_v30 }
 0x4cf   :  { %v1586_v29 = vpop.f32.mrf.mxu0 }
 0x4d0   :  { %v1599_v54 = vpop.f32.mrf.mxu1  ;;  %v1626_v49 = vadd.f32 %v1586_v29, %v1523_v50 }
 0x4d1   :  { %v1631_v60 = vadd.f32 %v3081_v56, %v1599_v54 }
 0x4d2   :  { %v1627_v58 = vmul.f32 0.5, %v1626_v49 }
 0x4d5   :  { %v1573_v61 = vpop.f32.mrf.mxu3 }
 0x4d6   :  { %v1621_v5 = vadd.f32 %v1573_v61, %v1522_v44 }
 0x4d7   :  { %v1588_v28 = vpop.f32.mrf.mxu0 }
 0x4d8   :  { %v1622_v23 = vmul.f32 0.5, %v1621_v5  ;;  %v1601_v43 = vpop.f32.mrf.mxu1 }
 0x4da   :  { %2202 = vtanh.f32 %v1622_v23 }
 0x4db   :  { %2204 = vtanh.f32 %v1627_v58 }
 0x4dd   :  { %v1575_v11 = vpop.f32.mrf.mxu3 }
 0x4e0   :  { %v2203_v1 = vpop.eup %2202 }
 0x4e1   :  { %v1624_v39 = vmul.f32 0.5, %v2203_v1  ;;  %v2205_v27 = vpop.eup %2204 }
 0x4e2   :  { %v1629_v42 = vmul.f32 0.5, %v2205_v27  ;;  %v1646_v27 = vld [vmem:[#allocation2 + $0x14] sm:$0xf] }
 0x4e3   :  { %v1625_v6 = vadd.f32 0.5, %v1624_v39 }
 0x4e4   :  { %v1630_v41 = vadd.f32 0.5, %v1629_v42 }
 0x4e5   :  { %v1632_v38 = vmul.f32 %v1631_v60, %v1625_v6 }
 0x4e6   :  { %v1635_v55 = vsub.f32 1.0, %v1630_v41  ;;  %v1637_v18 = vmul.f32 %v1630_v41, %v3086_v32  ;;  %v1651_v32 = vadd.f32 %v1648_v15, %v3259_v36  ;;  %v1652_v36 = vadd.f32 %v1649_v20, %v2661_v7  ;;  %v1645_v7 = vld [vmem:[#allocation2 + $0xc] sm:$0xff] }
 0x4e7   :  { %v1633_v47 = vadd.f32 %v1632_v38, %v1524_v16  ;;  %v1654_v43 = vunpack.c.h.bf16 %v1645_v7  ;;  %v1655_v16 = vunpack.c.l.bf16 %v1646_v27 }
 0x4e9   :  { %2206 = vtanh.f32 %v1633_v47  ;;  %v1658_v41 = vadd.f32 %v1655_v16, %v2712_v22 }
 0x4ef   :  { %v2207_v24 = vpop.eup %2206 }
 0x4f0   :  { %v1636_v51 = vmul.f32 %v2207_v24, %v1635_v55 }
 0x4f2   :  { %v3118_v37 = vadd.f32 %v1637_v18, %v1636_v51 }
 0x4f4   :  { %v1641_v17 = vpack.c.bf16 %v3118_v37, %v3118_v37 }
 0x4f6   :  { %2058 = vst [vmem:[%s3153_s6 + $0xc] sm:$0xf] %v1641_v17  ;;  %1706 = vmatmul.bf16.vlgmr.msra.gmra.mxu1 %v1641_v17  ;;  %1719 = vmatmul.bf16.vlgmr.msrb.gmra.mxu2 %v1641_v17 }
 0x4f7   :  { %1732 = vmatmul.bf16.vlgmr.msrb.gmra.mxu3 %v1641_v17 }
 0x538   :  { %v1694_v26 = vpop.f32.mrf.mxu0 }
 0x539   :  { %v1747_v2 = vadd.f32 %v2968_v59, %v1694_v26  ;;  %v1653_v59 = vunpack.c.l.bf16 %v1645_v7 }
 0x53b   :  { %v1656_v5 = vadd.f32 %v1653_v59, %v2694_v33 }
 0x53d   :  { %v1668_v12 = vpop.f32.mrf.mxu2  ;;  %v1681_v3 = vpop.f32.mrf.mxu3 }
 0x53e   :  { %v1737_v8 = vadd.f32 %v1668_v12, %v1650_v40  ;;  %v1742_v53 = vadd.f32 %v1681_v3, %v1651_v32 }
 0x540   :  { %v1738_v62 = vmul.f32 0.5, %v1737_v8  ;;  %v1696_v57 = vpop.f32.mrf.mxu0  ;;  %v1743_v45 = vmul.f32 0.5, %v1742_v53 }
 0x542   :  { %2208 = vtanh.f32 %v1738_v62 }
 0x543   :  { %2210 = vtanh.f32 %v1743_v45 }
 0x545   :  { %v1670_v4 = vpop.f32.mrf.mxu2  ;;  %v1683_v10 = vpop.f32.mrf.mxu3 }
 0x548   :  { %v2209_v19 = vpop.eup %2208 }
 0x549   :  { %v1740_v46 = vmul.f32 0.5, %v2209_v19  ;;  %v2211_v25 = vpop.eup %2210 }
 0x54a   :  { %v1745_v0 = vmul.f32 0.5, %v2211_v25 }
 0x54b   :  { %v1741_v48 = vadd.f32 0.5, %v1740_v46 }
 0x54c   :  { %v1746_v29 = vadd.f32 0.5, %v1745_v0 }
 0x54d   :  { %v1748_v30 = vmul.f32 %v1747_v2, %v1741_v48 }
 0x54e   :  { %v1751_v54 = vsub.f32 1.0, %v1746_v29  ;;  %v1753_v44 = vmul.f32 %v1746_v29, %v3106_v63  ;;  %v1657_v63 = vadd.f32 %v1654_v43, %v2696_v52 }
 0x54f   :  { %v1749_v13 = vadd.f32 %v1748_v30, %v1652_v36 }
 0x551   :  { %2212 = vtanh.f32 %v1749_v13 }
 0x557   :  { %v2213_v31 = vpop.eup %2212 }
 0x558   :  { %v1752_v50 = vmul.f32 %v2213_v31, %v1751_v54 }
 0x55a   :  { %v1754_v49 = vadd.f32 %v1753_v44, %v1752_v50 }
 0x55c   :  { %v1773_v61 = vpack.c.bf16 %v1754_v49, %v1754_v49  ;;  %1777 = vst [vmem:[%s3154_s7] sm:$0xff] %v1754_v49 }
 0x55e   :  { %2059 = vst [vmem:[%s3153_s6 + $0x38] sm:$0xf] %v1773_v61 }
 0x573   :  { %v1707_v28 = vpop.f32.mrf.mxu1 }
 0x574   :  { %v1755_v23 = vadd.f32 %v1707_v28, %v1656_v5 }
 0x576   :  { %v1756_v58 = vmul.f32 0.5, %v1755_v23 }
 0x578   :  { %2214 = vtanh.f32 %v1756_v58 }
 0x579   :  { %v1720_v11 = vpop.f32.mrf.mxu2 }
 0x57a   :  { %v1760_v34 = vadd.f32 %v1720_v11, %v1657_v63  ;;  %v1733_v1 = vpop.f32.mrf.mxu3 }
 0x57b   :  { %v1709_v9 = vpop.f32.mrf.mxu1  ;;  %v1765_v33 = vadd.f32 %v3081_v56, %v1733_v1 }
 0x57c   :  { %v1761_v39 = vmul.f32 0.5, %v1760_v34 }
 0x57e   :  { %v2215_v60 = vpop.eup %2214  ;;  %2216 = vtanh.f32 %v1761_v39 }
 0x57f   :  { %v1758_v6 = vmul.f32 0.5, %v2215_v60 }
 0x581   :  { %v1759_v38 = vadd.f32 0.5, %v1758_v6  ;;  %v1722_v42 = vpop.f32.mrf.mxu2 }
 0x582   :  { %v1735_v47 = vpop.f32.mrf.mxu3 }
 0x583   :  { %v1766_v55 = vmul.f32 %v1765_v33, %v1759_v38 }
 0x584   :  { %v2217_v24 = vpop.eup %2216 }
 0x585   :  { %v1763_v52 = vmul.f32 0.5, %v2217_v24  ;;  %v1767_v18 = vadd.f32 %v1766_v55, %v1658_v41 }
 0x587   :  { %2218 = vtanh.f32 %v1767_v18  ;;  %v1764_v51 = vadd.f32 0.5, %v1763_v52 }
 0x589   :  { %v1769_v17 = vsub.f32 1.0, %v1764_v51  ;;  %v1771_v26 = vmul.f32 %v1764_v51, %v3118_v37 }
 0x58d   :  { %v2219_v21 = vpop.eup %2218 }
 0x58e   :  { %v1770_v35 = vmul.f32 %v2219_v21, %v1769_v17 }
 0x590   :  { %v1772_v15 = vadd.f32 %v1771_v26, %v1770_v35 }
 0x592   :  { %v1775_v40 = vpack.c.bf16 %v1772_v15, %v1772_v15  ;;  %2060 = vst [vmem:[%s3154_s7 + $0x8] sm:$0xff] %v1772_v15 }
 0x594   :  { %1776 = vst [vmem:[%s3153_s6 + $0x4] sm:$0xf] %v1775_v40 }
 0x595   :  { %1788 = vsyncpa [#allocation4], 1 }

// kernel: encoder_forward.3
= control target key start
LH: loop header
LB: loop body
LE: loop exit
PB: predicated region body
PF: predicated region fallthrough
CT: control target
= control target key end

     0   :  { %13 = vsyncpa [#allocation4], 0  ;;  %s4362_s0 = inlined_call_operand.vmem [shape: bf16[8,8,256], index: 0, kind: input, shape index: {}]   ;;  %s4363_s1 = inlined_call_operand.hbm [shape: bf16[256,768], index: 1, kind: input, shape index: {}]   ;;  %s4364_s2 = inlined_call_operand.hbm [shape: bf16[2,128,384], index: 2, kind: input, shape index: {}]   ;;  %s4365_s3 = inlined_call_operand.vmem [shape: f32[1,768], index: 3, kind: input, shape index: {}]   ;;  %s4366_s4 = inlined_call_operand.vmem [shape: f32[1,256], index: 4, kind: input, shape index: {}]   ;;  %s4367_s5 = inlined_call_operand.vmem [shape: f32[2,8,128], index: 5, kind: input, shape index: {}]   ;;  %s4368_s6 = inlined_call_operand.vmem [shape: f32[8,8,256], index: 6, kind: output, shape index: {0}]   ;;  %s4369_s7 = inlined_call_operand.vmem [shape: f32[2,8,128], index: 7, kind: output, shape index: {1}]  }
   0x1   :  { %s21_s26 = sshll.u32 %s4363_s1, 4  ;;  %s22_s26 = int_to_ptr.hbm [resolvable:$true] %s21_s26 }
   0x2   :  { %14 = vsyncpa [#allocation6], 0  ;;  %s3458_s27 = smov [#allocation3]   ;;  %s34_s8 = sshll.u32 %s4364_s2, 4  ;;  %s35_s8 = int_to_ptr.hbm [resolvable:$true] %s34_s8 }
   0x3   :  { %s23_s28 = sshll.u32 %s3458_s27, 4  ;;  %s3459_s9 = smov 384   ;;  %s24_s28 = int_to_ptr.vmem [resolvable:$true] %s23_s28 }
   0x4   :  { %s3460_s10 = smov 24   ;;  %s3461_s11 = smov [#allocation5]  }
   0x5   :  { %29 = dma.hbm_to_vmem [thread:$0]  %s22_s26, 12288, %s24_s28, [#allocation4], %s3459_s9, %s3459_s9, %s3460_s10  }
   0x6   :  { %s36_s12 = sshll.u32 %s3461_s11, 4  ;;  %s3462_s13 = smov 192   ;;  %s37_s12 = int_to_ptr.vmem [resolvable:$true] %s36_s12 }
   0x7   :  { %s3463_s14 = smov 12  }
   0x8   :  { %42 = dma.hbm_to_vmem [thread:$0]  %s35_s8, 6144, %s37_s12, [#allocation6], %s3462_s13, %s3462_s13, %s3463_s14  }
   0x9   :  { %3454 = dma.done.wait [#allocation4], 12288  }
   0xa   :  { %3455 = vsyncadd [#allocation4], 4294955008 }
   0xb   :  { %3456 = dma.done.wait [#allocation6], 6144  }
   0xc   :  { %3457 = vsyncadd [#allocation6], 4294961152  ;;  %v2726_v0 = vld [vmem:[#allocation3 + $0x150] sm:$0xf]  ;;  %v3193_v1 = vld [vmem:[#allocation3 + $0x164] sm:$0xf0] }
   0xd   :  { %v2918_v2 = vld [vmem:[#allocation3 + $0x2d0] sm:$0xf]  ;;  %v2727_v3 = vor.u32 %v3193_v1, %v2726_v0  ;;  %v3241_v4 = vld [vmem:[#allocation3 + $0x2e4] sm:$0xf0]  ;;  %v3190_v5 = vld [vmem:[#allocation3 + $0x154] sm:$0xf] }
   0xe   :  { %v2728_v6 = vld [vmem:[#allocation3 + $0x168] sm:$0xf0]  ;;  %v2919_v7 = vor.u32 %v3241_v4, %v2918_v2  ;;  %v3238_v9 = vld [vmem:[#allocation3 + $0x2d4] sm:$0xf]  ;;  %v2702_v11 = vld [vmem:[#allocation3 + $0x120] sm:$0xf] }
   0xf   :  { %v2731_v8 = vor.u32 %v3190_v5, %v2728_v6  ;;  %v2920_v10 = vld [vmem:[#allocation3 + $0x2e8] sm:$0xf0]  ;;  %681 = vmatpush.bf16.msra.mxu0 %v2727_v3  ;;  %v3187_v13 = vld [vmem:[#allocation3 + $0x134] sm:$0xf0]  ;;  %v2894_v14 = vld [vmem:[#allocation3 + $0x2a0] sm:$0xf] }
  0x10   :  { %v2923_v12 = vor.u32 %v3238_v9, %v2920_v10  ;;  %v3235_v15 = vld [vmem:[#allocation3 + $0x2b4] sm:$0xf0]  ;;  %710 = vmatpush.bf16.msra.mxu1 %v2919_v7  ;;  %v2703_v16 = vor.u32 %v3187_v13, %v2702_v11  ;;  %v3184_v18 = vld [vmem:[#allocation3 + $0x124] sm:$0xf]  ;;  %v2704_v19 = vld [vmem:[#allocation3 + $0x138] sm:$0xf0] }
  0x11   :  { %739 = vmatpush.bf16.msra.mxu2 %v2731_v8  ;;  %v2895_v17 = vor.u32 %v3235_v15, %v2894_v14  ;;  %v3232_v20 = vld [vmem:[#allocation3 + $0x2a4] sm:$0xf]  ;;  %v2707_v21 = vor.u32 %v3184_v18, %v2704_v19  ;;  %v2896_v22 = vld [vmem:[#allocation3 + $0x2b8] sm:$0xf0]  ;;  %v2678_v23 = vld [vmem:[#allocation3 + $0xf0] sm:$0xf] }
  0x12   :  { %768 = vmatpush.bf16.msra.mxu3 %v2923_v12  ;;  %v3181_v24 = vld [vmem:[#allocation3 + $0x104] sm:$0xf0]  ;;  %v2899_v25 = vor.u32 %v3232_v20, %v2896_v22  ;;  %v2870_v26 = vld [vmem:[#allocation3 + $0x270] sm:$0xf]  ;;  %v3178_v28 = vld [vmem:[#allocation3 + $0xf4] sm:$0xf] }
  0x13   :  { %v3229_v27 = vld [vmem:[#allocation3 + $0x284] sm:$0xf0]  ;;  %682 = vmatpush.bf16.msra.mxu0 %v2703_v16  ;;  %v2679_v29 = vor.u32 %v3181_v24, %v2678_v23  ;;  %v2680_v30 = vld [vmem:[#allocation3 + $0x108] sm:$0xf0]  ;;  %v3226_v31 = vld [vmem:[#allocation3 + $0x274] sm:$0xf] }
  0x14   :  { %v2872_v32 = vld [vmem:[#allocation3 + $0x288] sm:$0xf0]  ;;  %711 = vmatpush.bf16.msra.mxu1 %v2895_v17  ;;  %v2871_v33 = vor.u32 %v3229_v27, %v2870_v26  ;;  %v2683_v34 = vor.u32 %v3178_v28, %v2680_v30  ;;  %v2654_v35 = vld [vmem:[#allocation3 + $0xc0] sm:$0xf]  ;;  %v3175_v36 = vld [vmem:[#allocation3 + $0xd4] sm:$0xf0] }
  0x15   :  { %740 = vmatpush.bf16.msra.mxu2 %v2707_v21  ;;  %v2846_v37 = vld [vmem:[#allocation3 + $0x240] sm:$0xf]  ;;  %v2875_v38 = vor.u32 %v3226_v31, %v2872_v32  ;;  %v3223_v39 = vld [vmem:[#allocation3 + $0x254] sm:$0xf0]  ;;  %v3172_v40 = vld [vmem:[#allocation3 + $0xc4] sm:$0xf]  ;;  %v2655_v44 = vor.u32 %v3175_v36, %v2654_v35 }
  0x16   :  { %769 = vmatpush.bf16.msra.mxu3 %v2899_v25  ;;  %v2656_v41 = vld [vmem:[#allocation3 + $0xd8] sm:$0xf0]  ;;  %v3220_v42 = vld [vmem:[#allocation3 + $0x244] sm:$0xf]  ;;  %v2847_v45 = vor.u32 %v3223_v39, %v2846_v37  ;;  %v2630_v47 = vld [vmem:[#allocation3 + $0x90] sm:$0xf] }
  0x17   :  { %v2848_v43 = vld [vmem:[#allocation3 + $0x258] sm:$0xf0]  ;;  %683 = vmatpush.bf16.msra.mxu0 %v2679_v29  ;;  %v2659_v46 = vor.u32 %v3172_v40, %v2656_v41  ;;  %v3169_v48 = vld [vmem:[#allocation3 + $0xa4] sm:$0xf0]  ;;  %v2822_v49 = vld [vmem:[#allocation3 + $0x210] sm:$0xf] }
  0x18   :  { %712 = vmatpush.bf16.msra.mxu1 %v2871_v33  ;;  %v2851_v50 = vor.u32 %v3220_v42, %v2848_v43  ;;  %v3217_v51 = vld [vmem:[#allocation3 + $0x224] sm:$0xf0]  ;;  %v3166_v52 = vld [vmem:[#allocation3 + $0x94] sm:$0xf]  ;;  %v2632_v53 = vld [vmem:[#allocation3 + $0xa8] sm:$0xf0]  ;;  %v2631_v56 = vor.u32 %v3169_v48, %v2630_v47 }
  0x19   :  { %741 = vmatpush.bf16.msra.mxu2 %v2683_v34  ;;  %v3214_v54 = vld [vmem:[#allocation3 + $0x214] sm:$0xf]  ;;  %v2824_v55 = vld [vmem:[#allocation3 + $0x228] sm:$0xf0]  ;;  %v2823_v57 = vor.u32 %v3217_v51, %v2822_v49  ;;  %v2635_v58 = vor.u32 %v3166_v52, %v2632_v53  ;;  %v2606_v59 = vld [vmem:[#allocation3 + $0x60] sm:$0xf] }
  0x1a   :  { %770 = vmatpush.bf16.msra.mxu3 %v2875_v38  ;;  %v3163_v60 = vld [vmem:[#allocation3 + $0x74] sm:$0xf0]  ;;  %v2798_v61 = vld [vmem:[#allocation3 + $0x1e0] sm:$0xf]  ;;  %v2827_v62 = vor.u32 %v3214_v54, %v2824_v55  ;;  %v3160_v0 = vld [vmem:[#allocation3 + $0x64] sm:$0xf] }
  0x1b   :  { %684 = vmatpush.bf16.msra.mxu0 %v2655_v44  ;;  %v3211_v63 = vld [vmem:[#allocation3 + $0x1f4] sm:$0xf0]  ;;  %v2608_v1 = vld [vmem:[#allocation3 + $0x78] sm:$0xf0]  ;;  %v3208_v2 = vld [vmem:[#allocation3 + $0x1e4] sm:$0xf]  ;;  %v2607_v4 = vor.u32 %v3163_v60, %v2606_v59 }
  0x1c   :  { %713 = vmatpush.bf16.msra.mxu1 %v2847_v45  ;;  %v2800_v3 = vld [vmem:[#allocation3 + $0x1f8] sm:$0xf0]  ;;  %v2799_v5 = vor.u32 %v3211_v63, %v2798_v61  ;;  %v2611_v6 = vor.u32 %v3160_v0, %v2608_v1  ;;  %v2582_v7 = vld [vmem:[#allocation3 + $0x30] sm:$0xf]  ;;  %v3157_v8 = vld [vmem:[#allocation3 + $0x44] sm:$0xf0] }
  0x1d   :  { %742 = vmatpush.bf16.msra.mxu2 %v2659_v46  ;;  %v2774_v9 = vld [vmem:[#allocation3 + $0x1b0] sm:$0xf]  ;;  %v2803_v10 = vor.u32 %v3208_v2, %v2800_v3  ;;  %v3205_v11 = vld [vmem:[#allocation3 + $0x1c4] sm:$0xf0]  ;;  %v3154_v12 = vld [vmem:[#allocation3 + $0x34] sm:$0xf]  ;;  %v2583_v16 = vor.u32 %v3157_v8, %v2582_v7 }
  0x1e   :  { %771 = vmatpush.bf16.msra.mxu3 %v2851_v50  ;;  %v2584_v13 = vld [vmem:[#allocation3 + $0x48] sm:$0xf0]  ;;  %v3202_v14 = vld [vmem:[#allocation3 + $0x1b4] sm:$0xf]  ;;  %v2558_v17 = vld [vmem:[#allocation3] sm:$0xf]  ;;  %v2775_v19 = vor.u32 %v3205_v11, %v2774_v9 }
  0x1f   :  { %685 = vmatpush.bf16.msra.mxu0 %v2631_v56  ;;  %v2776_v15 = vld [vmem:[#allocation3 + $0x1c8] sm:$0xf0]  ;;  %v3151_v18 = vld [vmem:[#allocation3 + $0x14] sm:$0xf0]  ;;  %v2587_v20 = vor.u32 %v3154_v12, %v2584_v13  ;;  %v2750_v21 = vld [vmem:[#allocation3 + $0x180] sm:$0xf] }
  0x20   :  { %714 = vmatpush.bf16.msra.mxu1 %v2823_v57  ;;  %v3199_v22 = vld [vmem:[#allocation3 + $0x194] sm:$0xf0]  ;;  %v3148_v23 = vld [vmem:[#allocation3 + $0x4] sm:$0xf]  ;;  %v2779_v24 = vor.u32 %v3202_v14, %v2776_v15  ;;  %v2560_v25 = vld [vmem:[#allocation3 + $0x18] sm:$0xf0]  ;;  %v2559_v31 = vor.u32 %v3151_v18, %v2558_v17 }
  0x21   :  { %743 = vmatpush.bf16.msra.mxu2 %v2635_v58  ;;  %v3196_v26 = vld [vmem:[#allocation3 + $0x184] sm:$0xf]  ;;  %v2752_v27 = vld [vmem:[#allocation3 + $0x198] sm:$0xf0]  ;;  %v2526_v28 = vld [vmem:[%s4362_s0] sm:$0xf]  ;;  %v2751_v35 = vor.u32 %v3199_v22, %v2750_v21  ;;  %v2563_v36 = vor.u32 %v3148_v23, %v2560_v25 }
  0x22   :  { %772 = vmatpush.bf16.msra.mxu3 %v2827_v62  ;;  %v3191_v29 = vld [vmem:[#allocation3 + $0x15c] sm:$0xf]  ;;  %v2736_v30 = vld [vmem:[#allocation3 + $0x170] sm:$0xf0]  ;;  %v3245_v32 = vld [vmem:[%s4362_s0 + $0x4] sm:$0xf0]  ;;  %v2755_v39 = vor.u32 %v3196_v26, %v2752_v27 }
  0x23   :  { %686 = vmatpush.bf16.msra.mxu0 %v2607_v4  ;;  %v3239_v33 = vld [vmem:[#allocation3 + $0x2dc] sm:$0xf]  ;;  %v2928_v34 = vld [vmem:[#allocation3 + $0x2f0] sm:$0xf0]  ;;  %v3244_v37 = vld [vmem:[%s4362_s0 + $0x4] sm:$0xf]  ;;  %v2739_v40 = vor.u32 %v3191_v29, %v2736_v30  ;;  %v3522_v44 = vor.u32 %v3245_v32, %v2526_v28 }
  0x24   :  { %715 = vmatpush.bf16.msra.mxu1 %v2799_v5  ;;  %v2528_v38 = vld [vmem:[%s4362_s0 + $0x8] sm:$0xf0]  ;;  %v2734_v41 = vld [vmem:[#allocation3 + $0x158] sm:$0xf]  ;;  %v3194_v42 = vld [vmem:[#allocation3 + $0x16c] sm:$0xf0]  ;;  %v2931_v45 = vor.u32 %v3239_v33, %v2928_v34 }
  0x25   :  { %744 = vmatpush.bf16.msra.mxu2 %v2611_v6  ;;  %v2926_v43 = vld [vmem:[#allocation3 + $0x2d8] sm:$0xf]  ;;  %v3242_v46 = vld [vmem:[#allocation3 + $0x2ec] sm:$0xf0]  ;;  %v3185_v47 = vld [vmem:[#allocation3 + $0x12c] sm:$0xf]  ;;  %v3524_v49 = vor.u32 %v3244_v37, %v2528_v38  ;;  %v2735_v52 = vor.u32 %v3194_v42, %v2734_v41 }
  0x26   :  { %773 = vmatpush.bf16.msra.mxu3 %v2803_v10  ;;  %v2712_v48 = vld [vmem:[#allocation3 + $0x140] sm:$0xf0]  ;;  %v3233_v50 = vld [vmem:[#allocation3 + $0x2ac] sm:$0xf]  ;;  %v2927_v53 = vor.u32 %v3242_v46, %v2926_v43  ;;  %v2710_v55 = vld [vmem:[#allocation3 + $0x128] sm:$0xf] }
  0x27   :  { %687 = vmatpush.bf16.msra.mxu0 %v2583_v16  ;;  %v2904_v51 = vld [vmem:[#allocation3 + $0x2c0] sm:$0xf0]  ;;  %v2715_v54 = vor.u32 %v3185_v47, %v2712_v48  ;;  %v3188_v56 = vld [vmem:[#allocation3 + $0x13c] sm:$0xf0]  ;;  %v2902_v57 = vld [vmem:[#allocation3 + $0x2a8] sm:$0xf] }
  0x28   :  { %716 = vmatpush.bf16.msra.mxu1 %v2775_v19  ;;  %v2907_v58 = vor.u32 %v3233_v50, %v2904_v51  ;;  %v3236_v59 = vld [vmem:[#allocation3 + $0x2bc] sm:$0xf0]  ;;  %v3179_v60 = vld [vmem:[#allocation3 + $0xfc] sm:$0xf]  ;;  %v2688_v61 = vld [vmem:[#allocation3 + $0x110] sm:$0xf0]  ;;  %v2711_v0 = vor.u32 %v3188_v56, %v2710_v55 }
  0x29   :  { %745 = vmatpush.bf16.msra.mxu2 %v2587_v20  ;;  %v3227_v62 = vld [vmem:[#allocation3 + $0x27c] sm:$0xf]  ;;  %v2880_v63 = vld [vmem:[#allocation3 + $0x290] sm:$0xf0]  ;;  %v2903_v1 = vor.u32 %v3236_v59, %v2902_v57  ;;  %v2691_v2 = vor.u32 %v3179_v60, %v2688_v61  ;;  %v2686_v3 = vld [vmem:[#allocation3 + $0xf8] sm:$0xf] }
  0x2a   :  { %774 = vmatpush.bf16.msra.mxu3 %v2779_v24  ;;  %v3182_v4 = vld [vmem:[#allocation3 + $0x10c] sm:$0xf0]  ;;  %v2878_v5 = vld [vmem:[#allocation3 + $0x278] sm:$0xf]  ;;  %v2883_v6 = vor.u32 %v3227_v62, %v2880_v63  ;;  %v3173_v8 = vld [vmem:[#allocation3 + $0xcc] sm:$0xf] }
  0x2b   :  { %688 = vmatpush.bf16.msra.mxu0 %v2559_v31  ;;  %v3230_v7 = vld [vmem:[#allocation3 + $0x28c] sm:$0xf0]  ;;  %v2664_v9 = vld [vmem:[#allocation3 + $0xe0] sm:$0xf0]  ;;  %v3221_v10 = vld [vmem:[#allocation3 + $0x24c] sm:$0xf]  ;;  %v2687_v12 = vor.u32 %v3182_v4, %v2686_v3 }
  0x2c   :  { %717 = vmatpush.bf16.msra.mxu1 %v2751_v35  ;;  %v2856_v11 = vld [vmem:[#allocation3 + $0x260] sm:$0xf0]  ;;  %v2662_v13 = vld [vmem:[#allocation3 + $0xc8] sm:$0xf]  ;;  %v3176_v14 = vld [vmem:[#allocation3 + $0xdc] sm:$0xf0]  ;;  %v2879_v16 = vor.u32 %v3230_v7, %v2878_v5  ;;  %v2667_v17 = vor.u32 %v3173_v8, %v2664_v9 }
  0x2d   :  { %746 = vmatpush.bf16.msra.mxu2 %v2563_v36  ;;  %v2534_v15 = vld [vmem:[%s4362_s0 + $0x10] sm:$0xf]  ;;  %v2854_v18 = vld [vmem:[#allocation3 + $0x248] sm:$0xf]  ;;  %v3224_v19 = vld [vmem:[#allocation3 + $0x25c] sm:$0xf0]  ;;  %v2859_v21 = vor.u32 %v3221_v10, %v2856_v11  ;;  %v2663_v28 = vor.u32 %v3176_v14, %v2662_v13 }
  0x2e   :  { %775 = vmatpush.bf16.msra.mxu3 %v2755_v39  ;;  %689 = vmatmul.bf16.vlgmr.msra.gmra.mxu0 %v3522_v44  ;;  %v3167_v20 = vld [vmem:[#allocation3 + $0x9c] sm:$0xf]  ;;  %v2640_v22 = vld [vmem:[#allocation3 + $0xb0] sm:$0xf0]  ;;  %v3247_v23 = vld [vmem:[%s4362_s0 + $0x14] sm:$0xf0]  ;;  %v2855_v29 = vor.u32 %v3224_v19, %v2854_v18 }
  0x2f   :  { %718 = vmatmul.bf16.vlgmr.msra.gmra.mxu1 %v3524_v49  ;;  %797 = vmatpush.bf16.msrb.mxu0 %v2735_v52  ;;  %v3215_v24 = vld [vmem:[#allocation3 + $0x21c] sm:$0xf]  ;;  %v2832_v25 = vld [vmem:[#allocation3 + $0x230] sm:$0xf0]  ;;  %v2643_v30 = vor.u32 %v3167_v20, %v2640_v22  ;;  %v2638_v31 = vld [vmem:[#allocation3 + $0x98] sm:$0xf]  ;;  %v3542_v34 = vor.u32 %v3247_v23, %v2534_v15 }
  0x30   :  { %747 = vmatmul.bf16.vlgmr.msra.gmra.mxu2 %v3522_v44  ;;  %826 = vmatpush.bf16.msrb.mxu1 %v2927_v53  ;;  %v3246_v26 = vld [vmem:[%s4362_s0 + $0x14] sm:$0xf]  ;;  %v2536_v27 = vld [vmem:[%s4362_s0 + $0x18] sm:$0xf0]  ;;  %v3170_v32 = vld [vmem:[#allocation3 + $0xac] sm:$0xf0]  ;;  %v2835_v35 = vor.u32 %v3215_v24, %v2832_v25 }
  0x31   :  { %855 = vmatpush.bf16.msrb.mxu2 %v2739_v40  ;;  %776 = vmatmul.bf16.vlgmr.msra.gmra.mxu3 %v3524_v49  ;;  %v2830_v33 = vld [vmem:[#allocation3 + $0x218] sm:$0xf]  ;;  %v3218_v36 = vld [vmem:[#allocation3 + $0x22c] sm:$0xf0]  ;;  %v3161_v37 = vld [vmem:[#allocation3 + $0x6c] sm:$0xf]  ;;  %v3544_v39 = vor.u32 %v3246_v26, %v2536_v27  ;;  %v2639_v42 = vor.u32 %v3170_v32, %v2638_v31 }
  0x32   :  { %884 = vmatpush.bf16.msrb.mxu3 %v2931_v45  ;;  %v2616_v38 = vld [vmem:[#allocation3 + $0x80] sm:$0xf0]  ;;  %v3209_v40 = vld [vmem:[#allocation3 + $0x1ec] sm:$0xf]  ;;  %v2831_v43 = vor.u32 %v3218_v36, %v2830_v33  ;;  %v2614_v46 = vld [vmem:[#allocation3 + $0x68] sm:$0xf] }
  0x33   :  { %798 = vmatpush.bf16.msrb.mxu0 %v2711_v0  ;;  %v2808_v41 = vld [vmem:[#allocation3 + $0x200] sm:$0xf0]  ;;  %v2619_v45 = vor.u32 %v3161_v37, %v2616_v38  ;;  %v3164_v47 = vld [vmem:[#allocation3 + $0x7c] sm:$0xf0]  ;;  %v2806_v50 = vld [vmem:[#allocation3 + $0x1e8] sm:$0xf] }
  0x34   :  { %827 = vmatpush.bf16.msrb.mxu1 %v2903_v1  ;;  %v2811_v48 = vor.u32 %v3209_v40, %v2808_v41  ;;  %v3212_v51 = vld [vmem:[#allocation3 + $0x1fc] sm:$0xf0]  ;;  %v2615_v52 = vor.u32 %v3164_v47, %v2614_v46  ;;  %v3155_v53 = vld [vmem:[#allocation3 + $0x3c] sm:$0xf]  ;;  %v2590_v59 = vld [vmem:[#allocation3 + $0x38] sm:$0xf] }
  0x35   :  { %856 = vmatpush.bf16.msrb.mxu2 %v2715_v54  ;;  %v2592_v54 = vld [vmem:[#allocation3 + $0x50] sm:$0xf0]  ;;  %v3203_v55 = vld [vmem:[#allocation3 + $0x1bc] sm:$0xf]  ;;  %v2807_v56 = vor.u32 %v3212_v51, %v2806_v50  ;;  %v3158_v60 = vld [vmem:[#allocation3 + $0x4c] sm:$0xf0] }
  0x36   :  { %885 = vmatpush.bf16.msrb.mxu3 %v2907_v58  ;;  %v2595_v57 = vor.u32 %v3155_v53, %v2592_v54  ;;  %v2784_v58 = vld [vmem:[#allocation3 + $0x1d0] sm:$0xf0]  ;;  %v2782_v62 = vld [vmem:[#allocation3 + $0x1b8] sm:$0xf]  ;;  %v3206_v63 = vld [vmem:[#allocation3 + $0x1cc] sm:$0xf0]  ;;  %v2591_v4 = vor.u32 %v3158_v60, %v2590_v59 }
  0x37   :  { %799 = vmatpush.bf16.msrb.mxu0 %v2687_v12  ;;  %v2787_v61 = vor.u32 %v3203_v55, %v2784_v58  ;;  %v3149_v0 = vld [vmem:[#allocation3 + $0xc] sm:$0xf]  ;;  %v2568_v1 = vld [vmem:[#allocation3 + $0x20] sm:$0xf0]  ;;  %v2783_v5 = vor.u32 %v3206_v63, %v2782_v62  ;;  %v2566_v7 = vld [vmem:[#allocation3 + $0x8] sm:$0xf] }
  0x38   :  { %828 = vmatpush.bf16.msrb.mxu1 %v2879_v16  ;;  %v2760_v3 = vld [vmem:[#allocation3 + $0x1a0] sm:$0xf0]  ;;  %v3152_v8 = vld [vmem:[#allocation3 + $0x1c] sm:$0xf0]  ;;  %v2758_v10 = vld [vmem:[#allocation3 + $0x188] sm:$0xf] }
  0x39   :  { %857 = vmatpush.bf16.msrb.mxu2 %v2691_v2  ;;  %v3197_v2 = vld [vmem:[#allocation3 + $0x18c] sm:$0xf]  ;;  %v3200_v11 = vld [vmem:[#allocation3 + $0x19c] sm:$0xf0]  ;;  %v3249_v13 = vld [vmem:[%s4362_s0 + $0x24] sm:$0xf0]  ;;  %v2567_v16 = vor.u32 %v3152_v8, %v2566_v7 }
  0x3a   :  { %886 = vmatpush.bf16.msrb.mxu3 %v2883_v6  ;;  %v2571_v6 = vor.u32 %v3149_v0, %v2568_v1  ;;  %v2763_v9 = vor.u32 %v3197_v2, %v2760_v3  ;;  %v2542_v12 = vld [vmem:[%s4362_s0 + $0x20] sm:$0xf]  ;;  %v3248_v14 = vld [vmem:[%s4362_s0 + $0x24] sm:$0xf]  ;;  %v2544_v15 = vld [vmem:[%s4362_s0 + $0x28] sm:$0xf0] }
  0x3b   :  { %800 = vmatpush.bf16.msrb.mxu0 %v2663_v28  ;;  %v3562_v18 = vor.u32 %v3249_v13, %v2542_v12  ;;  %v3564_v19 = vor.u32 %v3248_v14, %v2544_v15  ;;  %v3192_v20 = vld [vmem:[#allocation3 + $0x164] sm:$0xf]  ;;  %v2936_v24 = vld [vmem:[#allocation3 + $0x2f8] sm:$0xf0]  ;;  %v2742_v25 = vld [vmem:[#allocation3 + $0x160] sm:$0xf] }
  0x3c   :  { %829 = vmatpush.bf16.msrb.mxu1 %v2855_v29  ;;  %v3240_v22 = vld [vmem:[#allocation3 + $0x2e4] sm:$0xf]  ;;  %v3195_v26 = vld [vmem:[#allocation3 + $0x174] sm:$0xf0]  ;;  %v2934_v29 = vld [vmem:[#allocation3 + $0x2e0] sm:$0xf] }
  0x3d   :  { %858 = vmatpush.bf16.msrb.mxu2 %v2667_v17  ;;  %v2759_v17 = vor.u32 %v3200_v11, %v2758_v10  ;;  %v2939_v27 = vor.u32 %v3240_v22, %v2936_v24  ;;  %v2743_v28 = vor.u32 %v3195_v26, %v2742_v25  ;;  %v3186_v31 = vld [vmem:[#allocation3 + $0x134] sm:$0xf]  ;;  %v2720_v33 = vld [vmem:[#allocation3 + $0x148] sm:$0xf0]  ;;  %v2718_v40 = vld [vmem:[#allocation3 + $0x130] sm:$0xf] }
  0x3e   :  { %887 = vmatpush.bf16.msrb.mxu3 %v2859_v21  ;;  %694 = vmatmul.bf16.gmra.mxu0 %v3542_v34  ;;  %v2744_v21 = vld [vmem:[#allocation3 + $0x178] sm:$0xf0]  ;;  %v2912_v36 = vld [vmem:[#allocation3 + $0x2c8] sm:$0xf0]  ;;  %v2723_v37 = vor.u32 %v3186_v31, %v2720_v33  ;;  %v3189_v41 = vld [vmem:[#allocation3 + $0x144] sm:$0xf0] }
  0x3f   :  { %723 = vmatmul.bf16.gmra.mxu1 %v3544_v39  ;;  %801 = vmatpush.bf16.msrb.mxu0 %v2639_v42  ;;  %v2747_v23 = vor.u32 %v3192_v20, %v2744_v21  ;;  %v2910_v42 = vld [vmem:[#allocation3 + $0x2b0] sm:$0xf]  ;;  %v3250_v50 = vld [vmem:[%s4362_s0 + $0x34] sm:$0xf]  ;;  %v2552_v51 = vld [vmem:[%s4362_s0 + $0x38] sm:$0xf0] }
  0x40   :  { %752 = vmatmul.bf16.gmra.mxu2 %v3542_v34  ;;  %830 = vmatpush.bf16.msrb.mxu1 %v2831_v43  ;;  %v2719_v43 = vor.u32 %v3189_v41, %v2718_v40  ;;  %v2550_v47 = vld [vmem:[%s4362_s0 + $0x30] sm:$0xf]  ;;  %v3584_v53 = vor.u32 %v3250_v50, %v2552_v51  ;;  %v3180_v54 = vld [vmem:[#allocation3 + $0x104] sm:$0xf]  ;;  %v2696_v55 = vld [vmem:[#allocation3 + $0x118] sm:$0xf0] }
  0x41   :  { %859 = vmatpush.bf16.msrb.mxu2 %v2643_v30  ;;  %781 = vmatmul.bf16.gmra.mxu3 %v3544_v39  ;;  %v3243_v30 = vld [vmem:[#allocation3 + $0x2f4] sm:$0xf0]  ;;  %v2888_v58 = vld [vmem:[#allocation3 + $0x298] sm:$0xf0]  ;;  %v2694_v59 = vld [vmem:[#allocation3 + $0x100] sm:$0xf] }
  0x42   :  { %888 = vmatpush.bf16.msrb.mxu3 %v2835_v35  ;;  %v2935_v32 = vor.u32 %v3243_v30, %v2934_v29  ;;  %v3234_v35 = vld [vmem:[#allocation3 + $0x2b4] sm:$0xf]  ;;  %v3183_v60 = vld [vmem:[#allocation3 + $0x114] sm:$0xf0]  ;;  %v2886_v63 = vld [vmem:[#allocation3 + $0x280] sm:$0xf] }
  0x43   :  { %802 = vmatpush.bf16.msrb.mxu0 %v2615_v52  ;;  %v2915_v38 = vor.u32 %v3234_v35, %v2912_v36  ;;  %v2695_v62 = vor.u32 %v3183_v60, %v2694_v59  ;;  %v3231_v0 = vld [vmem:[#allocation3 + $0x294] sm:$0xf0]  ;;  %v3174_v1 = vld [vmem:[#allocation3 + $0xd4] sm:$0xf]  ;;  %v2672_v3 = vld [vmem:[#allocation3 + $0xe8] sm:$0xf0] }
  0x44   :  { %831 = vmatpush.bf16.msrb.mxu1 %v2807_v56  ;;  %v3228_v56 = vld [vmem:[#allocation3 + $0x284] sm:$0xf]  ;;  %v2887_v2 = vor.u32 %v3231_v0, %v2886_v63  ;;  %v2670_v8 = vld [vmem:[#allocation3 + $0xd0] sm:$0xf]  ;;  %v3225_v12 = vld [vmem:[#allocation3 + $0x264] sm:$0xf0] }
  0x45   :  { %860 = vmatpush.bf16.msrb.mxu2 %v2619_v45  ;;  %v3237_v45 = vld [vmem:[#allocation3 + $0x2c4] sm:$0xf0]  ;;  %v2862_v10 = vld [vmem:[#allocation3 + $0x250] sm:$0xf]  ;;  %v3168_v14 = vld [vmem:[#allocation3 + $0xa4] sm:$0xf] }
  0x46   :  { %889 = vmatpush.bf16.msrb.mxu3 %v2811_v48  ;;  %v2911_v46 = vor.u32 %v3237_v45, %v2910_v42  ;;  %v3251_v48 = vld [vmem:[%s4362_s0 + $0x34] sm:$0xf0]  ;;  %v2863_v13 = vor.u32 %v3225_v12, %v2862_v10  ;;  %v2648_v15 = vld [vmem:[#allocation3 + $0xb8] sm:$0xf0]  ;;  %v2646_v21 = vld [vmem:[#allocation3 + $0xa0] sm:$0xf] }
  0x47   :  { %803 = vmatpush.bf16.msrb.mxu0 %v2591_v4  ;;  %v3582_v52 = vor.u32 %v3251_v48, %v2550_v47  ;;  %v3222_v4 = vld [vmem:[#allocation3 + $0x254] sm:$0xf]  ;;  %v2840_v20 = vld [vmem:[#allocation3 + $0x238] sm:$0xf0]  ;;  %v3171_v22 = vld [vmem:[#allocation3 + $0xb4] sm:$0xf0] }
  0x48   :  { %832 = vmatpush.bf16.msrb.mxu1 %v2783_v5  ;;  %v2864_v5 = vld [vmem:[#allocation3 + $0x268] sm:$0xf0]  ;;  %v2647_v24 = vor.u32 %v3171_v22, %v2646_v21  ;;  %v2838_v25 = vld [vmem:[#allocation3 + $0x220] sm:$0xf]  ;;  %v3219_v26 = vld [vmem:[#allocation3 + $0x234] sm:$0xf0] }
  0x49   :  { %861 = vmatpush.bf16.msrb.mxu2 %v2595_v57  ;;  %v2699_v57 = vor.u32 %v3180_v54, %v2696_v55  ;;  %v2867_v7 = vor.u32 %v3222_v4, %v2864_v5  ;;  %v2624_v29 = vld [vmem:[#allocation3 + $0x88] sm:$0xf0]  ;;  %v3210_v30 = vld [vmem:[#allocation3 + $0x1f4] sm:$0xf]  ;;  %v2622_v35 = vld [vmem:[#allocation3 + $0x70] sm:$0xf] }
  0x4a   :  { %890 = vmatpush.bf16.msrb.mxu3 %v2787_v61  ;;  %v2891_v61 = vor.u32 %v3228_v56, %v2888_v58  ;;  %v2816_v31 = vld [vmem:[#allocation3 + $0x208] sm:$0xf0]  ;;  %v3165_v36 = vld [vmem:[#allocation3 + $0x84] sm:$0xf0]  ;;  %v3156_v42 = vld [vmem:[#allocation3 + $0x44] sm:$0xf] }
  0x4b   :  { %804 = vmatpush.bf16.msrb.mxu0 %v2567_v16  ;;  %v3216_v16 = vld [vmem:[#allocation3 + $0x224] sm:$0xf]  ;;  %v2819_v33 = vor.u32 %v3210_v30, %v2816_v31  ;;  %v3213_v40 = vld [vmem:[#allocation3 + $0x204] sm:$0xf0]  ;;  %v2792_v47 = vld [vmem:[#allocation3 + $0x1d8] sm:$0xf0] }
  0x4c   :  { %833 = vmatpush.bf16.msrb.mxu1 %v2759_v17  ;;  %v2651_v17 = vor.u32 %v3168_v14, %v2648_v15  ;;  %v3204_v45 = vld [vmem:[#allocation3 + $0x1c4] sm:$0xf]  ;;  %v2598_v48 = vld [vmem:[#allocation3 + $0x40] sm:$0xf]  ;;  %v3159_v50 = vld [vmem:[#allocation3 + $0x54] sm:$0xf0] }
  0x4d   :  { %862 = vmatpush.bf16.msrb.mxu2 %v2571_v6  ;;  %v2675_v6 = vor.u32 %v3174_v1, %v2672_v3  ;;  %v2795_v51 = vor.u32 %v3204_v45, %v2792_v47  ;;  %v2599_v54 = vor.u32 %v3159_v50, %v2598_v48  ;;  %v2790_v55 = vld [vmem:[#allocation3 + $0x1c0] sm:$0xf]  ;;  %v3207_v56 = vld [vmem:[#allocation3 + $0x1d4] sm:$0xf0]  ;;  %v2576_v59 = vld [vmem:[#allocation3 + $0x28] sm:$0xf0] }
  0x4e   :  { %891 = vmatpush.bf16.msrb.mxu3 %v2763_v9  ;;  %699 = vmatmul.bf16.gmra.mxu0 %v3562_v18  ;;  %v3177_v9 = vld [vmem:[#allocation3 + $0xe4] sm:$0xf0]  ;;  %v2791_v58 = vor.u32 %v3207_v56, %v2790_v55  ;;  %v3198_v60 = vld [vmem:[#allocation3 + $0x194] sm:$0xf]  ;;  %v2574_v0 = vld [vmem:[#allocation3 + $0x10] sm:$0xf] }
  0x4f   :  { %728 = vmatmul.bf16.gmra.mxu1 %v3564_v19  ;;  %913 = vmatpush.bf16.msra.mxu0 %v2743_v28  ;;  %v2671_v11 = vor.u32 %v3177_v9, %v2670_v8  ;;  %v2839_v28 = vor.u32 %v3219_v26, %v2838_v25  ;;  %v3153_v1 = vld [vmem:[#allocation3 + $0x24] sm:$0xf0]  ;;  %v2766_v3 = vld [vmem:[#allocation3 + $0x190] sm:$0xf]  ;;  %v3275_v10 = vld [vmem:[#allocation5 + $0xb8] sm:$0xf0] }
  0x50   :  { %757 = vmatmul.bf16.gmra.mxu2 %v3562_v18  ;;  %942 = vmatpush.bf16.msra.mxu1 %v2935_v32  ;;  %v3201_v4 = vld [vmem:[#allocation3 + $0x1a4] sm:$0xf0]  ;;  %v3035_v9 = vld [vmem:[#allocation5 + $0xb0] sm:$0xf]  ;;  %v3271_v15 = vld [vmem:[#allocation5 + $0x98] sm:$0xf0] }
  0x51   :  { %786 = vmatmul.bf16.gmra.mxu3 %v3564_v19  ;;  %971 = vmatpush.bf16.msra.mxu2 %v2747_v23  ;;  %v2843_v23 = vor.u32 %v3216_v16, %v2840_v20  ;;  %v2767_v5 = vor.u32 %v3201_v4, %v2766_v3  ;;  %v3605_v12 = vor.u32 %v3275_v10, %v3035_v9  ;;  %v3015_v14 = vld [vmem:[#allocation5 + $0x90] sm:$0xf]  ;;  %v3273_v20 = vld [vmem:[#allocation5 + $0xac] sm:$0xf]  ;;  %v3029_v21 = vld [vmem:[#allocation5 + $0xb4] sm:$0xf0] }
  0x52   :  { %1000 = vmatpush.bf16.msra.mxu3 %v2939_v27  ;;  %v3162_v27 = vld [vmem:[#allocation3 + $0x74] sm:$0xf]  ;;  %v3612_v22 = vor.u32 %v3273_v20, %v3029_v21  ;;  %v3111_v25 = vld [vmem:[#allocation5 + $0x150] sm:$0xf]  ;;  %v3267_v47 = vld [vmem:[#allocation5 + $0x7c] sm:$0xf] }
  0x53   :  { %914 = vmatpush.bf16.msra.mxu0 %v2719_v43  ;;  %v2627_v32 = vor.u32 %v3162_v27, %v2624_v29  ;;  %v2600_v43 = vld [vmem:[#allocation3 + $0x58] sm:$0xf0]  ;;  %v3268_v29 = vld [vmem:[#allocation5 + $0x80] sm:$0xf0]  ;;  %v3005_v48 = vld [vmem:[#allocation5 + $0x84] sm:$0xf0] }
  0x54   :  { %943 = vmatpush.bf16.msra.mxu1 %v2911_v46  ;;  %v2603_v46 = vor.u32 %v3156_v42, %v2600_v43  ;;  %v3295_v27 = vld [vmem:[#allocation5 + $0x158] sm:$0xf0]  ;;  %v2991_v42 = vld [vmem:[#allocation5 + $0x60] sm:$0xf]  ;;  %v3265_v43 = vld [vmem:[#allocation5 + $0x68] sm:$0xf0] }
  0x55   :  { %972 = vmatpush.bf16.msra.mxu2 %v2723_v37  ;;  %v2814_v37 = vld [vmem:[#allocation3 + $0x1f0] sm:$0xf]  ;;  %v3623_v30 = vor.u32 %v3295_v27, %v3111_v25  ;;  %v2999_v55 = vld [vmem:[#allocation5 + $0x68] sm:$0xf]  ;;  %v3266_v56 = vld [vmem:[#allocation5 + $0x70] sm:$0xf0] }
  0x56   :  { %1001 = vmatpush.bf16.msra.mxu3 %v2915_v38  ;;  %v2623_v38 = vor.u32 %v3165_v36, %v2622_v35  ;;  %v2815_v41 = vor.u32 %v3213_v40, %v2814_v37  ;;  %v3011_v36 = vld [vmem:[#allocation5 + $0x80] sm:$0xf]  ;;  %v3269_v37 = vld [vmem:[#allocation5 + $0x88] sm:$0xf0]  ;;  %v2981_v9 = vld [vmem:[#allocation5 + $0x54] sm:$0xf0] }
  0x57   :  { %915 = vmatpush.bf16.msra.mxu0 %v2695_v62  ;;  %v3633_v40 = vor.u32 %v3269_v37, %v3011_v36  ;;  %v2987_v20 = vld [vmem:[#allocation5 + $0x50] sm:$0xf]  ;;  %v3263_v21 = vld [vmem:[#allocation5 + $0x58] sm:$0xf0]  ;;  %v3286_v25 = vld [vmem:[#allocation5 + $0x110] sm:$0xf0] }
  0x58   :  { %944 = vmatpush.bf16.msra.mxu1 %v2887_v2  ;;  %v2575_v2 = vor.u32 %v3153_v1, %v2574_v0  ;;  %v3264_v1 = vld [vmem:[#allocation5 + $0x64] sm:$0xf]  ;;  %v3258_v27 = vld [vmem:[#allocation5 + $0x34] sm:$0xf] }
  0x59   :  { %973 = vmatpush.bf16.msra.mxu2 %v2699_v57  ;;  %v3150_v57 = vld [vmem:[#allocation3 + $0x14] sm:$0xf]  ;;  %v3256_v36 = vld [vmem:[#allocation5 + $0x20] sm:$0xf0] }
  0x5a   :  { %1002 = vmatpush.bf16.msra.mxu3 %v2891_v61  ;;  %v2768_v61 = vld [vmem:[#allocation3 + $0x1a8] sm:$0xf0]  ;;  %v2579_v62 = vor.u32 %v3150_v57, %v2576_v59  ;;  %v3087_v57 = vld [vmem:[#allocation5 + $0x120] sm:$0xf] }
  0x5b   :  { %916 = vmatpush.bf16.msra.mxu0 %v2671_v11  ;;  %v2771_v63 = vor.u32 %v3198_v60, %v2768_v61  ;;  %v3123_v11 = vld [vmem:[#allocation5 + $0x168] sm:$0xf]  ;;  %v3289_v59 = vld [vmem:[#allocation5 + $0x128] sm:$0xf0]  ;;  %v3262_v61 = vld [vmem:[#allocation5 + $0x50] sm:$0xf0] }
  0x5c   :  { %945 = vmatpush.bf16.msra.mxu1 %v2863_v13  ;;  %v3298_v13 = vld [vmem:[#allocation5 + $0x170] sm:$0xf0]  ;;  %v2979_v60 = vld [vmem:[#allocation5 + $0x48] sm:$0xf] }
  0x5d   :  { %974 = vmatpush.bf16.msra.mxu2 %v2675_v6  ;;  %v3027_v6 = vld [vmem:[#allocation5 + $0xa8] sm:$0xf]  ;;  %v3607_v16 = vor.u32 %v3298_v13, %v3123_v11  ;;  %v3653_v0 = vor.u32 %v3262_v61, %v2979_v60  ;;  %v2967_v11 = vld [vmem:[#allocation5 + $0x30] sm:$0xf]  ;;  %v3259_v13 = vld [vmem:[#allocation5 + $0x38] sm:$0xf0] }
  0x5e   :  { %704 = vmatmul.bf16.gmra.mxu0 %v3582_v52  ;;  %1003 = vmatpush.bf16.msra.mxu3 %v2867_v7  ;;  %v3274_v7 = vld [vmem:[#allocation5 + $0xb0] sm:$0xf0]  ;;  %v3297_v61 = vld [vmem:[#allocation5 + $0x16c] sm:$0xf] }
  0x5f   :  { %733 = vmatmul.bf16.gmra.mxu1 %v3584_v53  ;;  %917 = vmatpush.bf16.msra.mxu0 %v2647_v24  ;;  %v3602_v8 = vor.u32 %v3274_v7, %v3027_v6  ;;  %v3272_v24 = vld [vmem:[#allocation5 + $0xa0] sm:$0xf0]  ;;  %4416 = vst [vmem:[#allocation12_spill] sm:$0xff] %v3653_v0  ;;  %v3261_v7 = vld [vmem:[#allocation5 + $0x4c] sm:$0xf] }
  0x60   :  { %762 = vmatmul.bf16.gmra.mxu2 %v3582_v52  ;;  %946 = vmatpush.bf16.msra.mxu1 %v2839_v28  ;;  %v3003_v28 = vld [vmem:[#allocation5 + $0x78] sm:$0xf]  ;;  %v3661_v10 = vor.u32 %v3261_v7, %v2981_v9 }
  0x61   :  { %791 = vmatmul.bf16.gmra.mxu3 %v3584_v53  ;;  %975 = vmatpush.bf16.msra.mxu2 %v2651_v17  ;;  %v3609_v17 = vor.u32 %v3271_v15, %v3015_v14  ;;  %v3625_v31 = vor.u32 %v3268_v29, %v3003_v28  ;;  %v3665_v15 = vor.u32 %v3259_v13, %v2967_v11  ;;  %v3131_v11 = vld [vmem:[#allocation5 + $0x170] sm:$0xf]  ;;  %v3299_v13 = vld [vmem:[#allocation5 + $0x178] sm:$0xf0] }
  0x62   :  { %1004 = vmatpush.bf16.msra.mxu3 %v2843_v23  ;;  %v3023_v23 = vld [vmem:[#allocation5 + $0x98] sm:$0xf]  ;;  %4418 = vst [vmem:[#allocation14_spill] sm:$0xff] %v3661_v10 }
  0x63   :  { %918 = vmatpush.bf16.msra.mxu0 %v2623_v38  ;;  %v3621_v26 = vor.u32 %v3272_v24, %v3023_v23  ;;  %4413 = vst [vmem:[#allocation9_spill] sm:$0xff] %v3625_v31  ;;  %v3099_v38 = vld [vmem:[#allocation5 + $0x138] sm:$0xf]  ;;  %v3669_v23 = vor.u32 %v3263_v21, %v2987_v20  ;;  %v3075_v24 = vld [vmem:[#allocation5 + $0x108] sm:$0xf] }
  0x64   :  { %947 = vmatpush.bf16.msra.mxu1 %v2815_v41  ;;  %v3292_v41 = vld [vmem:[#allocation5 + $0x140] sm:$0xf0]  ;;  %4420 = vst [vmem:[#allocation16_spill] sm:$0xff] %v3665_v15  ;;  %v3671_v29 = vor.u32 %v3286_v25, %v3075_v24  ;;  %v3701_v24 = vor.u32 %v3299_v13, %v3131_v11  ;;  %v3294_v25 = vld [vmem:[#allocation5 + $0x154] sm:$0xf] }
  0x65   :  { %976 = vmatpush.bf16.msra.mxu2 %v2627_v32  ;;  %v3270_v32 = vld [vmem:[#allocation5 + $0x94] sm:$0xf]  ;;  %v3635_v45 = vor.u32 %v3292_v41, %v3099_v38  ;;  %v3039_v11 = vld [vmem:[#allocation5 + $0xc0] sm:$0xf] }
  0x66   :  { %1005 = vmatpush.bf16.msra.mxu3 %v2819_v33  ;;  %v3017_v33 = vld [vmem:[#allocation5 + $0x9c] sm:$0xf0] }
  0x67   :  { %919 = vmatpush.bf16.msra.mxu0 %v2599_v54  ;;  %v3628_v35 = vor.u32 %v3270_v32, %v3017_v33  ;;  %v2969_v32 = vld [vmem:[#allocation5 + $0x3c] sm:$0xf0]  ;;  %v2955_v33 = vld [vmem:[#allocation5 + $0x18] sm:$0xf] }
  0x68   :  { %948 = vmatpush.bf16.msra.mxu1 %v2791_v58  ;;  %v3649_v58 = vor.u32 %v3266_v56, %v2999_v55  ;;  %v3674_v41 = vor.u32 %v3258_v27, %v2969_v32  ;;  %v2943_v56 = vld [vmem:[#allocation5] sm:$0xf] }
  0x69   :  { %977 = vmatpush.bf16.msra.mxu2 %v2603_v46  ;;  %v3637_v46 = vor.u32 %v3265_v43, %v2991_v42  ;;  %v3676_v42 = vor.u32 %v3256_v36, %v2955_v33  ;;  %v3113_v27 = vld [vmem:[#allocation5 + $0x15c] sm:$0xf0] }
  0x6a   :  { %1006 = vmatpush.bf16.msra.mxu3 %v2795_v51  ;;  %v3640_v51 = vor.u32 %v3267_v47, %v3005_v48  ;;  %4421 = vst [vmem:[#allocation17_spill] sm:$0xff] %v3674_v41  ;;  %v3704_v36 = vor.u32 %v3294_v25, %v3113_v27  ;;  %v3277_v27 = vld [vmem:[#allocation5 + $0xc8] sm:$0xf0] }
  0x6b   :  { %920 = vmatpush.bf16.msra.mxu0 %v2575_v2  ;;  %4414 = vst [vmem:[#allocation10_spill] sm:$0xff] %v3637_v46  ;;  %v2993_v2 = vld [vmem:[#allocation5 + $0x6c] sm:$0xf0] }
  0x6c   :  { %949 = vmatpush.bf16.msra.mxu1 %v2767_v5  ;;  %4415 = vst [vmem:[#allocation11_spill] sm:$0xff] %v3640_v51 }
  0x6d   :  { %978 = vmatpush.bf16.msra.mxu2 %v2579_v62  ;;  %4422 = vst [vmem:[#allocation18_spill] sm:$0xff] %v3676_v42 }
  0x6e   :  { %805 = vmatmul.bf16.vlgmr.msrb.gmra.mxu0 %v3522_v44  ;;  %1007 = vmatpush.bf16.msra.mxu3 %v2771_v63  ;;  %v3651_v63 = vor.u32 %v3289_v59, %v3087_v57  ;;  %v3253_v57 = vld [vmem:[#allocation5 + $0x8] sm:$0xf0] }
  0x6f   :  { %834 = vmatmul.bf16.vlgmr.msrb.gmra.mxu1 %v3524_v49  ;;  %1315 = vmatpush.bf16.msrb.mxu0 %v3602_v8  ;;  %v3684_v60 = vor.u32 %v3253_v57, %v2943_v56  ;;  %v3051_v56 = vld [vmem:[#allocation5 + $0xd8] sm:$0xf] }
  0x70   :  { %863 = vmatmul.bf16.vlgmr.msrb.gmra.mxu2 %v3522_v44  ;;  %1328 = vmatpush.bf16.msrb.mxu1 %v3612_v22 }
  0x71   :  { %892 = vmatmul.bf16.vlgmr.msrb.gmra.mxu3 %v3524_v49  ;;  %1341 = vmatpush.bf16.msrb.mxu2 %v3605_v12  ;;  %4424 = vst [vmem:[#allocation20_spill] sm:$0xff] %v3684_v60 }
  0x72   :  { %1483 = vmatpush.bf16.msrb.mxu3 %v3607_v16 }
  0x73   :  { %1316 = vmatpush.bf16.msrb.mxu0 %v3609_v17 }
  0x74   :  { %1329 = vmatpush.bf16.msrb.mxu1 %v3628_v35 }
  0x75   :  { %1342 = vmatpush.bf16.msrb.mxu2 %v3621_v26 }
  0x76   :  { %1484 = vmatpush.bf16.msrb.mxu3 %v3623_v30 }
  0x77   :  { %1317 = vmatpush.bf16.msrb.mxu0 %v3625_v31 }
  0x78   :  { %1330 = vmatpush.bf16.msrb.mxu1 %v3640_v51 }
  0x79   :  { %1343 = vmatpush.bf16.msrb.mxu2 %v3633_v40 }
  0x7a   :  { %1485 = vmatpush.bf16.msrb.mxu3 %v3635_v45 }
  0x7b   :  { %1318 = vmatpush.bf16.msrb.mxu0 %v3637_v46 }
  0x7d   :  { %1344 = vmatpush.bf16.msrb.mxu2 %v3649_v58 }
  0x7e   :  { %810 = vmatmul.bf16.gmra.mxu0 %v3542_v34  ;;  %1486 = vmatpush.bf16.msrb.mxu3 %v3651_v63 }
  0x7f   :  { %839 = vmatmul.bf16.gmra.mxu1 %v3544_v39  ;;  %1319 = vmatpush.bf16.msrb.mxu0 %v3653_v0 }
  0x80   :  { %868 = vmatmul.bf16.gmra.mxu2 %v3542_v34 }
  0x81   :  { %897 = vmatmul.bf16.gmra.mxu3 %v3544_v39  ;;  %1345 = vmatpush.bf16.msrb.mxu2 %v3669_v23 }
  0x82   :  { %1487 = vmatpush.bf16.msrb.mxu3 %v3671_v29 }
  0x83   :  { %1320 = vmatpush.bf16.msrb.mxu0 %v3665_v15 }
  0x87   :  { %1321 = vmatpush.bf16.msrb.mxu0 %v3676_v42 }
  0x8b   :  { %1322 = vmatpush.bf16.msrb.mxu0 %v3684_v60 }
  0x8e   :  { %815 = vmatmul.bf16.gmra.mxu0 %v3562_v18 }
  0x8f   :  { %844 = vmatmul.bf16.gmra.mxu1 %v3564_v19 }
  0x90   :  { %873 = vmatmul.bf16.gmra.mxu2 %v3562_v18 }
  0x91   :  { %902 = vmatmul.bf16.gmra.mxu3 %v3564_v19 }
  0x9e   :  { %820 = vmatmul.bf16.gmra.mxu0 %v3582_v52 }
  0x9f   :  { %849 = vmatmul.bf16.gmra.mxu1 %v3584_v53 }
  0xa0   :  { %878 = vmatmul.bf16.gmra.mxu2 %v3582_v52 }
  0xa1   :  { %907 = vmatmul.bf16.gmra.mxu3 %v3584_v53 }
  0xab   :  { %v690_v50 = vpop.f32.mrf.mxu0 }
  0xac   :  { %v719_v54 = vpop.f32.mrf.mxu1 }
  0xae   :  { %921 = vmatmul.bf16.vlgmr.msra.gmra.mxu0 %v3522_v44 }
  0xaf   :  { %950 = vmatmul.bf16.vlgmr.msra.gmra.mxu1 %v3524_v49 }
  0xb0   :  { %979 = vmatmul.bf16.vlgmr.msra.gmra.mxu2 %v3522_v44  ;;  %v3656_v44 = vor.u32 %v3264_v1, %v2993_v2  ;;  %v2975_v2 = vld [vmem:[#allocation5 + $0x38] sm:$0xf] }
  0xb1   :  { %1008 = vmatmul.bf16.vlgmr.msra.gmra.mxu3 %v3524_v49  ;;  %v720_v49 = vadd.f32 %v719_v54, %v690_v50  ;;  %v3255_v50 = vld [vmem:[#allocation5 + $0x1c] sm:$0xf]  ;;  %v2957_v54 = vld [vmem:[#allocation5 + $0x24] sm:$0xf0] }
  0xb2   :  { %4417 = vst [vmem:[#allocation13_spill] sm:$0xff] %v3656_v44  ;;  %1331 = vmatpush.bf16.msrb.mxu1 %v3656_v44  ;;  %v3681_v55 = vor.u32 %v3255_v50, %v2957_v54  ;;  %v2963_v50 = vld [vmem:[#allocation5 + $0x20] sm:$0xf]  ;;  %v3257_v54 = vld [vmem:[#allocation5 + $0x28] sm:$0xf0] }
  0xb3   :  { %v748_v62 = vpop.f32.mrf.mxu2  ;;  %v692_v4 = vpop.f32.mrf.mxu0 }
  0xb4   :  { %v777_v3 = vpop.f32.mrf.mxu3  ;;  %v721_v6 = vpop.f32.mrf.mxu1  ;;  %4423 = vst [vmem:[#allocation19_spill] sm:$0xff] %v3681_v55 }
  0xb5   :  { %v778_v5 = vadd.f32 %v777_v3, %v748_v62  ;;  %v722_v43 = vadd.f32 %v721_v6, %v692_v4  ;;  %v3125_v62 = vld [vmem:[#allocation5 + $0x174] sm:$0xf0]  ;;  %v3260_v3 = vld [vmem:[#allocation5 + $0x40] sm:$0xf0] }
  0xb6   :  { %1332 = vmatpush.bf16.msrb.mxu1 %v3661_v10  ;;  %v3688_v1 = vor.u32 %v3297_v61, %v3125_v62  ;;  %v3693_v4 = vor.u32 %v3260_v3, %v2975_v2  ;;  %v3252_v6 = vld [vmem:[#allocation5 + $0x4] sm:$0xf]  ;;  %v3101_v61 = vld [vmem:[#allocation5 + $0x144] sm:$0xf0]  ;;  %v3107_v3 = vld [vmem:[#allocation5 + $0x140] sm:$0xf] }
  0xb7   :  { %v3663_v14 = vpack.c.bf16 %v778_v5, %v720_v49  ;;  %v3063_v49 = vld [vmem:[#allocation5 + $0xf0] sm:$0xf]  ;;  %v3283_v5 = vld [vmem:[#allocation5 + $0xf8] sm:$0xf0] }
  0xb8   :  { %v3695_v9 = vor.u32 %v3283_v5, %v3063_v49  ;;  %1496 = vmatpush.bf16.msra.mxu0 %v3688_v1  ;;  %1346 = vmatpush.bf16.msrb.mxu2 %v3693_v4  ;;  %v3293_v49 = vld [vmem:[#allocation5 + $0x148] sm:$0xf0] }
  0xb9   :  { %4419 = vst [vmem:[#allocation15_spill] sm:$0xff] %v3663_v14 }
  0xba   :  { %1333 = vmatpush.bf16.msrb.mxu1 %v3674_v41  ;;  %1488 = vmatpush.bf16.msrb.mxu3 %v3695_v9 }
  0xbb   :  { %v750_v28 = vpop.f32.mrf.mxu2  ;;  %v695_v38 = vpop.f32.mrf.mxu0 }
  0xbc   :  { %v779_v37 = vpop.f32.mrf.mxu3  ;;  %v724_v48 = vpop.f32.mrf.mxu1  ;;  %1497 = vmatpush.bf16.msra.mxu0 %v3704_v36 }
  0xbd   :  { %v780_v47 = vadd.f32 %v779_v37, %v750_v28  ;;  %v725_v28 = vadd.f32 %v724_v48, %v695_v38  ;;  %v3119_v37 = vld [vmem:[#allocation5 + $0x158] sm:$0xf]  ;;  %v3711_v38 = vor.u32 %v3257_v54, %v2963_v50  ;;  %v3280_v48 = vld [vmem:[#allocation5 + $0xe0] sm:$0xf0]  ;;  %v3728_v54 = vor.u32 %v3277_v27, %v3039_v11  ;;  %v3065_v11 = vld [vmem:[#allocation5 + $0xfc] sm:$0xf0] }
  0xbe   :  { %926 = vmatmul.bf16.gmra.mxu0 %v3542_v34  ;;  %1334 = vmatpush.bf16.msrb.mxu1 %v3681_v55  ;;  %v3713_v62 = vor.u32 %v3280_v48, %v3051_v56  ;;  %v3095_v56 = vld [vmem:[#allocation5 + $0x128] sm:$0xf] }
  0xbf   :  { %v1032_v59 = vpack.c.bf16 %v780_v47, %v722_v43  ;;  %955 = vmatmul.bf16.gmra.mxu1 %v3544_v39  ;;  %v3296_v43 = vld [vmem:[#allocation5 + $0x160] sm:$0xf0]  ;;  %1347 = vmatpush.bf16.msrb.mxu2 %v3711_v38 }
  0xc0   :  { %984 = vmatmul.bf16.gmra.mxu2 %v3542_v34  ;;  %v2945_v34 = vld [vmem:[#allocation5 + $0xc] sm:$0xf0]  ;;  %v3709_v57 = vor.u32 %v3296_v43, %v3119_v37  ;;  %1489 = vmatpush.bf16.msrb.mxu3 %v3713_v62 }
  0xc1   :  { %1056 = vst [vmem:[#allocation2 + $0x18] sm:$0xff] %v1032_v59  ;;  %1013 = vmatmul.bf16.gmra.mxu3 %v3544_v39  ;;  %v3699_v21 = vor.u32 %v3252_v6, %v2945_v34  ;;  %v3291_v59 = vld [vmem:[#allocation5 + $0x13c] sm:$0xf]  ;;  %v3720_v6 = vor.u32 %v3293_v49, %v3107_v3  ;;  %v3254_v34 = vld [vmem:[#allocation5 + $0x10] sm:$0xf0] }
  0xc2   :  { %v3715_v2 = vor.u32 %v3291_v59, %v3101_v61  ;;  %v3290_v59 = vld [vmem:[#allocation5 + $0x130] sm:$0xf0]  ;;  %v3285_v61 = vld [vmem:[#allocation5 + $0x10c] sm:$0xf]  ;;  %v3077_v3 = vld [vmem:[#allocation5 + $0x114] sm:$0xf0] }
  0xc3   :  { %v753_v7 = vpop.f32.mrf.mxu2  ;;  %v697_v20 = vpop.f32.mrf.mxu0  ;;  %4425 = vst [vmem:[#allocation21_spill] sm:$0xff] %v3699_v21  ;;  %1335 = vmatpush.bf16.msrb.mxu1 %v3699_v21  ;;  %v3083_v49 = vld [vmem:[#allocation5 + $0x110] sm:$0xf] }
  0xc4   :  { %v782_v39 = vpop.f32.mrf.mxu3  ;;  %v726_v33 = vpop.f32.mrf.mxu1  ;;  %1498 = vmatpush.bf16.msra.mxu0 %v3715_v2  ;;  %1490 = vmatpush.bf16.msrb.mxu3 %v3728_v54 }
  0xc5   :  { %v783_v32 = vadd.f32 %v782_v39, %v753_v7  ;;  %v2951_v7 = vld [vmem:[#allocation5 + $0x8] sm:$0xf]  ;;  %v727_v37 = vadd.f32 %v726_v33, %v697_v20  ;;  %v3734_v20 = vor.u32 %v3290_v59, %v3095_v56  ;;  %v3738_v33 = vor.u32 %v3285_v61, %v3077_v3  ;;  %v3284_v56 = vld [vmem:[#allocation5 + $0x100] sm:$0xf0]  ;;  %v3279_v61 = vld [vmem:[#allocation5 + $0xdc] sm:$0xf] }
  0xc6   :  { %v3723_v25 = vor.u32 %v3254_v34, %v2951_v7  ;;  %v3053_v3 = vld [vmem:[#allocation5 + $0xe4] sm:$0xf0] }
  0xc7   :  { %v1035_v47 = vpack.c.bf16 %v783_v32, %v725_v28  ;;  %1509 = vmatpush.bf16.msra.mxu1 %v3701_v24  ;;  %v3288_v28 = vld [vmem:[#allocation5 + $0x124] sm:$0xf]  ;;  %v3089_v32 = vld [vmem:[#allocation5 + $0x12c] sm:$0xf0] }
  0xc8   :  { %v3725_v50 = vor.u32 %v3288_v28, %v3089_v32  ;;  %1348 = vmatpush.bf16.msrb.mxu2 %v3723_v25  ;;  %1593 = vmatpush.bf16.msra.mxu3 %v3612_v22 }
  0xc9   :  { %1059 = vst [vmem:[#allocation2 + $0x30] sm:$0xff] %v1035_v47 }
  0xca   :  { %1499 = vmatpush.bf16.msra.mxu0 %v3725_v50 }
  0xcb   :  { %v755_v5 = vpop.f32.mrf.mxu2  ;;  %1510 = vmatpush.bf16.msra.mxu1 %v3709_v57  ;;  %v700_v39 = vpop.f32.mrf.mxu0 }
  0xcc   :  { %v784_v13 = vpop.f32.mrf.mxu3  ;;  %v729_v47 = vpop.f32.mrf.mxu1  ;;  %1580 = vmatpush.bf16.msra.mxu2 %v3602_v8  ;;  %1594 = vmatpush.bf16.msra.mxu3 %v3628_v35 }
  0xcd   :  { %v785_v43 = vadd.f32 %v784_v13, %v755_v5  ;;  %v3287_v5 = vld [vmem:[#allocation5 + $0x118] sm:$0xf0]  ;;  %v730_v27 = vadd.f32 %v729_v47, %v700_v39  ;;  %v3755_v39 = vor.u32 %v3279_v61, %v3053_v3  ;;  %v3059_v47 = vld [vmem:[#allocation5 + $0xe0] sm:$0xf]  ;;  %v3047_v61 = vld [vmem:[#allocation5 + $0xc8] sm:$0xf] }
  0xce   :  { %931 = vmatmul.bf16.gmra.mxu0 %v3562_v18  ;;  %v3743_v34 = vor.u32 %v3287_v5, %v3083_v49  ;;  %v3281_v49 = vld [vmem:[#allocation5 + $0xe8] sm:$0xf0]  ;;  %v3278_v3 = vld [vmem:[#allocation5 + $0xd0] sm:$0xf0] }
  0xcf   :  { %v1038_v48 = vpack.c.bf16 %v785_v43, %v727_v37  ;;  %1511 = vmatpush.bf16.msra.mxu1 %v3720_v6  ;;  %1500 = vmatpush.bf16.msra.mxu0 %v3738_v33  ;;  %v3071_v43 = vld [vmem:[#allocation5 + $0xf8] sm:$0xf] }
  0xd0   :  { %960 = vmatmul.bf16.gmra.mxu1 %v3564_v19  ;;  %989 = vmatmul.bf16.gmra.mxu2 %v3562_v18  ;;  %v3282_v18 = vld [vmem:[#allocation5 + $0xf4] sm:$0xf]  ;;  %v3751_v59 = vor.u32 %v3284_v56, %v3071_v43 }
  0xd1   :  { %1062 = vst [vmem:[#allocation2 + $0x48] sm:$0xff] %v1038_v48  ;;  %1018 = vmatmul.bf16.gmra.mxu3 %v3564_v19  ;;  %v3747_v37 = vor.u32 %v3282_v18, %v3065_v11  ;;  %1581 = vmatpush.bf16.msra.mxu2 %v3609_v17  ;;  %v3276_v18 = vld [vmem:[#allocation5 + $0xc4] sm:$0xf]  ;;  %v3041_v11 = vld [vmem:[#allocation5 + $0xcc] sm:$0xf0] }
  0xd2   :  { %1595 = vmatpush.bf16.msra.mxu3 %v3640_v51 }
  0xd3   :  { %v758_v7 = vpop.f32.mrf.mxu2  ;;  %1512 = vmatpush.bf16.msra.mxu1 %v3734_v20  ;;  %v702_v13 = vpop.f32.mrf.mxu0  ;;  %1501 = vmatpush.bf16.msra.mxu0 %v3747_v37 }
  0xd4   :  { %v787_v19 = vpop.f32.mrf.mxu3  ;;  %v731_v32 = vpop.f32.mrf.mxu1 }
  0xd5   :  { %v788_v28 = vadd.f32 %v787_v19, %v758_v7  ;;  %1582 = vmatpush.bf16.msra.mxu2 %v3625_v31  ;;  %v3759_v7 = vor.u32 %v3281_v49, %v3059_v47  ;;  %v3768_v47 = vor.u32 %v3278_v3, %v3047_v61 }
  0xd6   :  { %1596 = vmatpush.bf16.msra.mxu3 %v3656_v44 }
  0xd7   :  { %v1041_v48 = vpack.c.bf16 %v788_v28, %v730_v27  ;;  %1513 = vmatpush.bf16.msra.mxu1 %v3743_v34  ;;  %4426 = vst [vmem:[#allocation22_spill] sm:$0xff] %v3759_v7  ;;  %v732_v28 = vadd.f32 %v731_v32, %v702_v13  ;;  %1502 = vmatpush.bf16.msra.mxu0 %v3755_v39 }
  0xd8   :  { %4427 = vst [vmem:[#allocation23_spill] sm:$0xff] %v3768_v47 }
  0xd9   :  { %1065 = vst [vmem:[#allocation2 + $0x60] sm:$0xff] %v1041_v48  ;;  %v3763_v48 = vor.u32 %v3276_v18, %v3041_v11  ;;  %1583 = vmatpush.bf16.msra.mxu2 %v3637_v46 }
  0xda   :  { %1597 = vmatpush.bf16.msra.mxu3 %v3661_v10 }
  0xdb   :  { %v760_v5 = vpop.f32.mrf.mxu2  ;;  %1514 = vmatpush.bf16.msra.mxu1 %v3751_v59  ;;  %v705_v27 = vpop.f32.mrf.mxu0  ;;  %1503 = vmatpush.bf16.msra.mxu0 %v3763_v48 }
  0xdc   :  { %v789_v19 = vpop.f32.mrf.mxu3  ;;  %v734_v56 = vpop.f32.mrf.mxu1 }
  0xdd   :  { %v790_v43 = vadd.f32 %v789_v19, %v760_v5  ;;  %1584 = vmatpush.bf16.msra.mxu2 %v3653_v0  ;;  %v735_v5 = vadd.f32 %v734_v56, %v705_v27 }
  0xde   :  { %936 = vmatmul.bf16.gmra.mxu0 %v3582_v52  ;;  %1598 = vmatpush.bf16.msra.mxu3 %v3674_v41 }
  0xdf   :  { %v1044_v14 = vpack.c.bf16 %v790_v43, %v732_v28  ;;  %1515 = vmatpush.bf16.msra.mxu1 %v3759_v7 }
  0xe0   :  { %965 = vmatmul.bf16.gmra.mxu1 %v3584_v53  ;;  %994 = vmatmul.bf16.gmra.mxu2 %v3582_v52 }
  0xe1   :  { %1068 = vst [vmem:[#allocation2 + $0x78] sm:$0xff] %v1044_v14  ;;  %1023 = vmatmul.bf16.gmra.mxu3 %v3584_v53  ;;  %1585 = vmatpush.bf16.msra.mxu2 %v3665_v15  ;;  %v3782_v53 = vld [vmem:[%s4367_s5] sm:$0xff]  ;;  %v3787_v14 = vld [vmem:[%s4367_s5 + $0x8] sm:$0xff] }
  0xe2   :  { %v1186_v27 = vpack.c.bf16 %v3782_v53, %v3782_v53  ;;  %1599 = vmatpush.bf16.msra.mxu3 %v3681_v55 }
  0xe3   :  { %v763_v13 = vpop.f32.mrf.mxu2  ;;  %1516 = vmatpush.bf16.msra.mxu1 %v3768_v47  ;;  %v707_v49 = vpop.f32.mrf.mxu0 }
  0xe4   :  { %v792_v32 = vpop.f32.mrf.mxu3  ;;  %v736_v11 = vpop.f32.mrf.mxu1 }
  0xe5   :  { %v793_v18 = vadd.f32 %v792_v32, %v763_v13  ;;  %1586 = vmatpush.bf16.msra.mxu2 %v3676_v42  ;;  %v737_v56 = vadd.f32 %v736_v11, %v707_v49  ;;  %v1354_v13 = vpack.c.bf16 %v3787_v14, %v3787_v14 }
  0xe6   :  { %1600 = vmatpush.bf16.msra.mxu3 %v3699_v21 }
  0xe7   :  { %v1047_v52 = vpack.c.bf16 %v793_v18, %v735_v5 }
  0xe9   :  { %1071 = vst [vmem:[#allocation2 + $0x90] sm:$0xff] %v1047_v52  ;;  %1587 = vmatpush.bf16.msra.mxu2 %v3684_v60 }
  0xeb   :  { %v765_v19 = vpop.f32.mrf.mxu2  ;;  %v806_v43 = vpop.f32.mrf.mxu0 }
  0xec   :  { %v794_v28 = vpop.f32.mrf.mxu3  ;;  %v835_v3 = vpop.f32.mrf.mxu1 }
  0xed   :  { %v795_v61 = vadd.f32 %v794_v28, %v765_v19  ;;  %v836_v11 = vadd.f32 %v835_v3, %v806_v43 }
  0xee   :  { %1323 = vmatmul.bf16.vlgmr.msrb.gmra.mxu0 %v1186_v27 }
  0xef   :  { %v1050_v32 = vpack.c.bf16 %v795_v61, %v737_v56  ;;  %1606 = vmatpush.bf16.msrb.mxu0 %v3605_v12 }
  0xf0   :  { %1336 = vmatmul.bf16.vlgmr.msrb.gmra.mxu1 %v1186_v27  ;;  %1349 = vmatmul.bf16.vlgmr.msrb.gmra.mxu2 %v1186_v27 }
  0xf1   :  { %1074 = vst [vmem:[#allocation2 + $0xa8] sm:$0xff] %v1050_v32  ;;  %1491 = vmatmul.bf16.vlgmr.msrb.gmra.mxu3 %v1354_v13  ;;  %1620 = vmatpush.bf16.msrb.mxu1 %v3607_v16 }
  0xf2   :  { %1633 = vmatpush.bf16.msrb.mxu2 %v3688_v1  ;;  %1646 = vmatpush.bf16.msrb.mxu3 %v3701_v24 }
  0xf3   :  { %v864_v49 = vpop.f32.mrf.mxu2  ;;  %v808_v18 = vpop.f32.mrf.mxu0  ;;  %1607 = vmatpush.bf16.msrb.mxu0 %v3621_v26 }
  0xf4   :  { %v893_v5 = vpop.f32.mrf.mxu3  ;;  %v837_v19 = vpop.f32.mrf.mxu1 }
  0xf5   :  { %v894_v52 = vadd.f32 %v893_v5, %v864_v49  ;;  %1621 = vmatpush.bf16.msrb.mxu1 %v3623_v30  ;;  %v838_v61 = vadd.f32 %v837_v19, %v808_v18 }
  0xf6   :  { %1634 = vmatpush.bf16.msrb.mxu2 %v3704_v36  ;;  %1647 = vmatpush.bf16.msrb.mxu3 %v3709_v57 }
  0xf7   :  { %v1030_v27 = vpack.c.bf16 %v894_v52, %v836_v11  ;;  %1608 = vmatpush.bf16.msrb.mxu0 %v3633_v40 }
  0xf9   :  { %1054 = vst [vmem:[#allocation2 + $0x8] sm:$0xff] %v1030_v27  ;;  %1622 = vmatpush.bf16.msrb.mxu1 %v3635_v45 }
  0xfa   :  { %1635 = vmatpush.bf16.msrb.mxu2 %v3715_v2  ;;  %1648 = vmatpush.bf16.msrb.mxu3 %v3720_v6 }
  0xfb   :  { %v866_v28 = vpop.f32.mrf.mxu2  ;;  %v811_v56 = vpop.f32.mrf.mxu0  ;;  %1609 = vmatpush.bf16.msrb.mxu0 %v3649_v58 }
  0xfc   :  { %v895_v43 = vpop.f32.mrf.mxu3  ;;  %v840_v32 = vpop.f32.mrf.mxu1 }
  0xfd   :  { %v896_v3 = vadd.f32 %v895_v43, %v866_v28  ;;  %1623 = vmatpush.bf16.msrb.mxu1 %v3651_v63  ;;  %v841_v52 = vadd.f32 %v840_v32, %v811_v56 }
  0xfe   :  { %1504 = vmatmul.bf16.vlgmr.msra.gmra.mxu0 %v1354_v13  ;;  %1636 = vmatpush.bf16.msrb.mxu2 %v3725_v50 }
  0xff   :  { %v1033_v49 = vpack.c.bf16 %v896_v3, %v838_v61  ;;  %1649 = vmatpush.bf16.msrb.mxu3 %v3734_v20  ;;  %1610 = vmatpush.bf16.msrb.mxu0 %v3669_v23 }
 0x100   :  { %1517 = vmatmul.bf16.vlgmr.msra.gmra.mxu1 %v1354_v13 }
 0x101   :  { %1057 = vst [vmem:[#allocation2 + $0x20] sm:$0xff] %v1033_v49  ;;  %1624 = vmatpush.bf16.msrb.mxu1 %v3671_v29 }
 0x102   :  { %1637 = vmatpush.bf16.msrb.mxu2 %v3738_v33 }
 0x103   :  { %v869_v5 = vpop.f32.mrf.mxu2  ;;  %v813_v11 = vpop.f32.mrf.mxu0  ;;  %1650 = vmatpush.bf16.msrb.mxu3 %v3743_v34  ;;  %1611 = vmatpush.bf16.msrb.mxu0 %v3693_v4 }
 0x104   :  { %v898_v18 = vpop.f32.mrf.mxu3  ;;  %v842_v27 = vpop.f32.mrf.mxu1 }
 0x105   :  { %v899_v19 = vadd.f32 %v898_v18, %v869_v5  ;;  %1625 = vmatpush.bf16.msrb.mxu1 %v3695_v9  ;;  %v843_v61 = vadd.f32 %v842_v27, %v813_v11 }
 0x106   :  { %1638 = vmatpush.bf16.msrb.mxu2 %v3747_v37 }
 0x107   :  { %v1036_v13 = vpack.c.bf16 %v899_v19, %v841_v52  ;;  %1651 = vmatpush.bf16.msrb.mxu3 %v3751_v59  ;;  %1612 = vmatpush.bf16.msrb.mxu0 %v3711_v38 }
 0x109   :  { %1060 = vst [vmem:[#allocation2 + $0x38] sm:$0xff] %v1036_v13  ;;  %1626 = vmatpush.bf16.msrb.mxu1 %v3713_v62 }
 0x10a   :  { %1639 = vmatpush.bf16.msrb.mxu2 %v3755_v39 }
 0x10b   :  { %v871_v28 = vpop.f32.mrf.mxu2  ;;  %v816_v56 = vpop.f32.mrf.mxu0  ;;  %1652 = vmatpush.bf16.msrb.mxu3 %v3759_v7  ;;  %1613 = vmatpush.bf16.msrb.mxu0 %v3723_v25 }
 0x10c   :  { %v900_v43 = vpop.f32.mrf.mxu3  ;;  %v845_v32 = vpop.f32.mrf.mxu1 }
 0x10d   :  { %v901_v3 = vadd.f32 %v900_v43, %v871_v28  ;;  %1627 = vmatpush.bf16.msrb.mxu1 %v3728_v54  ;;  %v846_v52 = vadd.f32 %v845_v32, %v816_v56 }
 0x10e   :  { %1640 = vmatpush.bf16.msrb.mxu2 %v3763_v48 }
 0x10f   :  { %1718 = vmatpush.bf16.msra.mxu0 %v3602_v8  ;;  %v1039_v49 = vpack.c.bf16 %v901_v3, %v843_v61  ;;  %1653 = vmatpush.bf16.msrb.mxu3 %v3768_v47 }
 0x111   :  { %1731 = vmatpush.bf16.msra.mxu1 %v3612_v22  ;;  %1063 = vst [vmem:[#allocation2 + $0x50] sm:$0xff] %v1039_v49 }
 0x113   :  { %1719 = vmatpush.bf16.msra.mxu0 %v3609_v17  ;;  %v874_v5 = vpop.f32.mrf.mxu2  ;;  %v818_v11 = vpop.f32.mrf.mxu0 }
 0x114   :  { %v903_v18 = vpop.f32.mrf.mxu3  ;;  %v847_v27 = vpop.f32.mrf.mxu1 }
 0x115   :  { %1732 = vmatpush.bf16.msra.mxu1 %v3628_v35  ;;  %v904_v19 = vadd.f32 %v903_v18, %v874_v5  ;;  %v848_v3 = vadd.f32 %v847_v27, %v818_v11 }
 0x117   :  { %1720 = vmatpush.bf16.msra.mxu0 %v3625_v31  ;;  %v1042_v13 = vpack.c.bf16 %v904_v19, %v846_v52 }
 0x119   :  { %1733 = vmatpush.bf16.msra.mxu1 %v3640_v51  ;;  %1066 = vst [vmem:[#allocation2 + $0x68] sm:$0xff] %v1042_v13 }
 0x11b   :  { %1721 = vmatpush.bf16.msra.mxu0 %v3637_v46  ;;  %v876_v28 = vpop.f32.mrf.mxu2  ;;  %v821_v61 = vpop.f32.mrf.mxu0 }
 0x11c   :  { %v905_v43 = vpop.f32.mrf.mxu3  ;;  %v850_v47 = vpop.f32.mrf.mxu1 }
 0x11d   :  { %1734 = vmatpush.bf16.msra.mxu1 %v3656_v44  ;;  %v906_v49 = vadd.f32 %v905_v43, %v876_v28  ;;  %v851_v52 = vadd.f32 %v850_v47, %v821_v61 }
 0x11f   :  { %1722 = vmatpush.bf16.msra.mxu0 %v3653_v0  ;;  %v1045_v56 = vpack.c.bf16 %v906_v49, %v848_v3 }
 0x121   :  { %1735 = vmatpush.bf16.msra.mxu1 %v3661_v10  ;;  %1069 = vst [vmem:[#allocation2 + $0x80] sm:$0xff] %v1045_v56 }
 0x123   :  { %1723 = vmatpush.bf16.msra.mxu0 %v3665_v15  ;;  %v879_v32 = vpop.f32.mrf.mxu2  ;;  %v823_v18 = vpop.f32.mrf.mxu0 }
 0x124   :  { %v908_v5 = vpop.f32.mrf.mxu3  ;;  %v852_v13 = vpop.f32.mrf.mxu1 }
 0x125   :  { %1736 = vmatpush.bf16.msra.mxu1 %v3674_v41  ;;  %v909_v19 = vadd.f32 %v908_v5, %v879_v32  ;;  %v853_v3 = vadd.f32 %v852_v13, %v823_v18 }
 0x127   :  { %1724 = vmatpush.bf16.msra.mxu0 %v3676_v42  ;;  %v1048_v11 = vpack.c.bf16 %v909_v19, %v851_v52 }
 0x129   :  { %1737 = vmatpush.bf16.msra.mxu1 %v3681_v55  ;;  %1072 = vst [vmem:[#allocation2 + $0x98] sm:$0xff] %v1048_v11 }
 0x12b   :  { %1725 = vmatpush.bf16.msra.mxu0 %v3684_v60  ;;  %v881_v27 = vpop.f32.mrf.mxu2  ;;  %v922_v43 = vpop.f32.mrf.mxu0 }
 0x12c   :  { %v910_v28 = vpop.f32.mrf.mxu3  ;;  %v951_v56 = vpop.f32.mrf.mxu1 }
 0x12d   :  { %1738 = vmatpush.bf16.msra.mxu1 %v3699_v21  ;;  %v911_v49 = vadd.f32 %v910_v28, %v881_v27  ;;  %v952_v5 = vadd.f32 %v951_v56, %v922_v43 }
 0x12f   :  { %v1051_v41 = vpack.c.bf16 %v911_v49, %v853_v3 }
 0x131   :  { %1075 = vst [vmem:[#allocation2 + $0xb0] sm:$0xff] %v1051_v41 }
 0x133   :  { %v980_v47 = vpop.f32.mrf.mxu2  ;;  %v924_v32 = vpop.f32.mrf.mxu0 }
 0x134   :  { %v1009_v61 = vpop.f32.mrf.mxu3  ;;  %v953_v19 = vpop.f32.mrf.mxu1 }
 0x135   :  { %v1010_v52 = vadd.f32 %v1009_v61, %v980_v47  ;;  %v954_v15 = vadd.f32 %v953_v19, %v924_v32 }
 0x137   :  { %v1031_v55 = vpack.c.bf16 %v1010_v52, %v952_v5 }
 0x139   :  { %1055 = vst [vmem:[#allocation2 + $0x10] sm:$0xff] %v1031_v55 }
 0x13b   :  { %v982_v11 = vpop.f32.mrf.mxu2  ;;  %v927_v42 = vpop.f32.mrf.mxu0 }
 0x13c   :  { %v1011_v60 = vpop.f32.mrf.mxu3  ;;  %v956_v10 = vpop.f32.mrf.mxu1 }
 0x13d   :  { %v1012_v21 = vadd.f32 %v1011_v60, %v982_v11  ;;  %v957_v41 = vadd.f32 %v956_v10, %v927_v42 }
 0x13f   :  { %v1034_v0 = vpack.c.bf16 %v1012_v21, %v954_v15 }
 0x141   :  { %1058 = vst [vmem:[#allocation2 + $0x28] sm:$0xff] %v1034_v0 }
 0x143   :  { %v985_v18 = vpop.f32.mrf.mxu2  ;;  %v929_v27 = vpop.f32.mrf.mxu0 }
 0x144   :  { %v1014_v13 = vpop.f32.mrf.mxu3  ;;  %v958_v3 = vpop.f32.mrf.mxu1 }
 0x145   :  { %v1015_v28 = vadd.f32 %v1014_v13, %v985_v18  ;;  %v959_v55 = vadd.f32 %v958_v3, %v929_v27 }
 0x147   :  { %v1037_v49 = vpack.c.bf16 %v1015_v28, %v957_v41 }
 0x149   :  { %1061 = vst [vmem:[#allocation2 + $0x40] sm:$0xff] %v1037_v49 }
 0x14b   :  { %v987_v43 = vpop.f32.mrf.mxu2  ;;  %v932_v47 = vpop.f32.mrf.mxu0 }
 0x14c   :  { %v1016_v56 = vpop.f32.mrf.mxu3 }
 0x14d   :  { %v1017_v61 = vadd.f32 %v1016_v56, %v987_v43  ;;  %v961_v5 = vpop.f32.mrf.mxu1  ;;  %v1142_v56 = vld [vmem:[%s4365_s3] sm:$0x7] }
 0x14e   :  { %v962_v0 = vadd.f32 %v961_v5, %v932_v47 }
 0x14f   :  { %v1040_v52 = vpack.c.bf16 %v1017_v61, %v959_v55 }
 0x151   :  { %1064 = vst [vmem:[#allocation2 + $0x58] sm:$0xff] %v1040_v52  ;;  %v3849_v52 = vperm.slane %v1142_v56, 0 }
 0x153   :  { %v990_v60 = vpop.f32.mrf.mxu2  ;;  %v934_v15 = vpop.f32.mrf.mxu0  ;;  %4428 = vst [vmem:[#allocation24_spill] sm:$0xff] %v3849_v52 }
 0x154   :  { %v1019_v32 = vpop.f32.mrf.mxu3 }
 0x155   :  { %v1020_v21 = vadd.f32 %v1019_v32, %v990_v60  ;;  %v963_v19 = vpop.f32.mrf.mxu1  ;;  %v4429_v60 = vld [vmem:[#allocation15_spill] sm:$0xff] }
 0x156   :  { %v964_v13 = vadd.f32 %v963_v19, %v934_v15  ;;  %v1174_v32 = vunpack.c.l.bf16 %v4429_v60  ;;  %v3852_v15 = vperm.slane %v1142_v56, 1 }
 0x157   :  { %v1043_v11 = vpack.c.bf16 %v1020_v21, %v962_v0  ;;  %v1175_v0 = vunpack.c.h.bf16 %v4429_v60 }
 0x158   :  { %4430 = vst [vmem:[#allocation15_spill] sm:$0xff] %v3852_v15  ;;  %v1177_v19 = vadd.f32 %v1174_v32, %v3849_v52 }
 0x159   :  { %1067 = vst [vmem:[#allocation2 + $0x70] sm:$0xff] %v1043_v11 }
 0x15b   :  { %v992_v10 = vpop.f32.mrf.mxu2  ;;  %v937_v18 = vpop.f32.mrf.mxu0 }
 0x15c   :  { %v1021_v42 = vpop.f32.mrf.mxu3 }
 0x15d   :  { %v1022_v41 = vadd.f32 %v1021_v42, %v992_v10  ;;  %v966_v28 = vpop.f32.mrf.mxu1  ;;  %v1178_v42 = vadd.f32 %v1175_v0, %v3852_v15  ;;  %v1170_v0 = vld [vmem:[#allocation2 + $0x8] sm:$0xf] }
 0x15e   :  { %v967_v47 = vadd.f32 %v966_v28, %v937_v18 }
 0x15f   :  { %v1046_v49 = vpack.c.bf16 %v1022_v41, %v964_v13 }
 0x161   :  { %1070 = vst [vmem:[#allocation2 + $0x88] sm:$0xff] %v1046_v49 }
 0x163   :  { %v995_v27 = vpop.f32.mrf.mxu2  ;;  %v939_v43 = vpop.f32.mrf.mxu0 }
 0x164   :  { %v1024_v3 = vpop.f32.mrf.mxu3 }
 0x165   :  { %v1025_v55 = vadd.f32 %v1024_v3, %v995_v27  ;;  %v968_v61 = vpop.f32.mrf.mxu1 }
 0x166   :  { %v969_v18 = vadd.f32 %v968_v61, %v939_v43  ;;  %v1150_v61 = vld [vmem:[%s4365_s3 + $0x3] sm:$0x7] }
 0x167   :  { %v1049_v5 = vpack.c.bf16 %v1025_v55, %v967_v47 }
 0x169   :  { %1073 = vst [vmem:[#allocation2 + $0xa0] sm:$0xff] %v1049_v5  ;;  %v3860_v5 = vld [vmem:[%s4366_s4] ss:$0 sm:$0xff] }
 0x16a   :  { %4431 = vst [vmem:[#allocation25_spill] sm:$0xff] %v3860_v5 }
 0x16b   :  { %v997_v21 = vpop.f32.mrf.mxu2  ;;  %v1324_v10 = vpop.f32.mrf.mxu0 }
 0x16c   :  { %v1026_v11 = vpop.f32.mrf.mxu3  ;;  %v1522_v41 = vadd.f32 %v1324_v10, %v1177_v19  ;;  %v1176_v10 = vunpack.c.l.bf16 %v1170_v0 }
 0x16d   :  { %v1027_v13 = vadd.f32 %v1026_v11, %v997_v21  ;;  %v1337_v28 = vpop.f32.mrf.mxu1  ;;  %v3865_v11 = vperm.slane %v1142_v56, 2 }
 0x16e   :  { %v1527_v49 = vadd.f32 %v1337_v28, %v1178_v42  ;;  %v1523_v3 = vmul.f32 0.5, %v1522_v41  ;;  %v3870_v28 = vperm.slane %v1150_v61, 1 }
 0x16f   :  { %v1052_v27 = vpack.c.bf16 %v1027_v13, %v969_v18  ;;  %v3868_v13 = vperm.slane %v1150_v61, 0  ;;  %v1179_v56 = vadd.f32 %v1176_v10, %v3865_v11 }
 0x170   :  { %v1528_v47 = vmul.f32 0.5, %v1527_v49  ;;  %3308 = vtanh.f32 %v1523_v3  ;;  %4433 = vst [vmem:[#allocation27_spill] sm:$0xff] %v3870_v28 }
 0x171   :  { %1076 = vst [vmem:[#allocation2 + $0xb8] sm:$0xff] %v1052_v27 }
 0x172   :  { %3310 = vtanh.f32 %v1528_v47  ;;  %4432 = vst [vmem:[#allocation26_spill] sm:$0xff] %v3868_v13 }
 0x173   :  { %v1350_v55 = vpop.f32.mrf.mxu2  ;;  %v1326_v32 = vpop.f32.mrf.mxu0 }
 0x174   :  { %v1492_v60 = vpop.f32.mrf.mxu3  ;;  %v1532_v42 = vadd.f32 %v3860_v5, %v1350_v55 }
 0x175   :  { %v1339_v43 = vpop.f32.mrf.mxu1 }
 0x176   :  { %v3309_v21 = vpop.eup %3308 }
 0x177   :  { %v1525_v19 = vmul.f32 0.5, %v3309_v21 }
 0x178   :  { %v1172_v18 = vld [vmem:[#allocation2 + $0xb4] sm:$0xff]  ;;  %v3311_v27 = vpop.eup %3310 }
 0x179   :  { %v1180_v41 = vunpack.c.l.bf16 %v1172_v18  ;;  %v1181_v49 = vunpack.c.h.bf16 %v1172_v18  ;;  %v1526_v3 = vadd.f32 0.5, %v1525_v19  ;;  %v1530_v55 = vmul.f32 0.5, %v3311_v27  ;;  %v3878_v19 = vld [vmem:[%s4366_s4 + $0x1] ss:$0 sm:$0xff] }
 0x17b   :  { %v1183_v47 = vadd.f32 %v1180_v41, %v3868_v13  ;;  %v1352_v32 = vpop.f32.mrf.mxu2  ;;  %v1184_v43 = vadd.f32 %v1181_v49, %v3870_v28  ;;  %v1533_v21 = vmul.f32 %v1532_v42, %v1526_v3  ;;  %v1505_v15 = vpop.f32.mrf.mxu0  ;;  %v1531_v51 = vadd.f32 0.5, %v1530_v55  ;;  %v1173_v41 = vld [vmem:[#allocation2 + $0xbc] sm:$0xf] }
 0x17c   :  { %v1494_v0 = vpop.f32.mrf.mxu3 }
 0x17d   :  { %v1540_v5 = vadd.f32 %v1492_v60, %v1183_v47  ;;  %v1545_v52 = vadd.f32 %v1505_v15, %v1184_v43  ;;  %v1518_v44 = vpop.f32.mrf.mxu1  ;;  %v1534_v46 = vadd.f32 %v1533_v21, %v1179_v56  ;;  %v1536_v42 = vsub.f32 1.0, %v1531_v51 }
 0x17e   :  { %v1538_v15 = vmul.f32 %v1531_v51, %v3782_v53  ;;  %v3884_v43 = vperm.slane %v1150_v61, 2 }
 0x17f   :  { %v1541_v7 = vmul.f32 0.5, %v1540_v5  ;;  %3312 = vtanh.f32 %v1534_v46  ;;  %v1546_v18 = vmul.f32 0.5, %v1545_v52  ;;  %v1182_v46 = vunpack.c.l.bf16 %v1173_v41 }
 0x180   :  { %v1550_v52 = vadd.f32 %v3878_v19, %v1518_v44 }
 0x181   :  { %3314 = vtanh.f32 %v1541_v7  ;;  %v1185_v51 = vadd.f32 %v1182_v46, %v3884_v43  ;;  %v4441_v46 = vld [vmem:[#allocation16_spill] sm:$0xff] }
 0x182   :  { %3316 = vtanh.f32 %v1546_v18 }
 0x183   :  { %v1507_v10 = vpop.f32.mrf.mxu0 }
 0x185   :  { %v1520_v49 = vpop.f32.mrf.mxu1  ;;  %v3313_v27 = vpop.eup %3312 }
 0x186   :  { %v1537_v3 = vmul.f32 %v3313_v27, %v1536_v42  ;;  %v4435_v49 = vld [vmem:[#allocation22_spill] sm:$0xff] }
 0x187   :  { %v3315_v60 = vpop.eup %3314  ;;  %v4436_v27 = vld [vmem:[#allocation10_spill] sm:$0xff] }
 0x188   :  { %v1543_v5 = vmul.f32 0.5, %v3315_v60  ;;  %v3882_v7 = vadd.f32 %v1538_v15, %v1537_v3  ;;  %v3317_v47 = vpop.eup %3316  ;;  %v4437_v60 = vld [vmem:[#allocation13_spill] sm:$0xff]  ;;  %v4438_v15 = vld [vmem:[#allocation23_spill] sm:$0xff]  ;;  %v4439_v3 = vld [vmem:[#allocation12_spill] sm:$0xff] }
 0x189   :  { %v1548_v21 = vmul.f32 0.5, %v3317_v47  ;;  %v4443_v47 = vld [vmem:[#allocation18_spill] sm:$0xff] }
 0x18a   :  { %v1544_v32 = vadd.f32 0.5, %v1543_v5  ;;  %1558 = vst [vmem:[%s4368_s6] sm:$0xff] %v3882_v7  ;;  %v1579_v56 = vpack.c.bf16 %v3882_v7, %v3882_v7  ;;  %v4440_v5 = vld [vmem:[#allocation14_spill] sm:$0xff] }
 0x18b   :  { %v1549_v61 = vadd.f32 0.5, %v1548_v21 }
 0x18c   :  { %v1551_v53 = vmul.f32 %v1550_v52, %v1544_v32  ;;  %1588 = vmatmul.bf16.vlgmr.msra.gmra.mxu2 %v1579_v56  ;;  %1601 = vmatmul.bf16.vlgmr.msra.gmra.mxu3 %v1579_v56  ;;  %v4442_v52 = vld [vmem:[#allocation17_spill] sm:$0xff]  ;;  %v4444_v32 = vld [vmem:[#allocation19_spill] sm:$0xff] }
 0x18d   :  { %1614 = vmatmul.bf16.vlgmr.msrb.gmra.mxu0 %v1579_v56  ;;  %1744 = vmatpush.bf16.msra.mxu2 %v3605_v12  ;;  %v1554_v0 = vsub.f32 1.0, %v1549_v61  ;;  %v1556_v18 = vmul.f32 %v3787_v14, %v1549_v61  ;;  %v4434_v14 = vld [vmem:[#allocation11_spill] sm:$0xff]  ;;  %v4445_v56 = vld [vmem:[#allocation20_spill] sm:$0xff] }
 0x18e   :  { %v1552_v44 = vadd.f32 %v1551_v53, %v1185_v51  ;;  %1758 = vmatpush.bf16.msra.mxu3 %v3607_v16  ;;  %1771 = vmatpush.bf16.msrb.mxu0 %v3688_v1  ;;  %v4446_v51 = vld [vmem:[#allocation21_spill] sm:$0xff]  ;;  %v1562_v53 = vld [vmem:[#allocation2 + $0x18] sm:$0xff] }
 0x18f   :  { %v1568_v61 = vunpack.c.h.bf16 %v1562_v53 }
 0x190   :  { %3318 = vtanh.f32 %v1552_v44  ;;  %v1567_v44 = vunpack.c.l.bf16 %v1562_v53 }
 0x191   :  { %1745 = vmatpush.bf16.msra.mxu2 %v3621_v26 }
 0x192   :  { %1759 = vmatpush.bf16.msra.mxu3 %v3623_v30  ;;  %1772 = vmatpush.bf16.msrb.mxu0 %v3704_v36 }
 0x195   :  { %1746 = vmatpush.bf16.msra.mxu2 %v3633_v40 }
 0x196   :  { %v3319_v55 = vpop.eup %3318  ;;  %1760 = vmatpush.bf16.msra.mxu3 %v3635_v45  ;;  %1773 = vmatpush.bf16.msrb.mxu0 %v3715_v2 }
 0x197   :  { %v1555_v10 = vmul.f32 %v3319_v55, %v1554_v0  ;;  %v4447_v0 = vld [vmem:[#allocation24_spill] sm:$0xff] }
 0x198   :  { %v1570_v55 = vadd.f32 %v1567_v44, %v4447_v0 }
 0x199   :  { %v3903_v42 = vadd.f32 %v1556_v18, %v1555_v10  ;;  %1747 = vmatpush.bf16.msra.mxu2 %v3649_v58  ;;  %v4448_v18 = vld [vmem:[#allocation15_spill] sm:$0xff] }
 0x19a   :  { %1761 = vmatpush.bf16.msra.mxu3 %v3651_v63  ;;  %1774 = vmatpush.bf16.msrb.mxu0 %v3725_v50  ;;  %v1571_v10 = vadd.f32 %v1568_v61, %v4448_v18 }
 0x19b   :  { %3133 = vst [vmem:[%s4368_s6 + $0x78] sm:$0xff] %v3903_v42  ;;  %v1619_v41 = vpack.c.bf16 %v3903_v42, %v3903_v42 }
 0x19d   :  { %1628 = vmatmul.bf16.vlgmr.msrb.gmra.mxu1 %v1619_v41  ;;  %1641 = vmatmul.bf16.vlgmr.msrb.gmra.mxu2 %v1619_v41 }
 0x19e   :  { %1654 = vmatmul.bf16.vlgmr.msrb.gmra.mxu3 %v1619_v41  ;;  %1748 = vmatpush.bf16.msra.mxu2 %v3669_v23 }
 0x19f   :  { %1784 = vmatpush.bf16.msrb.mxu1 %v3701_v24  ;;  %1762 = vmatpush.bf16.msra.mxu3 %v3671_v29 }
 0x1a0   :  { %1775 = vmatpush.bf16.msrb.mxu0 %v3738_v33 }
 0x1a2   :  { %1749 = vmatpush.bf16.msra.mxu2 %v3693_v4 }
 0x1a3   :  { %1785 = vmatpush.bf16.msrb.mxu1 %v3709_v57  ;;  %1763 = vmatpush.bf16.msra.mxu3 %v3695_v9 }
 0x1a4   :  { %1776 = vmatpush.bf16.msrb.mxu0 %v3747_v37 }
 0x1a6   :  { %1750 = vmatpush.bf16.msra.mxu2 %v3711_v38 }
 0x1a7   :  { %1786 = vmatpush.bf16.msrb.mxu1 %v3720_v6  ;;  %1764 = vmatpush.bf16.msra.mxu3 %v3713_v62 }
 0x1a8   :  { %1777 = vmatpush.bf16.msrb.mxu0 %v3755_v39 }
 0x1aa   :  { %1751 = vmatpush.bf16.msra.mxu2 %v3723_v25 }
 0x1ab   :  { %1787 = vmatpush.bf16.msrb.mxu1 %v3734_v20  ;;  %1765 = vmatpush.bf16.msra.mxu3 %v3728_v54 }
 0x1ac   :  { %1778 = vmatpush.bf16.msrb.mxu0 %v3763_v48 }
 0x1ae   :  { %1856 = vmatpush.bf16.msrb.mxu2 %v3602_v8 }
 0x1af   :  { %1869 = vmatpush.bf16.msrb.mxu3 %v3612_v22  ;;  %1788 = vmatpush.bf16.msrb.mxu1 %v3743_v34 }
 0x1b2   :  { %1857 = vmatpush.bf16.msrb.mxu2 %v3609_v17 }
 0x1b3   :  { %1870 = vmatpush.bf16.msrb.mxu3 %v3628_v35  ;;  %1789 = vmatpush.bf16.msrb.mxu1 %v3751_v59 }
 0x1b6   :  { %1858 = vmatpush.bf16.msrb.mxu2 %v3625_v31 }
 0x1b7   :  { %1871 = vmatpush.bf16.msrb.mxu3 %v4434_v14  ;;  %1790 = vmatpush.bf16.msrb.mxu1 %v4435_v49  ;;  %v1563_v14 = vld [vmem:[#allocation2 + $0x20] sm:$0xf] }
 0x1b8   :  { %v1569_v18 = vunpack.c.l.bf16 %v1563_v14  ;;  %v1566_v14 = vld [vmem:[#allocation2 + $0xa4] sm:$0xf] }
 0x1ba   :  { %1859 = vmatpush.bf16.msrb.mxu2 %v4436_v27 }
 0x1bb   :  { %1872 = vmatpush.bf16.msrb.mxu3 %v4437_v60  ;;  %1791 = vmatpush.bf16.msrb.mxu1 %v4438_v15 }
 0x1be   :  { %1860 = vmatpush.bf16.msrb.mxu2 %v4439_v3  ;;  %v1565_v3 = vld [vmem:[#allocation2 + $0x9c] sm:$0xff] }
 0x1bf   :  { %1873 = vmatpush.bf16.msrb.mxu3 %v4440_v5  ;;  %v1574_v61 = vunpack.c.h.bf16 %v1565_v3 }
 0x1c2   :  { %1861 = vmatpush.bf16.msrb.mxu2 %v4441_v46 }
 0x1c3   :  { %1874 = vmatpush.bf16.msrb.mxu3 %v4442_v52 }
 0x1c6   :  { %1862 = vmatpush.bf16.msrb.mxu2 %v4443_v47 }
 0x1c7   :  { %1875 = vmatpush.bf16.msrb.mxu3 %v4444_v32 }
 0x1ca   :  { %1863 = vmatpush.bf16.msrb.mxu2 %v4445_v56  ;;  %v1573_v56 = vunpack.c.l.bf16 %v1565_v3 }
 0x1cb   :  { %1876 = vmatpush.bf16.msrb.mxu3 %v4446_v51 }
 0x1cc   :  { %v1576_v53 = vadd.f32 %v1573_v56, %v3868_v13 }
 0x20a   :  { %v1615_v21 = vpop.f32.mrf.mxu0 }
 0x20f   :  { %v1589_v41 = vpop.f32.mrf.mxu2  ;;  %v1602_v46 = vpop.f32.mrf.mxu3 }
 0x210   :  { %v1659_v5 = vadd.f32 %v1589_v41, %v1570_v55  ;;  %v1664_v52 = vadd.f32 %v1602_v46, %v1571_v10  ;;  %v4449_v10 = vld [vmem:[#allocation25_spill] sm:$0xff] }
 0x212   :  { %v1660_v47 = vmul.f32 0.5, %v1659_v5  ;;  %v1617_v60 = vpop.f32.mrf.mxu0  ;;  %v1665_v32 = vmul.f32 0.5, %v1664_v52  ;;  %v1669_v5 = vadd.f32 %v4449_v10, %v1615_v21  ;;  %v1577_v52 = vadd.f32 %v1574_v61, %v3870_v28 }
 0x214   :  { %3320 = vtanh.f32 %v1660_v47  ;;  %v1572_v47 = vadd.f32 %v1569_v18, %v3865_v11 }
 0x215   :  { %3322 = vtanh.f32 %v1665_v32 }
 0x217   :  { %v1591_v51 = vpop.f32.mrf.mxu2  ;;  %v1604_v27 = vpop.f32.mrf.mxu3 }
 0x21a   :  { %v1629_v15 = vpop.f32.mrf.mxu1  ;;  %v3321_v44 = vpop.eup %3320 }
 0x21b   :  { %v1677_v0 = vadd.f32 %v1629_v15, %v1576_v53  ;;  %v1662_v31 = vmul.f32 0.5, %v3321_v44  ;;  %v3323_v46 = vpop.eup %3322 }
 0x21c   :  { %v1667_v51 = vmul.f32 0.5, %v3323_v46 }
 0x21d   :  { %v1678_v55 = vmul.f32 0.5, %v1677_v0  ;;  %v1663_v60 = vadd.f32 0.5, %v1662_v31  ;;  %v1575_v31 = vunpack.c.l.bf16 %v1566_v14 }
 0x21e   :  { %v1668_v53 = vadd.f32 0.5, %v1667_v51 }
 0x21f   :  { %3324 = vtanh.f32 %v1678_v55  ;;  %v1670_v27 = vmul.f32 %v1669_v5, %v1663_v60  ;;  %v1578_v46 = vadd.f32 %v1575_v31, %v3884_v43  ;;  %v4451_v31 = vld [vmem:[#allocation23_spill] sm:$0xff] }
 0x220   :  { %v1642_v32 = vpop.f32.mrf.mxu2  ;;  %v1673_v18 = vsub.f32 1.0, %v1668_v53 }
 0x221   :  { %v1682_v56 = vadd.f32 %v1642_v32, %v1577_v52  ;;  %v1655_v41 = vpop.f32.mrf.mxu3  ;;  %v1671_v13 = vadd.f32 %v1670_v27, %v1572_v47  ;;  %v1675_v32 = vmul.f32 %v1668_v53, %v3882_v7 }
 0x222   :  { %v1631_v15 = vpop.f32.mrf.mxu1  ;;  %v1687_v61 = vadd.f32 %v3878_v19, %v1655_v41 }
 0x223   :  { %v1683_v3 = vmul.f32 0.5, %v1682_v56  ;;  %3326 = vtanh.f32 %v1671_v13 }
 0x225   :  { %v3325_v0 = vpop.eup %3324  ;;  %3328 = vtanh.f32 %v1683_v3 }
 0x226   :  { %v1680_v21 = vmul.f32 0.5, %v3325_v0 }
 0x228   :  { %v1681_v44 = vadd.f32 0.5, %v1680_v21  ;;  %v1644_v55 = vpop.f32.mrf.mxu2 }
 0x229   :  { %v1657_v5 = vpop.f32.mrf.mxu3  ;;  %v3327_v60 = vpop.eup %3326  ;;  %v4454_v55 = vld [vmem:[#allocation13_spill] sm:$0xff] }
 0x22a   :  { %v1688_v52 = vmul.f32 %v1687_v61, %v1681_v44  ;;  %v1674_v27 = vmul.f32 %v3327_v60, %v1673_v18  ;;  %v4452_v44 = vld [vmem:[#allocation11_spill] sm:$0xff]  ;;  %v4453_v61 = vld [vmem:[#allocation10_spill] sm:$0xff]  ;;  %v4455_v18 = vld [vmem:[#allocation12_spill] sm:$0xff] }
 0x22b   :  { %v3329_v47 = vpop.eup %3328  ;;  %v4456_v5 = vld [vmem:[#allocation14_spill] sm:$0xff]  ;;  %v4457_v60 = vld [vmem:[#allocation16_spill] sm:$0xff] }
 0x22c   :  { %v1685_v13 = vmul.f32 0.5, %v3329_v47  ;;  %v1689_v56 = vadd.f32 %v1688_v52, %v1578_v46  ;;  %v3959_v51 = vadd.f32 %v1675_v32, %v1674_v27  ;;  %v4458_v46 = vld [vmem:[#allocation17_spill] sm:$0xff]  ;;  %v4459_v52 = vld [vmem:[#allocation18_spill] sm:$0xff]  ;;  %v4460_v47 = vld [vmem:[#allocation19_spill] sm:$0xff] }
 0x22d   :  { %v4461_v27 = vld [vmem:[#allocation20_spill] sm:$0xff]  ;;  %v4462_v32 = vld [vmem:[#allocation21_spill] sm:$0xff] }
 0x22e   :  { %v1686_v15 = vadd.f32 0.5, %v1685_v13  ;;  %3330 = vtanh.f32 %v1689_v56  ;;  %3134 = vst [vmem:[%s4368_s6 + $0x10] sm:$0xff] %v3959_v51  ;;  %v1717_v41 = vpack.c.bf16 %v3959_v51, %v3959_v51  ;;  %v1700_v13 = vld [vmem:[#allocation2 + $0x30] sm:$0xff] }
 0x22f   :  { %v1705_v56 = vunpack.c.l.bf16 %v1700_v13 }
 0x230   :  { %v1691_v3 = vsub.f32 1.0, %v1686_v15  ;;  %1726 = vmatmul.bf16.vlgmr.msra.gmra.mxu0 %v1717_v41  ;;  %1739 = vmatmul.bf16.vlgmr.msra.gmra.mxu1 %v1717_v41  ;;  %v1693_v14 = vmul.f32 %v1686_v15, %v3903_v42  ;;  %v4450_v42 = vld [vmem:[#allocation9_spill] sm:$0xff]  ;;  %v1706_v15 = vunpack.c.h.bf16 %v1700_v13 }
 0x231   :  { %1752 = vmatmul.bf16.vlgmr.msra.gmra.mxu2 %v1717_v41  ;;  %1882 = vmatpush.bf16.msra.mxu0 %v3605_v12  ;;  %v4463_v41 = vld [vmem:[#allocation24_spill] sm:$0xff] }
 0x232   :  { %1896 = vmatpush.bf16.msra.mxu1 %v3607_v16  ;;  %1909 = vmatpush.bf16.msra.mxu2 %v3688_v1 }
 0x234   :  { %v3331_v7 = vpop.eup %3330 }
 0x235   :  { %v1692_v0 = vmul.f32 %v3331_v7, %v1691_v3  ;;  %1883 = vmatpush.bf16.msra.mxu0 %v3621_v26  ;;  %v1708_v3 = vadd.f32 %v1705_v56, %v4463_v41  ;;  %v4464_v7 = vld [vmem:[#allocation15_spill] sm:$0xff] }
 0x236   :  { %1897 = vmatpush.bf16.msra.mxu1 %v3623_v30  ;;  %1910 = vmatpush.bf16.msra.mxu2 %v3704_v36 }
 0x237   :  { %v3972_v53 = vadd.f32 %v1693_v14, %v1692_v0  ;;  %v1709_v14 = vadd.f32 %v1706_v15, %v4464_v7 }
 0x239   :  { %3135 = vst [vmem:[%s4368_s6 + $0x68] sm:$0xff] %v3972_v53  ;;  %v1757_v21 = vpack.c.bf16 %v3972_v53, %v3972_v53  ;;  %1884 = vmatpush.bf16.msra.mxu0 %v3633_v40 }
 0x23a   :  { %1898 = vmatpush.bf16.msra.mxu1 %v3635_v45  ;;  %1911 = vmatpush.bf16.msra.mxu2 %v3715_v2 }
 0x23b   :  { %1766 = vmatmul.bf16.vlgmr.msra.gmra.mxu3 %v1757_v21 }
 0x23c   :  { %1922 = vmatpush.bf16.msra.mxu3 %v3701_v24 }
 0x23d   :  { %1885 = vmatpush.bf16.msra.mxu0 %v3649_v58 }
 0x23e   :  { %1899 = vmatpush.bf16.msra.mxu1 %v3651_v63  ;;  %1912 = vmatpush.bf16.msra.mxu2 %v3725_v50 }
 0x240   :  { %1923 = vmatpush.bf16.msra.mxu3 %v3709_v57  ;;  %1779 = vmatmul.bf16.vlgmr.msrb.gmra.mxu0 %v1757_v21 }
 0x241   :  { %1792 = vmatmul.bf16.vlgmr.msrb.gmra.mxu1 %v1757_v21  ;;  %1886 = vmatpush.bf16.msra.mxu0 %v3669_v23 }
 0x242   :  { %1900 = vmatpush.bf16.msra.mxu1 %v3671_v29  ;;  %1913 = vmatpush.bf16.msra.mxu2 %v3738_v33 }
 0x244   :  { %1924 = vmatpush.bf16.msra.mxu3 %v3720_v6 }
 0x245   :  { %1887 = vmatpush.bf16.msra.mxu0 %v3693_v4 }
 0x246   :  { %1901 = vmatpush.bf16.msra.mxu1 %v3695_v9  ;;  %1914 = vmatpush.bf16.msra.mxu2 %v3747_v37 }
 0x248   :  { %1925 = vmatpush.bf16.msra.mxu3 %v3734_v20 }
 0x249   :  { %1888 = vmatpush.bf16.msra.mxu0 %v3711_v38 }
 0x24a   :  { %1902 = vmatpush.bf16.msra.mxu1 %v3713_v62  ;;  %1915 = vmatpush.bf16.msra.mxu2 %v3755_v39 }
 0x24c   :  { %1926 = vmatpush.bf16.msra.mxu3 %v3743_v34 }
 0x24d   :  { %1889 = vmatpush.bf16.msra.mxu0 %v3723_v25 }
 0x24e   :  { %1903 = vmatpush.bf16.msra.mxu1 %v3728_v54  ;;  %1916 = vmatpush.bf16.msra.mxu2 %v3763_v48 }
 0x250   :  { %1927 = vmatpush.bf16.msra.mxu3 %v3751_v59 }
 0x251   :  { %1992 = vmatpush.bf16.msrb.mxu0 %v3602_v8 }
 0x252   :  { %2005 = vmatpush.bf16.msrb.mxu1 %v3612_v22 }
 0x254   :  { %1928 = vmatpush.bf16.msra.mxu3 %v4435_v49 }
 0x255   :  { %1993 = vmatpush.bf16.msrb.mxu0 %v3609_v17 }
 0x256   :  { %2006 = vmatpush.bf16.msrb.mxu1 %v3628_v35 }
 0x258   :  { %1929 = vmatpush.bf16.msra.mxu3 %v4451_v31  ;;  %v1703_v31 = vld [vmem:[#allocation2 + $0x84] sm:$0xff] }
 0x259   :  { %1994 = vmatpush.bf16.msrb.mxu0 %v4450_v42  ;;  %v1712_v13 = vunpack.c.h.bf16 %v1703_v31 }
 0x25a   :  { %2007 = vmatpush.bf16.msrb.mxu1 %v4452_v44 }
 0x25d   :  { %1995 = vmatpush.bf16.msrb.mxu0 %v4453_v61  ;;  %v1711_v61 = vunpack.c.l.bf16 %v1703_v31 }
 0x25e   :  { %2008 = vmatpush.bf16.msrb.mxu1 %v4454_v55 }
 0x261   :  { %1996 = vmatpush.bf16.msrb.mxu0 %v4455_v18 }
 0x262   :  { %2009 = vmatpush.bf16.msrb.mxu1 %v4456_v5 }
 0x265   :  { %1997 = vmatpush.bf16.msrb.mxu0 %v4457_v60 }
 0x266   :  { %2010 = vmatpush.bf16.msrb.mxu1 %v4458_v46 }
 0x269   :  { %1998 = vmatpush.bf16.msrb.mxu0 %v4459_v52 }
 0x26a   :  { %2011 = vmatpush.bf16.msrb.mxu1 %v4460_v47 }
 0x26d   :  { %1999 = vmatpush.bf16.msrb.mxu0 %v4461_v27 }
 0x26e   :  { %2012 = vmatpush.bf16.msrb.mxu1 %v4462_v32  ;;  %v1701_v32 = vld [vmem:[#allocation2 + $0x38] sm:$0xf] }
 0x26f   :  { %v1707_v56 = vunpack.c.l.bf16 %v1701_v32 }
 0x2ad   :  { %v1727_v0 = vpop.f32.mrf.mxu0  ;;  %v1740_v21 = vpop.f32.mrf.mxu1 }
 0x2ae   :  { %v1797_v60 = vadd.f32 %v1727_v0, %v1708_v3  ;;  %v1802_v5 = vadd.f32 %v1740_v21, %v1709_v14  ;;  %v4465_v14 = vld [vmem:[#allocation26_spill] sm:$0xff] }
 0x2b0   :  { %v1798_v46 = vmul.f32 0.5, %v1797_v60  ;;  %v1803_v18 = vmul.f32 0.5, %v1802_v5  ;;  %v1714_v60 = vadd.f32 %v1711_v61, %v4465_v14  ;;  %v1715_v5 = vadd.f32 %v1712_v13, %v3870_v28  ;;  %v1704_v13 = vld [vmem:[#allocation2 + $0x8c] sm:$0xf] }
 0x2b2   :  { %3332 = vtanh.f32 %v1798_v46 }
 0x2b3   :  { %3334 = vtanh.f32 %v1803_v18  ;;  %v1710_v18 = vadd.f32 %v1707_v56, %v3865_v11 }
 0x2b4   :  { %v1753_v52 = vpop.f32.mrf.mxu2 }
 0x2b5   :  { %v1729_v47 = vpop.f32.mrf.mxu0  ;;  %v1742_v27 = vpop.f32.mrf.mxu1  ;;  %v1807_v7 = vadd.f32 %v4449_v10, %v1753_v52 }
 0x2b8   :  { %v3333_v55 = vpop.eup %3332 }
 0x2b9   :  { %v1800_v49 = vmul.f32 0.5, %v3333_v55  ;;  %v3335_v41 = vpop.eup %3334 }
 0x2ba   :  { %v1805_v0 = vmul.f32 0.5, %v3335_v41 }
 0x2bb   :  { %v1801_v15 = vadd.f32 0.5, %v1800_v49 }
 0x2bc   :  { %v1755_v3 = vpop.f32.mrf.mxu2  ;;  %v1806_v42 = vadd.f32 0.5, %v1805_v0 }
 0x2bd   :  { %v1808_v46 = vmul.f32 %v1807_v7, %v1801_v15  ;;  %v1780_v27 = vpop.f32.mrf.mxu0 }
 0x2be   :  { %v1767_v47 = vpop.f32.mrf.mxu3  ;;  %v1820_v44 = vadd.f32 %v1780_v27, %v1715_v5  ;;  %v1793_v31 = vpop.f32.mrf.mxu1  ;;  %v1811_v3 = vsub.f32 1.0, %v1806_v42  ;;  %v1813_v15 = vmul.f32 %v1806_v42, %v3959_v51  ;;  %v1713_v5 = vunpack.c.l.bf16 %v1704_v13  ;;  %v4468_v13 = vld [vmem:[#allocation22_spill] sm:$0xff] }
 0x2bf   :  { %v1815_v21 = vadd.f32 %v1767_v47, %v1714_v60  ;;  %v1809_v55 = vadd.f32 %v1808_v46, %v1710_v18 }
 0x2c0   :  { %v1821_v49 = vmul.f32 0.5, %v1820_v44  ;;  %v1825_v44 = vadd.f32 %v3878_v19, %v1793_v31  ;;  %v1716_v27 = vadd.f32 %v1713_v5, %v3884_v43  ;;  %v4474_v5 = vld [vmem:[#allocation16_spill] sm:$0xff] }
 0x2c1   :  { %v1816_v32 = vmul.f32 0.5, %v1815_v21  ;;  %3336 = vtanh.f32 %v1809_v55 }
 0x2c3   :  { %3338 = vtanh.f32 %v1816_v32 }
 0x2c4   :  { %3340 = vtanh.f32 %v1821_v49 }
 0x2c5   :  { %v1782_v61 = vpop.f32.mrf.mxu0 }
 0x2c6   :  { %v1769_v52 = vpop.f32.mrf.mxu3  ;;  %v1795_v28 = vpop.f32.mrf.mxu1 }
 0x2c7   :  { %v3337_v56 = vpop.eup %3336 }
 0x2c8   :  { %v1812_v41 = vmul.f32 %v3337_v56, %v1811_v3  ;;  %v4467_v3 = vld [vmem:[#allocation11_spill] sm:$0xff]  ;;  %v4469_v56 = vld [vmem:[#allocation10_spill] sm:$0xff] }
 0x2c9   :  { %v3339_v7 = vpop.eup %3338 }
 0x2ca   :  { %v1818_v60 = vmul.f32 0.5, %v3339_v7  ;;  %v4031_v47 = vadd.f32 %v1813_v15, %v1812_v41  ;;  %v3341_v18 = vpop.eup %3340  ;;  %v4470_v7 = vld [vmem:[#allocation13_spill] sm:$0xff]  ;;  %v4471_v15 = vld [vmem:[#allocation23_spill] sm:$0xff]  ;;  %v4472_v41 = vld [vmem:[#allocation12_spill] sm:$0xff] }
 0x2cb   :  { %v1823_v42 = vmul.f32 0.5, %v3341_v18  ;;  %v4475_v18 = vld [vmem:[#allocation17_spill] sm:$0xff] }
 0x2cc   :  { %v1819_v46 = vadd.f32 0.5, %v1818_v60  ;;  %3136 = vst [vmem:[%s4368_s6 + $0x20] sm:$0xff] %v4031_v47  ;;  %v1855_v28 = vpack.c.bf16 %v4031_v47, %v4031_v47  ;;  %v4473_v60 = vld [vmem:[#allocation14_spill] sm:$0xff] }
 0x2cd   :  { %v1824_v21 = vadd.f32 0.5, %v1823_v42 }
 0x2ce   :  { %v1826_v51 = vmul.f32 %v1825_v44, %v1819_v46  ;;  %1864 = vmatmul.bf16.vlgmr.msrb.gmra.mxu2 %v1855_v28  ;;  %1877 = vmatmul.bf16.vlgmr.msrb.gmra.mxu3 %v1855_v28  ;;  %v4476_v46 = vld [vmem:[#allocation18_spill] sm:$0xff]  ;;  %v4477_v44 = vld [vmem:[#allocation19_spill] sm:$0xff] }
 0x2cf   :  { %1890 = vmatmul.bf16.vlgmr.msra.gmra.mxu0 %v1855_v28  ;;  %2018 = vmatpush.bf16.msrb.mxu2 %v3605_v12  ;;  %v1829_v31 = vsub.f32 1.0, %v1824_v21  ;;  %v1831_v32 = vmul.f32 %v1824_v21, %v3972_v53  ;;  %v4466_v53 = vld [vmem:[#allocation9_spill] sm:$0xff]  ;;  %v4478_v28 = vld [vmem:[#allocation20_spill] sm:$0xff] }
 0x2d0   :  { %v1827_v0 = vadd.f32 %v1826_v51, %v1716_v27  ;;  %2032 = vmatpush.bf16.msrb.mxu3 %v3607_v16  ;;  %2045 = vmatpush.bf16.msra.mxu0 %v3688_v1  ;;  %v4479_v27 = vld [vmem:[#allocation21_spill] sm:$0xff]  ;;  %v1838_v51 = vld [vmem:[#allocation2 + $0x48] sm:$0xff] }
 0x2d1   :  { %v1844_v21 = vunpack.c.h.bf16 %v1838_v51 }
 0x2d2   :  { %3342 = vtanh.f32 %v1827_v0  ;;  %v1843_v0 = vunpack.c.l.bf16 %v1838_v51 }
 0x2d3   :  { %2019 = vmatpush.bf16.msrb.mxu2 %v3621_v26 }
 0x2d4   :  { %2033 = vmatpush.bf16.msrb.mxu3 %v3623_v30  ;;  %2046 = vmatpush.bf16.msra.mxu0 %v3704_v36 }
 0x2d7   :  { %2020 = vmatpush.bf16.msrb.mxu2 %v3633_v40 }
 0x2d8   :  { %v3343_v55 = vpop.eup %3342  ;;  %2034 = vmatpush.bf16.msrb.mxu3 %v3635_v45  ;;  %2047 = vmatpush.bf16.msra.mxu0 %v3715_v2 }
 0x2d9   :  { %v1830_v49 = vmul.f32 %v3343_v55, %v1829_v31  ;;  %v4480_v31 = vld [vmem:[#allocation24_spill] sm:$0xff] }
 0x2da   :  { %v1846_v55 = vadd.f32 %v1843_v0, %v4480_v31 }
 0x2db   :  { %v4051_v52 = vadd.f32 %v1831_v32, %v1830_v49  ;;  %2021 = vmatpush.bf16.msrb.mxu2 %v3649_v58  ;;  %v4481_v32 = vld [vmem:[#allocation15_spill] sm:$0xff] }
 0x2dc   :  { %2035 = vmatpush.bf16.msrb.mxu3 %v3651_v63  ;;  %2048 = vmatpush.bf16.msra.mxu0 %v3725_v50  ;;  %v1847_v49 = vadd.f32 %v1844_v21, %v4481_v32 }
 0x2dd   :  { %3137 = vst [vmem:[%s4368_s6 + $0x58] sm:$0xff] %v4051_v52  ;;  %v1895_v61 = vpack.c.bf16 %v4051_v52, %v4051_v52 }
 0x2df   :  { %1904 = vmatmul.bf16.vlgmr.msra.gmra.mxu1 %v1895_v61  ;;  %1917 = vmatmul.bf16.vlgmr.msra.gmra.mxu2 %v1895_v61 }
 0x2e0   :  { %1930 = vmatmul.bf16.vlgmr.msra.gmra.mxu3 %v1895_v61  ;;  %2022 = vmatpush.bf16.msrb.mxu2 %v3669_v23 }
 0x2e1   :  { %2058 = vmatpush.bf16.msra.mxu1 %v3701_v24  ;;  %2036 = vmatpush.bf16.msrb.mxu3 %v3671_v29 }
 0x2e2   :  { %2049 = vmatpush.bf16.msra.mxu0 %v3738_v33 }
 0x2e4   :  { %2023 = vmatpush.bf16.msrb.mxu2 %v3693_v4 }
 0x2e5   :  { %2059 = vmatpush.bf16.msra.mxu1 %v3709_v57  ;;  %2037 = vmatpush.bf16.msrb.mxu3 %v3695_v9 }
 0x2e6   :  { %2050 = vmatpush.bf16.msra.mxu0 %v3747_v37 }
 0x2e8   :  { %2024 = vmatpush.bf16.msrb.mxu2 %v3711_v38 }
 0x2e9   :  { %2060 = vmatpush.bf16.msra.mxu1 %v3720_v6  ;;  %2038 = vmatpush.bf16.msrb.mxu3 %v3713_v62 }
 0x2ea   :  { %2051 = vmatpush.bf16.msra.mxu0 %v3755_v39 }
 0x2ec   :  { %2025 = vmatpush.bf16.msrb.mxu2 %v3723_v25 }
 0x2ed   :  { %2061 = vmatpush.bf16.msra.mxu1 %v3734_v20  ;;  %2039 = vmatpush.bf16.msrb.mxu3 %v3728_v54 }
 0x2ee   :  { %2052 = vmatpush.bf16.msra.mxu0 %v3763_v48 }
 0x2f0   :  { %2126 = vmatpush.bf16.msra.mxu2 %v3602_v8 }
 0x2f1   :  { %2139 = vmatpush.bf16.msra.mxu3 %v3612_v22  ;;  %2062 = vmatpush.bf16.msra.mxu1 %v3743_v34 }
 0x2f4   :  { %2127 = vmatpush.bf16.msra.mxu2 %v3609_v17 }
 0x2f5   :  { %2140 = vmatpush.bf16.msra.mxu3 %v3628_v35  ;;  %2063 = vmatpush.bf16.msra.mxu1 %v3751_v59 }
 0x2f8   :  { %2128 = vmatpush.bf16.msra.mxu2 %v4466_v53 }
 0x2f9   :  { %2141 = vmatpush.bf16.msra.mxu3 %v4467_v3  ;;  %2064 = vmatpush.bf16.msra.mxu1 %v4468_v13  ;;  %v1839_v3 = vld [vmem:[#allocation2 + $0x50] sm:$0xf] }
 0x2fa   :  { %v1845_v32 = vunpack.c.l.bf16 %v1839_v3  ;;  %v1842_v3 = vld [vmem:[#allocation2 + $0x74] sm:$0xf] }
 0x2fc   :  { %2129 = vmatpush.bf16.msra.mxu2 %v4469_v56 }
 0x2fd   :  { %2142 = vmatpush.bf16.msra.mxu3 %v4470_v7  ;;  %2065 = vmatpush.bf16.msra.mxu1 %v4471_v15 }
 0x300   :  { %2130 = vmatpush.bf16.msra.mxu2 %v4472_v41  ;;  %v1841_v41 = vld [vmem:[#allocation2 + $0x6c] sm:$0xff] }
 0x301   :  { %2143 = vmatpush.bf16.msra.mxu3 %v4473_v60  ;;  %v1850_v21 = vunpack.c.h.bf16 %v1841_v41 }
 0x304   :  { %2131 = vmatpush.bf16.msra.mxu2 %v4474_v5 }
 0x305   :  { %2144 = vmatpush.bf16.msra.mxu3 %v4475_v18 }
 0x308   :  { %2132 = vmatpush.bf16.msra.mxu2 %v4476_v46 }
 0x309   :  { %2145 = vmatpush.bf16.msra.mxu3 %v4477_v44 }
 0x30c   :  { %2133 = vmatpush.bf16.msra.mxu2 %v4478_v28  ;;  %v1849_v28 = vunpack.c.l.bf16 %v1841_v41 }
 0x30d   :  { %2146 = vmatpush.bf16.msra.mxu3 %v4479_v27 }
 0x30e   :  { %v1852_v51 = vadd.f32 %v1849_v28, %v4465_v14 }
 0x34c   :  { %v1891_v42 = vpop.f32.mrf.mxu0 }
 0x351   :  { %v1865_v61 = vpop.f32.mrf.mxu2  ;;  %v1878_v5 = vpop.f32.mrf.mxu3 }
 0x352   :  { %v1935_v60 = vadd.f32 %v1865_v61, %v1846_v55  ;;  %v1940_v18 = vadd.f32 %v1878_v5, %v1847_v49 }
 0x354   :  { %v1936_v46 = vmul.f32 0.5, %v1935_v60  ;;  %v1893_v7 = vpop.f32.mrf.mxu0  ;;  %v1941_v44 = vmul.f32 0.5, %v1940_v18  ;;  %v1945_v60 = vadd.f32 %v4449_v10, %v1891_v42  ;;  %v4482_v18 = vld [vmem:[#allocation27_spill] sm:$0xff] }
 0x356   :  { %3344 = vtanh.f32 %v1936_v46  ;;  %v1853_v46 = vadd.f32 %v1850_v21, %v4482_v18 }
 0x357   :  { %3346 = vtanh.f32 %v1941_v44  ;;  %v1848_v44 = vadd.f32 %v1845_v32, %v3865_v11 }
 0x359   :  { %v1867_v27 = vpop.f32.mrf.mxu2  ;;  %v1880_v56 = vpop.f32.mrf.mxu3 }
 0x35c   :  { %v1905_v15 = vpop.f32.mrf.mxu1  ;;  %v3345_v0 = vpop.eup %3344 }
 0x35d   :  { %v1953_v31 = vadd.f32 %v1905_v15, %v1852_v51  ;;  %v1938_v53 = vmul.f32 0.5, %v3345_v0  ;;  %v3347_v5 = vpop.eup %3346 }
 0x35e   :  { %v1943_v49 = vmul.f32 0.5, %v3347_v5 }
 0x35f   :  { %v1954_v55 = vmul.f32 0.5, %v1953_v31  ;;  %v1939_v7 = vadd.f32 0.5, %v1938_v53  ;;  %v1851_v53 = vunpack.c.l.bf16 %v1842_v3 }
 0x360   :  { %v1944_v51 = vadd.f32 0.5, %v1943_v49 }
 0x361   :  { %3348 = vtanh.f32 %v1954_v55  ;;  %v1946_v56 = vmul.f32 %v1945_v60, %v1939_v7  ;;  %v1854_v5 = vadd.f32 %v1851_v53, %v3884_v43  ;;  %v4486_v53 = vld [vmem:[#allocation10_spill] sm:$0xff] }
 0x362   :  { %v1918_v27 = vpop.f32.mrf.mxu2  ;;  %v1949_v32 = vsub.f32 1.0, %v1944_v51 }
 0x363   :  { %v1958_v28 = vadd.f32 %v1918_v27, %v1853_v46  ;;  %v1931_v61 = vpop.f32.mrf.mxu3  ;;  %v1947_v14 = vadd.f32 %v1946_v56, %v1848_v44  ;;  %v1951_v56 = vmul.f32 %v1944_v51, %v4031_v47  ;;  %v4484_v51 = vld [vmem:[#allocation23_spill] sm:$0xff] }
 0x364   :  { %v1907_v15 = vpop.f32.mrf.mxu1  ;;  %v1963_v0 = vadd.f32 %v3878_v19, %v1931_v61 }
 0x365   :  { %v1959_v41 = vmul.f32 0.5, %v1958_v28  ;;  %3350 = vtanh.f32 %v1947_v14 }
 0x367   :  { %v3349_v31 = vpop.eup %3348  ;;  %3352 = vtanh.f32 %v1959_v41 }
 0x368   :  { %v1956_v10 = vmul.f32 0.5, %v3349_v31 }
 0x36a   :  { %v1957_v42 = vadd.f32 0.5, %v1956_v10  ;;  %v1920_v21 = vpop.f32.mrf.mxu2  ;;  %v4485_v10 = vld [vmem:[#allocation11_spill] sm:$0xff] }
 0x36b   :  { %v1933_v55 = vpop.f32.mrf.mxu3  ;;  %v3351_v60 = vpop.eup %3350  ;;  %v4489_v21 = vld [vmem:[#allocation14_spill] sm:$0xff] }
 0x36c   :  { %v1964_v7 = vmul.f32 %v1963_v0, %v1957_v42  ;;  %v1950_v44 = vmul.f32 %v3351_v60, %v1949_v32  ;;  %v4487_v42 = vld [vmem:[#allocation13_spill] sm:$0xff]  ;;  %v4488_v0 = vld [vmem:[#allocation12_spill] sm:$0xff]  ;;  %v4492_v60 = vld [vmem:[#allocation18_spill] sm:$0xff] }
 0x36d   :  { %v3353_v46 = vpop.eup %3352  ;;  %v4490_v32 = vld [vmem:[#allocation16_spill] sm:$0xff]  ;;  %v4491_v55 = vld [vmem:[#allocation17_spill] sm:$0xff] }
 0x36e   :  { %v1961_v14 = vmul.f32 0.5, %v3353_v46  ;;  %v1965_v27 = vadd.f32 %v1964_v7, %v1854_v5  ;;  %v4107_v49 = vadd.f32 %v1951_v56, %v1950_v44  ;;  %v4493_v5 = vld [vmem:[#allocation19_spill] sm:$0xff]  ;;  %v4494_v7 = vld [vmem:[#allocation20_spill] sm:$0xff]  ;;  %v4495_v46 = vld [vmem:[#allocation21_spill] sm:$0xff] }
 0x36f   :  { %v1975_v44 = vld [vmem:[#allocation2 + $0x60] sm:$0xff] }
 0x370   :  { %v1962_v28 = vadd.f32 0.5, %v1961_v14  ;;  %3354 = vtanh.f32 %v1965_v27  ;;  %3138 = vst [vmem:[%s4368_s6 + $0x30] sm:$0xff] %v4107_v49  ;;  %v1991_v19 = vpack.c.bf16 %v4107_v49, %v4107_v49  ;;  %v1979_v56 = vunpack.c.l.bf16 %v1975_v44  ;;  %v4496_v27 = vld [vmem:[#allocation24_spill] sm:$0xff] }
 0x371   :  { %v1980_v14 = vunpack.c.h.bf16 %v1975_v44 }
 0x372   :  { %v1967_v61 = vsub.f32 1.0, %v1962_v28  ;;  %2000 = vmatmul.bf16.vlgmr.msrb.gmra.mxu0 %v1991_v19  ;;  %2013 = vmatmul.bf16.vlgmr.msrb.gmra.mxu1 %v1991_v19  ;;  %v1969_v15 = vmul.f32 %v1962_v28, %v4051_v52  ;;  %v4483_v52 = vld [vmem:[#allocation9_spill] sm:$0xff]  ;;  %v1982_v28 = vadd.f32 %v1979_v56, %v4496_v27 }
 0x373   :  { %2026 = vmatmul.bf16.vlgmr.msrb.gmra.mxu2 %v1991_v19  ;;  %2152 = vmatpush.bf16.msrb.mxu0 %v3605_v12  ;;  %v4497_v19 = vld [vmem:[#allocation15_spill] sm:$0xff] }
 0x374   :  { %2166 = vmatpush.bf16.msrb.mxu1 %v3607_v16  ;;  %2179 = vmatpush.bf16.msrb.mxu2 %v3688_v1 }
 0x376   :  { %v3355_v47 = vpop.eup %3354 }
 0x377   :  { %v1968_v41 = vmul.f32 %v3355_v47, %v1967_v61  ;;  %2153 = vmatpush.bf16.msrb.mxu0 %v3621_v26  ;;  %v1983_v61 = vadd.f32 %v1980_v14, %v4497_v19 }
 0x378   :  { %2167 = vmatpush.bf16.msrb.mxu1 %v3623_v30  ;;  %2180 = vmatpush.bf16.msrb.mxu2 %v3704_v36 }
 0x379   :  { %v4120_v3 = vadd.f32 %v1969_v15, %v1968_v41 }
 0x37b   :  { %3139 = vst [vmem:[%s4368_s6 + $0x48] sm:$0xff] %v4120_v3  ;;  %v2031_v31 = vpack.c.bf16 %v4120_v3, %v4120_v3  ;;  %2154 = vmatpush.bf16.msrb.mxu0 %v3633_v40 }
 0x37c   :  { %2168 = vmatpush.bf16.msrb.mxu1 %v3635_v45  ;;  %2181 = vmatpush.bf16.msrb.mxu2 %v3715_v2 }
 0x37d   :  { %2040 = vmatmul.bf16.vlgmr.msrb.gmra.mxu3 %v2031_v31 }
 0x37e   :  { %2192 = vmatpush.bf16.msrb.mxu3 %v3701_v24 }
 0x37f   :  { %2155 = vmatpush.bf16.msrb.mxu0 %v3649_v58 }
 0x380   :  { %2169 = vmatpush.bf16.msrb.mxu1 %v3651_v63  ;;  %2182 = vmatpush.bf16.msrb.mxu2 %v3725_v50 }
 0x382   :  { %2193 = vmatpush.bf16.msrb.mxu3 %v3709_v57  ;;  %2053 = vmatmul.bf16.vlgmr.msra.gmra.mxu0 %v2031_v31 }
 0x383   :  { %2066 = vmatmul.bf16.vlgmr.msra.gmra.mxu1 %v2031_v31  ;;  %2156 = vmatpush.bf16.msrb.mxu0 %v3669_v23 }
 0x384   :  { %2170 = vmatpush.bf16.msrb.mxu1 %v3671_v29  ;;  %2183 = vmatpush.bf16.msrb.mxu2 %v3738_v33 }
 0x386   :  { %2194 = vmatpush.bf16.msrb.mxu3 %v3720_v6 }
 0x387   :  { %2157 = vmatpush.bf16.msrb.mxu0 %v3693_v4 }
 0x388   :  { %2171 = vmatpush.bf16.msrb.mxu1 %v3695_v9  ;;  %2184 = vmatpush.bf16.msrb.mxu2 %v3747_v37 }
 0x38a   :  { %2195 = vmatpush.bf16.msrb.mxu3 %v3734_v20 }
 0x38b   :  { %2158 = vmatpush.bf16.msrb.mxu0 %v3711_v38 }
 0x38c   :  { %2172 = vmatpush.bf16.msrb.mxu1 %v3713_v62  ;;  %2185 = vmatpush.bf16.msrb.mxu2 %v3755_v39 }
 0x38e   :  { %2196 = vmatpush.bf16.msrb.mxu3 %v3743_v34 }
 0x38f   :  { %2159 = vmatpush.bf16.msrb.mxu0 %v3723_v25 }
 0x390   :  { %2173 = vmatpush.bf16.msrb.mxu1 %v3728_v54  ;;  %2186 = vmatpush.bf16.msrb.mxu2 %v3763_v48 }
 0x392   :  { %2197 = vmatpush.bf16.msrb.mxu3 %v3751_v59 }
 0x393   :  { %2260 = vmatpush.bf16.msra.mxu0 %v3602_v8 }
 0x394   :  { %2273 = vmatpush.bf16.msra.mxu1 %v3612_v22 }
 0x396   :  { %2198 = vmatpush.bf16.msrb.mxu3 %v4468_v13 }
 0x397   :  { %2261 = vmatpush.bf16.msra.mxu0 %v3609_v17 }
 0x398   :  { %2274 = vmatpush.bf16.msra.mxu1 %v3628_v35 }
 0x39a   :  { %2199 = vmatpush.bf16.msrb.mxu3 %v4484_v51 }
 0x39b   :  { %2262 = vmatpush.bf16.msra.mxu0 %v4483_v52 }
 0x39c   :  { %2275 = vmatpush.bf16.msra.mxu1 %v4485_v10 }
 0x39f   :  { %2263 = vmatpush.bf16.msra.mxu0 %v4486_v53 }
 0x3a0   :  { %2276 = vmatpush.bf16.msra.mxu1 %v4487_v42 }
 0x3a3   :  { %2264 = vmatpush.bf16.msra.mxu0 %v4488_v0 }
 0x3a4   :  { %2277 = vmatpush.bf16.msra.mxu1 %v4489_v21  ;;  %v1977_v21 = vld [vmem:[#allocation2 + $0x54] sm:$0xff] }
 0x3a5   :  { %v1985_v51 = vunpack.c.l.bf16 %v1977_v21  ;;  %v1986_v44 = vunpack.c.h.bf16 %v1977_v21 }
 0x3a7   :  { %2265 = vmatpush.bf16.msra.mxu0 %v4490_v32 }
 0x3a8   :  { %2278 = vmatpush.bf16.msra.mxu1 %v4491_v55 }
 0x3ab   :  { %2266 = vmatpush.bf16.msra.mxu0 %v4492_v60 }
 0x3ac   :  { %2279 = vmatpush.bf16.msra.mxu1 %v4493_v5 }
 0x3af   :  { %2267 = vmatpush.bf16.msra.mxu0 %v4494_v7 }
 0x3b0   :  { %2280 = vmatpush.bf16.msra.mxu1 %v4495_v46  ;;  %v1976_v46 = vld [vmem:[#allocation2 + $0x68] sm:$0xf] }
 0x3b1   :  { %v1981_v56 = vunpack.c.l.bf16 %v1976_v46 }
 0x3ef   :  { %v2001_v47 = vpop.f32.mrf.mxu0  ;;  %v2014_v15 = vpop.f32.mrf.mxu1 }
 0x3f0   :  { %v2071_v41 = vadd.f32 %v2001_v47, %v1982_v28  ;;  %v2076_v31 = vadd.f32 %v2014_v15, %v1983_v61  ;;  %v4177_v28 = vld [vmem:[%s4366_s4] ss:$0 sm:$0xff]  ;;  %v1984_v47 = vadd.f32 %v1981_v56, %v3865_v11 }
 0x3f2   :  { %v2072_v55 = vmul.f32 0.5, %v2071_v41  ;;  %v2077_v32 = vmul.f32 0.5, %v2076_v31 }
 0x3f4   :  { %3356 = vtanh.f32 %v2072_v55 }
 0x3f5   :  { %3358 = vtanh.f32 %v2077_v32  ;;  %v4498_v32 = vld [vmem:[#allocation26_spill] sm:$0xff] }
 0x3f6   :  { %v2027_v60 = vpop.f32.mrf.mxu2 }
 0x3f7   :  { %v2003_v5 = vpop.f32.mrf.mxu0  ;;  %v2016_v7 = vpop.f32.mrf.mxu1  ;;  %v2081_v55 = vadd.f32 %v4177_v28, %v2027_v60 }
 0x3f8   :  { %v1988_v5 = vadd.f32 %v1985_v51, %v4498_v32  ;;  %v1989_v7 = vadd.f32 %v1986_v44, %v4482_v18  ;;  %v1978_v44 = vld [vmem:[#allocation2 + $0x5c] sm:$0xf] }
 0x3fa   :  { %v3357_v0 = vpop.eup %3356 }
 0x3fb   :  { %v2074_v42 = vmul.f32 0.5, %v3357_v0  ;;  %v3359_v27 = vpop.eup %3358 }
 0x3fc   :  { %v2079_v46 = vmul.f32 0.5, %v3359_v27 }
 0x3fd   :  { %v2075_v14 = vadd.f32 0.5, %v2074_v42 }
 0x3fe   :  { %v2029_v61 = vpop.f32.mrf.mxu2  ;;  %v2080_v10 = vadd.f32 0.5, %v2079_v46 }
 0x3ff   :  { %v2082_v15 = vmul.f32 %v2081_v55, %v2075_v14  ;;  %v2054_v0 = vpop.f32.mrf.mxu0 }
 0x400   :  { %v2041_v21 = vpop.f32.mrf.mxu3  ;;  %v2094_v42 = vadd.f32 %v2054_v0, %v1989_v7  ;;  %v2067_v31 = vpop.f32.mrf.mxu1  ;;  %v2085_v61 = vsub.f32 1.0, %v2080_v10  ;;  %v2087_v55 = vmul.f32 %v2080_v10, %v4107_v49  ;;  %v1987_v7 = vunpack.c.l.bf16 %v1978_v44  ;;  %v4500_v44 = vld [vmem:[#allocation22_spill] sm:$0xff] }
 0x401   :  { %v2089_v41 = vadd.f32 %v2041_v21, %v1988_v5  ;;  %v2083_v19 = vadd.f32 %v2082_v15, %v1984_v47 }
 0x402   :  { %v2095_v13 = vmul.f32 0.5, %v2094_v42  ;;  %v1990_v49 = vadd.f32 %v1987_v7, %v3884_v43  ;;  %v4511_v7 = vld [vmem:[#allocation21_spill] sm:$0xff] }
 0x403   :  { %v2090_v53 = vmul.f32 0.5, %v2089_v41  ;;  %3360 = vtanh.f32 %v2083_v19 }
 0x405   :  { %3362 = vtanh.f32 %v2090_v53 }
 0x406   :  { %3364 = vtanh.f32 %v2095_v13  ;;  %v4189_v13 = vld [vmem:[%s4366_s4 + $0x1] ss:$0 sm:$0xff] }
 0x407   :  { %v2056_v51 = vpop.f32.mrf.mxu0  ;;  %v2099_v53 = vadd.f32 %v4189_v13, %v2067_v31 }
 0x408   :  { %v2043_v60 = vpop.f32.mrf.mxu3  ;;  %v2069_v18 = vpop.f32.mrf.mxu1 }
 0x409   :  { %v3361_v56 = vpop.eup %3360 }
 0x40a   :  { %v2086_v27 = vmul.f32 %v3361_v56, %v2085_v61  ;;  %v4501_v56 = vld [vmem:[#allocation10_spill] sm:$0xff] }
 0x40b   :  { %v3363_v14 = vpop.eup %3362 }
 0x40c   :  { %v2092_v5 = vmul.f32 0.5, %v3363_v14  ;;  %v4184_v21 = vadd.f32 %v2087_v55, %v2086_v27  ;;  %v3365_v47 = vpop.eup %3364  ;;  %v4502_v14 = vld [vmem:[#allocation13_spill] sm:$0xff]  ;;  %v4505_v55 = vld [vmem:[#allocation14_spill] sm:$0xff] }
 0x40d   :  { %v2097_v15 = vmul.f32 0.5, %v3365_v47  ;;  %v4508_v27 = vld [vmem:[#allocation18_spill] sm:$0xff]  ;;  %v2109_v47 = vld [vmem:[#allocation2 + $0x78] sm:$0xff] }
 0x40e   :  { %v2093_v19 = vadd.f32 0.5, %v2092_v5  ;;  %3140 = vst [vmem:[%s4368_s6 + $0x40] sm:$0xff] %v4184_v21  ;;  %v2125_v18 = vpack.c.bf16 %v4184_v21, %v4184_v21  ;;  %v4510_v5 = vld [vmem:[#allocation20_spill] sm:$0xff] }
 0x40f   :  { %v2098_v46 = vadd.f32 0.5, %v2097_v15  ;;  %v4513_v15 = vld [vmem:[#allocation15_spill] sm:$0xff] }
 0x410   :  { %v2100_v10 = vmul.f32 %v2099_v53, %v2093_v19  ;;  %2134 = vmatmul.bf16.vlgmr.msra.gmra.mxu2 %v2125_v18  ;;  %2147 = vmatmul.bf16.vlgmr.msra.gmra.mxu3 %v2125_v18  ;;  %v2113_v53 = vunpack.c.l.bf16 %v2109_v47 }
 0x411   :  { %2160 = vmatmul.bf16.vlgmr.msrb.gmra.mxu0 %v2125_v18  ;;  %2286 = vmatpush.bf16.msra.mxu2 %v3605_v12  ;;  %v2103_v41 = vsub.f32 1.0, %v2098_v46  ;;  %v2105_v31 = vmul.f32 %v2098_v46, %v4120_v3  ;;  %v4499_v3 = vld [vmem:[#allocation11_spill] sm:$0xff]  ;;  %v2114_v18 = vunpack.c.h.bf16 %v2109_v47 }
 0x412   :  { %v2101_v0 = vadd.f32 %v2100_v10, %v1990_v49  ;;  %2300 = vmatpush.bf16.msra.mxu3 %v3607_v16  ;;  %2313 = vmatpush.bf16.msrb.mxu0 %v3688_v1  ;;  %v4512_v49 = vld [vmem:[#allocation24_spill] sm:$0xff] }
 0x413   :  { %v2116_v10 = vadd.f32 %v2113_v53, %v4512_v49 }
 0x414   :  { %3366 = vtanh.f32 %v2101_v0  ;;  %v2117_v0 = vadd.f32 %v2114_v18, %v4513_v15 }
 0x415   :  { %2287 = vmatpush.bf16.msra.mxu2 %v3621_v26 }
 0x416   :  { %2301 = vmatpush.bf16.msra.mxu3 %v3623_v30  ;;  %2314 = vmatpush.bf16.msrb.mxu0 %v3704_v36 }
 0x419   :  { %2288 = vmatpush.bf16.msra.mxu2 %v3633_v40 }
 0x41a   :  { %v3367_v42 = vpop.eup %3366  ;;  %2302 = vmatpush.bf16.msra.mxu3 %v3635_v45  ;;  %2315 = vmatpush.bf16.msrb.mxu0 %v3715_v2 }
 0x41b   :  { %v2104_v60 = vmul.f32 %v3367_v42, %v2103_v41 }
 0x41d   :  { %v4209_v51 = vadd.f32 %v2105_v31, %v2104_v60  ;;  %2289 = vmatpush.bf16.msra.mxu2 %v3649_v58  ;;  %v2111_v60 = vld [vmem:[#allocation2 + $0x3c] sm:$0xff] }
 0x41e   :  { %2303 = vmatpush.bf16.msra.mxu3 %v3651_v63  ;;  %2316 = vmatpush.bf16.msrb.mxu0 %v3725_v50 }
 0x41f   :  { %3141 = vst [vmem:[%s4368_s6 + $0x38] sm:$0xff] %v4209_v51  ;;  %v2165_v61 = vpack.c.bf16 %v4209_v51, %v4209_v51 }
 0x421   :  { %2174 = vmatmul.bf16.vlgmr.msrb.gmra.mxu1 %v2165_v61  ;;  %2187 = vmatmul.bf16.vlgmr.msrb.gmra.mxu2 %v2165_v61 }
 0x422   :  { %2200 = vmatmul.bf16.vlgmr.msrb.gmra.mxu3 %v2165_v61  ;;  %2290 = vmatpush.bf16.msra.mxu2 %v3669_v23 }
 0x423   :  { %2326 = vmatpush.bf16.msrb.mxu1 %v3701_v24  ;;  %2304 = vmatpush.bf16.msra.mxu3 %v3671_v29 }
 0x424   :  { %2317 = vmatpush.bf16.msrb.mxu0 %v3738_v33 }
 0x426   :  { %2291 = vmatpush.bf16.msra.mxu2 %v3693_v4 }
 0x427   :  { %2327 = vmatpush.bf16.msrb.mxu1 %v3709_v57  ;;  %2305 = vmatpush.bf16.msra.mxu3 %v3695_v9 }
 0x428   :  { %2318 = vmatpush.bf16.msrb.mxu0 %v3747_v37 }
 0x42a   :  { %2292 = vmatpush.bf16.msra.mxu2 %v3711_v38 }
 0x42b   :  { %2328 = vmatpush.bf16.msrb.mxu1 %v3720_v6  ;;  %2306 = vmatpush.bf16.msra.mxu3 %v3713_v62 }
 0x42c   :  { %2319 = vmatpush.bf16.msrb.mxu0 %v3755_v39 }
 0x42e   :  { %2293 = vmatpush.bf16.msra.mxu2 %v3723_v25 }
 0x42f   :  { %2329 = vmatpush.bf16.msrb.mxu1 %v3734_v20  ;;  %2307 = vmatpush.bf16.msra.mxu3 %v3728_v54 }
 0x430   :  { %2320 = vmatpush.bf16.msrb.mxu0 %v3763_v48 }
 0x432   :  { %2394 = vmatpush.bf16.msrb.mxu2 %v3602_v8  ;;  %v4503_v8 = vld [vmem:[#allocation23_spill] sm:$0xff] }
 0x433   :  { %2407 = vmatpush.bf16.msrb.mxu3 %v3612_v22  ;;  %2330 = vmatpush.bf16.msrb.mxu1 %v3743_v34  ;;  %v4504_v22 = vld [vmem:[#allocation12_spill] sm:$0xff] }
 0x436   :  { %2395 = vmatpush.bf16.msrb.mxu2 %v3609_v17  ;;  %v4506_v17 = vld [vmem:[#allocation16_spill] sm:$0xff] }
 0x437   :  { %2408 = vmatpush.bf16.msrb.mxu3 %v3628_v35  ;;  %2331 = vmatpush.bf16.msrb.mxu1 %v3751_v59  ;;  %v4507_v35 = vld [vmem:[#allocation17_spill] sm:$0xff] }
 0x43a   :  { %2396 = vmatpush.bf16.msrb.mxu2 %v4483_v52  ;;  %v4509_v52 = vld [vmem:[#allocation19_spill] sm:$0xff] }
 0x43b   :  { %2409 = vmatpush.bf16.msrb.mxu3 %v4499_v3  ;;  %2332 = vmatpush.bf16.msrb.mxu1 %v4500_v44 }
 0x43e   :  { %2397 = vmatpush.bf16.msrb.mxu2 %v4501_v56 }
 0x43f   :  { %2410 = vmatpush.bf16.msrb.mxu3 %v4502_v14  ;;  %2333 = vmatpush.bf16.msrb.mxu1 %v4503_v8  ;;  %v2119_v14 = vunpack.c.l.bf16 %v2111_v60 }
 0x442   :  { %2398 = vmatpush.bf16.msrb.mxu2 %v4504_v22 }
 0x443   :  { %2411 = vmatpush.bf16.msrb.mxu3 %v4505_v55 }
 0x446   :  { %2399 = vmatpush.bf16.msrb.mxu2 %v4506_v17  ;;  %v2110_v17 = vld [vmem:[#allocation2 + $0x80] sm:$0xf] }
 0x447   :  { %2412 = vmatpush.bf16.msrb.mxu3 %v4507_v35  ;;  %v2122_v35 = vadd.f32 %v2119_v14, %v4498_v32  ;;  %v2115_v47 = vunpack.c.l.bf16 %v2110_v17  ;;  %v2112_v17 = vld [vmem:[#allocation2 + $0x44] sm:$0xf] }
 0x44a   :  { %2400 = vmatpush.bf16.msrb.mxu2 %v4508_v27 }
 0x44b   :  { %2413 = vmatpush.bf16.msrb.mxu3 %v4509_v52 }
 0x44e   :  { %2401 = vmatpush.bf16.msrb.mxu2 %v4510_v5 }
 0x44f   :  { %2414 = vmatpush.bf16.msrb.mxu3 %v4511_v7  ;;  %v2120_v7 = vunpack.c.h.bf16 %v2111_v60 }
 0x48e   :  { %v2161_v19 = vpop.f32.mrf.mxu0 }
 0x493   :  { %v2135_v46 = vpop.f32.mrf.mxu2  ;;  %v2148_v41 = vpop.f32.mrf.mxu3 }
 0x494   :  { %v2205_v42 = vadd.f32 %v2135_v46, %v2116_v10  ;;  %v2210_v31 = vadd.f32 %v2148_v41, %v2117_v0  ;;  %v2215_v0 = vadd.f32 %v4177_v28, %v2161_v19  ;;  %v4514_v41 = vld [vmem:[#allocation27_spill] sm:$0xff] }
 0x496   :  { %v2206_v61 = vmul.f32 0.5, %v2205_v42  ;;  %v2163_v3 = vpop.f32.mrf.mxu0  ;;  %v2211_v56 = vmul.f32 0.5, %v2210_v31  ;;  %v2123_v42 = vadd.f32 %v2120_v7, %v4514_v41  ;;  %v2118_v31 = vadd.f32 %v2115_v47, %v3865_v11 }
 0x498   :  { %3368 = vtanh.f32 %v2206_v61 }
 0x499   :  { %3370 = vtanh.f32 %v2211_v56 }
 0x49b   :  { %v2137_v22 = vpop.f32.mrf.mxu2  ;;  %v2150_v55 = vpop.f32.mrf.mxu3 }
 0x49e   :  { %v2175_v27 = vpop.f32.mrf.mxu1  ;;  %v3369_v52 = vpop.eup %3368 }
 0x49f   :  { %v2223_v5 = vadd.f32 %v2175_v27, %v2122_v35  ;;  %v2208_v53 = vmul.f32 0.5, %v3369_v52  ;;  %v3371_v10 = vpop.eup %3370 }
 0x4a0   :  { %v2213_v56 = vmul.f32 0.5, %v3371_v10 }
 0x4a1   :  { %v2224_v18 = vmul.f32 0.5, %v2223_v5  ;;  %v2209_v46 = vadd.f32 0.5, %v2208_v53  ;;  %v2121_v5 = vunpack.c.l.bf16 %v2112_v17 }
 0x4a2   :  { %v2214_v52 = vadd.f32 0.5, %v2213_v56 }
 0x4a3   :  { %3372 = vtanh.f32 %v2224_v18  ;;  %v2216_v61 = vmul.f32 %v2215_v0, %v2209_v46  ;;  %v2124_v10 = vadd.f32 %v2121_v5, %v3884_v43 }
 0x4a4   :  { %v2188_v3 = vpop.f32.mrf.mxu2  ;;  %v2219_v47 = vsub.f32 1.0, %v2214_v52 }
 0x4a5   :  { %v2228_v14 = vadd.f32 %v2188_v3, %v2123_v42  ;;  %v2201_v22 = vpop.f32.mrf.mxu3  ;;  %v2217_v55 = vadd.f32 %v2216_v61, %v2118_v31  ;;  %v2221_v3 = vmul.f32 %v2214_v52, %v4184_v21 }
 0x4a6   :  { %v2177_v35 = vpop.f32.mrf.mxu1  ;;  %v2233_v7 = vadd.f32 %v4189_v13, %v2201_v22 }
 0x4a7   :  { %v2229_v60 = vmul.f32 0.5, %v2228_v14  ;;  %3374 = vtanh.f32 %v2217_v55 }
 0x4a9   :  { %v3373_v27 = vpop.eup %3372  ;;  %3376 = vtanh.f32 %v2229_v60 }
 0x4aa   :  { %v2226_v19 = vmul.f32 0.5, %v3373_v27 }
 0x4ac   :  { %v2227_v53 = vadd.f32 0.5, %v2226_v19  ;;  %v2190_v18 = vpop.f32.mrf.mxu2 }
 0x4ad   :  { %v2203_v0 = vpop.f32.mrf.mxu3  ;;  %v3375_v46 = vpop.eup %3374 }
 0x4ae   :  { %v2234_v42 = vmul.f32 %v2233_v7, %v2227_v53  ;;  %v2220_v61 = vmul.f32 %v3375_v46, %v2219_v47 }
 0x4af   :  { %v3377_v31 = vpop.eup %3376 }
 0x4b0   :  { %v2231_v14 = vmul.f32 0.5, %v3377_v31  ;;  %v2235_v55 = vadd.f32 %v2234_v42, %v2124_v10  ;;  %v4265_v56 = vadd.f32 %v2221_v3, %v2220_v61  ;;  %v2246_v31 = vld [vmem:[#allocation2 + $0x2c] sm:$0xf] }
 0x4b2   :  { %v2232_v35 = vadd.f32 0.5, %v2231_v14  ;;  %3378 = vtanh.f32 %v2235_v55  ;;  %3142 = vst [vmem:[%s4368_s6 + $0x50] sm:$0xff] %v4265_v56  ;;  %v2259_v22 = vpack.c.bf16 %v4265_v56, %v4265_v56 }
 0x4b4   :  { %v2237_v60 = vsub.f32 1.0, %v2232_v35  ;;  %2268 = vmatmul.bf16.vlgmr.msra.gmra.mxu0 %v2259_v22  ;;  %2281 = vmatmul.bf16.vlgmr.msra.gmra.mxu1 %v2259_v22  ;;  %v2239_v17 = vmul.f32 %v2232_v35, %v4209_v51 }
 0x4b5   :  { %2294 = vmatmul.bf16.vlgmr.msra.gmra.mxu2 %v2259_v22  ;;  %2420 = vmatpush.bf16.msra.mxu0 %v3605_v12 }
 0x4b6   :  { %2434 = vmatpush.bf16.msra.mxu1 %v3607_v16  ;;  %2447 = vmatpush.bf16.msra.mxu2 %v3688_v1  ;;  %v2243_v16 = vld [vmem:[#allocation2 + $0x90] sm:$0xff] }
 0x4b8   :  { %v3379_v21 = vpop.eup %3378 }
 0x4b9   :  { %v2238_v27 = vmul.f32 %v3379_v21, %v2237_v60  ;;  %2421 = vmatpush.bf16.msra.mxu0 %v3621_v26  ;;  %v2247_v26 = vunpack.c.l.bf16 %v2243_v16  ;;  %v2255_v60 = vunpack.c.l.bf16 %v2246_v31 }
 0x4ba   :  { %2435 = vmatpush.bf16.msra.mxu1 %v3623_v30  ;;  %2448 = vmatpush.bf16.msra.mxu2 %v3704_v36  ;;  %v2248_v30 = vunpack.c.h.bf16 %v2243_v16 }
 0x4bb   :  { %v4278_v52 = vadd.f32 %v2239_v17, %v2238_v27 }
 0x4bd   :  { %3143 = vst [vmem:[%s4368_s6 + $0x28] sm:$0xff] %v4278_v52  ;;  %v2299_v12 = vpack.c.bf16 %v4278_v52, %v4278_v52  ;;  %2422 = vmatpush.bf16.msra.mxu0 %v3633_v40  ;;  %v2250_v40 = vadd.f32 %v2247_v26, %v4512_v49  ;;  %v2258_v26 = vadd.f32 %v2255_v60, %v3884_v43 }
 0x4be   :  { %2436 = vmatpush.bf16.msra.mxu1 %v3635_v45  ;;  %2449 = vmatpush.bf16.msra.mxu2 %v3715_v2  ;;  %v2251_v45 = vadd.f32 %v2248_v30, %v4513_v15 }
 0x4bf   :  { %2308 = vmatmul.bf16.vlgmr.msra.gmra.mxu3 %v2299_v12 }
 0x4c0   :  { %2460 = vmatpush.bf16.msra.mxu3 %v3701_v24 }
 0x4c1   :  { %2423 = vmatpush.bf16.msra.mxu0 %v3649_v58 }
 0x4c2   :  { %2437 = vmatpush.bf16.msra.mxu1 %v3651_v63  ;;  %2450 = vmatpush.bf16.msra.mxu2 %v3725_v50 }
 0x4c4   :  { %2461 = vmatpush.bf16.msra.mxu3 %v3709_v57  ;;  %2321 = vmatmul.bf16.vlgmr.msrb.gmra.mxu0 %v2299_v12  ;;  %v2245_v57 = vld [vmem:[#allocation2 + $0x24] sm:$0xff] }
 0x4c5   :  { %2334 = vmatmul.bf16.vlgmr.msrb.gmra.mxu1 %v2299_v12  ;;  %2424 = vmatpush.bf16.msra.mxu0 %v3669_v23  ;;  %v2253_v2 = vunpack.c.l.bf16 %v2245_v57 }
 0x4c6   :  { %2438 = vmatpush.bf16.msra.mxu1 %v3671_v29  ;;  %2451 = vmatpush.bf16.msra.mxu2 %v3738_v33 }
 0x4c8   :  { %2462 = vmatpush.bf16.msra.mxu3 %v3720_v6  ;;  %v2254_v6 = vunpack.c.h.bf16 %v2245_v57 }
 0x4c9   :  { %2425 = vmatpush.bf16.msra.mxu0 %v3693_v4 }
 0x4ca   :  { %2439 = vmatpush.bf16.msra.mxu1 %v3695_v9  ;;  %2452 = vmatpush.bf16.msra.mxu2 %v3747_v37  ;;  %v2256_v37 = vadd.f32 %v2253_v2, %v4498_v32 }
 0x4cc   :  { %2463 = vmatpush.bf16.msra.mxu3 %v3734_v20 }
 0x4cd   :  { %2426 = vmatpush.bf16.msra.mxu0 %v3711_v38  ;;  %v2244_v38 = vld [vmem:[#allocation2 + $0x98] sm:$0xf] }
 0x4ce   :  { %2440 = vmatpush.bf16.msra.mxu1 %v3713_v62  ;;  %2453 = vmatpush.bf16.msra.mxu2 %v3755_v39  ;;  %v2249_v50 = vunpack.c.l.bf16 %v2244_v38 }
 0x4d0   :  { %2464 = vmatpush.bf16.msra.mxu3 %v3743_v34  ;;  %v2252_v39 = vadd.f32 %v2249_v50, %v3865_v11  ;;  %v2379_v50 = vld [vmem:[#allocation2 + $0xc] sm:$0xff] }
 0x4d1   :  { %2427 = vmatpush.bf16.msra.mxu0 %v3723_v25 }
 0x4d2   :  { %2441 = vmatpush.bf16.msra.mxu1 %v3728_v54  ;;  %2454 = vmatpush.bf16.msra.mxu2 %v3763_v48 }
 0x4d4   :  { %2465 = vmatpush.bf16.msra.mxu3 %v3751_v59  ;;  %v2257_v59 = vadd.f32 %v2254_v6, %v4514_v41 }
 0x4d8   :  { %2466 = vmatpush.bf16.msra.mxu3 %v4500_v44 }
 0x4dc   :  { %2467 = vmatpush.bf16.msra.mxu3 %v4503_v8 }
 0x531   :  { %v2269_v58 = vpop.f32.mrf.mxu0  ;;  %v2282_v63 = vpop.f32.mrf.mxu1 }
 0x532   :  { %v2339_v23 = vadd.f32 %v2269_v58, %v2250_v40  ;;  %v2344_v29 = vadd.f32 %v2282_v63, %v2251_v45 }
 0x534   :  { %v2340_v1 = vmul.f32 0.5, %v2339_v23  ;;  %v2345_v4 = vmul.f32 0.5, %v2344_v29 }
 0x536   :  { %3380 = vtanh.f32 %v2340_v1 }
 0x537   :  { %3382 = vtanh.f32 %v2345_v4 }
 0x538   :  { %v2295_v9 = vpop.f32.mrf.mxu2 }
 0x539   :  { %v2271_v24 = vpop.f32.mrf.mxu0  ;;  %v2284_v36 = vpop.f32.mrf.mxu1  ;;  %v2349_v33 = vadd.f32 %v4177_v28, %v2295_v9  ;;  %v2377_v9 = vld [vmem:[#allocation2 + $0xa8] sm:$0xff] }
 0x53a   :  { %v2381_v36 = vunpack.c.l.bf16 %v2377_v9  ;;  %v2382_v57 = vunpack.c.h.bf16 %v2377_v9 }
 0x53c   :  { %v3381_v62 = vpop.eup %3380  ;;  %v2385_v38 = vadd.f32 %v2382_v57, %v4513_v15  ;;  %v2388_v15 = vunpack.c.h.bf16 %v2379_v50 }
 0x53d   :  { %v2342_v25 = vmul.f32 0.5, %v3381_v62  ;;  %v3383_v54 = vpop.eup %3382 }
 0x53e   :  { %v2347_v8 = vmul.f32 0.5, %v3383_v54 }
 0x53f   :  { %v2343_v20 = vadd.f32 0.5, %v2342_v25 }
 0x540   :  { %v2297_v34 = vpop.f32.mrf.mxu2  ;;  %v2348_v0 = vadd.f32 0.5, %v2347_v8 }
 0x541   :  { %v2350_v48 = vmul.f32 %v2349_v33, %v2343_v20  ;;  %v2322_v44 = vpop.f32.mrf.mxu0  ;;  %v2387_v34 = vunpack.c.l.bf16 %v2379_v50 }
 0x542   :  { %v2309_v51 = vpop.f32.mrf.mxu3  ;;  %v2362_v5 = vadd.f32 %v2322_v44, %v2257_v59  ;;  %v2335_v53 = vpop.f32.mrf.mxu1  ;;  %v2353_v42 = vsub.f32 1.0, %v2348_v0  ;;  %v2355_v55 = vmul.f32 %v2348_v0, %v4265_v56 }
 0x543   :  { %v2357_v19 = vadd.f32 %v2309_v51, %v2256_v37  ;;  %v2351_v7 = vadd.f32 %v2350_v48, %v2252_v39  ;;  %v2367_v12 = vadd.f32 %v4189_v13, %v2335_v53  ;;  %v2378_v39 = vld [vmem:[#allocation2 + $0xb0] sm:$0xf]  ;;  %v2390_v48 = vadd.f32 %v2387_v34, %v4498_v32 }
 0x544   :  { %v2363_v47 = vmul.f32 0.5, %v2362_v5  ;;  %v2383_v8 = vunpack.c.l.bf16 %v2378_v39 }
 0x545   :  { %v2358_v18 = vmul.f32 0.5, %v2357_v19  ;;  %3384 = vtanh.f32 %v2351_v7 }
 0x546   :  { %v2386_v0 = vadd.f32 %v2383_v8, %v3865_v11 }
 0x547   :  { %3386 = vtanh.f32 %v2358_v18 }
 0x548   :  { %3388 = vtanh.f32 %v2363_v47  ;;  %v2391_v47 = vadd.f32 %v2388_v15, %v4514_v41 }
 0x549   :  { %v2324_v10 = vpop.f32.mrf.mxu0 }
 0x54a   :  { %v2311_v46 = vpop.f32.mrf.mxu3  ;;  %v2337_v61 = vpop.f32.mrf.mxu1 }
 0x54b   :  { %v3385_v3 = vpop.eup %3384 }
 0x54c   :  { %v2354_v35 = vmul.f32 %v3385_v3, %v2353_v42 }
 0x54d   :  { %v3387_v14 = vpop.eup %3386 }
 0x54e   :  { %v2360_v22 = vmul.f32 0.5, %v3387_v14  ;;  %v4321_v21 = vadd.f32 %v2355_v55, %v2354_v35  ;;  %v3389_v17 = vpop.eup %3388  ;;  %v2380_v55 = vld [vmem:[#allocation2 + $0x14] sm:$0xf] }
 0x54f   :  { %v2365_v30 = vmul.f32 0.5, %v3389_v17  ;;  %v2389_v60 = vunpack.c.l.bf16 %v2380_v55 }
 0x550   :  { %v2361_v27 = vadd.f32 0.5, %v2360_v22  ;;  %3144 = vst [vmem:[%s4368_s6 + $0x60] sm:$0xff] %v4321_v21  ;;  %v2393_v16 = vpack.c.bf16 %v4321_v21, %v4321_v21 }
 0x551   :  { %v2366_v45 = vadd.f32 0.5, %v2365_v30 }
 0x552   :  { %v2368_v56 = vmul.f32 %v2367_v12, %v2361_v27  ;;  %2402 = vmatmul.bf16.vlgmr.msrb.gmra.mxu2 %v2393_v16  ;;  %2415 = vmatmul.bf16.vlgmr.msrb.gmra.mxu3 %v2393_v16 }
 0x553   :  { %2428 = vmatmul.bf16.vlgmr.msra.gmra.mxu0 %v2393_v16  ;;  %v2371_v58 = vsub.f32 1.0, %v2366_v45  ;;  %v2373_v23 = vmul.f32 %v2366_v45, %v4278_v52  ;;  %v2384_v52 = vadd.f32 %v2381_v36, %v4512_v49 }
 0x554   :  { %v2369_v40 = vadd.f32 %v2368_v56, %v2258_v26  ;;  %v2392_v26 = vadd.f32 %v2389_v60, %v3884_v43 }
 0x556   :  { %3390 = vtanh.f32 %v2369_v40 }
 0x55c   :  { %v3391_v63 = vpop.eup %3390 }
 0x55d   :  { %v2372_v29 = vmul.f32 %v3391_v63, %v2371_v58 }
 0x55f   :  { %v4332_v1 = vadd.f32 %v2373_v23, %v2372_v29 }
 0x561   :  { %3145 = vst [vmem:[%s4368_s6 + $0x18] sm:$0xff] %v4332_v1  ;;  %v2433_v4 = vpack.c.bf16 %v4332_v1, %v4332_v1 }
 0x563   :  { %2442 = vmatmul.bf16.vlgmr.msra.gmra.mxu1 %v2433_v4  ;;  %2455 = vmatmul.bf16.vlgmr.msra.gmra.mxu2 %v2433_v4 }
 0x564   :  { %2468 = vmatmul.bf16.vlgmr.msra.gmra.mxu3 %v2433_v4 }
 0x5d0   :  { %v2429_v24 = vpop.f32.mrf.mxu0 }
 0x5d1   :  { %v2483_v7 = vadd.f32 %v4177_v28, %v2429_v24 }
 0x5d5   :  { %v2403_v62 = vpop.f32.mrf.mxu2  ;;  %v2416_v2 = vpop.f32.mrf.mxu3 }
 0x5d6   :  { %v2473_v6 = vadd.f32 %v2403_v62, %v2384_v52  ;;  %v2478_v25 = vadd.f32 %v2416_v2, %v2385_v38 }
 0x5d8   :  { %v2474_v54 = vmul.f32 0.5, %v2473_v6  ;;  %v2431_v20 = vpop.f32.mrf.mxu0  ;;  %v2479_v33 = vmul.f32 0.5, %v2478_v25 }
 0x5da   :  { %3392 = vtanh.f32 %v2474_v54 }
 0x5db   :  { %3394 = vtanh.f32 %v2479_v33 }
 0x5dd   :  { %v2405_v37 = vpop.f32.mrf.mxu2  ;;  %v2418_v59 = vpop.f32.mrf.mxu3 }
 0x5e0   :  { %v2443_v51 = vpop.f32.mrf.mxu1  ;;  %v3393_v49 = vpop.eup %3392 }
 0x5e1   :  { %v2491_v44 = vadd.f32 %v2443_v51, %v2390_v48  ;;  %v2476_v19 = vmul.f32 0.5, %v3393_v49  ;;  %v3395_v53 = vpop.eup %3394 }
 0x5e2   :  { %v2481_v42 = vmul.f32 0.5, %v3395_v53 }
 0x5e3   :  { %v2492_v5 = vmul.f32 0.5, %v2491_v44  ;;  %v2477_v18 = vadd.f32 0.5, %v2476_v19 }
 0x5e4   :  { %v2482_v22 = vadd.f32 0.5, %v2481_v42 }
 0x5e5   :  { %3396 = vtanh.f32 %v2492_v5  ;;  %v2484_v46 = vmul.f32 %v2483_v7, %v2477_v18 }
 0x5e6   :  { %v2456_v10 = vpop.f32.mrf.mxu2  ;;  %v2487_v11 = vsub.f32 1.0, %v2482_v22  ;;  %v2489_v45 = vmul.f32 %v2482_v22, %v4321_v21 }
 0x5e7   :  { %v2496_v32 = vadd.f32 %v2456_v10, %v2391_v47  ;;  %v2469_v31 = vpop.f32.mrf.mxu3  ;;  %v2485_v61 = vadd.f32 %v2484_v46, %v2386_v0 }
 0x5e8   :  { %v2445_v3 = vpop.f32.mrf.mxu1  ;;  %v2501_v41 = vadd.f32 %v4189_v13, %v2469_v31 }
 0x5e9   :  { %v2497_v14 = vmul.f32 0.5, %v2496_v32  ;;  %3398 = vtanh.f32 %v2485_v61 }
 0x5eb   :  { %v3397_v35 = vpop.eup %3396  ;;  %3400 = vtanh.f32 %v2497_v14 }
 0x5ec   :  { %v2494_v28 = vmul.f32 0.5, %v3397_v35 }
 0x5ee   :  { %v2495_v17 = vadd.f32 0.5, %v2494_v28  ;;  %v2458_v27 = vpop.f32.mrf.mxu2 }
 0x5ef   :  { %v2471_v12 = vpop.f32.mrf.mxu3  ;;  %v3399_v16 = vpop.eup %3398 }
 0x5f0   :  { %v2502_v56 = vmul.f32 %v2501_v41, %v2495_v17  ;;  %v2488_v40 = vmul.f32 %v3399_v16, %v2487_v11 }
 0x5f1   :  { %v3401_v30 = vpop.eup %3400 }
 0x5f2   :  { %v2499_v58 = vmul.f32 0.5, %v3401_v30  ;;  %v2503_v63 = vadd.f32 %v2502_v56, %v2392_v26  ;;  %v2490_v23 = vadd.f32 %v2489_v45, %v2488_v40 }
 0x5f4   :  { %v2500_v29 = vadd.f32 0.5, %v2499_v58  ;;  %3402 = vtanh.f32 %v2503_v63  ;;  %3146 = vst [vmem:[%s4368_s6 + $0x70] sm:$0xff] %v2490_v23 }
 0x5f5   :  { %2511 = vst [vmem:[%s4369_s7] sm:$0xff] %v2490_v23 }
 0x5f6   :  { %v2505_v13 = vsub.f32 1.0, %v2500_v29  ;;  %v2507_v4 = vmul.f32 %v2500_v29, %v4332_v1 }
 0x5fa   :  { %v3403_v43 = vpop.eup %3402 }
 0x5fb   :  { %v2506_v9 = vmul.f32 %v3403_v43, %v2505_v13 }
 0x5fd   :  { %v2508_v24 = vadd.f32 %v2507_v4, %v2506_v9 }
 0x5ff   :  { %2510 = vst [vmem:[%s4368_s6 + $0x8] sm:$0xff] %v2508_v24 }
 0x600   :  { %3147 = vst [vmem:[%s4369_s7 + $0x8] sm:$0xff] %v2508_v24 }
 0x601   :  { %2522 = vsyncpa [#allocation4], 1 }
 0x602   :  { %2523 = vsyncpa [#allocation6], 1 }

</bundles_post_ra>
